<compile_context>
chip_gen: v5e
topology: v5e:2x2
jax: 0.10.0
libtpu: 0.0.40
codegen_flags: <defaults>
</compile_context>

<pallas_src>
import functools

import jax
import jax.numpy as jnp
from jax.experimental import pallas as pl
from jax.experimental.pallas import tpu as pltpu

EPS = 1e-5  # PyTorch InstanceNorm2d default


def _instance_norm(y, gamma, beta):
    """y: (HW, C) f32, gamma/beta: (1, C) f32. Single-pass sum / sum-sq stats.

    # TODO(synk): switch to two-pass stats if HW grows large (E[x^2]-E[x]^2 precision).
    """
    inv_hw = 1.0 / y.shape[0]
    mean = jnp.sum(y, axis=0, keepdims=True) * inv_hw
    var = jnp.maximum(jnp.sum(y * y, axis=0, keepdims=True) * inv_hw - mean * mean, 0.0)
    scale = jax.lax.rsqrt(var + EPS) * gamma          # (1, C), broadcast once
    return (y - mean) * scale + beta


# ------------------------- fused per-sample kernel ----------------------------

def fused_resnext_kernel(rc_ref, x_ref, w1_ref, g1_ref, bt1_ref,
                         w2_ref, g2_ref, bt2_ref,
                         w3_ref, g3_ref, bt3_ref,
                         o_ref, *, H, W):
    # rc_ref : (HW, 2) int32  -- [:,0]=row index, [:,1]=col index of each spatial pos
    # x_ref  : (1, HW, Cin) f32      w1_ref: (Cin, C1) bf16
    # w2_ref : (9*C1, C2)   bf16 (tap-major, tap = ky*3+kx)
    # w3_ref : (C2, C3)     bf16
    # g*/bt* : (1, C*)      f32      o_ref : (1, HW, C3) f32
    HW = H * W
    C1 = w1_ref.shape[1]
    C2 = w2_ref.shape[1]

    # ---- conv1 (1x1) + IN + ReLU (conv bias dropped: cancelled by IN mean) ----
    y1 = jnp.dot(x_ref[0].astype(jnp.bfloat16), w1_ref[...],
                 preferred_element_type=jnp.float32)            # (HW, C1) f32
    h = jnp.maximum(_instance_norm(y1, g1_ref[...], bt1_ref[...]), 0.0)

    # ---- boundary masks (indices precomputed on host; no int div/mod in-kernel) ----
    row = rc_ref[:, 0:1]                                        # (HW, 1) int32
    col = rc_ref[:, 1:2]
    is_row0 = row == 0
    is_rowL = row == (H - 1)
    is_col0 = col == 0
    is_colL = col == (W - 1)

    # ---- 3x3 conv with reflection padding, built from XLU rolls of the flattened
    #      (HW, C1) activation; no padded / im2col scratch, no strided scatters. ----
    # np.roll semantics: roll(h, s)[p] = h[p - s]  (mod HW).
    up_src = pltpu.roll(h, W, axis=0)          # value at p - W (row above, interior)
    dn_src = pltpu.roll(h, HW - W, axis=0)     # value at p + W (row below, interior)
    v_list = (
        jnp.where(is_row0, dn_src, up_src),    # dy = -1 : row -1 reflects to row +1
        h,                                     # dy =  0
        jnp.where(is_rowL, up_src, dn_src),    # dy = +1 : row H reflects to row H-2
    )

    acc = jnp.zeros((HW, C2), jnp.float32)
    for iy, v in enumerate(v_list):
        prv = pltpu.roll(v, 1, axis=0)         # value at p - 1 (left neighbour, interior)
        nxt = pltpu.roll(v, HW - 1, axis=0)    # value at p + 1 (right neighbour, interior)
        taps = (
            jnp.where(is_col0, nxt, prv),      # dx = -1 : col -1 reflects to col +1
            v,                                 # dx =  0
            jnp.where(is_colL, prv, nxt),      # dx = +1 : col W reflects to col W-2
        )
        for ix, tap in enumerate(taps):
            t = iy * 3 + ix                    # tap index = ky*3 + kx
            acc += jnp.dot(tap.astype(jnp.bfloat16),
                           w2_ref[t * C1:(t + 1) * C1, :],
                           preferred_element_type=jnp.float32)  # (HW, C2)

    # ---- IN + ReLU ----
    y2 = jnp.maximum(_instance_norm(acc, g2_ref[...], bt2_ref[...]), 0.0)

    # ---- conv3 (1x1) + IN + residual add ----
    y3 = jnp.dot(y2.astype(jnp.bfloat16), w3_ref[...],
                 preferred_element_type=jnp.float32)            # (HW, C3)
    y3 = _instance_norm(y3, g3_ref[...], bt3_ref[...])
    o_ref[0] = y3 + x_ref[0]


# ------------------------------- wrappers --------------------------------------

def prepare_params(params):
    """One-time parameter prep (run once, OUTSIDE the per-call jit).

    Drops conv biases (cancelled by the following InstanceNorm mean subtraction),
    casts weights to MXU-native bf16 and reshapes w2 (HWIO) tap-major to (9*C1, C2).
    NOTE: real PyTorch Conv2d weights are OIHW; convert with w.transpose(2, 3, 1, 0)
    to HWIO before calling this.
    """
    (w1, b1, g1, bt1, w2, b2, g2, bt2, w3, b3, g3, bt3) = params
    del b1, b2, b3
    kh, kw, c1, c2 = w2.shape
    return (w1.astype(jnp.bfloat16),
            g1.astype(jnp.float32), bt1.astype(jnp.float32),
            w2.reshape(kh * kw * c1, c2).astype(jnp.bfloat16),
            g2.astype(jnp.float32), bt2.astype(jnp.float32),
            w3.astype(jnp.bfloat16),
            g3.astype(jnp.float32), bt3.astype(jnp.float32))


@jax.jit
def resnext_forward_nhwc(x_nhwc, prepared):
    """Core forward on NHWC activations (call this directly to skip NCHW transposes)."""
    (w1b, g1, bt1, w2b, g2, bt2, w3b, g3, bt3) = prepared
    N, H, W, Cin = x_nhwc.shape
    C1 = w1b.shape[1]
    C2 = w2b.shape[1]
    C3 = w3b.shape[1]
    HW = H * W
    x_flat = x_nhwc.reshape(N, HW, Cin).astype(jnp.float32)

    # Precomputed (row, col) indices for boundary masks (constant, 2 KiB).
    rows = jnp.repeat(jnp.arange(H, dtype=jnp.int32), W)
    cols = jnp.tile(jnp.arange(W, dtype=jnp.int32), H)
    rc = jnp.stack([rows, cols], axis=1)                        # (HW, 2) int32

    kernel = functools.partial(fused_resnext_kernel, H=H, W=W)

    out = pl.pallas_call(
        kernel,
        out_shape=jax.ShapeDtypeStruct((N, HW, C3), jnp.float32),
        grid=(N,),
        in_specs=[
            pl.BlockSpec((HW, 2), lambda n: (0, 0)),
            pl.BlockSpec((1, HW, Cin), lambda n: (n, 0, 0)),
            pl.BlockSpec((Cin, C1), lambda n: (0, 0)),
            pl.BlockSpec((1, C1), lambda n: (0, 0)),
            pl.BlockSpec((1, C1), lambda n: (0, 0)),
            pl.BlockSpec((9 * C1, C2), lambda n: (0, 0)),
            pl.BlockSpec((1, C2), lambda n: (0, 0)),
            pl.BlockSpec((1, C2), lambda n: (0, 0)),
            pl.BlockSpec((C2, C3), lambda n: (0, 0)),
            pl.BlockSpec((1, C3), lambda n: (0, 0)),
            pl.BlockSpec((1, C3), lambda n: (0, 0)),
        ],
        out_specs=pl.BlockSpec((1, HW, C3), lambda n: (n, 0, 0)),
        compiler_params=pltpu.CompilerParams(
            dimension_semantics=("parallel",),   # batch axis -> both TCs on v7x (keep N>=2, even)
            vmem_limit_bytes=32 * 1024 * 1024,
        ),
    )(rc, x_flat, w1b, g1, bt1, w2b, g2, bt2, w3b, g3, bt3)

    return out.reshape(N, H, W, C3)


@jax.jit
def resnext_forward(x_nchw, prepared):
    """NCHW (PyTorch-convention) wrapper around the NHWC core."""
    x = jnp.transpose(x_nchw, (0, 2, 3, 1))
    y = resnext_forward_nhwc(x, prepared)
    return jnp.transpose(y, (0, 3, 1, 2))


# ---------------------------- pure-JAX reference -------------------------------

@jax.jit
def reference_forward(x_nchw, params):
    (w1, b1, g1, bt1, w2, b2, g2, bt2, w3, b3, g3, bt3) = params
    x = jnp.transpose(x_nchw, (0, 2, 3, 1)).astype(jnp.float32)
    hi = jax.lax.Precision.HIGHEST

    def inorm(y, g, b):
        mean = jnp.mean(y, axis=(1, 2), keepdims=True)
        var = jnp.mean((y - mean) ** 2, axis=(1, 2), keepdims=True)
        return (y - mean) / jnp.sqrt(var + EPS) * g + b

    y = jnp.einsum("nhwc,cd->nhwd", x, w1, precision=hi) + b1[0]
    y = jnp.maximum(inorm(y, g1[0], bt1[0]), 0.0)

    yp = jnp.pad(y, ((0, 0), (1, 1), (1, 1), (0, 0)), mode="reflect")
    y2 = jax.lax.conv_general_dilated(
        yp, w2, window_strides=(1, 1), padding="VALID",
        dimension_numbers=("NHWC", "HWIO", "NHWC"), precision=hi) + b2[0]
    y2 = jnp.maximum(inorm(y2, g2[0], bt2[0]), 0.0)

    y3 = jnp.einsum("nhwc,cd->nhwd", y2, w3, precision=hi) + b3[0]
    y3 = inorm(y3, g3[0], bt3[0]) + x
    return jnp.transpose(y3, (0, 3, 1, 2))


# ----------------------------------- main ---------------------------------------

if __name__ == "__main__":
    # Module-default channel config (in_ch=128, channels=[64, 64, 128]); small
    # spatial/batch keeps the test fast.  Residual needs C3 == Cin.
    N, Cin, H, W = 2, 128, 16, 16
    C1, C2, C3 = 64, 64, 128

    key = jax.random.PRNGKey(0)
    ks = jax.random.split(key, 16)

    w1 = 0.2 * jax.random.normal(ks[0], (Cin, C1), jnp.float32)
    b1 = 0.1 * jax.random.normal(ks[1], (1, C1), jnp.float32)
    g1 = 1.0 + 0.1 * jax.random.normal(ks[2], (1, C1), jnp.float32)
    bt1 = 0.1 * jax.random.normal(ks[3], (1, C1), jnp.float32)

    w2 = 0.2 * jax.random.normal(ks[4], (3, 3, C1, C2), jnp.float32)   # HWIO
    b2 = 0.1 * jax.random.normal(ks[5], (1, C2), jnp.float32)
    g2 = 1.0 + 0.1 * jax.random.normal(ks[6], (1, C2), jnp.float32)
    bt2 = 0.1 * jax.random.normal(ks[7], (1, C2), jnp.float32)

    w3 = 0.2 * jax.random.normal(ks[8], (C2, C3), jnp.float32)
    b3 = 0.1 * jax.random.normal(ks[9], (1, C3), jnp.float32)
    g3 = 1.0 + 0.1 * jax.random.normal(ks[10], (1, C3), jnp.float32)
    bt3 = 0.1 * jax.random.normal(ks[11], (1, C3), jnp.float32)

    params = (w1, b1, g1, bt1, w2, b2, g2, bt2, w3, b3, g3, bt3)
    prepared = prepare_params(params)        # one-time prep, outside the jitted forward

    x = jax.random.normal(ks[12], (N, Cin, H, W), jnp.float32)  # NCHW input

    out = jax.block_until_ready(resnext_forward(x, prepared))
    ref = jax.block_until_ready(reference_forward(x, params))

    assert out.shape == (N, C3, H, W), out.shape
    # Kernel uses bf16 MXU inputs (f32 accumulation/statistics) -> looser tolerance vs f32 ref.
    max_err = float(jnp.max(jnp.abs(out - ref)))
    assert jnp.allclose(out, ref, rtol=3e-2, atol=3e-2), max_err
    print("KERNEL_OK")
</pallas_src>

<mosaic_0001>
module attributes {stable_mosaic.version = 11 : i64} {
  func.func @fused_resnext_kernel(%arg0: i32, %arg1: memref<256x2xi32, #tpu.memory_space<vmem>>, %arg2: memref<1x256x128xf32, #tpu.memory_space<vmem>>, %arg3: memref<128x64xbf16, #tpu.memory_space<vmem>>, %arg4: memref<1x64xf32, #tpu.memory_space<vmem>>, %arg5: memref<1x64xf32, #tpu.memory_space<vmem>>, %arg6: memref<576x64xbf16, #tpu.memory_space<vmem>>, %arg7: memref<1x64xf32, #tpu.memory_space<vmem>>, %arg8: memref<1x64xf32, #tpu.memory_space<vmem>>, %arg9: memref<64x128xbf16, #tpu.memory_space<vmem>>, %arg10: memref<1x128xf32, #tpu.memory_space<vmem>>, %arg11: memref<1x128xf32, #tpu.memory_space<vmem>>, %arg12: memref<1x256x128xf32, #tpu.memory_space<vmem>>) attributes {dimension_semantics = [#tpu.dimension_semantics<parallel>], iteration_bounds = array<i64: 2>, scalar_prefetch = 0 : i64, scratch_operands = 0 : i64, tpu.core_type = #tpu.core_type<tc>, window_params = [{pipeline_mode = #tpu.pipeline_mode<synchronous>, transform_indices = @transform_0, window_bounds = array<i64: 256, 2>}, {transform_indices = @transform_1, window_bounds = array<i64: 1, 256, 128>}, {pipeline_mode = #tpu.pipeline_mode<synchronous>, transform_indices = @transform_2, window_bounds = array<i64: 128, 64>}, {pipeline_mode = #tpu.pipeline_mode<synchronous>, transform_indices = @transform_3, window_bounds = array<i64: 1, 64>}, {pipeline_mode = #tpu.pipeline_mode<synchronous>, transform_indices = @transform_4, window_bounds = array<i64: 1, 64>}, {pipeline_mode = #tpu.pipeline_mode<synchronous>, transform_indices = @transform_5, window_bounds = array<i64: 576, 64>}, {pipeline_mode = #tpu.pipeline_mode<synchronous>, transform_indices = @transform_6, window_bounds = array<i64: 1, 64>}, {pipeline_mode = #tpu.pipeline_mode<synchronous>, transform_indices = @transform_7, window_bounds = array<i64: 1, 64>}, {pipeline_mode = #tpu.pipeline_mode<synchronous>, transform_indices = @transform_8, window_bounds = array<i64: 64, 128>}, {pipeline_mode = #tpu.pipeline_mode<synchronous>, transform_indices = @transform_9, window_bounds = array<i64: 1, 128>}, {pipeline_mode = #tpu.pipeline_mode<synchronous>, transform_indices = @transform_10, window_bounds = array<i64: 1, 128>}, {transform_indices = @transform_11, window_bounds = array<i64: 1, 256, 128>}]} {
    %c0 = arith.constant 0 : index
    %c0_0 = arith.constant 0 : index
    %c0_1 = arith.constant 0 : index
    %0 = vector.load %arg2[%c0, %c0_0, %c0_1] : memref<1x256x128xf32, #tpu.memory_space<vmem>>, vector<1x256x128xf32>
    %1 = vector.shape_cast %0 : vector<1x256x128xf32> to vector<256x128xf32>
    %2 = arith.truncf %1 : vector<256x128xf32> to vector<256x128xbf16>
    %c0_2 = arith.constant 0 : index
    %c0_3 = arith.constant 0 : index
    %3 = vector.load %arg3[%c0_2, %c0_3] : memref<128x64xbf16, #tpu.memory_space<vmem>>, vector<128x64xbf16>
    %cst = arith.constant dense<0.000000e+00> : vector<256x64xf32>
    %4 = tpu.matmul %2, %3, %cst {dimension_numbers = #tpu.dot_dimension_numbers<[1], [0], [0], [1], [0, 0, 1, 1], [], []>} : vector<256x128xbf16>, vector<128x64xbf16>, vector<256x64xf32> -> vector<256x64xf32>
    %c0_4 = arith.constant 0 : index
    %c0_5 = arith.constant 0 : index
    %5 = vector.load %arg4[%c0_4, %c0_5] : memref<1x64xf32, #tpu.memory_space<vmem>>, vector<1x64xf32>
    %c0_6 = arith.constant 0 : index
    %c0_7 = arith.constant 0 : index
    %6 = vector.load %arg5[%c0_6, %c0_7] : memref<1x64xf32, #tpu.memory_space<vmem>>, vector<1x64xf32>
    %cst_8 = arith.constant dense<0.000000e+00> : vector<64xf32>
    %7 = vector.multi_reduction <add>, %4, %cst_8 [0] : vector<256x64xf32> to vector<64xf32>
    %8 = vector.shape_cast %7 : vector<64xf32> to vector<1x64xf32>
    %cst_9 = arith.constant 3.906250e-03 : f32
    %9 = vector.broadcast %cst_9 : f32 to vector<1x64xf32>
    %10 = arith.mulf %8, %9 : vector<1x64xf32>
    %11 = arith.mulf %4, %4 : vector<256x64xf32>
    %cst_10 = arith.constant dense<0.000000e+00> : vector<64xf32>
    %12 = vector.multi_reduction <add>, %11, %cst_10 [0] : vector<256x64xf32> to vector<64xf32>
    %13 = vector.shape_cast %12 : vector<64xf32> to vector<1x64xf32>
    %cst_11 = arith.constant 3.906250e-03 : f32
    %14 = vector.broadcast %cst_11 : f32 to vector<1x64xf32>
    %15 = arith.mulf %13, %14 : vector<1x64xf32>
    %16 = arith.mulf %10, %10 : vector<1x64xf32>
    %17 = arith.subf %15, %16 : vector<1x64xf32>
    %cst_12 = arith.constant 0.000000e+00 : f32
    %18 = vector.broadcast %cst_12 : f32 to vector<1x64xf32>
    %19 = arith.maximumf %17, %18 : vector<1x64xf32>
    %cst_13 = arith.constant 9.99999974E-6 : f32
    %20 = vector.broadcast %cst_13 : f32 to vector<1x64xf32>
    %21 = arith.addf %19, %20 : vector<1x64xf32>
    %22 = math.rsqrt %21 : vector<1x64xf32>
    %23 = arith.mulf %22, %5 : vector<1x64xf32>
    %24 = vector.broadcast %10 : vector<1x64xf32> to vector<256x64xf32>
    %25 = arith.subf %4, %24 : vector<256x64xf32>
    %26 = vector.broadcast %23 : vector<1x64xf32> to vector<256x64xf32>
    %27 = arith.mulf %25, %26 : vector<256x64xf32>
    %28 = vector.broadcast %6 : vector<1x64xf32> to vector<256x64xf32>
    %29 = arith.addf %27, %28 : vector<256x64xf32>
    %cst_14 = arith.constant 0.000000e+00 : f32
    %30 = vector.broadcast %cst_14 : f32 to vector<256x64xf32>
    %31 = arith.maximumf %29, %30 : vector<256x64xf32>
    %c0_15 = arith.constant 0 : index
    %c0_16 = arith.constant 0 : index
    %32 = vector.load %arg1[%c0_15, %c0_16] : memref<256x2xi32, #tpu.memory_space<vmem>>, vector<256x1xi32>
    %c0_17 = arith.constant 0 : index
    %c1 = arith.constant 1 : index
    %33 = vector.load %arg1[%c0_17, %c1] : memref<256x2xi32, #tpu.memory_space<vmem>>, vector<256x1xi32>
    %c0_i32 = arith.constant 0 : i32
    %34 = vector.broadcast %c0_i32 : i32 to vector<256x1xi32>
    %35 = arith.cmpi eq, %32, %34 : vector<256x1xi32>
    %c15_i32 = arith.constant 15 : i32
    %36 = vector.broadcast %c15_i32 : i32 to vector<256x1xi32>
    %37 = arith.cmpi eq, %32, %36 : vector<256x1xi32>
    %c0_i32_18 = arith.constant 0 : i32
    %38 = vector.broadcast %c0_i32_18 : i32 to vector<256x1xi32>
    %39 = arith.cmpi eq, %33, %38 : vector<256x1xi32>
    %c15_i32_19 = arith.constant 15 : i32
    %40 = vector.broadcast %c15_i32_19 : i32 to vector<256x1xi32>
    %41 = arith.cmpi eq, %33, %40 : vector<256x1xi32>
    %c16_i32 = arith.constant 16 : i32
    %42 = tpu.dynamic_rotate %31 by %c16_i32 dim 0 : vector<256x64xf32>, i32 -> vector<256x64xf32>
    %c240_i32 = arith.constant 240 : i32
    %43 = tpu.dynamic_rotate %31 by %c240_i32 dim 0 : vector<256x64xf32>, i32 -> vector<256x64xf32>
    %44 = vector.shape_cast %35 : vector<256x1xi1> to vector<256x1xi1>
    %45 = vector.broadcast %44 : vector<256x1xi1> to vector<256x64xi1>
    %46 = arith.select %45, %43, %42 : vector<256x64xi1>, vector<256x64xf32>
    %47 = vector.shape_cast %37 : vector<256x1xi1> to vector<256x1xi1>
    %48 = vector.broadcast %47 : vector<256x1xi1> to vector<256x64xi1>
    %49 = arith.select %48, %42, %43 : vector<256x64xi1>, vector<256x64xf32>
    %cst_20 = arith.constant 0.000000e+00 : f32
    %50 = vector.broadcast %cst_20 : f32 to vector<256x64xf32>
    %c1_i32 = arith.constant 1 : i32
    %51 = tpu.dynamic_rotate %46 by %c1_i32 dim 0 : vector<256x64xf32>, i32 -> vector<256x64xf32>
    %c255_i32 = arith.constant 255 : i32
    %52 = tpu.dynamic_rotate %46 by %c255_i32 dim 0 : vector<256x64xf32>, i32 -> vector<256x64xf32>
    %53 = vector.shape_cast %39 : vector<256x1xi1> to vector<256x1xi1>
    %54 = vector.broadcast %53 : vector<256x1xi1> to vector<256x64xi1>
    %55 = arith.select %54, %52, %51 : vector<256x64xi1>, vector<256x64xf32>
    %56 = vector.shape_cast %41 : vector<256x1xi1> to vector<256x1xi1>
    %57 = vector.broadcast %56 : vector<256x1xi1> to vector<256x64xi1>
    %58 = arith.select %57, %51, %52 : vector<256x64xi1>, vector<256x64xf32>
    %59 = arith.truncf %55 : vector<256x64xf32> to vector<256x64xbf16>
    %c0_21 = arith.constant 0 : index
    %c0_22 = arith.constant 0 : index
    %60 = vector.load %arg6[%c0_21, %c0_22] : memref<576x64xbf16, #tpu.memory_space<vmem>>, vector<64x64xbf16>
    %cst_23 = arith.constant dense<0.000000e+00> : vector<256x64xf32>
    %61 = tpu.matmul %59, %60, %cst_23 {dimension_numbers = #tpu.dot_dimension_numbers<[1], [0], [0], [1], [0, 0, 1, 1], [], []>} : vector<256x64xbf16>, vector<64x64xbf16>, vector<256x64xf32> -> vector<256x64xf32>
    %62 = arith.addf %50, %61 : vector<256x64xf32>
    %63 = arith.truncf %46 : vector<256x64xf32> to vector<256x64xbf16>
    %c64 = arith.constant 64 : index
    %c0_24 = arith.constant 0 : index
    %64 = vector.load %arg6[%c64, %c0_24] : memref<576x64xbf16, #tpu.memory_space<vmem>>, vector<64x64xbf16>
    %cst_25 = arith.constant dense<0.000000e+00> : vector<256x64xf32>
    %65 = tpu.matmul %63, %64, %cst_25 {dimension_numbers = #tpu.dot_dimension_numbers<[1], [0], [0], [1], [0, 0, 1, 1], [], []>} : vector<256x64xbf16>, vector<64x64xbf16>, vector<256x64xf32> -> vector<256x64xf32>
    %66 = arith.addf %62, %65 : vector<256x64xf32>
    %67 = arith.truncf %58 : vector<256x64xf32> to vector<256x64xbf16>
    %c128 = arith.constant 128 : index
    %c0_26 = arith.constant 0 : index
    %68 = vector.load %arg6[%c128, %c0_26] : memref<576x64xbf16, #tpu.memory_space<vmem>>, vector<64x64xbf16>
    %cst_27 = arith.constant dense<0.000000e+00> : vector<256x64xf32>
    %69 = tpu.matmul %67, %68, %cst_27 {dimension_numbers = #tpu.dot_dimension_numbers<[1], [0], [0], [1], [0, 0, 1, 1], [], []>} : vector<256x64xbf16>, vector<64x64xbf16>, vector<256x64xf32> -> vector<256x64xf32>
    %70 = arith.addf %66, %69 : vector<256x64xf32>
    %c1_i32_28 = arith.constant 1 : i32
    %71 = tpu.dynamic_rotate %31 by %c1_i32_28 dim 0 : vector<256x64xf32>, i32 -> vector<256x64xf32>
    %c255_i32_29 = arith.constant 255 : i32
    %72 = tpu.dynamic_rotate %31 by %c255_i32_29 dim 0 : vector<256x64xf32>, i32 -> vector<256x64xf32>
    %73 = vector.shape_cast %39 : vector<256x1xi1> to vector<256x1xi1>
    %74 = vector.broadcast %73 : vector<256x1xi1> to vector<256x64xi1>
    %75 = arith.select %74, %72, %71 : vector<256x64xi1>, vector<256x64xf32>
    %76 = vector.shape_cast %41 : vector<256x1xi1> to vector<256x1xi1>
    %77 = vector.broadcast %76 : vector<256x1xi1> to vector<256x64xi1>
    %78 = arith.select %77, %71, %72 : vector<256x64xi1>, vector<256x64xf32>
    %79 = arith.truncf %75 : vector<256x64xf32> to vector<256x64xbf16>
    %c192 = arith.constant 192 : index
    %c0_30 = arith.constant 0 : index
    %80 = vector.load %arg6[%c192, %c0_30] : memref<576x64xbf16, #tpu.memory_space<vmem>>, vector<64x64xbf16>
    %cst_31 = arith.constant dense<0.000000e+00> : vector<256x64xf32>
    %81 = tpu.matmul %79, %80, %cst_31 {dimension_numbers = #tpu.dot_dimension_numbers<[1], [0], [0], [1], [0, 0, 1, 1], [], []>} : vector<256x64xbf16>, vector<64x64xbf16>, vector<256x64xf32> -> vector<256x64xf32>
    %82 = arith.addf %70, %81 : vector<256x64xf32>
    %83 = arith.truncf %31 : vector<256x64xf32> to vector<256x64xbf16>
    %c256 = arith.constant 256 : index
    %c0_32 = arith.constant 0 : index
    %84 = vector.load %arg6[%c256, %c0_32] : memref<576x64xbf16, #tpu.memory_space<vmem>>, vector<64x64xbf16>
    %cst_33 = arith.constant dense<0.000000e+00> : vector<256x64xf32>
    %85 = tpu.matmul %83, %84, %cst_33 {dimension_numbers = #tpu.dot_dimension_numbers<[1], [0], [0], [1], [0, 0, 1, 1], [], []>} : vector<256x64xbf16>, vector<64x64xbf16>, vector<256x64xf32> -> vector<256x64xf32>
    %86 = arith.addf %82, %85 : vector<256x64xf32>
    %87 = arith.truncf %78 : vector<256x64xf32> to vector<256x64xbf16>
    %c320 = arith.constant 320 : index
    %c0_34 = arith.constant 0 : index
    %88 = vector.load %arg6[%c320, %c0_34] : memref<576x64xbf16, #tpu.memory_space<vmem>>, vector<64x64xbf16>
    %cst_35 = arith.constant dense<0.000000e+00> : vector<256x64xf32>
    %89 = tpu.matmul %87, %88, %cst_35 {dimension_numbers = #tpu.dot_dimension_numbers<[1], [0], [0], [1], [0, 0, 1, 1], [], []>} : vector<256x64xbf16>, vector<64x64xbf16>, vector<256x64xf32> -> vector<256x64xf32>
    %90 = arith.addf %86, %89 : vector<256x64xf32>
    %c1_i32_36 = arith.constant 1 : i32
    %91 = tpu.dynamic_rotate %49 by %c1_i32_36 dim 0 : vector<256x64xf32>, i32 -> vector<256x64xf32>
    %c255_i32_37 = arith.constant 255 : i32
    %92 = tpu.dynamic_rotate %49 by %c255_i32_37 dim 0 : vector<256x64xf32>, i32 -> vector<256x64xf32>
    %93 = vector.shape_cast %39 : vector<256x1xi1> to vector<256x1xi1>
    %94 = vector.broadcast %93 : vector<256x1xi1> to vector<256x64xi1>
    %95 = arith.select %94, %92, %91 : vector<256x64xi1>, vector<256x64xf32>
    %96 = vector.shape_cast %41 : vector<256x1xi1> to vector<256x1xi1>
    %97 = vector.broadcast %96 : vector<256x1xi1> to vector<256x64xi1>
    %98 = arith.select %97, %91, %92 : vector<256x64xi1>, vector<256x64xf32>
    %99 = arith.truncf %95 : vector<256x64xf32> to vector<256x64xbf16>
    %c384 = arith.constant 384 : index
    %c0_38 = arith.constant 0 : index
    %100 = vector.load %arg6[%c384, %c0_38] : memref<576x64xbf16, #tpu.memory_space<vmem>>, vector<64x64xbf16>
    %cst_39 = arith.constant dense<0.000000e+00> : vector<256x64xf32>
    %101 = tpu.matmul %99, %100, %cst_39 {dimension_numbers = #tpu.dot_dimension_numbers<[1], [0], [0], [1], [0, 0, 1, 1], [], []>} : vector<256x64xbf16>, vector<64x64xbf16>, vector<256x64xf32> -> vector<256x64xf32>
    %102 = arith.addf %90, %101 : vector<256x64xf32>
    %103 = arith.truncf %49 : vector<256x64xf32> to vector<256x64xbf16>
    %c448 = arith.constant 448 : index
    %c0_40 = arith.constant 0 : index
    %104 = vector.load %arg6[%c448, %c0_40] : memref<576x64xbf16, #tpu.memory_space<vmem>>, vector<64x64xbf16>
    %cst_41 = arith.constant dense<0.000000e+00> : vector<256x64xf32>
    %105 = tpu.matmul %103, %104, %cst_41 {dimension_numbers = #tpu.dot_dimension_numbers<[1], [0], [0], [1], [0, 0, 1, 1], [], []>} : vector<256x64xbf16>, vector<64x64xbf16>, vector<256x64xf32> -> vector<256x64xf32>
    %106 = arith.addf %102, %105 : vector<256x64xf32>
    %107 = arith.truncf %98 : vector<256x64xf32> to vector<256x64xbf16>
    %c512 = arith.constant 512 : index
    %c0_42 = arith.constant 0 : index
    %108 = vector.load %arg6[%c512, %c0_42] : memref<576x64xbf16, #tpu.memory_space<vmem>>, vector<64x64xbf16>
    %cst_43 = arith.constant dense<0.000000e+00> : vector<256x64xf32>
    %109 = tpu.matmul %107, %108, %cst_43 {dimension_numbers = #tpu.dot_dimension_numbers<[1], [0], [0], [1], [0, 0, 1, 1], [], []>} : vector<256x64xbf16>, vector<64x64xbf16>, vector<256x64xf32> -> vector<256x64xf32>
    %110 = arith.addf %106, %109 : vector<256x64xf32>
    %c0_44 = arith.constant 0 : index
    %c0_45 = arith.constant 0 : index
    %111 = vector.load %arg7[%c0_44, %c0_45] : memref<1x64xf32, #tpu.memory_space<vmem>>, vector<1x64xf32>
    %c0_46 = arith.constant 0 : index
    %c0_47 = arith.constant 0 : index
    %112 = vector.load %arg8[%c0_46, %c0_47] : memref<1x64xf32, #tpu.memory_space<vmem>>, vector<1x64xf32>
    %cst_48 = arith.constant dense<0.000000e+00> : vector<64xf32>
    %113 = vector.multi_reduction <add>, %110, %cst_48 [0] : vector<256x64xf32> to vector<64xf32>
    %114 = vector.shape_cast %113 : vector<64xf32> to vector<1x64xf32>
    %cst_49 = arith.constant 3.906250e-03 : f32
    %115 = vector.broadcast %cst_49 : f32 to vector<1x64xf32>
    %116 = arith.mulf %114, %115 : vector<1x64xf32>
    %117 = arith.mulf %110, %110 : vector<256x64xf32>
    %cst_50 = arith.constant dense<0.000000e+00> : vector<64xf32>
    %118 = vector.multi_reduction <add>, %117, %cst_50 [0] : vector<256x64xf32> to vector<64xf32>
    %119 = vector.shape_cast %118 : vector<64xf32> to vector<1x64xf32>
    %cst_51 = arith.constant 3.906250e-03 : f32
    %120 = vector.broadcast %cst_51 : f32 to vector<1x64xf32>
    %121 = arith.mulf %119, %120 : vector<1x64xf32>
    %122 = arith.mulf %116, %116 : vector<1x64xf32>
    %123 = arith.subf %121, %122 : vector<1x64xf32>
    %cst_52 = arith.constant 0.000000e+00 : f32
    %124 = vector.broadcast %cst_52 : f32 to vector<1x64xf32>
    %125 = arith.maximumf %123, %124 : vector<1x64xf32>
    %cst_53 = arith.constant 9.99999974E-6 : f32
    %126 = vector.broadcast %cst_53 : f32 to vector<1x64xf32>
    %127 = arith.addf %125, %126 : vector<1x64xf32>
    %128 = math.rsqrt %127 : vector<1x64xf32>
    %129 = arith.mulf %128, %111 : vector<1x64xf32>
    %130 = vector.broadcast %116 : vector<1x64xf32> to vector<256x64xf32>
    %131 = arith.subf %110, %130 : vector<256x64xf32>
    %132 = vector.broadcast %129 : vector<1x64xf32> to vector<256x64xf32>
    %133 = arith.mulf %131, %132 : vector<256x64xf32>
    %134 = vector.broadcast %112 : vector<1x64xf32> to vector<256x64xf32>
    %135 = arith.addf %133, %134 : vector<256x64xf32>
    %cst_54 = arith.constant 0.000000e+00 : f32
    %136 = vector.broadcast %cst_54 : f32 to vector<256x64xf32>
    %137 = arith.maximumf %135, %136 : vector<256x64xf32>
    %138 = arith.truncf %137 : vector<256x64xf32> to vector<256x64xbf16>
    %c0_55 = arith.constant 0 : index
    %c0_56 = arith.constant 0 : index
    %139 = vector.load %arg9[%c0_55, %c0_56] : memref<64x128xbf16, #tpu.memory_space<vmem>>, vector<64x128xbf16>
    %cst_57 = arith.constant dense<0.000000e+00> : vector<256x128xf32>
    %140 = tpu.matmul %138, %139, %cst_57 {dimension_numbers = #tpu.dot_dimension_numbers<[1], [0], [0], [1], [0, 0, 1, 1], [], []>} : vector<256x64xbf16>, vector<64x128xbf16>, vector<256x128xf32> -> vector<256x128xf32>
    %c0_58 = arith.constant 0 : index
    %c0_59 = arith.constant 0 : index
    %141 = vector.load %arg10[%c0_58, %c0_59] : memref<1x128xf32, #tpu.memory_space<vmem>>, vector<1x128xf32>
    %c0_60 = arith.constant 0 : index
    %c0_61 = arith.constant 0 : index
    %142 = vector.load %arg11[%c0_60, %c0_61] : memref<1x128xf32, #tpu.memory_space<vmem>>, vector<1x128xf32>
    %cst_62 = arith.constant dense<0.000000e+00> : vector<128xf32>
    %143 = vector.multi_reduction <add>, %140, %cst_62 [0] : vector<256x128xf32> to vector<128xf32>
    %144 = vector.shape_cast %143 : vector<128xf32> to vector<1x128xf32>
    %cst_63 = arith.constant 3.906250e-03 : f32
    %145 = vector.broadcast %cst_63 : f32 to vector<1x128xf32>
    %146 = arith.mulf %144, %145 : vector<1x128xf32>
    %147 = arith.mulf %140, %140 : vector<256x128xf32>
    %cst_64 = arith.constant dense<0.000000e+00> : vector<128xf32>
    %148 = vector.multi_reduction <add>, %147, %cst_64 [0] : vector<256x128xf32> to vector<128xf32>
    %149 = vector.shape_cast %148 : vector<128xf32> to vector<1x128xf32>
    %cst_65 = arith.constant 3.906250e-03 : f32
    %150 = vector.broadcast %cst_65 : f32 to vector<1x128xf32>
    %151 = arith.mulf %149, %150 : vector<1x128xf32>
    %152 = arith.mulf %146, %146 : vector<1x128xf32>
    %153 = arith.subf %151, %152 : vector<1x128xf32>
    %cst_66 = arith.constant 0.000000e+00 : f32
    %154 = vector.broadcast %cst_66 : f32 to vector<1x128xf32>
    %155 = arith.maximumf %153, %154 : vector<1x128xf32>
    %cst_67 = arith.constant 9.99999974E-6 : f32
    %156 = vector.broadcast %cst_67 : f32 to vector<1x128xf32>
    %157 = arith.addf %155, %156 : vector<1x128xf32>
    %158 = math.rsqrt %157 : vector<1x128xf32>
    %159 = arith.mulf %158, %141 : vector<1x128xf32>
    %160 = vector.broadcast %146 : vector<1x128xf32> to vector<256x128xf32>
    %161 = arith.subf %140, %160 : vector<256x128xf32>
    %162 = vector.broadcast %159 : vector<1x128xf32> to vector<256x128xf32>
    %163 = arith.mulf %161, %162 : vector<256x128xf32>
    %164 = vector.broadcast %142 : vector<1x128xf32> to vector<256x128xf32>
    %165 = arith.addf %163, %164 : vector<256x128xf32>
    %c0_68 = arith.constant 0 : index
    %c0_69 = arith.constant 0 : index
    %c0_70 = arith.constant 0 : index
    %166 = vector.load %arg2[%c0_68, %c0_69, %c0_70] : memref<1x256x128xf32, #tpu.memory_space<vmem>>, vector<1x256x128xf32>
    %167 = vector.shape_cast %166 : vector<1x256x128xf32> to vector<256x128xf32>
    %168 = arith.addf %165, %167 : vector<256x128xf32>
    %c0_71 = arith.constant 0 : index
    %c0_72 = arith.constant 0 : index
    %c0_73 = arith.constant 0 : index
    %169 = vector.load %arg12[%c0_71, %c0_72, %c0_73] : memref<1x256x128xf32, #tpu.memory_space<vmem>>, vector<1x256x128xf32>
    %170 = vector.shape_cast %169 : vector<1x256x128xf32> to vector<256x128xf32>
    %171 = vector.shape_cast %168 : vector<256x128xf32> to vector<1x256x128xf32>
    tpu.vector_store %arg12[%c0_71, %c0_72, %c0_73], %171 {strides = array<i32>} : memref<1x256x128xf32, #tpu.memory_space<vmem>>, vector<1x256x128xf32>,
    return
  }
  func.func @transform_0(%arg0: i32) -> (i32, i32) {
    %c0_i32 = arith.constant 0 : i32
    %c0_i32_0 = arith.constant 0 : i32
    %c0_i32_1 = arith.constant 0 : i32
    return %c0_i32, %c0_i32_0 : i32, i32
  }
  func.func @transform_1(%arg0: i32) -> (i32, i32, i32) {
    %c0_i32 = arith.constant 0 : i32
    %c0_i32_0 = arith.constant 0 : i32
    %c0_i32_1 = arith.constant 0 : i32
    return %arg0, %c0_i32, %c0_i32_0 : i32, i32, i32
  }
  func.func @transform_2(%arg0: i32) -> (i32, i32) {
    %c0_i32 = arith.constant 0 : i32
    %c0_i32_0 = arith.constant 0 : i32
    %c0_i32_1 = arith.constant 0 : i32
    return %c0_i32, %c0_i32_0 : i32, i32
  }
  func.func @transform_3(%arg0: i32) -> (i32, i32) {
    %c0_i32 = arith.constant 0 : i32
    %c0_i32_0 = arith.constant 0 : i32
    %c0_i32_1 = arith.constant 0 : i32
    return %c0_i32, %c0_i32_0 : i32, i32
  }
  func.func @transform_4(%arg0: i32) -> (i32, i32) {
    %c0_i32 = arith.constant 0 : i32
    %c0_i32_0 = arith.constant 0 : i32
    %c0_i32_1 = arith.constant 0 : i32
    return %c0_i32, %c0_i32_0 : i32, i32
  }
  func.func @transform_5(%arg0: i32) -> (i32, i32) {
    %c0_i32 = arith.constant 0 : i32
    %c0_i32_0 = arith.constant 0 : i32
    %c0_i32_1 = arith.constant 0 : i32
    return %c0_i32, %c0_i32_0 : i32, i32
  }
  func.func @transform_6(%arg0: i32) -> (i32, i32) {
    %c0_i32 = arith.constant 0 : i32
    %c0_i32_0 = arith.constant 0 : i32
    %c0_i32_1 = arith.constant 0 : i32
    return %c0_i32, %c0_i32_0 : i32, i32
  }
  func.func @transform_7(%arg0: i32) -> (i32, i32) {
    %c0_i32 = arith.constant 0 : i32
    %c0_i32_0 = arith.constant 0 : i32
    %c0_i32_1 = arith.constant 0 : i32
    return %c0_i32, %c0_i32_0 : i32, i32
  }
  func.func @transform_8(%arg0: i32) -> (i32, i32) {
    %c0_i32 = arith.constant 0 : i32
    %c0_i32_0 = arith.constant 0 : i32
    %c0_i32_1 = arith.constant 0 : i32
    return %c0_i32, %c0_i32_0 : i32, i32
  }
  func.func @transform_9(%arg0: i32) -> (i32, i32) {
    %c0_i32 = arith.constant 0 : i32
    %c0_i32_0 = arith.constant 0 : i32
    %c0_i32_1 = arith.constant 0 : i32
    return %c0_i32, %c0_i32_0 : i32, i32
  }
  func.func @transform_10(%arg0: i32) -> (i32, i32) {
    %c0_i32 = arith.constant 0 : i32
    %c0_i32_0 = arith.constant 0 : i32
    %c0_i32_1 = arith.constant 0 : i32
    return %c0_i32, %c0_i32_0 : i32, i32
  }
  func.func @transform_11(%arg0: i32) -> (i32, i32, i32) {
    %c0_i32 = arith.constant 0 : i32
    %c0_i32_0 = arith.constant 0 : i32
    %c0_i32_1 = arith.constant 0 : i32
    return %arg0, %c0_i32, %c0_i32_0 : i32, i32, i32
  }
}

</mosaic_0001>

<bundles_post_ra>
// kernel: tile.9
= control target key start
LH: loop header
LB: loop body
LE: loop exit
PB: predicated region body
PF: predicated region fallthrough
CT: control target
= control target key end

     0   :  { %s7_s6 = smov 3  ;;  %s21_s9 = smov 3  ;;  %vm4_vm0 = vcmask 130048   ;;  %vm11_vm1 = vcmask 1048448   ;;  %vm18_vm2 = vcmask 917248   ;;  %vm25_vm3 = vcmask 786048   ;;  %s129_s0 = inlined_call_operand.vmem [shape: s32[16,16], index: 0, kind: input, shape index: {}]   ;;  %s130_s1 = inlined_call_operand.vmem [shape: s32[256,1], index: 1, kind: output, shape index: {}]  }
   0x1   :  { %v67_v0 = vld [vmem:[%s129_s0 + $0x7] ss:$8 sm:%s7_s6]   ;;  %s82_s10 = smov 112   ;;  %v69_v1 = vld [vmem:[%s129_s0 + $0x5] ss:$8 sm:%s21_s9]   ;;  %s83_s13 = smov 80  }
   0x2   :  { %9 = vrot.lane.b32.xlu0 %v67_v0, %s82_s10  ;;  %23 = vrot.lane.b32.xlu1 %v69_v1, %s83_s13  ;;  %s14_s14 = smov 3  ;;  %s28_s15 = smov 3  ;;  %vm32_vm4 = vcmask 654848   ;;  %vm39_vm5 = vcmask 523648   ;;  %vm46_vm6 = vcmask 392448   ;;  %vm53_vm7 = vcmask 261248  }
   0x3   :  { %s35_s16 = smov 3  ;;  %v68_v3 = vld [vmem:[%s129_s0 + $0x6] ss:$8 sm:%s14_s14]   ;;  %s84_s21 = smov 48   ;;  %v70_v4 = vld [vmem:[%s129_s0 + $0x4] ss:$8 sm:%s28_s15]  }
   0x4   :  { %v71_v2 = vld [vmem:[%s129_s0 + $0x3] ss:$8 sm:%s35_s16]   ;;  %s42_s24 = smov 3  ;;  %s85_s25 = smov 96  }
   0x5   :  { %37 = vrot.lane.b32.xlu2 %v71_v2, %s84_s21  ;;  %s86_s26 = smov 64   ;;  %s49_s27 = smov 3  ;;  %v72_v5 = vld [vmem:[%s129_s0 + $0x2] ss:$8 sm:%s42_s24]  }
   0x6   :  { %v73_v6 = vld [vmem:[%s129_s0 + $0x1] ss:$8 sm:%s49_s27]   ;;  %s87_s3 = smov 32   ;;  %s88_s4 = smov 16  }
   0x7   :  { %s2_s5 = smov 3 }
   0x8   :  { %v3_v7 = vld [vmem:[%s129_s0] ss:$8 sm:%s2_s5]  }
   0x9   :  { %5 = vst.msk [vmem:[#allocation0] ss:$8 sm:$0x3] %vm4_vm0, %v3_v7  }
   0xa   :  { %16 = vrot.lane.b32.xlu0 %v68_v3, %s85_s25  ;;  %30 = vrot.lane.b32.xlu1 %v70_v4, %s86_s26 }
   0xd   :  { %44 = vrot.lane.b32.xlu2 %v72_v5, %s87_s3 }
  0x12   :  { %51 = vrot.lane.b32.xlu0 %v73_v6, %s88_s4 }
  0x5f   :  { %v38_v8 = vpop.permute.xlu2 %37  }
  0x67   :  { %v45_v9 = vpop.permute.xlu2 %44  }
  0x74   :  { %v10_v10 = vpop.permute.xlu0 %9   ;;  %v24_v11 = vpop.permute.xlu1 %23  }
  0x75   :  { %12 = vst.msk [vmem:[#allocation0] ss:$8 sm:$0x3] %vm11_vm1, %v10_v10  }
  0x7c   :  { %v17_v12 = vpop.permute.xlu0 %16   ;;  %v31_v13 = vpop.permute.xlu1 %30  }
  0x7d   :  { %19 = vst.msk [vmem:[#allocation0] ss:$8 sm:$0x3] %vm18_vm2, %v17_v12  }
  0x7e   :  { %26 = vst.msk [vmem:[#allocation0] ss:$8 sm:$0x3] %vm25_vm3, %v24_v11  }
  0x7f   :  { %33 = vst.msk [vmem:[#allocation0] ss:$8 sm:$0x3] %vm32_vm4, %v31_v13  }
  0x80   :  { %40 = vst.msk [vmem:[#allocation0] ss:$8 sm:$0x3] %vm39_vm5, %v38_v8  }
  0x81   :  { %47 = vst.msk [vmem:[#allocation0] ss:$8 sm:$0x3] %vm46_vm6, %v45_v9  }
  0x84   :  { %v52_v14 = vpop.permute.xlu0 %51  }
  0x85   :  { %54 = vst.msk [vmem:[#allocation0] ss:$8 sm:$0x3] %vm53_vm7, %v52_v14  }
  0x8c   :  { %v57_v15 = vld [vmem:[#allocation0] sm:$0x1]  ;;  %v62_v16 = vld [vmem:[#allocation0 + $0x8] sm:$0x1] }
  0x8d   :  { %60 = vst [vmem:[%s130_s1] sm:$0x1] %v57_v15 }
  0x8e   :  { %74 = vst [vmem:[%s130_s1 + $0x1] sm:$0x1] %v62_v16 }

// kernel: resnext_forward_nhwc.1
= control target key start
LH: loop header
LB: loop body
LE: loop exit
PB: predicated region body
PF: predicated region fallthrough
CT: control target
= control target key end

     0   :  { %s11197_s0 = inlined_call_operand.vmem [shape: s32[256,2], index: 0, kind: input, shape index: {}]   ;;  %s11198_s1 = inlined_call_operand.vmem [shape: f32[2,256,128], index: 1, kind: input, shape index: {}]   ;;  %s11199_s2 = inlined_call_operand.vmem [shape: bf16[128,64], index: 2, kind: input, shape index: {}]   ;;  %s11200_s3 = inlined_call_operand.vmem [shape: f32[1,64], index: 3, kind: input, shape index: {}]   ;;  %s11201_s4 = inlined_call_operand.vmem [shape: f32[1,64], index: 4, kind: input, shape index: {}]   ;;  %s11202_s5 = inlined_call_operand.vmem [shape: bf16[576,64], index: 5, kind: input, shape index: {}]   ;;  %s11203_s6 = inlined_call_operand.vmem [shape: f32[1,64], index: 6, kind: input, shape index: {}]   ;;  %s11204_s7 = inlined_call_operand.vmem [shape: f32[1,64], index: 7, kind: input, shape index: {}]   ;;  %s11205_s8 = inlined_call_operand.vmem [shape: bf16[64,128], index: 8, kind: input, shape index: {}]   ;;  %s11206_s9 = inlined_call_operand.vmem [shape: f32[1,128], index: 9, kind: input, shape index: {}]   ;;  %s11207_s10 = inlined_call_operand.vmem [shape: f32[1,128], index: 10, kind: input, shape index: {}]   ;;  %s11208_s11 = inlined_call_operand.hbm [shape: f32[2,256,128], index: 11, kind: output, shape index: {}]  }
   0x1   :  { %11780 = sst [smem:[#allocation250_spill]] %s11197_s0 }
   0x2   :  { %16 = vsyncpa [#allocation3], 0 }
   0x3   :  { %18 = vsyncpa [#allocation3 + $0x1], 0  ;;  %s5668_s17 = smov 0   ;;  %s5670_s18 = smov 0  }
   0x4   :  { %s5672_s19 = smov 0   ;;  %s5674_s20 = smov 0  }
   0x5 LB: > { %s5689_s21 = sadd.s32 4294967295, %s5602_s20   ;;  %s4987_s22 = sadd.s32 4294967294, %s5602_s20   ;;  %s5602_s20 = sphi %s5674_s20, %s13332_s20   ;;  %s5598_s19 = sphi %s5672_s19, %s13331_s19   ;;  %s5594_s18 = sphi %s5670_s18, %s13330_s18   ;;  %s5590_s17 = sphi %s5668_s17, %s13329_s17  }
   0x6   : > { %s5693_s23 = sadd.s32 1, %s5602_s20   ;;  %s267_s24 = sadd.s32 1, %s5598_s19 }
   0x7   : > { %s264_s25 = ssub.s32 %s5602_s20, %s5693_s23  ;;  %p277_p0 = scmp.ne.s32.totalorder %s5598_s19, %s5594_s18 }
   0x8   : > { %p265_p1 = scmp.eq.s32.totalorder %s264_s25, 0  ;;  %p278_p2 = scmp.eq.s32.totalorder %s5689_s21, 1 }
   0x9   : > { %p283_p3 = scmp.ne.s32.totalorder %s5594_s18, %s5590_s17  ;;  %p284_p4 = scmp.eq.s32.totalorder %s4987_s22, 1 }
   0xa   : > { %s5704_s26 = scalar_select %p265_p1, %s5598_s19, %s267_s24  }
   0xb   : > { %p5706_p5 = por %p278_p2, %p277_p0  ;;  %p5710_p6 = por %p284_p4, %p283_p3 }
   0xc   : > { %p4990_p7 = scmp.ge.s32.totalorder %s5602_s20, 1  ;;  %p340_p8 = scmp.lt.s32.totalorder %s5602_s20, 3 }
   0xe   : > { %p341_p9 = pnand %p4990_p7, %p340_p8 }
  0x10   : > { %344 = sbr.rel (%p341_p9) target bundleno = 2063 (0x80f), region = 64 }
  0x15   : > { %s11783_s0 = sld [smem:[#allocation250_spill]]  ;;  %v5359_v2 = vld [vmem:[%s11199_s2 + $0x38] sm:$0xff]  ;;  %v11209_v3 = vmov 1   ;;  %v5605_v4 = vmov 0   ;;  %v5358_v7 = vld [vmem:[%s11199_s2 + $0x30] sm:$0xff]  ;;  %v5357_v9 = vld [vmem:[%s11199_s2 + $0x28] sm:$0xff] }
  0x16   : > { %5458 = vset.pattern.permute.xlu2 %v11209_v3  ;;  %5457 = vset.pattern.permute.xlu1 %v5605_v4  ;;  %v5356_v11 = vld [vmem:[%s11199_s2 + $0x20] sm:$0xff]  ;;  %p380_p10 = scmp.lt.s32.totalorder %s5689_s21, 1  ;;  %v5355_v13 = vld [vmem:[%s11199_s2 + $0x18] sm:$0xff]  ;;  %v5354_v15 = vld [vmem:[%s11199_s2 + $0x10] sm:$0xff]  ;;  %s377_s30 = sand.u32 1, %s5594_s18  }
  0x17   : > { %498 = vmatpush.bf16.msra.mxu0 %v5359_v2  ;;  %5456 = vset.pattern.permute.xlu0 %v5605_v4  ;;  %v5353_v20 = vld [vmem:[%s11199_s2 + $0x8] sm:$0xff]  ;;  %v5352_v23 = vld [vmem:[%s11199_s2] sm:$0xff]  ;;  %s4991_s14 = sshll.u32 %s377_s30, 8  ;;  %s5400_s16 = sshll.u32 %s5689_s21, 8 }
  0x18   : > { %s381_s24 = scalar_select %p380_p10, %s5689_s21, 1 }
  0x19   : > { %s10970_s15 = scalar_lea.vmem [#allocation2], %s4991_s14  ;;  %s4921_s25 = scalar_lea.hbm %s11208_s11, %s5400_s16 }
  0x1a   : > { %s5351_s22 = sshll.u32 %s381_s24, 8  ;;  %s4922_s29 = sshll.u32 %s10970_s15, 4  ;;  %s4923_s29 = int_to_ptr.vmem [resolvable:$true] %s4922_s29 }
  0x1b   : > { %v5719_v0 = vld [vmem:[%s11783_s0 + $0x38] sm:$0xff]  ;;  %v5724_v1 = vld [vmem:[%s11783_s0 + $0x30] sm:$0xff]  ;;  %v5741_v8 = vld [vmem:[%s11783_s0 + $0x40] sm:$0xff]  ;;  %499 = vmatpush.bf16.msra.mxu0 %v5358_v7  ;;  %s5795_s24 = scalar_lea.vmem %s11198_s1, %s5351_s22  ;;  %s4924_s12 = sshll.u32 %s4921_s25, 4  ;;  %s4925_s12 = int_to_ptr.hbm [resolvable:$true] %s4924_s12 }
  0x1c   : > { %vm948_vm0 = vcmp.eq.s32.totalorder %v5719_v0, 0  ;;  %vm947_vm1 = vcmp.eq.s32.totalorder %v5724_v1, 0  ;;  %vm949_vm2 = vcmp.eq.s32.totalorder %v5741_v8, 0  ;;  %v5755_v12 = vld [vmem:[%s11783_s0 + $0x50] sm:$0xff]  ;;  %v5770_v16 = vld [vmem:[%s11783_s0 + $0x58] sm:$0xff]  ;;  %v5775_v17 = vld [vmem:[%s11783_s0 + $0x60] sm:$0xff] }
  0x1d   : > { %v1012_v5 = vsel %vm948_vm0, 1, %v5605_v4  ;;  %v1011_v6 = vsel %vm947_vm1, 1, %v5605_v4  ;;  %v1013_v10 = vsel %vm949_vm2, 1, %v5605_v4  ;;  %vm951_vm3 = vcmp.eq.s32.totalorder %v5755_v12, 0  ;;  %v5780_v18 = vld [vmem:[%s11783_s0 + $0x28] sm:$0xff]  ;;  %v386_v24 = vld [vmem:[%s5795_s24] sm:$0xff] }
  0x1e   : > { %1059 = vperm.xlu1 %5457, %v1012_v5   ;;  %1540 = vperm.xlu2 %5458, %v1011_v6   ;;  %v1015_v14 = vsel %vm951_vm3, 1, %v5605_v4  ;;  %vm946_vm4 = vcmp.eq.s32.totalorder %v5780_v18, 0  ;;  %vm952_vm5 = vcmp.eq.s32.totalorder %v5770_v16, 0  ;;  %vm953_vm6 = vcmp.eq.s32.totalorder %v5775_v17, 0  ;;  %v387_v25 = vld [vmem:[%s5795_s24 + $0x8] sm:$0xff]  ;;  %v5815_v28 = vld [vmem:[%s11783_s0 + $0x70] sm:$0xff] }
  0x1f   : > { %500 = vmatpush.bf16.msra.mxu0 %v5357_v9  ;;  %v5785_v19 = vsel %vm946_vm4, 1, %v5605_v4  ;;  %v1016_v21 = vsel %vm952_vm5, 1, %v5605_v4  ;;  %v1017_v22 = vsel %vm953_vm6, 1, %v5605_v4  ;;  %v418_v26 = vpack.c.bf16 %v387_v25, %v386_v24  ;;  %v5809_v27 = vld [vmem:[%s11783_s0 + $0x48] sm:$0xff]  ;;  %v388_v31 = vld [vmem:[%s5795_s24 + $0x10] sm:$0xff]  ;;  %v389_v32 = vld [vmem:[%s5795_s24 + $0x18] sm:$0xff] }
  0x20   : > { %1053 = vperm.xlu0 %5456, %v5785_v19   ;;  %vm950_vm7 = vcmp.eq.s32.totalorder %v5809_v27, 0  ;;  %vm955_vm8 = vcmp.eq.s32.totalorder %v5815_v28, 0  ;;  %v419_v33 = vpack.c.bf16 %v389_v32, %v388_v31  ;;  %v5827_v34 = vld [vmem:[%s11783_s0 + $0x68] sm:$0xff]  ;;  %v5832_v35 = vld [vmem:[%s11783_s0 + $0x78] sm:$0xff]  ;;  %v5845_v38 = vld [vmem:[%s11783_s0 + $0x80] sm:$0xff]  ;;  %s4910_s13 = scalar_lea.sflag [#allocation3], %s377_s30 }
  0x21   : > { %v1014_v29 = vsel %vm950_vm7, 1, %v5605_v4  ;;  %v1019_v30 = vsel %vm955_vm8, 1, %v5605_v4  ;;  %vm954_vm9 = vcmp.eq.s32.totalorder %v5827_v34, 0  ;;  %vm956_vm10 = vcmp.eq.s32.totalorder %v5832_v35, 0  ;;  %v390_v39 = vld [vmem:[%s5795_s24 + $0x20] sm:$0xff]  ;;  %v391_v40 = vld [vmem:[%s5795_s24 + $0x28] sm:$0xff] }
  0x22   : > { %v1018_v36 = vsel %vm954_vm9, 1, %v5605_v4  ;;  %v1020_v37 = vsel %vm956_vm10, 1, %v5605_v4  ;;  %vm957_vm11 = vcmp.eq.s32.totalorder %v5845_v38, 0  ;;  %v420_v41 = vpack.c.bf16 %v391_v40, %v390_v39  ;;  %v5854_v42 = vld [vmem:[%s11783_s0 + $0x90] sm:$0xff]  ;;  %v5863_v45 = vld [vmem:[%s11783_s0 + $0x98] sm:$0xff]  ;;  %v5868_v46 = vld [vmem:[%s11783_s0 + $0x88] sm:$0xff] }
  0x23   : > { %501 = vmatpush.bf16.msra.mxu0 %v5356_v11  ;;  %v1021_v43 = vsel %vm957_vm11, 1, %v5605_v4  ;;  %vm959_vm12 = vcmp.eq.s32.totalorder %v5854_v42, 0  ;;  %v5873_v47 = vld [vmem:[%s11783_s0 + $0xa0] sm:$0xff]  ;;  %vm958_vm13 = vcmp.eq.s32.totalorder %v5868_v46, 0  ;;  %vm960_vm14 = vcmp.eq.s32.totalorder %v5863_v45, 0  ;;  %v392_v49 = vld [vmem:[%s5795_s24 + $0x30] sm:$0xff] }
  0x24   : > { %v1023_v44 = vsel %vm959_vm12, 1, %v5605_v4  ;;  %v1022_v48 = vsel %vm958_vm13, 1, %v5605_v4  ;;  %vm961_vm15 = vcmp.eq.s32.totalorder %v5873_v47, 0  ;;  %v393_v50 = vld [vmem:[%s5795_s24 + $0x38] sm:$0xff]  ;;  %v1024_v51 = vsel %vm960_vm14, 1, %v5605_v4  ;;  %v5888_v54 = vld [vmem:[%s11783_s0 + $0xa8] sm:$0xff] }
  0x25   : > { %v1025_v52 = vsel %vm961_vm15, 1, %v5605_v4  ;;  %v421_v53 = vpack.c.bf16 %v393_v50, %v392_v49  ;;  %vm962_vm0 = vcmp.eq.s32.totalorder %v5888_v54, 0  ;;  %v5896_v55 = vld [vmem:[%s11783_s0 + $0xb0] sm:$0xff]  ;;  %v394_v57 = vld [vmem:[%s5795_s24 + $0x40] sm:$0xff]  ;;  %v395_v58 = vld [vmem:[%s5795_s24 + $0x48] sm:$0xff]  ;;  %vm981_vm12 = vcmp.eq.s32.totalorder %v5741_v8, 15 }
  0x26   : > { %1062 = vperm.xlu1 %5457, %v1013_v10   ;;  %1543 = vperm.xlu2 %5458, %v1012_v5   ;;  %v1026_v56 = vsel %vm962_vm0, 1, %v5605_v4  ;;  %vm963_vm1 = vcmp.eq.s32.totalorder %v5896_v55, 0  ;;  %v5906_v59 = vld [vmem:[%s11783_s0 + $0xc0] sm:$0xff]  ;;  %v422_v61 = vpack.c.bf16 %v395_v58, %v394_v57  ;;  %v5914_v62 = vld [vmem:[%s11783_s0 + $0xb8] sm:$0xff]  ;;  %v5924_v5 = vld [vmem:[%s11783_s0 + $0xc8] sm:$0xff]  ;;  %vm984_vm13 = vcmp.eq.s32.totalorder %v5770_v16, 15 }
  0x27   : > { %502 = vmatpush.bf16.msra.mxu0 %v5355_v13  ;;  %v1027_v60 = vsel %vm963_vm1, 1, %v5605_v4  ;;  %vm965_vm2 = vcmp.eq.s32.totalorder %v5906_v59, 0  ;;  %vm964_vm3 = vcmp.eq.s32.totalorder %v5914_v62, 0  ;;  %vm966_vm4 = vcmp.eq.s32.totalorder %v5924_v5, 0  ;;  %v396_v9 = vld [vmem:[%s5795_s24 + $0x50] sm:$0xff]  ;;  %v399_v24 = vld [vmem:[%s5795_s24 + $0x68] sm:$0xff] }
  0x28   : > { %1056 = vperm.xlu0 %5456, %v1011_v6   ;;  %v1029_v63 = vsel %vm965_vm2, 1, %v5605_v4  ;;  %v1028_v2 = vsel %vm964_vm3, 1, %v5605_v4  ;;  %v1030_v7 = vsel %vm966_vm4, 1, %v5605_v4  ;;  %v5936_v13 = vld [vmem:[%s11783_s0 + $0xd0] sm:$0xff]  ;;  %v5961_v25 = vld [vmem:[%s11783_s0 + $0xe0] sm:$0xff]  ;;  %v403_v58 = vld [vmem:[%s5795_s24 + $0x88] sm:$0xff] }
  0x29   : > { %vm967_vm5 = vcmp.eq.s32.totalorder %v5936_v13, 0  ;;  %vm969_vm8 = vcmp.eq.s32.totalorder %v5961_v25, 0  ;;  %v5987_v40 = vld [vmem:[%s11783_s0] sm:$0xff]  ;;  %v6031_v8 = vld [vmem:[%s11783_s0 + $0x8] sm:$0xff]  ;;  %vm987_vm0 = vcmp.eq.s32.totalorder %v5815_v28, 15  ;;  %vm989_vm3 = vcmp.eq.s32.totalorder %v5845_v38, 15 }
  0x2a   : > { %vm941_vm10 = vcmp.eq.s32.totalorder %v5987_v40, 0  ;;  %v402_v57 = vld [vmem:[%s5795_s24 + $0x80] sm:$0xff]  ;;  %vm942_vm14 = vcmp.eq.s32.totalorder %v6031_v8, 0  ;;  %vm979_vm4 = vcmp.eq.s32.totalorder %v5724_v1, 15  ;;  %s5554_s14 = sshra.s32 %s4925_s12, 4  ;;  %s5555_s14 = int_to_ptr.hbm [resolvable:$true] %s5554_s14 }
  0x2b   : > { %503 = vmatpush.bf16.msra.mxu0 %v5354_v15  ;;  %v1005_v50 = vsel %vm941_vm10, 1, %v5605_v4  ;;  %v406_v38 = vld [vmem:[%s5795_s24 + $0xa0] sm:$0xff]  ;;  %vm986_vm10 = vcmp.eq.s32.totalorder %v5827_v34, 15  ;;  %s5556_s16 = scalar_lea.hbm %s5555_s14, 256  ;;  %p5561_p0 = scmp.lt.s32.totalorder %s5555_s14, %s11208_s11 }
  0x2c   : > { %p5557_p11 = scmp.ne.s32.totalorder %s5555_s14, %s5556_s16 }
  0x2e   : > { %1068 = vperm.xlu1 %5457, %v1015_v14   ;;  %1546 = vperm.xlu2 %5458, %v1013_v10   ;;  %v397_v10 = vld [vmem:[%s5795_s24 + $0x58] sm:$0xff]  ;;  %p5558_p12 = pnand %p5557_p11, %p5706_p5 }
  0x2f   : > { %504 = vmatpush.bf16.msra.mxu0 %v5353_v20  ;;  %v423_v11 = vpack.c.bf16 %v397_v10, %v396_v9  ;;  %v1031_v20 = vsel %vm967_vm5, 1, %v5605_v4  ;;  %v6037_v9 = vsel %vm984_vm13, 1, %v5605_v4  ;;  %vm980_vm5 = vcmp.eq.s32.totalorder %v5719_v0, 15 }
  0x30   : > { %1065 = vperm.xlu0 %5456, %v1014_v29   ;;  %vm974_vm13 = vcmp.eq.s32.totalorder %v6031_v8, 15  ;;  %v410_v8 = vld [vmem:[%s5795_s24 + $0xc0] sm:$0xff]  ;;  %p5559_p13 = pneg %p5558_p12 }
  0x33   : > { %505 = vmatpush.bf16.msra.mxu0 %v5352_v23  ;;  %v398_v23 = vld [vmem:[%s5795_s24 + $0x60] sm:$0xff] }
  0x34   : > { %v424_v31 = vpack.c.bf16 %v399_v24, %v398_v23  ;;  %v404_v23 = vld [vmem:[%s5795_s24 + $0x90] sm:$0xff]  ;;  %v405_v24 = vld [vmem:[%s5795_s24 + $0x98] sm:$0xff] }
  0x36   : > { %1071 = vperm.xlu1 %5457, %v1016_v21   ;;  %5460 = vset.pattern.permute.xlu2 %v5605_v4 }
  0x37   : > { %1074 = vperm.xlu2 %5460, %v1017_v22   ;;  %506 = vmatmul.bf16.vlgmr.msra.gmra.mxu0 %v418_v26 }
  0x38   : > { %5459 = vset.pattern.permute.xlu0 %v11209_v3 }
  0x39   : > { %1549 = vperm.xlu0 %5459, %v1014_v29  }
  0x3e   : > { %5461 = vset.pattern.permute.xlu1 %v11209_v3 }
  0x3f   : > { %1552 = vperm.xlu1 %5461, %v1015_v14   ;;  %5462 = vset.pattern.permute.xlu2 %v11209_v3 }
  0x40   : > { %1555 = vperm.xlu2 %5462, %v1016_v21   ;;  %v5949_v21 = vld [vmem:[%s11783_s0 + $0xd8] sm:$0xff] }
  0x41   : > { %5463 = vset.pattern.permute.xlu0 %v5605_v4  ;;  %vm968_vm7 = vcmp.eq.s32.totalorder %v5949_v21, 0 }
  0x42   : > { %1077 = vperm.xlu0 %5463, %v1018_v36   ;;  %v1032_v32 = vsel %vm968_vm7, 1, %v5605_v4  ;;  %vm983_vm7 = vcmp.eq.s32.totalorder %v5755_v12, 15  ;;  %v11799_v12 = vmov 1  }
  0x47   : > { %5464 = vset.pattern.permute.xlu1 %v5605_v4  ;;  %511 = vmatmul.bf16.gmra.mxu0 %v419_v33  ;;  %v1033_v33 = vsel %vm969_vm8, 1, %v5605_v4  ;;  %vm994_vm8 = vcmp.eq.s32.totalorder %v5888_v54, 15  ;;  %v6148_v54 = vsel %vm986_vm10, 1, %v5605_v4  ;;  %vm1000_vm10 = vcmp.eq.s32.totalorder %v5949_v21, 15 }
  0x48   : > { %1080 = vperm.xlu1 %5464, %v1019_v30   ;;  %1558 = vperm.xlu2 %5462, %v1017_v22   ;;  %v5954_v22 = vld [vmem:[%s11783_s0 + $0xe8] sm:$0xff] }
  0x49   : > { %vm970_vm6 = vcmp.eq.s32.totalorder %v5954_v22, 0 }
  0x4a   : > { %1086 = vperm.xlu0 %5463, %v1021_v43   ;;  %v1034_v29 = vsel %vm970_vm6, 1, %v5605_v4  ;;  %vm982_vm6 = vcmp.eq.s32.totalorder %v5809_v27, 15 }
  0x4b   : > { %v6119_v0 = vsel %vm982_vm6, 1, %v5605_v4  ;;  %vm996_vm6 = vcmp.eq.s32.totalorder %v5914_v62, 15 }
  0x50   : > { %5465 = vset.pattern.permute.xlu1 %v11209_v3  ;;  %5466 = vset.pattern.permute.xlu2 %v5605_v4 }
  0x51   : > { %1561 = vperm.xlu1 %5465, %v1018_v36   ;;  %1083 = vperm.xlu2 %5466, %v1020_v37   ;;  %v5977_v36 = vld [vmem:[%s11783_s0 + $0xf8] sm:$0xff] }
  0x52   : > { %1089 = vperm.xlu0 %5463, %v1022_v48   ;;  %vm972_vm9 = vcmp.eq.s32.totalorder %v5977_v36, 0 }
  0x53   : > { %v1036_v39 = vsel %vm972_vm9, 1, %v5605_v4  ;;  %vm985_vm9 = vcmp.eq.s32.totalorder %v5775_v17, 15 }
  0x57   : > { %516 = vmatmul.bf16.gmra.mxu0 %v420_v41 }
  0x59   : > { %1564 = vperm.xlu1 %5465, %v1019_v30   ;;  %5467 = vset.pattern.permute.xlu2 %v11209_v3 }
  0x5a   : > { %1567 = vperm.xlu2 %5467, %v1020_v37   ;;  %5469 = vset.pattern.permute.xlu0 %v11209_v3 }
  0x5b   : > { %1573 = vperm.xlu0 %5469, %v1022_v48   ;;  %v5998_v48 = vld [vmem:[%s11783_s0 + $0xf0] sm:$0xff] }
  0x5c   : > { %vm971_vm11 = vcmp.eq.s32.totalorder %v5998_v48, 0 }
  0x61   : > { %5468 = vset.pattern.permute.xlu1 %v5605_v4 }
  0x62   : > { %1092 = vperm.xlu1 %5468, %v1023_v44   ;;  %1570 = vperm.xlu2 %5467, %v1021_v43   ;;  %v400_v43 = vld [vmem:[%s5795_s24 + $0x70] sm:$0xff] }
  0x63   : > { %5473 = vset.pattern.permute.xlu0 %v5605_v4 }
  0x64   : > { %1101 = vperm.xlu0 %5473, %v1026_v56  }
  0x67   : > { %521 = vmatmul.bf16.gmra.mxu0 %v421_v53 }
  0x6a   : > { %1095 = vperm.xlu1 %5468, %v1024_v51   ;;  %5470 = vset.pattern.permute.xlu2 %v5605_v4 }
  0x6b   : > { %1098 = vperm.xlu2 %5470, %v1025_v52  }
  0x6c   : > { %1110 = vperm.xlu0 %5473, %v1029_v63  }
  0x72   : > { %5471 = vset.pattern.permute.xlu1 %v11209_v3 }
  0x73   : > { %1576 = vperm.xlu1 %5471, %v1023_v44   ;;  %5472 = vset.pattern.permute.xlu2 %v11209_v3  ;;  %v401_v44 = vld [vmem:[%s5795_s24 + $0x78] sm:$0xff] }
  0x74   : > { %1579 = vperm.xlu2 %5472, %v1024_v51   ;;  %1113 = vperm.xlu0 %5473, %v1030_v7   ;;  %v425_v51 = vpack.c.bf16 %v401_v44, %v400_v43  ;;  %v6075_v43 = vld [vmem:[%s11783_s0 + $0x20] sm:$0xff] }
  0x75   : > { %vm945_vm2 = vcmp.eq.s32.totalorder %v6075_v43, 0 }
  0x77   : > { %526 = vmatmul.bf16.gmra.mxu0 %v422_v61 }
  0x78   : > { %v5927_v6 = vpop.permute.xlu2 %1540 }
  0x79   : > { %11784 = vst [vmem:[#allocation5_spill] sm:$0xff] %v5927_v6 }
  0x7b   : > { %5474 = vset.pattern.permute.xlu1 %v5605_v4 }
  0x7c   : > { %1104 = vperm.xlu1 %5474, %v1027_v60   ;;  %1582 = vperm.xlu2 %5472, %v1025_v52   ;;  %v1035_v52 = vsel %vm971_vm11, 1, %v5605_v4  ;;  %vm999_vm11 = vcmp.eq.s32.totalorder %v5936_v13, 15 }
  0x7d   : > { %5479 = vset.pattern.permute.xlu0 %v11209_v3 }
  0x7e   : > { %1597 = vperm.xlu0 %5479, %v1030_v7  }
  0x80   : > { %v5939_v14 = vpop.permute.xlu2 %1543 }
  0x81   : > { %11785 = vst [vmem:[#allocation6_spill] sm:$0xff] %v5939_v14 }
  0x84   : > { %5475 = vset.pattern.permute.xlu1 %v11209_v3  ;;  %5476 = vset.pattern.permute.xlu2 %v5605_v4 }
  0x85   : > { %1585 = vperm.xlu1 %5475, %v1026_v56   ;;  %1107 = vperm.xlu2 %5476, %v1028_v2  }
  0x86   : > { %5483 = vset.pattern.permute.xlu0 %v5605_v4 }
  0x87   : > { %531 = vmatmul.bf16.gmra.mxu0 %v423_v11  ;;  %1125 = vperm.xlu0 %5483, %v1034_v29   ;;  %v6045_v11 = vld [vmem:[%s11783_s0 + $0x10] sm:$0xff] }
  0x88   : > { %v5969_v30 = vpop.permute.xlu2 %1546  ;;  %vm943_vm15 = vcmp.eq.s32.totalorder %v6045_v11, 0 }
  0x89   : > { %11786 = vst [vmem:[#allocation7_spill] sm:$0xff] %v5969_v30  ;;  %v6163_v30 = vsel %vm999_vm11, 1, %v5605_v4  ;;  %vm1001_vm11 = vcmp.eq.s32.totalorder %v5961_v25, 15 }
  0x8d   : > { %1588 = vperm.xlu1 %5475, %v1027_v60   ;;  %5477 = vset.pattern.permute.xlu2 %v11209_v3 }
  0x8e   : > { %1591 = vperm.xlu2 %5477, %v1028_v2   ;;  %v426_v2 = vpack.c.bf16 %v403_v58, %v402_v57  ;;  %v6093_v57 = vsel %vm989_vm3, 1, %v5605_v4  ;;  %vm993_vm3 = vcmp.eq.s32.totalorder %v5873_v47, 15 }
  0x8f   : > { %1131 = vperm.xlu0 %5483, %v1036_v39  }
  0x90   : > { %v5942_v15 = vpop.permute.xlu1 %1059 }
  0x91   : > { %v5989_v41 = vpop.permute.xlu2 %1074 }
  0x92   : > { %v6121_v1 = vpop.permute.xlu0 %1053 }
  0x95   : > { %5478 = vset.pattern.permute.xlu1 %v5605_v4 }
  0x96   : > { %1116 = vperm.xlu1 %5478, %v1031_v20   ;;  %1594 = vperm.xlu2 %5477, %v1029_v63   ;;  %v6023_v63 = vsel %vm981_vm12, 1, %v5605_v4  ;;  %vm988_vm12 = vcmp.eq.s32.totalorder %v5832_v35, 15  ;;  %v6178_v35 = vsel %vm974_vm13, 1, %v5605_v4 }
  0x97   : > { %536 = vmatmul.bf16.gmra.mxu0 %v424_v31  ;;  %5488 = vset.pattern.permute.xlu0 %v11209_v3  ;;  %v6063_v31 = vld [vmem:[%s11783_s0 + $0x18] sm:$0xff]  ;;  %v6167_v14 = vsel %vm988_vm12, 1, %v5605_v4  ;;  %vm1002_vm12 = vcmp.eq.s32.totalorder %v5954_v22, 15 }
  0x98   : > { %v5965_v26 = vpop.permute.xlu1 %1062  ;;  %1522 = vperm.xlu0 %5488, %v1005_v50   ;;  %vm944_vm1 = vcmp.eq.s32.totalorder %v6063_v31, 0  ;;  %vm976_vm13 = vcmp.eq.s32.totalorder %v6063_v31, 15 }
  0x9a   : > { %v6007_v53 = vpop.permute.xlu2 %1555 }
  0x9b   : > { %11788 = vst [vmem:[#allocation9_spill] sm:$0xff] %v6007_v53 }
  0x9e   : > { %1119 = vperm.xlu1 %5478, %v1032_v32   ;;  %5480 = vset.pattern.permute.xlu2 %v5605_v4 }
  0x9f   : > { %1122 = vperm.xlu2 %5480, %v1033_v33  }
  0xa0   : > { %v5981_v37 = vpop.permute.xlu1 %1068  ;;  %1537 = vperm.xlu0 %5488, %v5785_v19  }
  0xa2   : > { %v6015_v60 = vpop.permute.xlu2 %1558 }
  0xa3   : > { %11790 = vst [vmem:[#allocation11_spill] sm:$0xff] %v6015_v60  ;;  %v6150_v60 = vpop.permute.xlu0 %1056 }
  0xa6   : > { %5481 = vset.pattern.permute.xlu1 %v11209_v3 }
  0xa7   : > { %1600 = vperm.xlu1 %5481, %v1031_v20   ;;  %5482 = vset.pattern.permute.xlu2 %v11209_v3  ;;  %v6053_v20 = vsel %vm942_vm14, 1, %v5605_v4  ;;  %vm990_vm14 = vcmp.eq.s32.totalorder %v5868_v46, 15 }
  0xa8   : > { %v6001_v49 = vpop.permute.xlu1 %1071  ;;  %1603 = vperm.xlu2 %5482, %v1032_v32   ;;  %541 = vmatmul.bf16.gmra.mxu0 %v425_v51  ;;  %v6087_v51 = vsel %vm945_vm2, 1, %v5605_v4  ;;  %vm1004_vm2 = vcmp.eq.s32.totalorder %v5977_v36, 15  ;;  %v6236_v36 = vsel %vm993_vm3, 1, %v5605_v4 }
  0xa9   : > { %11787 = vst [vmem:[#allocation8_spill] sm:$0xff] %v6001_v49  ;;  %1706 = vperm.xlu0 %5488, %v6023_v63  }
  0xab   : > { %v6039_v10 = vpop.permute.xlu2 %1083 }
  0xaf   : > { %5484 = vset.pattern.permute.xlu1 %v5605_v4 }
  0xb0   : > { %1128 = vperm.xlu1 %5484, %v1035_v52   ;;  %1606 = vperm.xlu2 %5482, %v1033_v33   ;;  %v6070_v33 = vsel %vm987_vm0, 1, %v5605_v4  ;;  %vm991_vm0 = vcmp.eq.s32.totalorder %v5854_v42, 15 }
  0xb1   : > { %v6010_v56 = vpop.permute.xlu1 %1552  ;;  %1715 = vperm.xlu0 %5488, %v6037_v9  }
  0xb2   : > { %11789 = vst [vmem:[#allocation10_spill] sm:$0xff] %v6010_v56 }
  0xb4   : > { %v6020_v61 = vpop.f32.mrf.mxu0  ;;  %v6080_v28 = vpop.permute.xlu2 %1567 }
  0xb5   : > { %11793 = vst [vmem:[#allocation14_spill] sm:$0xff] %v6080_v28 }
  0xb8   : > { %5485 = vset.pattern.permute.xlu1 %v11209_v3  ;;  %5486 = vset.pattern.permute.xlu2 %v5605_v4 }
  0xb9   : > { %1609 = vperm.xlu1 %5485, %v1034_v29   ;;  %1038 = vperm.xlu2 %5486, %v1005_v50   ;;  %v6058_v29 = vsel %vm943_vm15, 1, %v5605_v4  ;;  %v1008_v50 = vsel %vm944_vm1, 1, %v5605_v4  ;;  %vm975_vm15 = vcmp.eq.s32.totalorder %v6045_v11, 15  ;;  %vm992_vm1 = vcmp.eq.s32.totalorder %v5863_v45, 15  ;;  %v412_v45 = vld [vmem:[%s5795_s24 + $0xd0] sm:$0xff] }
  0xba   : > { %v6025_v7 = vpop.permute.xlu1 %1080  ;;  %546 = vmatmul.bf16.gmra.mxu0 %v426_v2  ;;  %1724 = vperm.xlu0 %5488, %v6070_v33   ;;  %v6102_v2 = vsel %vm979_vm4, 1, %v5605_v4  ;;  %vm973_vm4 = vcmp.eq.s32.totalorder %v5987_v40, 15 }
  0xbb   : > { %11791 = vst [vmem:[#allocation12_spill] sm:$0xff] %v6025_v7  ;;  %v1197_v47 = vsel %vm973_vm4, 1, %v5605_v4 }
  0xbc   : > { %v6034_v19 = vpop.f32.mrf.mxu0  ;;  %v6099_v58 = vpop.permute.xlu2 %1570 }
  0xbd   : > { %11795 = vst [vmem:[#allocation16_spill] sm:$0xff] %v6099_v58 }
  0xc1   : > { %1612 = vperm.xlu1 %5485, %v1035_v52   ;;  %5487 = vset.pattern.permute.xlu2 %v11209_v3 }
  0xc2   : > { %1615 = vperm.xlu2 %5487, %v1036_v39   ;;  %v427_v39 = vpack.c.bf16 %v405_v24, %v404_v23  ;;  %1730 = vperm.xlu0 %5488, %v6093_v57   ;;  %v407_v23 = vld [vmem:[%s5795_s24 + $0xa8] sm:$0xff] }
  0xc3   : > { %v6049_v16 = vpop.permute.xlu1 %1561  ;;  %v428_v28 = vpack.c.bf16 %v407_v23, %v406_v38  ;;  %v6126_v38 = vsel %vm983_vm7, 1, %v5605_v4  ;;  %vm977_vm7 = vcmp.eq.s32.totalorder %v6075_v43, 15 }
  0xc4   : > { %11792 = vst [vmem:[#allocation13_spill] sm:$0xff] %v6049_v16  ;;  %v6067_v32 = vpop.f32.mrf.mxu0  ;;  %v409_v16 = vld [vmem:[%s5795_s24 + $0xb8] sm:$0xff]  ;;  %v1201_v62 = vsel %vm977_vm7, 1, %v5605_v4 }
  0xc5   : > { %v6123_v58 = vpop.permute.xlu2 %1098 }
  0xc6   : > { %11797 = vst [vmem:[#allocation18_spill] sm:$0xff] %v6123_v58 }
  0xc9   : > { %1525 = vperm.xlu1 %5485, %v6053_v20  }
  0xca   : > { %1528 = vperm.xlu2 %5487, %v6058_v29   ;;  %551 = vmatmul.bf16.gmra.mxu0 %v427_v39  ;;  %v6109_v39 = vsel %vm980_vm5, 1, %v5605_v4  ;;  %vm995_vm5 = vcmp.eq.s32.totalorder %v5896_v55, 15  ;;  %v6255_v55 = vsel %vm996_vm6, 1, %v5605_v4 }
  0xcb   : > { %v6083_v44 = vpop.permute.xlu1 %1564  ;;  %5490 = vset.pattern.permute.xlu0 %v5605_v4 }
  0xcc   : > { %11794 = vst [vmem:[#allocation15_spill] sm:$0xff] %v6083_v44  ;;  %v6090_v52 = vpop.f32.mrf.mxu0  ;;  %1047 = vperm.xlu0 %5490, %v1008_v50   ;;  %v408_v44 = vld [vmem:[%s5795_s24 + $0xb0] sm:$0xff] }
  0xcd   : > { %v429_v53 = vpack.c.bf16 %v409_v16, %v408_v44  ;;  %v6173_v16 = vpop.permute.xlu0 %1065 }
  0xce   : > { %v6155_v56 = vpop.permute.xlu2 %1579 }
  0xcf   : > { %11800 = vst [vmem:[#allocation20_spill] sm:$0xff] %v6155_v56  ;;  %v411_v56 = vld [vmem:[%s5795_s24 + $0xc8] sm:$0xff] }
  0xd0   : > { %v430_v46 = vpack.c.bf16 %v411_v56, %v410_v8  ;;  %v6206_v56 = vsel %vm991_vm0, 1, %v5605_v4  ;;  %v6219_v8 = vsel %vm1004_vm2, 1, %v5605_v4  ;;  %vm11316_vm0 = vcmask 523264  }
  0xd1   : > { %1531 = vperm.xlu1 %5485, %v1008_v50   ;;  %v6143_v50 = vsel %vm985_vm9, 1, %v5605_v4  ;;  %vm998_vm9 = vcmp.eq.s32.totalorder %v5924_v5, 15  ;;  %v6288_v5 = vsel %vm1000_vm10, 1, %v5605_v4 }
  0xd2   : > { %1534 = vperm.xlu2 %5487, %v6087_v51  }
  0xd4   : > { %v6106_v24 = vpop.permute.xlu1 %1092  ;;  %v6112_v3 = vpop.f32.mrf.mxu0  ;;  %5493 = vset.pattern.permute.xlu0 %v11799_v12 }
  0xd5   : > { %11796 = vst [vmem:[#allocation17_spill] sm:$0xff] %v6106_v24 }
  0xd6   : > { %v6180_v44 = vpop.permute.xlu2 %1582 }
  0xd7   : > { %11802 = vst [vmem:[#allocation22_spill] sm:$0xff] %v6180_v44  ;;  %v6200_v44 = vpop.permute.xlu0 %1549 }
  0xd8   : > { %11804 = vst [vmem:[#allocation24_spill] sm:$0xff] %v6200_v44 }
  0xd9   : > { %1700 = vperm.xlu1 %5485, %v6102_v2  }
  0xda   : > { %1703 = vperm.xlu2 %5487, %v6109_v39   ;;  %556 = vmatmul.bf16.gmra.mxu0 %v428_v28  ;;  %v6138_v28 = vsel %vm994_vm8, 1, %v5605_v4  ;;  %vm997_vm8 = vcmp.eq.s32.totalorder %v5906_v59, 15 }
  0xdb   : > { %1745 = vperm.xlu0 %5493, %v6138_v28  }
  0xdc   : > { %v6129_v23 = vpop.f32.mrf.mxu0  ;;  %v6131_v27 = vpop.permute.xlu1 %1095 }
  0xdd   : > { %11798 = vst [vmem:[#allocation19_spill] sm:$0xff] %v6131_v27 }
  0xe1   : > { %1709 = vperm.xlu1 %5485, %v6119_v0  }
  0xe2   : > { %1712 = vperm.xlu2 %5487, %v6126_v38  }
  0xe3   : > { %1760 = vperm.xlu0 %5493, %v6163_v30  }
  0xe4   : > { %v6153_v17 = vpop.f32.mrf.mxu0 }
  0xe5   : > { %v6159_v34 = vpop.permute.xlu1 %1576 }
  0xe6   : > { %11801 = vst [vmem:[#allocation21_spill] sm:$0xff] %v6159_v34  ;;  %v6187_v34 = vsel %vm990_vm14, 1, %v5605_v4  ;;  %vm1003_vm14 = vcmp.eq.s32.totalorder %v5998_v48, 15 }
  0xe9   : > { %1718 = vperm.xlu1 %5485, %v6143_v50  }
  0xea   : > { %1721 = vperm.xlu2 %5487, %v6148_v54   ;;  %561 = vmatmul.bf16.gmra.mxu0 %v429_v53 }
  0xeb   : > { %1685 = vperm.xlu0 %5493, %v6178_v35  }
  0xec   : > { %v6170_v13 = vpop.f32.mrf.mxu0 }
  0xee   : > { %v6184_v53 = vpop.permute.xlu1 %1104 }
  0xef   : > { %11803 = vst [vmem:[#allocation23_spill] sm:$0xff] %v6184_v53  ;;  %v6203_v53 = vpop.permute.xlu2 %1107 }
  0xf0   : > { %11805 = vst [vmem:[#allocation25_spill] sm:$0xff] %v6203_v53 }
  0xf1   : > { %1727 = vperm.xlu1 %5485, %v6167_v14  }
  0xf2   : > { %5489 = vset.pattern.permute.xlu2 %v5605_v4 }
  0xf3   : > { %1041 = vperm.xlu2 %5489, %v6053_v20   ;;  %v6198_v20 = vsel %vm975_vm15, 1, %v5605_v4  ;;  %vm978_vm15 = vcmp.eq.s32.totalorder %v5780_v18, 15 }
  0xf4   : > { %v6192_v6 = vpop.f32.mrf.mxu0  ;;  %1688 = vperm.xlu0 %5493, %v6198_v20   ;;  %v1202_v31 = vsel %vm978_vm15, 1, %v5605_v4  ;;  %vm1142_vm15 = vcmp.eq.s32.totalorder %v6173_v16, 1 }
  0xf7   : > { %v6208_v11 = vpop.permute.xlu1 %1585  ;;  %v6229_v44 = vpop.permute.xlu2 %1591 }
  0xf8   : > { %11806 = vst [vmem:[#allocation26_spill] sm:$0xff] %v6208_v11  ;;  %v413_v11 = vld [vmem:[%s5795_s24 + $0xd8] sm:$0xff] }
  0xf9   : > { %1733 = vperm.xlu1 %5485, %v6187_v34   ;;  %11807 = vst [vmem:[#allocation27_spill] sm:$0xff] %v6229_v44  ;;  %v431_v27 = vpack.c.bf16 %v413_v11, %v412_v45  ;;  %v415_v44 = vld [vmem:[%s5795_s24 + $0xe8] sm:$0xff] }
  0xfa   : > { %566 = vmatmul.bf16.gmra.mxu0 %v430_v46  ;;  %v6224_v46 = vpop.permute.xlu0 %1077 }
  0xfb   : > { %1044 = vperm.xlu2 %5489, %v6058_v29   ;;  %v6215_v29 = vsel %vm992_vm1, 1, %v5605_v4 }
  0xfc   : > { %v6212_v42 = vpop.f32.mrf.mxu0  ;;  %1775 = vperm.xlu0 %5493, %v6219_v8  }
  0xff   : > { %v6231_v53 = vpop.permute.xlu1 %1588  ;;  %v6251_v11 = vpop.permute.xlu2 %1594 }
 0x100   : > { %11808 = vst [vmem:[#allocation28_spill] sm:$0xff] %v6231_v53  ;;  %v6270_v53 = vsel %vm997_vm8, 1, %v5605_v4 }
 0x101   : > { %1736 = vperm.xlu1 %5485, %v6206_v56   ;;  %11810 = vst [vmem:[#allocation30_spill] sm:$0xff] %v6251_v11  ;;  %v414_v11 = vld [vmem:[%s5795_s24 + $0xe0] sm:$0xff] }
 0x102   : > { %v6249_v40 = vpop.permute.xlu0 %1086  ;;  %v432_v58 = vpack.c.bf16 %v415_v44, %v414_v11 }
 0x103   : > { %5491 = vset.pattern.permute.xlu2 %v11799_v12  ;;  %11809 = vst [vmem:[#allocation29_spill] sm:$0xff] %v6249_v40 }
 0x104   : > { %1739 = vperm.xlu2 %5491, %v6215_v29   ;;  %v6239_v24 = vpop.f32.mrf.mxu0  ;;  %5495 = vset.pattern.permute.xlu0 %v5605_v4 }
 0x105   : > { %1230 = vperm.xlu0 %5495, %v1197_v47  }
 0x107   : > { %v6280_v40 = vpop.permute.xlu2 %1122 }
 0x108   : > { %v6257_v45 = vpop.permute.xlu1 %1116  ;;  %11813 = vst [vmem:[#allocation33_spill] sm:$0xff] %v6280_v40 }
 0x109   : > { %5492 = vset.pattern.permute.xlu1 %v5605_v4  ;;  %11811 = vst [vmem:[#allocation31_spill] sm:$0xff] %v6257_v45  ;;  %v6273_v45 = vsel %vm998_vm9, 1, %v5605_v4 }
 0x10a   : > { %1050 = vperm.xlu1 %5492, %v6087_v51   ;;  %571 = vmatmul.bf16.gmra.mxu0 %v431_v27  ;;  %v6247_v51 = vsel %vm995_vm5, 1, %v5605_v4  ;;  %v6275_v49 = vpop.permute.xlu0 %1089 }
 0x10b   : > { %11812 = vst [vmem:[#allocation32_spill] sm:$0xff] %v6275_v49  ;;  %v6306_v49 = vsel %vm1002_vm12, 1, %v5605_v4  ;;  %vm1143_vm12 = vcmp.eq.s32.totalorder %v5981_v37, 1 }
 0x10c   : > { %1742 = vperm.xlu2 %5491, %v6236_v36   ;;  %v6259_v27 = vpop.f32.mrf.mxu0 }
 0x10d   : > { %1242 = vperm.xlu0 %5495, %v1201_v62  }
 0x10f   : > { %v6296_v40 = vpop.permute.xlu2 %1603 }
 0x110   : > { %v6282_v59 = vpop.permute.xlu1 %1119  ;;  %11816 = vst [vmem:[#allocation36_spill] sm:$0xff] %v6296_v40 }
 0x111   : > { %11814 = vst [vmem:[#allocation34_spill] sm:$0xff] %v6282_v59  ;;  %v1225_v59 = vsel %vm1001_vm11, 1, %v5605_v4 }
 0x112   : > { %5494 = vset.pattern.permute.xlu1 %v11799_v12  ;;  %v6293_v11 = vpop.permute.xlu0 %1573 }
 0x113   : > { %1748 = vperm.xlu1 %5494, %v6247_v51   ;;  %11815 = vst [vmem:[#allocation35_spill] sm:$0xff] %v6293_v11 }
 0x114   : > { %1751 = vperm.xlu2 %5491, %v6255_v55   ;;  %v6277_v43 = vpop.f32.mrf.mxu0 }
 0x115   : > { %1251 = vperm.xlu0 %5495, %v6109_v39   ;;  %v417_v39 = vld [vmem:[%s5795_s24 + $0xf8] sm:$0xff] }
 0x117   : > { %v6316_v22 = vpop.permute.xlu2 %1606 }
 0x118   : > { %11818 = vst [vmem:[#allocation38_spill] sm:$0xff] %v6316_v22 }
 0x119   : > { %v6299_v21 = vpop.permute.xlu1 %1600 }
 0x11a   : > { %576 = vmatmul.bf16.gmra.mxu0 %v432_v58  ;;  %11817 = vst [vmem:[#allocation37_spill] sm:$0xff] %v6299_v21  ;;  %v416_v58 = vld [vmem:[%s5795_s24 + $0xf0] sm:$0xff]  ;;  %v6313_v25 = vpop.permute.xlu0 %1101 }
 0x11b   : > { %1754 = vperm.xlu1 %5494, %v6270_v53   ;;  %v433_v7 = vpack.c.bf16 %v417_v39, %v416_v58  ;;  %v6322_v58 = vsel %vm1003_vm14, 1, %v5605_v4  ;;  %vm1139_vm14 = vcmp.eq.s32.totalorder %v6150_v60, 1 }
 0x11c   : > { %1757 = vperm.xlu2 %5491, %v6273_v45   ;;  %v6290_v44 = vpop.f32.mrf.mxu0 }
 0x11d   : > { %1260 = vperm.xlu0 %5495, %v6126_v38   ;;  %v1200_v38 = vsel %vm976_vm13, 1, %v5605_v4  ;;  %vm1138_vm13 = vcmp.eq.s32.totalorder %v6121_v1, 1 }
 0x11f   : > { %v6331_v48 = vpop.permute.xlu2 %1038 }
 0x120   : > { %11821 = vst [vmem:[#allocation41_spill] sm:$0xff] %v6331_v48 }
 0x123   : > { %1763 = vperm.xlu1 %5494, %v6288_v5  }
 0x124   : > { %1682 = vperm.xlu2 %5491, %v1197_v47   ;;  %v6319_v47 = vpop.permute.xlu1 %1128 }
 0x125   : > { %v6308_v11 = vpop.f32.mrf.mxu0  ;;  %1269 = vperm.xlu0 %5495, %v6148_v54   ;;  %11819 = vst [vmem:[#allocation39_spill] sm:$0xff] %v6319_v47 }
 0x127   : > { %v6344_v18 = vpop.permute.xlu2 %1615 }
 0x128   : > { %11824 = vst [vmem:[#allocation44_spill] sm:$0xff] %v6344_v18  ;;  %v661_v18 = vmul.f32 %v6034_v19, %v6034_v19 }
 0x12a   : > { %581 = vmatmul.bf16.gmra.mxu0 %v433_v7  ;;  %v6329_v7 = vpop.permute.xlu0 %1110  ;;  %v693_v40 = vsel %vm11316_vm0, %v661_v18, 0.0 }
 0x12b   : > { %1766 = vperm.xlu1 %5494, %v1225_v59   ;;  %11820 = vst [vmem:[#allocation40_spill] sm:$0xff] %v6329_v7 }
 0x12c   : > { %1769 = vperm.xlu2 %5491, %v6306_v49   ;;  %v6334_v54 = vpop.permute.xlu1 %1609 }
 0x12d   : > { %v6324_v39 = vpop.f32.mrf.mxu0  ;;  %1278 = vperm.xlu0 %5495, %v6093_v57   ;;  %11822 = vst [vmem:[#allocation42_spill] sm:$0xff] %v6334_v54 }
 0x12f   : > { %v6357_v54 = vpop.permute.xlu2 %1528 }
 0x130   : > { %11827 = vst [vmem:[#allocation47_spill] sm:$0xff] %v6357_v54 }
 0x132   : > { %v6339_v47 = vpop.permute.xlu0 %1113 }
 0x133   : > { %1691 = vperm.xlu1 %5494, %v1200_v38   ;;  %11823 = vst [vmem:[#allocation43_spill] sm:$0xff] %v6339_v47 }
 0x134   : > { %1772 = vperm.xlu2 %5491, %v6322_v58   ;;  %v6347_v57 = vpop.permute.xlu1 %1612 }
 0x135   : > { %1287 = vperm.xlu0 %5495, %v6215_v29   ;;  %11825 = vst [vmem:[#allocation45_spill] sm:$0xff] %v6347_v57 }
 0x137   : > { %v6336_v22 = vpop.f32.mrf.mxu0 }
 0x13a   : > { %v6355_v29 = vpop.permute.xlu0 %1597 }
 0x13b   : > { %1694 = vperm.xlu1 %5494, %v1201_v62   ;;  %11826 = vst [vmem:[#allocation46_spill] sm:$0xff] %v6355_v29  ;;  %v663_v29 = vmul.f32 %v6090_v52, %v6090_v52 }
 0x13c   : > { %1697 = vperm.xlu2 %5491, %v1202_v31  }
 0x13d   : > { %1296 = vperm.xlu0 %5495, %v6247_v51  }
 0x13f   : > { %v6341_v21 = vpop.f32.mrf.mxu0 }
 0x143   : > { %5496 = vset.pattern.permute.xlu1 %v5605_v4 }
 0x144   : > { %1233 = vperm.xlu1 %5496, %v6178_v35   ;;  %5497 = vset.pattern.permute.xlu2 %v5605_v4  ;;  %v6360_v35 = vpop.permute.xlu1 %1525  ;;  %v6365_v4 = vpop.permute.xlu0 %1125 }
 0x145   : > { %1236 = vperm.xlu2 %5497, %v6198_v20   ;;  %1305 = vperm.xlu0 %5495, %v6273_v45   ;;  %11828 = vst [vmem:[#allocation48_spill] sm:$0xff] %v6360_v35  ;;  %v6367_v20 = vpop.permute.xlu2 %1534 }
 0x146   : > { %11829 = vst [vmem:[#allocation49_spill] sm:$0xff] %v6365_v4  ;;  %v593_v4 = vsel %vm11316_vm0, %v6067_v32, 0.0 }
 0x147   : > { %v6352_v62 = vpop.f32.mrf.mxu0  ;;  %11830 = vst [vmem:[#allocation50_spill] sm:$0xff] %v6367_v20  ;;  %v664_v20 = vmul.f32 %v6112_v3, %v6112_v3 }
 0x14c   : > { %1323 = vperm.xlu1 %5496, %v6219_v8   ;;  %v6369_v8 = vpop.permute.xlu1 %1531  ;;  %v6376_v45 = vpop.permute.xlu0 %1131 }
 0x14d   : > { %1239 = vperm.xlu2 %5497, %v1200_v38   ;;  %1314 = vperm.xlu0 %5495, %v1225_v59   ;;  %11831 = vst [vmem:[#allocation51_spill] sm:$0xff] %v6369_v8  ;;  %v6378_v38 = vpop.permute.xlu2 %1703 }
 0x14e   : > { %11832 = vst [vmem:[#allocation52_spill] sm:$0xff] %v6376_v45 }
 0x14f   : > { %v6362_v57 = vpop.f32.mrf.mxu0  ;;  %11833 = vst [vmem:[#allocation53_spill] sm:$0xff] %v6378_v38 }
 0x154   : > { %1245 = vperm.xlu1 %5496, %v1202_v31   ;;  %v6386_v31 = vpop.permute.xlu0 %1522 }
 0x155   : > { %1248 = vperm.xlu2 %5497, %v6102_v2   ;;  %5498 = vset.pattern.permute.xlu0 %v11799_v12  ;;  %v6380_v2 = vpop.permute.xlu1 %1700  ;;  %11835 = vst [vmem:[#allocation55_spill] sm:$0xff] %v6386_v31  ;;  %v662_v31 = vmul.f32 %v6067_v32, %v6067_v32 }
 0x156   : > { %11834 = vst [vmem:[#allocation54_spill] sm:$0xff] %v6380_v2 }
 0x157   : > { %v6371_v51 = vpop.f32.mrf.mxu0  ;;  %v695_v7 = vsel %vm11316_vm0, %v662_v31, 0.0 }
 0x15c   : > { %1254 = vperm.xlu1 %5496, %v6023_v63   ;;  %v6390_v63 = vpop.permute.xlu2 %1712 }
 0x15d   : > { %1257 = vperm.xlu2 %5497, %v6119_v0   ;;  %11836 = vst [vmem:[#allocation56_spill] sm:$0xff] %v6390_v63  ;;  %v6393_v0 = vpop.permute.xlu1 %1709 }
 0x15e   : > { %11837 = vst [vmem:[#allocation57_spill] sm:$0xff] %v6393_v0  ;;  %v597_v0 = vsel %vm11316_vm0, %v6112_v3, 0.0 }
 0x15f   : > { %v6382_v59 = vpop.f32.mrf.mxu0 }
 0x164   : > { %1263 = vperm.xlu1 %5496, %v6037_v9   ;;  %v6401_v9 = vpop.permute.xlu0 %1537 }
 0x165   : > { %1266 = vperm.xlu2 %5497, %v6143_v50   ;;  %11838 = vst [vmem:[#allocation58_spill] sm:$0xff] %v6401_v9  ;;  %v660_v50 = vmul.f32 %v6020_v61, %v6020_v61  ;;  %v6412_v35 = vpop.permute.xlu1 %1718 }
 0x166   : > { %11840 = vst [vmem:[#allocation60_spill] sm:$0xff] %v6412_v35  ;;  %v697_v35 = vsel %vm11316_vm0, %v663_v29, 0.0 }
 0x167   : > { %v6388_v54 = vpop.f32.mrf.mxu0  ;;  %v692_v45 = vsel %vm11316_vm0, %v660_v50, 0.0  ;;  %v665_v50 = vmul.f32 %v6129_v23, %v6129_v23 }
 0x168   : > { %v694_v48 = vadd.f32 %v693_v40, %v692_v45  ;;  %v666_v40 = vmul.f32 %v6153_v17, %v6153_v17 }
 0x169   : > { %v701_v2 = vsel %vm11316_vm0, %v665_v50, 0.0 }
 0x16a   : > { %v696_v31 = vadd.f32 %v695_v7, %v694_v48  ;;  %v667_v7 = vmul.f32 %v6170_v13, %v6170_v13 }
 0x16c   : > { %1272 = vperm.xlu1 %5496, %v6070_v33   ;;  %v591_v33 = vsel %vm11316_vm0, %v6034_v19, 0.0  ;;  %v6441_v45 = vpop.permute.xlu0 %1706 }
 0x16d   : > { %1275 = vperm.xlu2 %5497, %v6167_v14   ;;  %v6409_v14 = vpop.permute.xlu2 %1721  ;;  %11841 = vst [vmem:[#allocation61_spill] sm:$0xff] %v6441_v45 }
 0x16e   : > { %11839 = vst [vmem:[#allocation59_spill] sm:$0xff] %v6409_v14  ;;  %v705_v14 = vsel %vm11316_vm0, %v667_v7, 0.0 }
 0x16f   : > { %v6396_v12 = vpop.f32.mrf.mxu0 }
 0x174   : > { %1281 = vperm.xlu1 %5496, %v6187_v34   ;;  %v590_v34 = vsel %vm11316_vm0, %v6020_v61, 0.0 }
 0x175   : > { %1284 = vperm.xlu2 %5497, %v6206_v56   ;;  %v592_v47 = vadd.f32 %v591_v33, %v590_v34  ;;  %v595_v56 = vsel %vm11316_vm0, %v6090_v52, 0.0  ;;  %v699_v34 = vsel %vm11316_vm0, %v664_v20, 0.0  ;;  %v6448_v48 = vpop.permute.xlu2 %1041 }
 0x176   : > { %11842 = vst [vmem:[#allocation62_spill] sm:$0xff] %v6448_v48  ;;  %v609_v48 = vsel %vm11316_vm0, %v6239_v24, 0.0 }
 0x177   : > { %v594_v8 = vadd.f32 %v593_v4, %v592_v47  ;;  %v6427_v18 = vpop.f32.mrf.mxu0  ;;  %v599_v47 = vsel %vm11316_vm0, %v6129_v23, 0.0  ;;  %v698_v4 = vadd.f32 %v697_v35, %v696_v31  ;;  %v603_v35 = vsel %vm11316_vm0, %v6170_v13, 0.0 }
 0x179   : > { %v596_v33 = vadd.f32 %v595_v56, %v594_v8  ;;  %v700_v20 = vadd.f32 %v699_v34, %v698_v4  ;;  %v6450_v56 = vpop.permute.xlu1 %1727  ;;  %v605_v34 = vsel %vm11316_vm0, %v6192_v6, 0.0 }
 0x17a   : > { %11843 = vst [vmem:[#allocation63_spill] sm:$0xff] %v6450_v56 }
 0x17b   : > { %v598_v29 = vadd.f32 %v597_v0, %v596_v33  ;;  %v668_v0 = vmul.f32 %v6192_v6, %v6192_v6  ;;  %v702_v31 = vadd.f32 %v701_v2, %v700_v20  ;;  %v670_v2 = vmul.f32 %v6239_v24, %v6239_v24 }
 0x17c   : > { %1290 = vperm.xlu1 %5496, %v6236_v36   ;;  %v601_v36 = vsel %vm11316_vm0, %v6153_v17, 0.0 }
 0x17d   : > { %1293 = vperm.xlu2 %5497, %v6138_v28   ;;  %v600_v8 = vadd.f32 %v599_v47, %v598_v29  ;;  %v703_v28 = vsel %vm11316_vm0, %v666_v40, 0.0  ;;  %v669_v47 = vmul.f32 %v6212_v42, %v6212_v42  ;;  %v707_v4 = vsel %vm11316_vm0, %v668_v0, 0.0  ;;  %v6476_v0 = vpop.permute.xlu0 %1715 }
 0x17e   : > { %v704_v40 = vadd.f32 %v703_v28, %v702_v31  ;;  %11844 = vst [vmem:[#allocation64_spill] sm:$0xff] %v6476_v0  ;;  %v611_v31 = vsel %vm11316_vm0, %v6259_v27, 0.0 }
 0x17f   : > { %v602_v50 = vadd.f32 %v601_v36, %v600_v8  ;;  %v6457_v33 = vpop.f32.mrf.mxu0  ;;  %v607_v36 = vsel %vm11316_vm0, %v6212_v42, 0.0  ;;  %v709_v8 = vsel %vm11316_vm0, %v669_v47, 0.0 }
 0x180   : > { %v706_v20 = vadd.f32 %v705_v14, %v704_v40  ;;  %v6483_v14 = vpop.permute.xlu2 %1044 }
 0x181   : > { %v604_v29 = vadd.f32 %v603_v35, %v602_v50  ;;  %v711_v50 = vsel %vm11316_vm0, %v670_v2, 0.0  ;;  %11845 = vst [vmem:[#allocation65_spill] sm:$0xff] %v6483_v14  ;;  %v6485_v40 = vpop.permute.xlu1 %1733  ;;  %v673_v2 = vmul.f32 %v6290_v44, %v6290_v44 }
 0x182   : > { %v708_v28 = vadd.f32 %v707_v4, %v706_v20  ;;  %11846 = vst [vmem:[#allocation66_spill] sm:$0xff] %v6485_v40  ;;  %v617_v40 = vsel %vm11316_vm0, %v6308_v11, 0.0 }
 0x183   : > { %v606_v7 = vadd.f32 %v605_v34, %v604_v29 }
 0x184   : > { %1299 = vperm.xlu1 %5496, %v6255_v55   ;;  %v671_v55 = vmul.f32 %v6259_v27, %v6259_v27  ;;  %v710_v47 = vadd.f32 %v709_v8, %v708_v28  ;;  %v674_v8 = vmul.f32 %v6308_v11, %v6308_v11 }
 0x185   : > { %1302 = vperm.xlu2 %5497, %v6270_v53   ;;  %v608_v35 = vadd.f32 %v607_v36, %v606_v7  ;;  %v672_v53 = vmul.f32 %v6277_v43, %v6277_v43  ;;  %v613_v36 = vsel %vm11316_vm0, %v6277_v43, 0.0 }
 0x186   : > { %v713_v4 = vsel %vm11316_vm0, %v671_v55, 0.0  ;;  %v712_v7 = vadd.f32 %v711_v50, %v710_v47 }
 0x187   : > { %v610_v34 = vadd.f32 %v609_v48, %v608_v35  ;;  %v6487_v29 = vpop.f32.mrf.mxu0  ;;  %v715_v14 = vsel %vm11316_vm0, %v672_v53, 0.0  ;;  %v615_v48 = vsel %vm11316_vm0, %v6290_v44, 0.0  ;;  %v717_v35 = vsel %vm11316_vm0, %v673_v2, 0.0 }
 0x188   : > { %v714_v28 = vadd.f32 %v713_v4, %v712_v7  ;;  %v719_v53 = vsel %vm11316_vm0, %v674_v8, 0.0 }
 0x189   : > { %v612_v20 = vadd.f32 %v611_v31, %v610_v34  ;;  %v619_v34 = vsel %vm11316_vm0, %v6324_v39, 0.0 }
 0x18a   : > { %v716_v50 = vadd.f32 %v715_v14, %v714_v28  ;;  %v621_v14 = vsel %vm11316_vm0, %v6336_v22, 0.0 }
 0x18b   : > { %v614_v55 = vadd.f32 %v613_v36, %v612_v20  ;;  %v6511_v36 = vpop.permute.xlu0 %1724  ;;  %v677_v20 = vmul.f32 %v6341_v21, %v6341_v21 }
 0x18c   : > { %1308 = vperm.xlu1 %5496, %v6163_v30   ;;  %v675_v30 = vmul.f32 %v6324_v39, %v6324_v39  ;;  %v718_v4 = vadd.f32 %v717_v35, %v716_v50  ;;  %11847 = vst [vmem:[#allocation67_spill] sm:$0xff] %v6511_v36  ;;  %v623_v35 = vsel %vm11316_vm0, %v6341_v21, 0.0 }
 0x18d   : > { %1311 = vperm.xlu2 %5497, %v6288_v5   ;;  %v616_v31 = vadd.f32 %v615_v48, %v614_v55  ;;  %v676_v5 = vmul.f32 %v6336_v22, %v6336_v22  ;;  %v6520_v48 = vpop.permute.xlu2 %1739  ;;  %v725_v56 = vsel %vm11316_vm0, %v677_v20, 0.0 }
 0x18e   : > { %v721_v7 = vsel %vm11316_vm0, %v675_v30, 0.0  ;;  %11848 = vst [vmem:[#allocation68_spill] sm:$0xff] %v6520_v48  ;;  %v720_v8 = vadd.f32 %v719_v53, %v718_v4  ;;  %v678_v30 = vmul.f32 %v6352_v62, %v6352_v62  ;;  %v679_v53 = vmul.f32 %v6362_v57, %v6362_v57 }
 0x18f   : > { %v618_v47 = vadd.f32 %v617_v40, %v616_v31  ;;  %v6513_v2 = vpop.f32.mrf.mxu0  ;;  %v6523_v40 = vpop.permute.xlu1 %1736  ;;  %v723_v28 = vsel %vm11316_vm0, %v676_v5, 0.0  ;;  %v627_v4 = vsel %vm11316_vm0, %v6362_v57, 0.0 }
 0x190   : > { %11849 = vst [vmem:[#allocation69_spill] sm:$0xff] %v6523_v40  ;;  %v722_v31 = vadd.f32 %v721_v7, %v720_v8  ;;  %v729_v20 = vsel %vm11316_vm0, %v679_v53, 0.0  ;;  %v682_v53 = vmul.f32 %v6388_v54, %v6388_v54 }
 0x191   : > { %v620_v55 = vadd.f32 %v619_v34, %v618_v47  ;;  %v727_v47 = vsel %vm11316_vm0, %v678_v30, 0.0 }
 0x192   : > { %v724_v34 = vadd.f32 %v723_v28, %v722_v31  ;;  %v681_v28 = vmul.f32 %v6382_v59, %v6382_v59 }
 0x193   : > { %v622_v50 = vadd.f32 %v621_v14, %v620_v55  ;;  %v629_v55 = vsel %vm11316_vm0, %v6371_v51, 0.0 }
 0x194   : > { %1317 = vperm.xlu1 %5496, %v6306_v49   ;;  %v625_v49 = vsel %vm11316_vm0, %v6352_v62, 0.0  ;;  %v726_v7 = vadd.f32 %v725_v56, %v724_v34  ;;  %v733_v48 = vsel %vm11316_vm0, %v681_v28, 0.0 }
 0x195   : > { %1320 = vperm.xlu2 %5497, %v6322_v58   ;;  %v624_v5 = vadd.f32 %v623_v35, %v622_v50  ;;  %v680_v58 = vmul.f32 %v6371_v51, %v6371_v51  ;;  %v6548_v50 = vpop.permute.xlu0 %1730  ;;  %v6553_v56 = vpop.permute.xlu2 %1742 }
 0x196   : > { %v728_v35 = vadd.f32 %v727_v47, %v726_v7  ;;  %11850 = vst [vmem:[#allocation70_spill] sm:$0xff] %v6548_v50  ;;  %v633_v47 = vsel %vm11316_vm0, %v6388_v54, 0.0  ;;  %v735_v7 = vsel %vm11316_vm0, %v682_v53, 0.0  ;;  %v637_v50 = vsel %vm11316_vm0, %v6427_v18, 0.0 }
 0x197   : > { %v626_v14 = vadd.f32 %v625_v49, %v624_v5  ;;  %v6541_v8 = vpop.f32.mrf.mxu0  ;;  %v731_v31 = vsel %vm11316_vm0, %v680_v58, 0.0  ;;  %v631_v49 = vsel %vm11316_vm0, %v6382_v59, 0.0  ;;  %11851 = vst [vmem:[#allocation71_spill] sm:$0xff] %v6553_v56  ;;  %v6557_v40 = vpop.permute.xlu1 %1050  ;;  %v635_v56 = vsel %vm11316_vm0, %v6396_v12, 0.0 }
 0x198   : > { %v730_v5 = vadd.f32 %v729_v20, %v728_v35  ;;  %v684_v20 = vmul.f32 %v6427_v18, %v6427_v18 }
 0x199   : > { %v628_v30 = vadd.f32 %v627_v4, %v626_v14  ;;  %v683_v4 = vmul.f32 %v6396_v12, %v6396_v12 }
 0x19a   : > { %v732_v58 = vadd.f32 %v731_v31, %v730_v5  ;;  %v685_v31 = vmul.f32 %v6457_v33, %v6457_v33  ;;  %v639_v5 = vsel %vm11316_vm0, %v6457_v33, 0.0 }
 0x19b   : > { %v630_v34 = vadd.f32 %v629_v55, %v628_v30  ;;  %v737_v28 = vsel %vm11316_vm0, %v683_v4, 0.0 }
 0x19c   : > { %v734_v35 = vadd.f32 %v733_v48, %v732_v58  ;;  %v686_v48 = vmul.f32 %v6487_v29, %v6487_v29  ;;  %v741_v36 = vsel %vm11316_vm0, %v685_v31, 0.0 }
 0x19d   : > { %v632_v14 = vadd.f32 %v631_v49, %v630_v34  ;;  %v739_v34 = vsel %vm11316_vm0, %v684_v20, 0.0 }
 0x19e   : > { %v736_v49 = vadd.f32 %v735_v7, %v734_v35  ;;  %v641_v7 = vsel %vm11316_vm0, %v6487_v29, 0.0  ;;  %v743_v0 = vsel %vm11316_vm0, %v686_v48, 0.0 }
 0x19f   : > { %v634_v55 = vadd.f32 %v633_v47, %v632_v14  ;;  %v6569_v30 = vpop.f32.mrf.mxu0  ;;  %v6581_v47 = vpop.permute.xlu0 %1047 }
 0x1a0   : > { %11852 = vst [vmem:[#allocation72_spill] sm:$0xff] %v6581_v47  ;;  %v738_v4 = vadd.f32 %v737_v28, %v736_v49  ;;  %v6583_v14 = vpop.permute.xlu2 %1751  ;;  %v688_v28 = vmul.f32 %v6541_v8, %v6541_v8 }
 0x1a1   : > { %v636_v53 = vadd.f32 %v635_v56, %v634_v55  ;;  %11853 = vst [vmem:[#allocation73_spill] sm:$0xff] %v6583_v14  ;;  %v687_v56 = vmul.f32 %v6513_v2, %v6513_v2  ;;  %v6590_v55 = vpop.permute.xlu1 %1748 }
 0x1a2   : > { %v740_v20 = vadd.f32 %v739_v34, %v738_v4  ;;  %11854 = vst [vmem:[#allocation74_spill] sm:$0xff] %v6590_v55  ;;  %v645_v34 = vsel %vm11316_vm0, %v6541_v8, 0.0  ;;  %v747_v4 = vsel %vm11316_vm0, %v688_v28, 0.0  ;;  %v647_v55 = vsel %vm11316_vm0, %v6569_v30, 0.0 }
 0x1a3   : > { %v638_v58 = vadd.f32 %v637_v50, %v636_v53  ;;  %v643_v50 = vsel %vm11316_vm0, %v6513_v2, 0.0  ;;  %v745_v14 = vsel %vm11316_vm0, %v687_v56, 0.0 }
 0x1a4   : > { %v742_v31 = vadd.f32 %v741_v36, %v740_v20 }
 0x1a5   : > { %v640_v35 = vadd.f32 %v639_v5, %v638_v58  ;;  %v689_v5 = vmul.f32 %v6569_v30, %v6569_v30 }
 0x1a6   : > { %v744_v58 = vadd.f32 %v743_v0, %v742_v31 }
 0x1a7   : > { %v642_v49 = vadd.f32 %v641_v7, %v640_v35  ;;  %v6597_v53 = vpop.f32.mrf.mxu0  ;;  %v749_v56 = vsel %vm11316_vm0, %v689_v5, 0.0  ;;  %v6612_v63 = vpop.permute.xlu0 %1745 }
 0x1a8   : > { %v690_v36 = vmul.f32 %v6597_v53, %v6597_v53  ;;  %v746_v20 = vadd.f32 %v745_v14, %v744_v58  ;;  %v649_v35 = vsel %vm11316_vm0, %v6597_v53, 0.0  ;;  %11855 = vst [vmem:[#allocation75_spill] sm:$0xff] %v6612_v63 }
 0x1a9   : > { %v644_v48 = vadd.f32 %v643_v50, %v642_v49  ;;  %v6614_v50 = vpop.permute.xlu2 %1757  ;;  %v6617_v49 = vpop.permute.xlu1 %1754 }
 0x1aa   : > { %v748_v45 = vadd.f32 %v747_v4, %v746_v20  ;;  %11856 = vst [vmem:[#allocation76_spill] sm:$0xff] %v6614_v50  ;;  %v751_v28 = vsel %vm11316_vm0, %v690_v36, 0.0 }
 0x1ab   : > { %v646_v7 = vadd.f32 %v645_v34, %v644_v48  ;;  %11857 = vst [vmem:[#allocation77_spill] sm:$0xff] %v6617_v49 }
 0x1ac   : > { %v750_v9 = vadd.f32 %v749_v56, %v748_v45 }
 0x1ad   : > { %v648_v0 = vadd.f32 %v647_v55, %v646_v7 }
 0x1ae   : > { %v752_v5 = vadd.f32 %v751_v28, %v750_v9 }
 0x1af   : > { %v650_v31 = vadd.f32 %v649_v35, %v648_v0  ;;  %v6619_v38 = vpop.f32.mrf.mxu0  ;;  %v6626_v20 = vpop.permute.xlu0 %1760 }
 0x1b0   : > { %v651_v14 = vsel %vm11316_vm0, %v6619_v38, 0.0  ;;  %v691_v34 = vmul.f32 %v6619_v38, %v6619_v38  ;;  %11858 = vst [vmem:[#allocation78_spill] sm:$0xff] %v6626_v20 }
 0x1b1   : > { %v652_v58 = vadd.f32 %v651_v14, %v650_v31  ;;  %v6628_v56 = vpop.permute.xlu2 %1682  ;;  %v6630_v0 = vpop.permute.xlu1 %1763 }
 0x1b2   : > { %v753_v55 = vsel %vm11316_vm0, %v691_v34, 0.0  ;;  %11859 = vst [vmem:[#allocation79_spill] sm:$0xff] %v6628_v56  ;;  %vm11315_vm11 = vcmp.eq.s32.totalorder %v6628_v56, 1 }
 0x1b3   : > { %v653_v48 = vrot.slane %v652_v58, 4  ;;  %v754_v4 = vadd.f32 %v753_v55, %v752_v5  ;;  %11860 = vst [vmem:[#allocation80_spill] sm:$0xff] %v6630_v0 }
 0x1b5   : > { %v654_v7 = vadd.f32 %v653_v48, %v652_v58  ;;  %v755_v36 = vrot.slane %v754_v4, 4 }
 0x1b7   : > { %v655_v35 = vrot.slane %v654_v7, 2  ;;  %v756_v45 = vadd.f32 %v755_v36, %v754_v4  ;;  %v6634_v34 = vpop.permute.xlu0 %1685 }
 0x1b8   : > { %11861 = vst [vmem:[#allocation81_spill] sm:$0xff] %v6634_v34  ;;  %vm11307_vm9 = vcmp.eq.s32.totalorder %v6634_v34, 1 }
 0x1b9   : > { %v656_v49 = vadd.f32 %v655_v35, %v654_v7  ;;  %v757_v50 = vrot.slane %v756_v45, 2  ;;  %v6638_v55 = vpop.permute.xlu2 %1769  ;;  %v6640_v48 = vpop.permute.xlu1 %1766 }
 0x1ba   : > { %11862 = vst [vmem:[#allocation82_spill] sm:$0xff] %v6638_v55 }
 0x1bb   : > { %v657_v63 = vrot.slane %v656_v49, 1  ;;  %v758_v47 = vadd.f32 %v757_v50, %v756_v45  ;;  %11863 = vst [vmem:[#allocation83_spill] sm:$0xff] %v6640_v48 }
 0x1bd   : > { %v658_v9 = vadd.f32 %v657_v63, %v656_v49  ;;  %v759_v28 = vrot.slane %v758_v47, 1 }
 0x1bf   : > { %v6632_v31 = vmul.f32 0.00390625, %v658_v9  ;;  %v760_v14 = vadd.f32 %v759_v28, %v758_v47  ;;  %v6644_v50 = vpop.permute.xlu0 %1688 }
 0x1c0   : > { %11864 = vst [vmem:[#allocation84_spill] sm:$0xff] %v6644_v50 }
 0x1c1   : > { %v761_v5 = vmul.f32 0.00390625, %v760_v14  ;;  %v762_v58 = vmul.f32 %v6632_v31, %v6632_v31  ;;  %v6646_v47 = vpop.permute.xlu2 %1772  ;;  %v6648_v49 = vpop.permute.xlu1 %1691  ;;  %v790_v37 = vsub.f32 %v6290_v44, %v6632_v31  ;;  %v791_v60 = vsub.f32 %v6308_v11, %v6632_v31 }
 0x1c2   : > { %11865 = vst [vmem:[#allocation85_spill] sm:$0xff] %v6646_v47  ;;  %v777_v47 = vsub.f32 %v6020_v61, %v6632_v31  ;;  %v792_v1 = vsub.f32 %v6324_v39, %v6632_v31 }
 0x1c3   : > { %v763_v4 = vsub.f32 %v761_v5, %v762_v58  ;;  %11866 = vst [vmem:[#allocation86_spill] sm:$0xff] %v6648_v49 }
 0x1c5   : > { %v764_v7 = vmax.f32 %v763_v4, 0.0  ;;  %v1421_v4 = vlaneseq }
 0x1c7   : > { %v765_v36 = vadd.f32 1e-05, %v764_v7  ;;  %v6650_v14 = vpop.permute.xlu0 %1775  ;;  %v587_v7 = vld [vmem:[%s11200_s3] sm:$0x1] }
 0x1c8   : > { %11867 = vst [vmem:[#allocation87_spill] sm:$0xff] %v6650_v14 }
 0x1c9   : > { %5502 = vrsqrt.f32 %v765_v36  ;;  %v6652_v5 = vpop.permute.xlu2 %1697  ;;  %v6654_v58 = vpop.permute.xlu1 %1694  ;;  %vm772_vm2 = vweird.f32 %v765_v36 }
 0x1ca   : > { %11868 = vst [vmem:[#allocation88_spill] sm:$0xff] %v6652_v5 }
 0x1cb   : > { %11869 = vst [vmem:[#allocation89_spill] sm:$0xff] %v6654_v58 }
 0x1cf   : > { %v5503_v35 = vpop.eup %5502 }
 0x1d0   : > { %v767_v45 = vmul.f32 %v5503_v35, %v765_v36  ;;  %vm773_vm1 = vweird.f32 %v5503_v35  ;;  %v780_v36 = vsub.f32 %v6090_v52, %v6632_v31 }
 0x1d1   : > { %vm774_vm3 = vmor %vm772_vm2, %vm773_vm1  ;;  %vm1145_vm1 = vcmp.eq.s32.totalorder %v5989_v41, 1  ;;  %vm1146_vm2 = vcmp.eq.s32.totalorder %v6224_v46, 1 }
 0x1d2   : > { %v768_v9 = vmul.f32 %v5503_v35, %v767_v45  ;;  %v6659_v45 = vshrl.u32 %v1421_v4, 7 }
 0x1d4   : > { %v769_v28 = vmul.f32 0.5, %v768_v9  ;;  %v808_v9 = vsub.f32 %v6619_v38, %v6632_v31  ;;  %v807_v38 = vsub.f32 %v6597_v53, %v6632_v31  ;;  %vm11318_vm4 = vcmp.lt.s32.totalorder %v6659_v45, 1  ;;  %v1234_v53 = vpop.permute.xlu1 %1233 }
 0x1d5   : > { %vm1326_vm7 = vcmp.eq.s32.totalorder %v1234_v53, 1  ;;  %vm1488_vm8 = vcmp.lt.s32.totalorder %v6659_v45, 7 }
 0x1d6   : > { %v770_v48 = vsub.f32 1.5, %v769_v28  ;;  %v6666_v28 = vld [vmem:[%s11201_s4] ss:$0 sm:$0xff] }
 0x1d8   : > { %v771_v63 = vmul.f32 %v5503_v35, %v770_v48  ;;  %v779_v48 = vsub.f32 %v6067_v32, %v6632_v31 }
 0x1da   : > { %v775_v49 = vsel %vm774_vm3, %v5503_v35, %v771_v63  ;;  %v781_v63 = vsub.f32 %v6112_v3, %v6632_v31  ;;  %v1237_v3 = vpop.permute.xlu2 %1236 }
 0x1db   : > { %v776_v50 = vmul.f32 %v775_v49, %v587_v7  ;;  %v1231_v49 = vpop.permute.xlu0 %1230  ;;  %vm1327_vm6 = vcmp.eq.s32.totalorder %v1237_v3, 1  ;;  %v800_v3 = vsub.f32 %v6396_v12, %v6632_v31 }
 0x1dc   : > { %vm1325_vm5 = vcmp.eq.s32.totalorder %v1231_v49, 1 }
 0x1dd   : > { %v6668_v14 = vperm.slane %v776_v50, 0 }
 0x1df   : > { %v841_v35 = vmul.f32 %v6668_v14, %v808_v9  ;;  %v810_v50 = vmul.f32 %v6668_v14, %v777_v47  ;;  %v812_v4 = vmul.f32 %v6668_v14, %v779_v48  ;;  %v813_v61 = vmul.f32 %v6668_v14, %v780_v36 }
 0x1e0   : > { %v814_v32 = vmul.f32 %v6668_v14, %v781_v63  ;;  %v840_v52 = vmul.f32 %v6668_v14, %v807_v38 }
 0x1e1   : > { %v876_v7 = vadd.f32 %v6666_v28, %v841_v35  ;;  %v845_v55 = vadd.f32 %v6666_v28, %v810_v50  ;;  %v847_v9 = vadd.f32 %v6666_v28, %v812_v4  ;;  %v848_v47 = vadd.f32 %v6666_v28, %v813_v61 }
 0x1e2   : > { %v849_v48 = vadd.f32 %v6666_v28, %v814_v32  ;;  %v875_v36 = vadd.f32 %v6666_v28, %v840_v52  ;;  %v794_v61 = vsub.f32 %v6341_v21, %v6632_v31  ;;  %v795_v32 = vsub.f32 %v6352_v62, %v6632_v31 }
 0x1e3   : > { %v6693_v0 = vmax.f32 %v876_v7, 0.0  ;;  %v6695_v63 = vmax.f32 %v845_v55, 0.0  ;;  %v6697_v38 = vmax.f32 %v847_v9, 0.0  ;;  %v6699_v35 = vmax.f32 %v848_v47, 0.0 }
 0x1e4   : > { %v6703_v50 = vmax.f32 %v849_v48, 0.0  ;;  %v6705_v4 = vmax.f32 %v875_v36, 0.0  ;;  %v796_v55 = vsub.f32 %v6362_v57, %v6632_v31  ;;  %v797_v57 = vsub.f32 %v6371_v51, %v6632_v31 }
 0x1e5   : > { %11870 = vst [vmem:[#allocation90_spill] sm:$0xff] %v6693_v0  ;;  %v6715_v52 = vsel %vm1326_vm7, %v6693_v0, %v6699_v35  ;;  %v798_v9 = vsub.f32 %v6382_v59, %v6632_v31  ;;  %v799_v48 = vsub.f32 %v6388_v54, %v6632_v31  ;;  %v801_v36 = vsub.f32 %v6427_v18, %v6632_v31 }
 0x1e6   : > { %11871 = vst [vmem:[#allocation91_spill] sm:$0xff] %v6695_v63  ;;  %v6720_v7 = vsel %vm1325_vm5, %v6705_v4, %v6697_v38  ;;  %v6725_v53 = vsel %vm1327_vm6, %v6695_v63, %v6703_v50  ;;  %v3336_v62 = vrot.slane %v6715_v52, 1  ;;  %v802_v51 = vsub.f32 %v6457_v33, %v6632_v31 }
 0x1e7   : > { %11872 = vst [vmem:[#allocation92_spill] sm:$0xff] %v6697_v38  ;;  %v3271_v47 = vrot.slane %v6720_v7, 7  ;;  %v803_v59 = vsub.f32 %v6487_v29, %v6632_v31  ;;  %v11879_v49 = vrot.slane %v6715_v52, 7  ;;  %v11881_v12 = vrot.slane %v6725_v53, 1 }
 0x1e8   : > { %11873 = vst [vmem:[#allocation93_spill] sm:$0xff] %v6699_v35  ;;  %v804_v21 = vsub.f32 %v6513_v2, %v6632_v31  ;;  %v806_v33 = vsub.f32 %v6569_v30, %v6632_v31  ;;  %v828_v20 = vmul.f32 %v6668_v14, %v795_v32  ;;  %v829_v0 = vmul.f32 %v6668_v14, %v796_v55 }
 0x1e9   : > { %11874 = vst [vmem:[#allocation94_spill] sm:$0xff] %v6703_v50  ;;  %v6751_v54 = vsel %vm11318_vm4, %v3271_v47, %v11879_v49  ;;  %v6757_v18 = vsel %vm1488_vm8, %v3336_v62, %v11881_v12  ;;  %v827_v49 = vmul.f32 %v6668_v14, %v794_v61  ;;  %v830_v12 = vmul.f32 %v6668_v14, %v797_v57 }
 0x1ea   : > { %11875 = vst [vmem:[#allocation95_spill] sm:$0xff] %v6705_v4  ;;  %v6767_v29 = vsel %vm11307_vm9, %v6751_v54, %v6757_v18  ;;  %v831_v4 = vmul.f32 %v6668_v14, %v798_v9  ;;  %v832_v2 = vmul.f32 %v6668_v14, %v799_v48  ;;  %v833_v30 = vmul.f32 %v6668_v14, %v800_v3 }
 0x1eb   : > { %11876 = vst [vmem:[#allocation96_spill] sm:$0xff] %v6715_v52  ;;  %v834_v52 = vmul.f32 %v6668_v14, %v801_v36  ;;  %v835_v34 = vmul.f32 %v6668_v14, %v802_v51  ;;  %v837_v61 = vmul.f32 %v6668_v14, %v804_v21  ;;  %v11884_v32 = vsub.f32 %v6541_v8, %v6632_v31 }
 0x1ec   : > { %11877 = vst [vmem:[#allocation97_spill] sm:$0xff] %v6720_v7  ;;  %v839_v57 = vmul.f32 %v6668_v14, %v806_v33  ;;  %v6786_v9 = vadd.f32 %v6666_v28, %v827_v49  ;;  %v6789_v48 = vadd.f32 %v6666_v28, %v828_v20  ;;  %v6792_v3 = vadd.f32 %v6666_v28, %v829_v0 }
 0x1ed   : > { %11878 = vst [vmem:[#allocation98_spill] sm:$0xff] %v6725_v53  ;;  %v838_v55 = vmul.f32 %v6668_v14, %v11884_v32  ;;  %v6795_v36 = vadd.f32 %v6666_v28, %v830_v12  ;;  %v6798_v21 = vadd.f32 %v6666_v28, %v831_v4  ;;  %v6801_v8 = vadd.f32 %v6666_v28, %v832_v2  ;;  %v6832_v32 = vpop.permute.xlu0 %1242 }
 0x1ee   : > { %11880 = vst [vmem:[#allocation99_spill] sm:$0xff] %v6751_v54  ;;  %v6804_v51 = vadd.f32 %v6666_v28, %v833_v30  ;;  %v6810_v20 = vadd.f32 %v6666_v28, %v835_v34  ;;  %v6816_v33 = vadd.f32 %v6666_v28, %v837_v61  ;;  %v874_v49 = vadd.f32 %v6666_v28, %v839_v57  ;;  %v1324_v61 = vpop.permute.xlu1 %1323 }
 0x1ef   : > { %11882 = vst [vmem:[#allocation100_spill] sm:$0xff] %v6757_v18  ;;  %v836_v18 = vmul.f32 %v6668_v14, %v803_v59  ;;  %v6807_v59 = vadd.f32 %v6666_v28, %v834_v52  ;;  %v6819_v4 = vadd.f32 %v6666_v28, %v838_v55  ;;  %v778_v12 = vsub.f32 %v6034_v19, %v6632_v31 }
 0x1f0   : > { %11883 = vst [vmem:[#allocation101_spill] sm:$0xff] %v6767_v29  ;;  %v6828_v30 = vmax.f32 %v874_v49, 0.0  ;;  %vm1356_vm10 = vcmp.eq.s32.totalorder %v1324_v61, 1  ;;  %v784_v55 = vsub.f32 %v6170_v13, %v6632_v31  ;;  %v785_v19 = vsub.f32 %v6192_v6, %v6632_v31 }
 0x1f1   : > { %v6813_v0 = vadd.f32 %v6666_v28, %v836_v18  ;;  %11886 = vst [vmem:[#allocation103_spill] sm:$0xff] %v6816_v33  ;;  %v811_v52 = vmul.f32 %v6668_v14, %v778_v12  ;;  %v11300_v18 = vrot.slane %v6720_v7, 1  ;;  %v788_v49 = vsub.f32 %v6259_v27, %v6632_v31  ;;  %v11914_v33 = vld [vmem:[#allocation25_spill] sm:$0xff] }
 0x1f2   : > { %11887 = vst [vmem:[#allocation104_spill] sm:$0xff] %v6819_v4  ;;  %v789_v12 = vsub.f32 %v6277_v43, %v6632_v31  ;;  %v817_v6 = vmul.f32 %v6668_v14, %v784_v55  ;;  %vm1140_vm5 = vcmp.eq.s32.totalorder %v5942_v15, 1  ;;  %vm1141_vm6 = vcmp.eq.s32.totalorder %v5965_v26, 1 }
 0x1f3   : > { %11885 = vst [vmem:[#allocation102_spill] sm:$0xff] %v6813_v0  ;;  %v846_v2 = vadd.f32 %v6666_v28, %v811_v52  ;;  %v6850_v52 = vsel %vm1488_vm8, %v11300_v18, %v3336_v62  ;;  %v821_v61 = vmul.f32 %v6668_v14, %v788_v49  ;;  %v6875_v18 = vpop.permute.xlu2 %1239  ;;  %vm1148_vm7 = vcmp.eq.s32.totalorder %v6039_v10, 1  ;;  %v11906_v62 = vld [vmem:[#allocation8_spill] sm:$0xff] }
 0x1f4   : > { %11889 = vst [vmem:[#allocation106_spill] sm:$0xff] %v6828_v30  ;;  %v822_v54 = vmul.f32 %v6668_v14, %v789_v12  ;;  %v852_v49 = vadd.f32 %v6666_v28, %v817_v6  ;;  %v783_v6 = vsub.f32 %v6153_v17, %v6632_v31  ;;  %vm1154_vm9 = vcmp.eq.s32.totalorder %v6313_v25, 1 }
 0x1f5   : > { %v6826_v34 = vmax.f32 %v846_v2, 0.0  ;;  %11891 = vst [vmem:[#allocation108_spill] sm:$0xff] %v6850_v52  ;;  %v818_v2 = vmul.f32 %v6668_v14, %v785_v19  ;;  %v856_v12 = vadd.f32 %v6666_v28, %v821_v61  ;;  %v787_v61 = vsub.f32 %v6239_v24, %v6632_v31 }
 0x1f6   : > { %v857_v19 = vadd.f32 %v6666_v28, %v822_v54  ;;  %11894 = vst [vmem:[#allocation111_spill] sm:$0xff] %v6875_v18  ;;  %v782_v54 = vsub.f32 %v6129_v23, %v6632_v31  ;;  %v816_v11 = vmul.f32 %v6668_v14, %v783_v6  ;;  %v7032_v53 = vmax.f32 %v6795_v36, 0.0 }
 0x1f7   : > { %11888 = vst [vmem:[#allocation105_spill] sm:$0xff] %v6826_v34  ;;  %v6840_v57 = vsel %vm1356_vm10, %v6828_v30, %v6826_v34  ;;  %v853_v55 = vadd.f32 %v6666_v28, %v818_v2  ;;  %v786_v2 = vsub.f32 %v6212_v42, %v6632_v31  ;;  %v793_v42 = vsub.f32 %v6336_v22, %v6632_v31  ;;  %v11908_v31 = vld [vmem:[#allocation17_spill] sm:$0xff] }
 0x1f8   : > { %11890 = vst [vmem:[#allocation107_spill] sm:$0xff] %v6840_v57  ;;  %v11301_v13 = vrot.slane %v6840_v57, 7  ;;  %v6881_v56 = vmax.f32 %v857_v19, 0.0  ;;  %v815_v44 = vmul.f32 %v6668_v14, %v782_v54  ;;  %v823_v19 = vmul.f32 %v6668_v14, %v790_v37  ;;  %v11904_v37 = vld [vmem:[#allocation12_spill] sm:$0xff] }
 0x1f9   : > { %v819_v39 = vmul.f32 %v6668_v14, %v786_v2  ;;  %v826_v6 = vmul.f32 %v6668_v14, %v793_v42  ;;  %vm1147_vm10 = vcmp.eq.s32.totalorder %v11904_v37, 1  ;;  %11934 = vst [vmem:[#allocation125_spill] sm:$0xff] %v7032_v53 }
 0x1fa   : > { %v6861_v27 = vsel %vm11318_vm4, %v11301_v13, %v3271_v47  ;;  %v6877_v47 = vpop.permute.xlu0 %1251  ;;  %v6879_v13 = vmax.f32 %v853_v55, 0.0  ;;  %11896 = vst [vmem:[#allocation113_spill] sm:$0xff] %v6881_v56  ;;  %v820_v55 = vmul.f32 %v6668_v14, %v787_v61  ;;  %v850_v61 = vadd.f32 %v6666_v28, %v815_v44  ;;  %v11907_v44 = vld [vmem:[#allocation18_spill] sm:$0xff] }
 0x1fb   : > { %11892 = vst [vmem:[#allocation109_spill] sm:$0xff] %v6861_v27  ;;  %v6867_v43 = vsel %vm11315_vm11, %v6861_v27, %v6850_v52  ;;  %v6883_v52 = vmax.f32 %v852_v49, 0.0  ;;  %v6885_v27 = vmax.f32 %v856_v12, 0.0  ;;  %v824_v49 = vmul.f32 %v6668_v14, %v791_v60  ;;  %v1249_v54 = vpop.permute.xlu2 %1248  ;;  %v11905_v60 = vld [vmem:[#allocation29_spill] sm:$0xff] }
 0x1fc   : > { %11893 = vst [vmem:[#allocation110_spill] sm:$0xff] %v6867_v43  ;;  %v6907_v23 = vsel %vm1139_vm14, %v6879_v13, %v6703_v50  ;;  %v6911_v17 = vsel %vm1143_vm12, %v6881_v56, %v6879_v13  ;;  %v825_v12 = vmul.f32 %v6668_v14, %v792_v1  ;;  %vm1331_vm3 = vcmp.eq.s32.totalorder %v1249_v54, 1  ;;  %v11909_v43 = vld [vmem:[#allocation19_spill] sm:$0xff] }
 0x1fd   : > { %11895 = vst [vmem:[#allocation112_spill] sm:$0xff] %v6879_v13  ;;  %v6915_v24 = vsel %vm1138_vm13, %v6883_v52, %v6699_v35  ;;  %v6919_v16 = vsel %vm1142_vm15, %v6885_v27, %v6883_v52  ;;  %vm1149_vm12 = vcmp.eq.s32.totalorder %v11905_v60, 1  ;;  %v851_v1 = vadd.f32 %v6666_v28, %v816_v11 }
 0x1fe   : > { %11897 = vst [vmem:[#allocation114_spill] sm:$0xff] %v6883_v52  ;;  %v854_v22 = vadd.f32 %v6666_v28, %v819_v39  ;;  %v855_v14 = vadd.f32 %v6666_v28, %v820_v55  ;;  %v858_v42 = vadd.f32 %v6666_v28, %v823_v19  ;;  %vm1144_vm13 = vcmp.eq.s32.totalorder %v11906_v62, 1 }
 0x1ff   : > { %11898 = vst [vmem:[#allocation115_spill] sm:$0xff] %v6885_v27  ;;  %vm1151_vm15 = vcmp.eq.s32.totalorder %v11908_v31, 1  ;;  %v859_v29 = vadd.f32 %v6666_v28, %v824_v49  ;;  %v860_v30 = vadd.f32 %v6666_v28, %v825_v12  ;;  %v11910_v11 = vrot.slane %v6911_v17, 7 }
 0x200   : > { %11899 = vst [vmem:[#allocation116_spill] sm:$0xff] %v6907_v23  ;;  %v11911_v39 = vrot.slane %v6919_v16, 7  ;;  %v11912_v19 = vrot.slane %v6907_v23, 7  ;;  %v11913_v7 = vrot.slane %v6915_v24, 7  ;;  %vm1156_vm11 = vcmp.eq.s32.totalorder %v11914_v33, 1 }
 0x201   : > { %11900 = vst [vmem:[#allocation117_spill] sm:$0xff] %v6911_v17  ;;  %v861_v18 = vadd.f32 %v6666_v28, %v826_v6  ;;  %v6988_v0 = vmax.f32 %v851_v1, 0.0  ;;  %v6990_v49 = vmax.f32 %v854_v22, 0.0  ;;  %v6992_v57 = vmax.f32 %v855_v14, 0.0 }
 0x202   : > { %11901 = vst [vmem:[#allocation118_spill] sm:$0xff] %v6915_v24  ;;  %v6937_v2 = vpop.permute.xlu0 %1260  ;;  %v6961_v55 = vsel %vm11318_vm4, %v11911_v39, %v11910_v11  ;;  %v6969_v4 = vsel %vm11318_vm4, %v11913_v7, %v11912_v19  ;;  %v11915_v11 = vld [vmem:[#allocation23_spill] sm:$0xff]  ;;  %v11916_v39 = vld [vmem:[#allocation32_spill] sm:$0xff]  ;;  %vm1332_vm4 = vcmp.eq.s32.totalorder %v6877_v47, 1  ;;  %v6984_v7 = vsel %vm1331_vm3, %v6703_v50, %v6879_v13 }
 0x203   : > { %11902 = vst [vmem:[#allocation119_spill] sm:$0xff] %v6919_v16  ;;  %vm1155_vm0 = vcmp.eq.s32.totalorder %v11915_v11, 1  ;;  %vm1150_vm14 = vcmp.eq.s32.totalorder %v11916_v39, 1  ;;  %v6986_v19 = vmax.f32 %v850_v61, 0.0  ;;  %v6994_v12 = vmax.f32 %v858_v42, 0.0 }
 0x204   : > { %11903 = vst [vmem:[#allocation120_spill] sm:$0xff] %v6937_v2  ;;  %v6996_v28 = vmax.f32 %v859_v29, 0.0  ;;  %v6998_v6 = vmax.f32 %v860_v30, 0.0  ;;  %v11925_v63 = vrot.slane %v6911_v17, 1  ;;  %v11926_v54 = vrot.slane %v6919_v16, 1  ;;  %v12032_v2 = vld [vmem:[#allocation68_spill] sm:$0xff] }
 0x205   : > { %11917 = vst [vmem:[#allocation12_spill] sm:$0xff] %v6984_v7  ;;  %v11927_v1 = vrot.slane %v6907_v23, 1  ;;  %v11928_v22 = vrot.slane %v6915_v24, 1  ;;  %v7016_v29 = vmax.f32 %v861_v18, 0.0  ;;  %v7019_v30 = vmax.f32 %v6786_v9, 0.0  ;;  %v12025_v7 = vld [vmem:[#allocation70_spill] sm:$0xff] }
 0x206   : > { %11918 = vst [vmem:[#allocation29_spill] sm:$0xff] %v6986_v19  ;;  %v7006_v61 = vsel %vm1488_vm8, %v11926_v54, %v11925_v63  ;;  %v7022_v42 = vmax.f32 %v6789_v48, 0.0  ;;  %v7025_v50 = vmax.f32 %v6792_v3, 0.0  ;;  %v7027_v63 = vpop.permute.xlu1 %1245  ;;  %v7029_v54 = vpop.permute.xlu2 %1257  ;;  %v7038_v18 = vmax.f32 %v6801_v8, 0.0 }
 0x207   : > { %11919 = vst [vmem:[#allocation8_spill] sm:$0xff] %v6988_v0  ;;  %v7014_v14 = vsel %vm1488_vm8, %v11928_v22, %v11927_v1  ;;  %v7035_v1 = vmax.f32 %v6798_v21, 0.0  ;;  %v7041_v9 = vmax.f32 %v6804_v51, 0.0  ;;  %v7044_v48 = vmax.f32 %v6807_v59, 0.0 }
 0x208   : > { %11920 = vst [vmem:[#allocation18_spill] sm:$0xff] %v6990_v49  ;;  %v7047_v3 = vmax.f32 %v6810_v20, 0.0  ;;  %v7053_v36 = vsel %vm1140_vm5, %v6990_v49, %v6986_v19  ;;  %v7059_v21 = vsel %vm1141_vm6, %v6992_v57, %v6988_v0  ;;  %v7065_v51 = vsel %vm1144_vm13, %v6994_v12, %v6990_v49 }
 0x209   : > { %11921 = vst [vmem:[#allocation17_spill] sm:$0xff] %v6992_v57  ;;  %v7071_v15 = vsel %vm1145_vm1, %v6996_v28, %v6992_v57  ;;  %v7077_v26 = vsel %vm1146_vm2, %v6998_v6, %v6885_v27  ;;  %v7083_v59 = vsel %vm1147_vm10, %v7016_v29, %v6881_v56  ;;  %v7089_v41 = vsel %vm1148_vm7, %v7019_v30, %v6994_v12 }
 0x20a   : > { %11922 = vst [vmem:[#allocation19_spill] sm:$0xff] %v6994_v12  ;;  %v1270_v8 = vpop.permute.xlu0 %1269  ;;  %v7095_v46 = vsel %vm1149_vm12, %v7022_v42, %v6996_v28  ;;  %v7101_v20 = vsel %vm1150_vm14, %v7025_v50, %v6998_v6  ;;  %v7107_v62 = vsel %vm1151_vm15, %v7032_v53, %v7016_v29  ;;  %vm11950_vm1 = vcmp.eq.s32.totalorder %v11909_v43, 1 }
 0x20b   : > { %11923 = vst [vmem:[#allocation25_spill] sm:$0xff] %v6996_v28  ;;  %vm1338_vm3 = vcmp.eq.s32.totalorder %v1270_v8, 1  ;;  %v7113_v10 = vsel %vm11950_vm1, %v7035_v1, %v7019_v30  ;;  %vm11952_vm2 = vcmp.eq.s32.totalorder %v11907_v44, 1  ;;  %v7125_v60 = vsel %vm1154_vm9, %v7041_v9, %v7025_v50 }
 0x20c   : > { %11924 = vst [vmem:[#allocation23_spill] sm:$0xff] %v6998_v6  ;;  %v7119_v37 = vsel %vm11952_vm2, %v7038_v18, %v7022_v42  ;;  %v7131_v31 = vsel %vm1155_vm0, %v7044_v48, %v7032_v53  ;;  %v7137_v43 = vsel %vm1156_vm11, %v7047_v3, %v7035_v1  ;;  %v7143_v44 = vsel %vm1332_vm4, %v6986_v19, %v6990_v49 }
 0x20d   : > { %11929 = vst [vmem:[#allocation32_spill] sm:$0xff] %v7016_v29  ;;  %v7147_v25 = vsel %vm1338_vm3, %v6885_v27, %v6998_v6  ;;  %v1396_v11 = vrot.slane %v7053_v36, 7  ;;  %v1397_v39 = vrot.slane %v7059_v21, 7  ;;  %v1400_v22 = vrot.slane %v7065_v51, 7 }
 0x20e   : > { %11930 = vst [vmem:[#allocation121_spill] sm:$0xff] %v7019_v30  ;;  %v1401_v33 = vrot.slane %v7071_v15, 7  ;;  %v1402_v8 = vrot.slane %v7077_v26, 7  ;;  %v1404_v47 = vrot.slane %v7089_v41, 7  ;;  %v1406_v49 = vrot.slane %v7101_v20, 7  ;;  %v7165_v53 = vpop.permute.xlu1 %1254  ;;  %v1267_v27 = vpop.permute.xlu2 %1266 }
 0x20f   : > { %11931 = vst [vmem:[#allocation122_spill] sm:$0xff] %v7022_v42  ;;  %v1467_v12 = vrot.slane %v7065_v51, 1  ;;  %v1468_v29 = vrot.slane %v7071_v15, 1  ;;  %v1471_v30 = vrot.slane %v7089_v41, 1  ;;  %v1473_v6 = vrot.slane %v7101_v20, 1 }
 0x210   : > { %11932 = vst [vmem:[#allocation123_spill] sm:$0xff] %v7025_v50  ;;  %v1407_v50 = vrot.slane %v7107_v62, 7  ;;  %v1475_v42 = vrot.slane %v7113_v10, 1  ;;  %vm1337_vm0 = vcmp.eq.s32.totalorder %v1267_v27, 1  ;;  %vm11963_vm4 = vcmp.lt.s32.totalorder %v6659_v45, 1 }
 0x211   : > { %11933 = vst [vmem:[#allocation124_spill] sm:$0xff] %v7029_v54  ;;  %vm11966_vm9 = vmmov %vm11963_vm4  ;;  %vm1137_vm2 = vcmp.eq.s32.totalorder %v6557_v40, 1  ;;  %v7345_v40 = vld [vmem:[%s11202_s5 + $0x10] sm:$0xff] }
 0x212   : > { %11935 = vst [vmem:[#allocation126_spill] sm:$0xff] %v7035_v1  ;;  %v1472_v1 = vrot.slane %v7095_v46, 1  ;;  %vm11968_vm11 = vmmov %vm11963_vm4 }
 0x213   : > { %11936 = vst [vmem:[#allocation127_spill] sm:$0xff] %v7038_v18  ;;  %v1474_v18 = vrot.slane %v7107_v62, 1  ;;  %v7195_v27 = vsel %vm11968_vm11, %v1406_v49, %v1407_v50  ;;  %vm11970_vm5 = vmmov %vm11963_vm4 }
 0x214   : > { %11937 = vst [vmem:[#allocation128_spill] sm:$0xff] %v7041_v9  ;;  %v1463_v9 = vrot.slane %v7053_v36, 1  ;;  %vm11972_vm6 = vmmov %vm11963_vm4 }
 0x215   : > { %11938 = vst [vmem:[#allocation129_spill] sm:$0xff] %v7044_v48  ;;  %v1403_v48 = vrot.slane %v7083_v59, 7  ;;  %vm11974_vm7 = vmmov %vm11963_vm4 }
 0x216   : > { %11939 = vst [vmem:[#allocation130_spill] sm:$0xff] %v7047_v3  ;;  %v1405_v3 = vrot.slane %v7095_v46, 7  ;;  %vm11976_vm10 = vmmov %vm11963_vm4 }
 0x217   : > { %11940 = vst [vmem:[#allocation131_spill] sm:$0xff] %v7053_v36  ;;  %vm11978_vm12 = vmmov %vm11963_vm4  ;;  %v12016_v36 = vld [vmem:[#allocation58_spill] sm:$0xff] }
 0x218   : > { %11941 = vst [vmem:[#allocation132_spill] sm:$0xff] %v7059_v21  ;;  %vm11980_vm13 = vmmov %vm11963_vm4  ;;  %vm11419_vm11 = vcmp.eq.s32.totalorder %v12016_v36, 1 }
 0x219   : > { %11942 = vst [vmem:[#allocation133_spill] sm:$0xff] %v7065_v51  ;;  %v5367_v51 = vld [vmem:[%s11202_s5 + $0x38] sm:$0xff]  ;;  %vm11983_vm14 = vmmov %vm11963_vm4 }
 0x21a   : > { %11943 = vst [vmem:[#allocation134_spill] sm:$0xff] %v7071_v15  ;;  %v7177_v15 = vsel %vm1337_vm0, %v6992_v57, %v6996_v28  ;;  %v7222_v57 = vsel %vm11978_vm12, %v1401_v33, %v1402_v8  ;;  %1965 = vmatpush.bf16.msrb.mxu0 %v5367_v51  ;;  %5401 = vmatpush.bf16.msra.mxu1 %v5367_v51  ;;  %vm11986_vm15 = vmmov %vm11963_vm4  ;;  %v11990_v51 = vrot.slane %v7137_v43, 1  ;;  %v12023_v28 = vld [vmem:[#allocation59_spill] sm:$0xff] }
 0x21b   : > { %11944 = vst [vmem:[#allocation135_spill] sm:$0xff] %v7077_v26  ;;  %vm11987_vm3 = vmmov %vm11963_vm4 }
 0x21c   : > { %11945 = vst [vmem:[#allocation136_spill] sm:$0xff] %v7083_v59  ;;  %vm11989_vm1 = vmmov %vm11987_vm3 }
 0x21d   : > { %11946 = vst [vmem:[#allocation137_spill] sm:$0xff] %v7089_v41  ;;  %v11961_v41 = vrot.slane %v7131_v31, 7  ;;  %vm12022_vm12 = vmmov %vm11989_vm1 }
 0x21e   : > { %11947 = vst [vmem:[#allocation138_spill] sm:$0xff] %v7095_v46  ;;  %v11962_v46 = vrot.slane %v7125_v60, 7 }
 0x21f   : > { %11948 = vst [vmem:[#allocation139_spill] sm:$0xff] %v7101_v20  ;;  %v11965_v20 = vrot.slane %v7113_v10, 7 }
 0x220   : > { %11949 = vst [vmem:[#allocation140_spill] sm:$0xff] %v7107_v62  ;;  %v7185_v62 = vsel %vm11963_vm4, %v11962_v46, %v11961_v41  ;;  %v7206_v46 = vsel %vm11970_vm5, %v1405_v3, %v1406_v49  ;;  %v1469_v49 = vrot.slane %v7077_v26, 1  ;;  %v1470_v41 = vrot.slane %v7083_v59, 1 }
 0x221   : > { %11951 = vst [vmem:[#allocation141_spill] sm:$0xff] %v7113_v10  ;;  %v7191_v13 = vsel %vm11966_vm9, %v1407_v50, %v11965_v20  ;;  %v7210_v20 = vsel %vm11972_vm6, %v1404_v47, %v1405_v3  ;;  %v7214_v50 = vsel %vm11974_vm7, %v1403_v48, %v1404_v47  ;;  %v7228_v3 = vsel %vm11980_vm13, %v1400_v22, %v1401_v33 }
 0x222   : > { %11953 = vst [vmem:[#allocation142_spill] sm:$0xff] %v7119_v37  ;;  %v11982_v47 = vrot.slane %v6911_v17, 7  ;;  %v7245_v59 = vsel %vm11987_vm3, %v1396_v11, %v1397_v39  ;;  %v11988_v33 = vrot.slane %v6907_v23, 7  ;;  %vm1329_vm4 = vcmp.eq.s32.totalorder %v6832_v32, 1 }
 0x223   : > { %11954 = vst [vmem:[#allocation143_spill] sm:$0xff] %v7125_v60  ;;  %v7218_v60 = vsel %vm11976_vm10, %v1402_v8, %v1403_v48  ;;  %v1464_v48 = vrot.slane %v7059_v21, 1  ;;  %v11985_v8 = vrot.slane %v6919_v16, 7  ;;  %v7269_v21 = vsel %vm1488_vm8, %v1474_v18, %v1475_v42 }
 0x224   : > { %11955 = vst [vmem:[#allocation144_spill] sm:$0xff] %v7131_v31  ;;  %v7234_v10 = vsel %vm11983_vm14, %v11982_v47, %v1400_v22  ;;  %v11991_v22 = vrot.slane %v7131_v31, 1  ;;  %v12021_v32 = vrot.slane %v6915_v24, 7  ;;  %vm11484_vm13 = vcmp.eq.s32.totalorder %v12023_v28, 1  ;;  %v7506_v28 = vld [vmem:[%s11202_s5 + $0x40] sm:$0xff] }
 0x225   : > { %11956 = vst [vmem:[#allocation145_spill] sm:$0xff] %v7137_v43  ;;  %v7241_v26 = vsel %vm11986_vm15, %v1397_v39, %v11985_v8  ;;  %v11993_v8 = vrot.slane %v7119_v37, 1  ;;  %v12006_v43 = vrot.slane %v6919_v16, 1  ;;  %vm11422_vm3 = vcmp.eq.s32.totalorder %v6652_v5, 1 }
 0x226   : > { %11957 = vst [vmem:[#allocation146_spill] sm:$0xff] %v7143_v44  ;;  %v7259_v47 = vsel %vm1488_vm8, %v11991_v22, %v11990_v51  ;;  %v7281_v51 = vsel %vm1488_vm8, %v1471_v30, %v1472_v1  ;;  %v7285_v22 = vsel %vm1488_vm8, %v1470_v41, %v1471_v30  ;;  %v12019_v44 = vld [vmem:[#allocation64_spill] sm:$0xff] }
 0x227   : > { %11958 = vst [vmem:[#allocation147_spill] sm:$0xff] %v7147_v25  ;;  %v7265_v39 = vsel %vm1488_vm8, %v1475_v42, %v11993_v8  ;;  %v7289_v42 = vsel %vm1488_vm8, %v1469_v49, %v1470_v41  ;;  %v7299_v8 = vpop.permute.xlu1 %1263  ;;  %v7311_v41 = vsel %vm1488_vm8, %v1464_v48, %v12006_v43  ;;  %v7333_v43 = vld [vmem:[%s11202_s5 + $0x58] sm:$0xff]  ;;  %vm11493_vm7 = vcmp.eq.s32.totalorder %v12019_v44, 1  ;;  %v12024_v25 = vld [vmem:[#allocation54_spill] sm:$0xff] }
 0x228   : > { %11959 = vst [vmem:[#allocation148_spill] sm:$0xff] %v7165_v53  ;;  %v7251_v53 = vsel %vm11989_vm1, %v11988_v33, %v1396_v11  ;;  %v7273_v11 = vsel %vm1488_vm8, %v1473_v6, %v1474_v18  ;;  %v7277_v33 = vsel %vm1488_vm8, %v1472_v1, %v1473_v6  ;;  %v7293_v18 = vsel %vm1488_vm8, %v1468_v29, %v1469_v49 }
 0x229   : > { %11960 = vst [vmem:[#allocation149_spill] sm:$0xff] %v7177_v15  ;;  %v7297_v6 = vsel %vm1488_vm8, %v1467_v12, %v1468_v29  ;;  %v12004_v1 = vrot.slane %v6911_v17, 1  ;;  %v7315_v49 = vsel %vm1488_vm8, %v1463_v9, %v1464_v48  ;;  %v12007_v29 = vrot.slane %v6907_v23, 1  ;;  %v5365_v48 = vld [vmem:[%s11202_s5 + $0x28] sm:$0xff]  ;;  %5409 = vmatpush.bf16.msra.mxu3 %v7333_v43  ;;  %v7355_v17 = vpop.permute.xlu0 %1278  ;;  %v12018_v23 = vld [vmem:[#allocation56_spill] sm:$0xff]  ;;  %v12020_v15 = vld [vmem:[#allocation67_spill] sm:$0xff] }
 0x22a   : > { %11964 = vst [vmem:[#allocation150_spill] sm:$0xff] %v7185_v62  ;;  %vm11508_vm6 = vcmp.eq.s32.totalorder %v12018_v23, 1  ;;  %vm11463_vm10 = vcmp.eq.s32.totalorder %v12020_v15, 1  ;;  %vm11547_vm14 = vcmp.eq.s32.totalorder %v12024_v25, 1  ;;  %vm1330_vm1 = vcmp.eq.s32.totalorder %v7027_v63, 1 }
 0x22b   : > { %11967 = vst [vmem:[#allocation151_spill] sm:$0xff] %v7191_v13  ;;  %v7305_v30 = vsel %vm1488_vm8, %v12004_v1, %v1467_v12  ;;  %v7321_v31 = vsel %vm1488_vm8, %v12007_v29, %v1463_v9  ;;  %v5366_v12 = vld [vmem:[%s11202_s5 + $0x30] sm:$0xff]  ;;  %v5363_v1 = vld [vmem:[%s11202_s5 + $0x18] sm:$0xff]  ;;  %v7337_v9 = vsel %vm1137_vm2, %v6988_v0, %v6697_v38  ;;  %v7406_v56 = vsel %vm1330_vm1, %v6699_v35, %v6883_v52  ;;  %v12035_v35 = vld [vmem:[#allocation69_spill] sm:$0xff] }
 0x22c   : > { %11969 = vst [vmem:[#allocation152_spill] sm:$0xff] %v7195_v27  ;;  %1966 = vmatpush.bf16.msrb.mxu0 %v5366_v12  ;;  %5402 = vmatpush.bf16.msra.mxu1 %v5366_v12  ;;  %v7351_v29 = vld [vmem:[%s11202_s5 + $0x50] sm:$0xff]  ;;  %v12011_v12 = vld [vmem:[#allocation72_spill] sm:$0xff]  ;;  %v1393_v37 = vrot.slane %v7337_v9, 7  ;;  %vm11451_vm1 = vcmp.eq.s32.totalorder %v12035_v35, 1  ;;  %v12041_v25 = vrot.slane %v7337_v9, 1  ;;  %v7486_v23 = vsel %vm11484_vm13, %v7222_v57, %v7289_v42 }
 0x22d   : > { %11971 = vst [vmem:[#allocation153_spill] sm:$0xff] %v7206_v46  ;;  %5405 = vmatpush.bf16.msra.mxu2 %v5363_v1  ;;  %vm1136_vm0 = vcmp.eq.s32.totalorder %v12011_v12, 1  ;;  %5410 = vmatpush.bf16.msra.mxu3 %v7351_v29  ;;  %v12017_v12 = vld [vmem:[#allocation61_spill] sm:$0xff]  ;;  %v7492_v44 = vsel %vm11463_vm10, %v7218_v60, %v7285_v22 }
 0x22e   : > { %11973 = vst [vmem:[#allocation154_spill] sm:$0xff] %v7210_v20  ;;  %vm11514_vm5 = vcmp.eq.s32.totalorder %v12017_v12, 1 }
 0x22f   : > { %11975 = vst [vmem:[#allocation155_spill] sm:$0xff] %v7214_v50  ;;  %v7357_v16 = vpop.permute.xlu1 %1272 }
 0x230   : > { %11977 = vst [vmem:[#allocation156_spill] sm:$0xff] %v7218_v60  ;;  %1967 = vmatpush.bf16.msrb.mxu0 %v5365_v48  ;;  %5403 = vmatpush.bf16.msra.mxu1 %v5365_v48  ;;  %v7369_v48 = vsel %vm1136_vm0, %v6986_v19, %v6826_v34  ;;  %v7383_v34 = vsel %vm1329_vm4, %v6697_v38, %v6988_v0  ;;  %v5364_v19 = vld [vmem:[%s11202_s5 + $0x20] sm:$0xff]  ;;  %v12034_v0 = vld [vmem:[#allocation66_spill] sm:$0xff]  ;;  %vm11566_vm4 = vcmp.eq.s32.totalorder %v6654_v58, 1 }
 0x231   : > { %11979 = vst [vmem:[#allocation157_spill] sm:$0xff] %v7222_v57  ;;  %5406 = vmatpush.bf16.msra.mxu2 %v7345_v40  ;;  %v12028_v38 = vld [vmem:[#allocation57_spill] sm:$0xff]  ;;  %vm11452_vm15 = vcmp.eq.s32.totalorder %v12034_v0, 1  ;;  %v12038_v5 = vrot.slane %v7369_v48, 7  ;;  %v5375_v0 = vld [vmem:[%s11202_s5 + $0x78] sm:$0xff] }
 0x232   : > { %11981 = vst [vmem:[#allocation158_spill] sm:$0xff] %v7228_v3  ;;  %vm11513_vm2 = vcmp.eq.s32.totalorder %v12028_v38, 1  ;;  %v12068_v58 = vld [vmem:[#allocation125_spill] sm:$0xff] }
 0x233   : > { %11984 = vst [vmem:[#allocation159_spill] sm:$0xff] %v7234_v10  ;;  %v12106_v60 = vld [vmem:[#allocation29_spill] sm:$0xff] }
 0x234   : > { %11992 = vst [vmem:[#allocation160_spill] sm:$0xff] %v7259_v47  ;;  %1968 = vmatpush.bf16.msrb.mxu0 %v5364_v19  ;;  %5404 = vmatpush.bf16.msra.mxu1 %v5364_v19  ;;  %v12037_v19 = vld [vmem:[#allocation74_spill] sm:$0xff]  ;;  %v12119_v57 = vld [vmem:[#allocation149_spill] sm:$0xff] }
 0x235   : > { %11994 = vst [vmem:[#allocation161_spill] sm:$0xff] %v7265_v39 }
 0x236   : > { %11995 = vst [vmem:[#allocation162_spill] sm:$0xff] %v7269_v21 }
 0x237   : > { %11996 = vst [vmem:[#allocation163_spill] sm:$0xff] %v7273_v11 }
 0x238   : > { %11997 = vst [vmem:[#allocation164_spill] sm:$0xff] %v7277_v33  ;;  %2126 = vmatpush.bf16.msra.mxu0 %v5363_v1  ;;  %v1288_v1 = vpop.permute.xlu0 %1287  ;;  %2720 = vmatpush.bf16.msrb.mxu1 %v5375_v0 }
 0x239   : > { %11998 = vst [vmem:[#allocation165_spill] sm:$0xff] %v7281_v51 }
 0x23a   : > { %11999 = vst [vmem:[#allocation166_spill] sm:$0xff] %v7285_v22 }
 0x23b   : > { %12000 = vst [vmem:[#allocation167_spill] sm:$0xff] %v7289_v42 }
 0x23c   : > { %12001 = vst [vmem:[#allocation168_spill] sm:$0xff] %v7293_v18  ;;  %2127 = vmatpush.bf16.msra.mxu0 %v7345_v40  ;;  %v12063_v40 = vld [vmem:[#allocation126_spill] sm:$0xff] }
 0x23d   : > { %12002 = vst [vmem:[#allocation169_spill] sm:$0xff] %v7297_v6 }
 0x23e   : > { %12003 = vst [vmem:[#allocation170_spill] sm:$0xff] %v7299_v8  ;;  %v7361_v8 = vpop.permute.xlu2 %1275 }
 0x23f   : > { %12005 = vst [vmem:[#allocation171_spill] sm:$0xff] %v7305_v30 }
 0x240   : > { %12008 = vst [vmem:[#allocation172_spill] sm:$0xff] %v7333_v43  ;;  %v12015_v43 = vld [vmem:[#allocation53_spill] sm:$0xff]  ;;  %v7570_v0 = vpop.permute.xlu0 %1296 }
 0x241   : > { %12009 = vst [vmem:[#allocation173_spill] sm:$0xff] %v7337_v9  ;;  %vm11532_vm9 = vcmp.eq.s32.totalorder %v12015_v43, 1 }
 0x242   : > { %12010 = vst [vmem:[#allocation174_spill] sm:$0xff] %v7351_v29  ;;  %v1450_v29 = vsel %vm12022_vm12, %v1393_v37, %v12021_v32  ;;  %v7396_v32 = vld [vmem:[%s11202_s5 + $0x48] sm:$0xff]  ;;  %v1816_v63 = vsel %vm11532_vm9, %v7251_v53, %v7315_v49 }
 0x243   : > { %12012 = vst [vmem:[#allocation72_spill] sm:$0xff] %v7355_v17  ;;  %v7391_v17 = vld [vmem:[%s11202_s5 + $0x8] sm:$0xff]  ;;  %v7411_v54 = vsel %vm11419_vm11, %v7014_v14, %v1450_v29  ;;  %v7423_v36 = vsel %vm11422_vm3, %v1450_v29, %v7014_v14  ;;  %5411 = vmatpush.bf16.msra.mxu3 %v7396_v32  ;;  %vm11450_vm11 = vcmp.eq.s32.totalorder %v12037_v19, 1  ;;  %vm12039_vm3 = vcmp.lt.s32.totalorder %v6659_v45, 1  ;;  %v12059_v19 = vld [vmem:[#allocation112_spill] sm:$0xff] }
 0x244   : > { %12013 = vst [vmem:[#allocation175_spill] sm:$0xff] %v7357_v16  ;;  %v12033_v16 = vld [vmem:[#allocation63_spill] sm:$0xff]  ;;  %5407 = vmatpush.bf16.msra.mxu2 %v7391_v17  ;;  %v7440_v14 = vsel %vm12039_vm3, %v12038_v5, %v1393_v37  ;;  %v12040_v29 = vrot.slane %v6915_v24, 1  ;;  %v7460_v5 = vsel %vm11513_vm2, %v7241_v26, %v7006_v61  ;;  %v7466_v37 = vsel %vm11508_vm6, %v6961_v55, %v7305_v30  ;;  %v12128_v30 = vld [vmem:[#allocation24_spill] sm:$0xff] }
 0x245   : > { %12014 = vst [vmem:[#allocation176_spill] sm:$0xff] %v7361_v8  ;;  %v12029_v8 = vld [vmem:[#allocation60_spill] sm:$0xff]  ;;  %vm11436_vm12 = vcmp.eq.s32.totalorder %v12033_v16, 1  ;;  %vm12047_vm3 = vcmp.eq.s32.totalorder %v12025_v7, 1  ;;  %v7518_v16 = vsel %vm11452_vm15, %v7206_v46, %v7273_v11  ;;  %v7536_v7 = vsel %vm11450_vm11, %v7185_v62, %v7259_v47  ;;  %2128 = vmatpush.bf16.msra.mxu0 %v7391_v17  ;;  %v12066_v17 = vld [vmem:[#allocation65_spill] sm:$0xff] }
 0x246   : > { %12026 = vst [vmem:[#allocation177_spill] sm:$0xff] %v7383_v34  ;;  %vm11485_vm0 = vcmp.eq.s32.totalorder %v12029_v8, 1  ;;  %v7448_v43 = vsel %vm1488_vm8, %v12041_v25, %v12040_v29  ;;  %v7472_v25 = vsel %vm11493_vm7, %v7234_v10, %v7297_v6  ;;  %v7474_v29 = vpop.permute.xlu1 %1281  ;;  %v7498_v12 = vsel %vm11436_vm12, %v7214_v50, %v7281_v51  ;;  %v1285_v8 = vpop.permute.xlu2 %1284  ;;  %v12055_v47 = vld [vmem:[#allocation120_spill] sm:$0xff] }
 0x247   : > { %12027 = vst [vmem:[#allocation178_spill] sm:$0xff] %v7396_v32  ;;  %v7454_v32 = vsel %vm11514_vm5, %v7245_v59, %v7311_v41  ;;  %v7480_v38 = vsel %vm11485_vm0, %v7228_v3, %v7293_v18  ;;  %v5360_v18 = vld [vmem:[%s11202_s5] sm:$0xff]  ;;  %v7512_v15 = vsel %vm12047_vm3, %v7210_v20, %v7277_v33  ;;  %v7524_v51 = vsel %vm11451_vm1, %v7195_v27, %v7269_v21  ;;  %v12109_v20 = vld [vmem:[#allocation128_spill] sm:$0xff] }
 0x248   : > { %12030 = vst [vmem:[#allocation179_spill] sm:$0xff] %v7406_v56  ;;  %vm12051_vm12 = vcmp.eq.s32.totalorder %v12032_v2, 1  ;;  %5408 = vmatpush.bf16.msra.mxu2 %v5360_v18  ;;  %v7542_v35 = vsel %vm11566_vm4, %v7440_v14, %v7448_v43  ;;  %5412 = vmatpush.bf16.msra.mxu3 %v7506_v28  ;;  %v5379_v2 = vld [vmem:[%s11202_s5 + $0x98] sm:$0xff]  ;;  %vm12057_vm11 = vcmask 523264   ;;  %vm1344_vm1 = vcmp.eq.s32.totalorder %v1288_v1, 1  ;;  %v12085_v1 = vld [vmem:[#allocation19_spill] sm:$0xff]  ;;  %v1306_v46 = vpop.permute.xlu0 %1305 }
 0x249   : > { %12031 = vst [vmem:[#allocation180_spill] sm:$0xff] %v7411_v54  ;;  %v1815_v54 = vsel %vm11547_vm14, %v6969_v4, %v7321_v31  ;;  %v7530_v50 = vsel %vm12051_vm12, %v7191_v13, %v7265_v39  ;;  %vm1335_vm12 = vcmp.eq.s32.totalorder %v12055_v47, 1  ;;  %v12056_v13 = vld [vmem:[#allocation124_spill] sm:$0xff]  ;;  %vm1343_vm15 = vcmp.eq.s32.totalorder %v1285_v8, 1  ;;  %v12067_v8 = vld [vmem:[#allocation98_spill] sm:$0xff]  ;;  %2129 = vmatpush.bf16.msra.mxu0 %v5360_v18  ;;  %v12075_v18 = vld [vmem:[#allocation111_spill] sm:$0xff] }
 0x24a   : > { %12036 = vst [vmem:[#allocation181_spill] sm:$0xff] %v7423_v36  ;;  %vm1334_vm3 = vcmp.eq.s32.totalorder %v12056_v13, 1  ;;  %v12099_v11 = vld [vmem:[#allocation72_spill] sm:$0xff]  ;;  %vm1342_vm7 = vcmp.eq.s32.totalorder %v7474_v29, 1  ;;  %v3275_v10 = vrot.slane %v7383_v34, 7  ;;  %v12165_v24 = vrot.slane %v12067_v8, 1 }
 0x24b   : > { %12042 = vst [vmem:[#allocation182_spill] sm:$0xff] %v7480_v38 }
 0x24c   : > { %12043 = vst [vmem:[#allocation183_spill] sm:$0xff] %v7486_v23  ;;  %2937 = vmatpush.bf16.msrb.mxu2 %v5379_v2 }
 0x24d   : > { %12044 = vst [vmem:[#allocation184_spill] sm:$0xff] %v7492_v44  ;;  %v12074_v44 = vld [vmem:[#allocation175_spill] sm:$0xff] }
 0x24e   : > { %12045 = vst [vmem:[#allocation185_spill] sm:$0xff] %v7498_v12  ;;  %v7572_v47 = vpop.permute.xlu1 %1290  ;;  %v7574_v13 = vpop.permute.xlu2 %1293 }
 0x24f   : > { %12046 = vst [vmem:[#allocation186_spill] sm:$0xff] %v7506_v28  ;;  %v12126_v28 = vpack.c.bf16 %v7460_v5, %v7454_v32  ;;  %vm1346_vm5 = vcmp.eq.s32.totalorder %v7574_v13, 1 }
 0x250   : > { %12048 = vst [vmem:[#allocation187_spill] sm:$0xff] %v7512_v15  ;;  %v12073_v15 = vld [vmem:[#allocation94_spill] sm:$0xff] }
 0x251   : > { %12049 = vst [vmem:[#allocation188_spill] sm:$0xff] %v7518_v16 }
 0x252   : > { %12050 = vst [vmem:[#allocation189_spill] sm:$0xff] %v7524_v51  ;;  %v12077_v51 = vld [vmem:[#allocation96_spill] sm:$0xff] }
 0x253   : > { %12052 = vst [vmem:[#allocation190_spill] sm:$0xff] %v7530_v50  ;;  %v12071_v50 = vld [vmem:[#allocation176_spill] sm:$0xff]  ;;  %v12078_v12 = vrot.slane %v12077_v51, 7  ;;  %v12088_v51 = vld [vmem:[#allocation62_spill] sm:$0xff] }
 0x254   : > { %12053 = vst [vmem:[#allocation191_spill] sm:$0xff] %v7536_v7  ;;  %v2214_v7 = vpack.c.bf16 %v1816_v63, %v1815_v54  ;;  %v12058_v63 = vld [vmem:[#allocation113_spill] sm:$0xff]  ;;  %v12061_v54 = vld [vmem:[#allocation115_spill] sm:$0xff] }
 0x255   : > { %12054 = vst [vmem:[#allocation192_spill] sm:$0xff] %v7542_v35  ;;  %v7578_v2 = vsel %vm1335_vm12, %v12059_v19, %v12058_v63  ;;  %v7582_v39 = vsel %vm1334_vm3, %v6883_v52, %v12061_v54  ;;  %v12069_v35 = vld [vmem:[#allocation32_spill] sm:$0xff]  ;;  %vm1340_vm12 = vcmp.eq.s32.totalorder %v12071_v50, 1  ;;  %v12072_v52 = vld [vmem:[#allocation91_spill] sm:$0xff]  ;;  %v12076_v19 = vrot.slane %v12067_v8, 7  ;;  %v12081_v54 = vld [vmem:[#allocation41_spill] sm:$0xff] }
 0x256   : > { %5109 = vmatmul.msk.bf16.vlgmr.msra.gmra.mxu3 %vm12057_vm11, %v2214_v7  ;;  %12060 = vst [vmem:[#allocation120_spill] sm:$0xff] %v7578_v2  ;;  %v12064_v7 = vld [vmem:[#allocation121_spill] sm:$0xff]  ;;  %vm1135_vm11 = vcmp.eq.s32.totalorder %v12066_v17, 1  ;;  %v7592_v36 = vsel %vm1343_vm15, %v12069_v35, %v12068_v58  ;;  %vm1339_vm15 = vcmp.eq.s32.totalorder %v12074_v44, 1  ;;  %vm12079_vm3 = vcmp.lt.s32.totalorder %v6659_v45, 1  ;;  %v12084_v17 = vld [vmem:[#allocation107_spill] sm:$0xff]  ;;  %v7655_v33 = vpop.permute.xlu1 %1299 }
 0x257   : > { %12062 = vst [vmem:[#allocation124_spill] sm:$0xff] %v7582_v39  ;;  %v7586_v62 = vsel %vm1344_vm1, %v12064_v7, %v12063_v40  ;;  %v7601_v16 = vsel %vm1135_vm11, %v12073_v15, %v12072_v52  ;;  %vm1328_vm1 = vcmp.eq.s32.totalorder %v12075_v18, 1  ;;  %v7613_v50 = vsel %vm12079_vm3, %v12078_v12, %v12076_v19  ;;  %v12082_v15 = vld [vmem:[#allocation103_spill] sm:$0xff]  ;;  %v12095_v12 = vld [vmem:[#allocation102_spill] sm:$0xff] }
 0x258   : > { %12065 = vst [vmem:[#allocation193_spill] sm:$0xff] %v7586_v62  ;;  %vm1133_vm10 = vcmp.eq.s32.totalorder %v12081_v54, 1  ;;  %v7617_v38 = vmax.f32 %v12082_v15, 0.0  ;;  %v7622_v44 = vsel %vm1340_vm12, %v12085_v1, %v12064_v7  ;;  %v7626_v21 = vsel %vm1339_vm15, %v12058_v63, %v12069_v35 }
 0x259   : > { %12070 = vst [vmem:[#allocation65_spill] sm:$0xff] %v7592_v36  ;;  %vm1134_vm11 = vcmp.eq.s32.totalorder %v12088_v51, 1  ;;  %v12089_v15 = vrot.slane %v7578_v2, 7  ;;  %v12090_v23 = vrot.slane %v7582_v39, 7  ;;  %v12092_v27 = vrot.slane %v7578_v2, 1  ;;  %v12107_v2 = vld [vmem:[#allocation105_spill] sm:$0xff] }
 0x25a   : > { %12080 = vst [vmem:[#allocation176_spill] sm:$0xff] %v7613_v50  ;;  %v12093_v35 = vrot.slane %v7582_v39, 1  ;;  %v7649_v19 = vmax.f32 %v12095_v12, 0.0  ;;  %v12097_v50 = vld [vmem:[#allocation104_spill] sm:$0xff]  ;;  %vm1341_vm12 = vcmp.eq.s32.totalorder %v12099_v11, 1  ;;  %v12102_v12 = vld [vmem:[#allocation97_spill] sm:$0xff] }
 0x25b   : > { %12083 = vst [vmem:[#allocation175_spill] sm:$0xff] %v7617_v38  ;;  %v7638_v7 = vsel %vm12079_vm3, %v12090_v23, %v12089_v15  ;;  %v7652_v52 = vmax.f32 %v12097_v50, 0.0  ;;  %v12100_v23 = vld [vmem:[#allocation51_spill] sm:$0xff]  ;;  %v12101_v15 = vld [vmem:[#allocation12_spill] sm:$0xff]  ;;  %vm1350_vm3 = vcmp.eq.s32.totalorder %v1306_v46, 1  ;;  %v12104_v50 = vrot.slane %v12084_v17, 1 }
 0x25c   : > { %12086 = vst [vmem:[#allocation111_spill] sm:$0xff] %v7622_v44  ;;  %v7646_v63 = vsel %vm1488_vm8, %v12093_v35, %v12092_v27  ;;  %vm11528_vm15 = vcmp.eq.s32.totalorder %v12100_v23, 1  ;;  %v1303_v27 = vpop.permute.xlu2 %1302  ;;  %v7678_v42 = vsel %vm1350_vm3, %v12109_v20, %v7617_v38  ;;  %v12111_v46 = vld [vmem:[#allocation50_spill] sm:$0xff]  ;;  %v12113_v17 = vld [vmem:[#allocation147_spill] sm:$0xff]  ;;  %v12137_v5 = vrot.slane %v7601_v16, 7 }
 0x25d   : > { %12087 = vst [vmem:[#allocation41_spill] sm:$0xff] %v7626_v21  ;;  %vm1349_vm13 = vcmp.eq.s32.totalorder %v1303_v27, 1  ;;  %vm11527_vm0 = vcmp.eq.s32.totalorder %v12111_v46, 1  ;;  %v12112_v35 = vld [vmem:[#allocation130_spill] sm:$0xff]  ;;  %v12123_v39 = vld [vmem:[#allocation123_spill] sm:$0xff]  ;;  %v12129_v27 = vrot.slane %v12113_v17, 7 }
 0x25e   : > { %12091 = vst [vmem:[#allocation103_spill] sm:$0xff] %v7638_v7  ;;  %v7674_v7 = vsel %vm1328_vm1, %v12107_v2, %v12106_v60  ;;  %v12117_v60 = vld [vmem:[#allocation5_spill] sm:$0xff]  ;;  %v12118_v2 = vld [vmem:[#allocation6_spill] sm:$0xff]  ;;  %v12124_v38 = vld [vmem:[#allocation23_spill] sm:$0xff]  ;;  %v1309_v54 = vpop.permute.xlu1 %1308 }
 0x25f   : > { %12094 = vst [vmem:[#allocation62_spill] sm:$0xff] %v7646_v63  ;;  %v12103_v63 = vrot.slane %v12102_v12, 1  ;;  %vm11526_vm1 = vcmp.eq.s32.totalorder %v12117_v60, 1  ;;  %vm11525_vm3 = vcmp.eq.s32.totalorder %v12118_v2, 1  ;;  %v12120_v12 = vld [vmem:[#allocation127_spill] sm:$0xff]  ;;  %v12122_v21 = vld [vmem:[#allocation146_spill] sm:$0xff]  ;;  %v7705_v6 = vsel %vm1342_vm7, %v12124_v38, %v12123_v39 }
 0x260   : > { %12096 = vst [vmem:[#allocation102_spill] sm:$0xff] %v7649_v19  ;;  %v7696_v3 = vsel %vm1349_vm13, %v12120_v12, %v7649_v19  ;;  %v3274_v29 = vrot.slane %v7674_v7, 7  ;;  %vm11539_vm13 = vcmp.eq.s32.totalorder %v12128_v30, 1  ;;  %v3338_v38 = vrot.slane %v7674_v7, 1  ;;  %v12188_v2 = vld [vmem:[#allocation129_spill] sm:$0xff]  ;;  %v12208_v23 = vld [vmem:[#allocation178_spill] sm:$0xff] }
 0x261   : > { %12098 = vst [vmem:[#allocation104_spill] sm:$0xff] %v7652_v52  ;;  %v7668_v22 = vsel %vm1488_vm8, %v12104_v50, %v12103_v63  ;;  %v12114_v50 = vld [vmem:[#allocation122_spill] sm:$0xff]  ;;  %v1459_v63 = vrot.slane %v7369_v48, 1  ;;  %vm12131_vm7 = vcmp.lt.s32.totalorder %v6659_v45, 1  ;;  %v12214_v46 = vld [vmem:[#allocation40_spill] sm:$0xff] }
 0x262   : > { %12105 = vst [vmem:[#allocation72_spill] sm:$0xff] %v7668_v22  ;;  %v12115_v22 = vld [vmem:[#allocation25_spill] sm:$0xff]  ;;  %vm12153_vm2 = vmmov %vm12131_vm7 }
 0x263   : > { %12108 = vst [vmem:[#allocation194_spill] sm:$0xff] %v7674_v7  ;;  %v7688_v18 = vsel %vm1341_vm12, %v12115_v22, %v12114_v50  ;;  %vm12127_vm12 = vcmask 523264   ;;  %v12134_v22 = vrot.slane %v12119_v57, 1 }
 0x264   : > { %12110 = vst [vmem:[#allocation195_spill] sm:$0xff] %v7678_v42  ;;  %v12140_v42 = vld [vmem:[#allocation7_spill] sm:$0xff] }
 0x265   : > { %12116 = vst [vmem:[#allocation196_spill] sm:$0xff] %v7688_v18  ;;  %vm11544_vm6 = vcmp.eq.s32.totalorder %v12140_v42, 1  ;;  %v12210_v42 = vld [vmem:[#allocation133_spill] sm:$0xff] }
 0x266   : > { %12121 = vst [vmem:[#allocation197_spill] sm:$0xff] %v7696_v3  ;;  %5110 = vmatmul.msk.bf16.gmra.mxu3 %vm12127_vm12, %v12126_v28  ;;  %v12130_v3 = vrot.slane %v12119_v57, 7  ;;  %v12136_v28 = vrot.slane %v7369_v48, 7  ;;  %vm12138_vm12 = vmmov %vm12131_vm7 }
 0x267   : > { %12125 = vst [vmem:[#allocation198_spill] sm:$0xff] %v7705_v6  ;;  %v12133_v6 = vrot.slane %v12113_v17, 1  ;;  %v12149_v17 = vld [vmem:[#allocation92_spill] sm:$0xff] }
 0x268   : > { %v7730_v11 = vsel %vm12131_vm7, %v12130_v3, %v12129_v27  ;;  %v7746_v7 = vsel %vm12138_vm12, %v12137_v5, %v12136_v28  ;;  %v12141_v3 = vrot.slane %v7337_v9, 1  ;;  %v12148_v5 = vld [vmem:[#allocation95_spill] sm:$0xff]  ;;  %vm12150_vm12 = vmmov %vm12131_vm7 }
 0x269   : > { %12132 = vst [vmem:[#allocation199_spill] sm:$0xff] %v7730_v11  ;;  %v7738_v32 = vsel %vm1488_vm8, %v12134_v22, %v12133_v6  ;;  %v12143_v11 = vrot.slane %v7601_v16, 1  ;;  %v12145_v6 = vrot.slane %v12122_v21, 7  ;;  %v7777_v9 = vsel %vm12150_vm12, %v3274_v29, %v3275_v10 }
 0x26a   : > { %12135 = vst [vmem:[#allocation200_spill] sm:$0xff] %v7738_v32  ;;  %v7753_v27 = vsel %vm1488_vm8, %v1459_v63, %v12141_v3  ;;  %v12146_v32 = vrot.slane %v12101_v15, 7  ;;  %v7773_v3 = vsel %vm1133_vm10, %v12149_v17, %v12148_v5  ;;  %v12158_v17 = vrot.slane %v12122_v21, 1 }
 0x26b   : > { %12139 = vst [vmem:[#allocation201_spill] sm:$0xff] %v7746_v7  ;;  %v7759_v22 = vsel %vm1488_vm8, %v12143_v11, %v1459_v63  ;;  %v12152_v63 = vrot.slane %v12067_v8, 7  ;;  %v1312_v8 = vpop.permute.xlu2 %1311  ;;  %vm1347_vm12 = vcmp.eq.s32.totalorder %v7570_v0, 1 }
 0x26c   : > { %12142 = vst [vmem:[#allocation202_spill] sm:$0xff] %v7753_v27  ;;  %v7767_v28 = vsel %vm12131_vm7, %v12146_v32, %v12145_v6  ;;  %v12155_v32 = vld [vmem:[#allocation90_spill] sm:$0xff]  ;;  %v12156_v6 = vld [vmem:[#allocation93_spill] sm:$0xff]  ;;  %vm12171_vm7 = vcmask 523264  }
 0x26d   : > { %12144 = vst [vmem:[#allocation203_spill] sm:$0xff] %v7759_v22  ;;  %v7783_v11 = vsel %vm12153_vm2, %v12152_v63, %v3274_v29  ;;  %v12159_v22 = vrot.slane %v12101_v15, 1  ;;  %v12161_v29 = vrot.slane %v7383_v34, 1  ;;  %v3276_v63 = vrot.slane %v7406_v56, 7 }
 0x26e   : > { %12147 = vst [vmem:[#allocation204_spill] sm:$0xff] %v7767_v28  ;;  %v7790_v28 = vsel %vm1134_vm11, %v12156_v6, %v12155_v32  ;;  %v12163_v6 = vld [vmem:[#allocation9_spill] sm:$0xff]  ;;  %vm1345_vm11 = vcmp.eq.s32.totalorder %v7572_v47, 1  ;;  %v7847_v47 = vsel %vm11527_vm0, %v7448_v43, %v7440_v14  ;;  %v3340_v14 = vrot.slane %v7406_v56, 1 }
 0x26f   : > { %12151 = vst [vmem:[#allocation205_spill] sm:$0xff] %v7777_v9  ;;  %v7798_v9 = vsel %vm1488_vm8, %v12159_v22, %v12158_v17  ;;  %v7804_v13 = vsel %vm1488_vm8, %v3338_v38, %v12161_v29  ;;  %v1865_v51 = vpack.c.bf16 %v7790_v28, %v7773_v3  ;;  %vm11554_vm10 = vcmp.eq.s32.totalorder %v12163_v6, 1  ;;  %v12168_v29 = vld [vmem:[#allocation116_spill] sm:$0xff]  ;;  %v12226_v6 = vld [vmem:[#allocation43_spill] sm:$0xff] }
 0x270   : > { %12154 = vst [vmem:[#allocation206_spill] sm:$0xff] %v7783_v11  ;;  %v12164_v11 = vld [vmem:[#allocation10_spill] sm:$0xff]  ;;  %v7815_v17 = vsel %vm1488_vm8, %v12165_v24, %v3338_v38  ;;  %v7821_v22 = vsel %vm11528_vm15, %v7753_v27, %v7746_v7  ;;  %v7833_v38 = vsel %vm1345_vm11, %v12114_v50, %v12120_v12  ;;  %v1655_v24 = vsel %vm11526_vm1, %v7321_v31, %v6969_v4  ;;  %vm12175_vm11 = vmmov %vm12171_vm7  ;;  %v12176_v31 = vld [vmem:[#allocation172_spill] sm:$0xff] }
 0x271   : > { %12157 = vst [vmem:[#allocation207_spill] sm:$0xff] %v7790_v28  ;;  %vm11557_vm2 = vcmp.eq.s32.totalorder %v12164_v11, 1  ;;  %v7828_v28 = vsel %vm1346_vm5, %v12123_v39, %v12109_v20  ;;  %5042 = vmatmul.msk.bf16.vlgmr.msrb.gmra.mxu0 %vm12171_vm7, %v1865_v51  ;;  %v12174_v51 = vld [vmem:[#allocation148_spill] sm:$0xff]  ;;  %vm1352_vm0 = vcmp.eq.s32.totalorder %v1312_v8, 1  ;;  %v12184_v4 = vld [vmem:[#allocation13_spill] sm:$0xff]  ;;  %v12212_v7 = vld [vmem:[#allocation159_spill] sm:$0xff] }
 0x272   : > { %12160 = vst [vmem:[#allocation208_spill] sm:$0xff] %v7798_v9  ;;  %v12169_v9 = vld [vmem:[#allocation131_spill] sm:$0xff]  ;;  %vm1333_vm5 = vcmp.eq.s32.totalorder %v12174_v51, 1  ;;  %2311 = vmatpush.bf16.msrb.mxu0 %v12176_v31  ;;  %v12183_v31 = vld [vmem:[#allocation170_spill] sm:$0xff]  ;;  %vm11585_vm15 = vcmp.eq.s32.totalorder %v12184_v4, 1  ;;  %v12185_v39 = vld [vmem:[#allocation17_spill] sm:$0xff] }
 0x273   : > { %12162 = vst [vmem:[#allocation209_spill] sm:$0xff] %v7804_v13  ;;  %v1868_v13 = vpack.c.bf16 %v12169_v9, %v12168_v29  ;;  %v1656_v9 = vsel %vm11525_vm3, %v7315_v49, %v7251_v53  ;;  %v12177_v29 = vld [vmem:[#allocation11_spill] sm:$0xff]  ;;  %v12178_v53 = vrot.slane %v12101_v15, 7  ;;  %vm12179_vm3 = vcmp.lt.s32.totalorder %v6659_v45, 1  ;;  %v12186_v50 = vld [vmem:[#allocation8_spill] sm:$0xff]  ;;  %v12213_v8 = vld [vmem:[#allocation169_spill] sm:$0xff] }
 0x274   : > { %12166 = vst [vmem:[#allocation210_spill] sm:$0xff] %v7815_v17  ;;  %vm11572_vm7 = vcmp.eq.s32.totalorder %v12177_v29, 1  ;;  %vm12181_vm1 = vmmov %vm12179_vm3  ;;  %v1844_v0 = vpack.c.bf16 %v1656_v9, %v1655_v24  ;;  %v12192_v24 = vld [vmem:[#allocation119_spill] sm:$0xff]  ;;  %v12196_v9 = vld [vmem:[#allocation14_spill] sm:$0xff]  ;;  %v7953_v60 = vsel %vm11554_vm10, %v12213_v8, %v12212_v7  ;;  %v12221_v7 = vrot.slane %v12101_v15, 1 }
 0x275   : > { %12167 = vst [vmem:[#allocation211_spill] sm:$0xff] %v7821_v22  ;;  %5045 = vmatmul.msk.bf16.vlgmr.msra.gmra.mxu1 %vm12175_vm11, %v1868_v13  ;;  %v7860_v49 = vsel %vm12179_vm3, %v3276_v63, %v12178_v53  ;;  %v7864_v43 = vsel %vm12181_vm1, %v3275_v10, %v3276_v63  ;;  %vm1336_vm11 = vcmp.eq.s32.totalorder %v12183_v31, 1  ;;  %v7873_v53 = vsel %vm1333_vm5, %v12186_v50, %v12185_v39  ;;  %v12191_v63 = vld [vmem:[#allocation132_spill] sm:$0xff]  ;;  %v12193_v51 = vld [vmem:[#allocation15_spill] sm:$0xff]  ;;  %v1315_v13 = vpop.permute.xlu0 %1314  ;;  %v12199_v39 = vld [vmem:[#allocation106_spill] sm:$0xff] }
 0x276   : > { %12170 = vst [vmem:[#allocation116_spill] sm:$0xff] %v7828_v28  ;;  %v7877_v10 = vsel %vm1347_vm12, %v12068_v58, %v12188_v2  ;;  %vm12190_vm1 = vcmask 523264   ;;  %vm1348_vm3 = vcmp.eq.s32.totalorder %v7655_v33, 1  ;;  %vm11606_vm9 = vcmp.eq.s32.totalorder %v12193_v51, 1  ;;  %v12203_v50 = vld [vmem:[#allocation35_spill] sm:$0xff]  ;;  %v12206_v31 = vld [vmem:[#allocation20_spill] sm:$0xff] }
 0x277   : > { %12172 = vst [vmem:[#allocation131_spill] sm:$0xff] %v7833_v38  ;;  %5077 = vmatmul.msk.bf16.vlgmr.msra.gmra.mxu2 %vm12190_vm1, %v1844_v0  ;;  %v7886_v56 = vsel %vm1348_vm3, %v12063_v40, %v12112_v35  ;;  %vm1351_vm5 = vcmp.eq.s32.totalorder %v1309_v54, 1  ;;  %v7892_v58 = vsel %vm11544_vm6, %v7311_v41, %v7245_v59  ;;  %v7898_v33 = vsel %vm11539_vm13, %v7006_v61, %v7241_v26  ;;  %v12195_v0 = vld [vmem:[#allocation174_spill] sm:$0xff]  ;;  %v12202_v26 = vld [vmem:[#allocation16_spill] sm:$0xff]  ;;  %v12220_v11 = vld [vmem:[#allocation135_spill] sm:$0xff] }
 0x278   : > { %12173 = vst [vmem:[#allocation212_spill] sm:$0xff] %v7847_v47  ;;  %2312 = vmatpush.bf16.msrb.mxu0 %v12195_v0  ;;  %vm11596_vm12 = vcmp.eq.s32.totalorder %v12196_v9, 1  ;;  %v12197_v40 = vld [vmem:[#allocation18_spill] sm:$0xff]  ;;  %v7911_v59 = vsel %vm1352_vm0, %v12112_v35, %v12199_v39  ;;  %v7917_v61 = vsel %vm1351_vm5, %v12188_v2, %v7652_v52  ;;  %vm11595_vm1 = vcmp.eq.s32.totalorder %v12202_v26, 1  ;;  %v12215_v27 = vld [vmem:[#allocation52_spill] sm:$0xff]  ;;  %v12294_v51 = vld [vmem:[#allocation163_spill] sm:$0xff] }
 0x279   : > { %12180 = vst [vmem:[#allocation148_spill] sm:$0xff] %v7860_v49  ;;  %v7906_v54 = vsel %vm1336_vm11, %v12197_v40, %v12085_v1  ;;  %v1318_v40 = vpop.permute.xlu1 %1317  ;;  %vm11593_vm0 = vcmp.eq.s32.totalorder %v12203_v50, 1  ;;  %v3279_v41 = vrot.slane %v7873_v53, 7  ;;  %v3343_v30 = vrot.slane %v7873_v53, 1  ;;  %v12207_v1 = vld [vmem:[#allocation21_spill] sm:$0xff]  ;;  %v12225_v22 = vld [vmem:[#allocation28_spill] sm:$0xff] }
 0x27a   : > { %12182 = vst [vmem:[#allocation172_spill] sm:$0xff] %v7864_v43  ;;  %vm1353_vm11 = vcmp.eq.s32.totalorder %v1315_v13, 1  ;;  %v12204_v0 = vpack.c.bf16 %v7472_v25, %v7466_v37  ;;  %vm12205_vm3 = vcmask 523264   ;;  %vm11604_vm5 = vcmp.eq.s32.totalorder %v12206_v31, 1  ;;  %v12209_v13 = vld [vmem:[#allocation117_spill] sm:$0xff]  ;;  %v12211_v25 = vld [vmem:[#allocation171_spill] sm:$0xff] }
 0x27b   : > { %12187 = vst [vmem:[#allocation170_spill] sm:$0xff] %v7873_v53  ;;  %vm11600_vm13 = vcmp.eq.s32.totalorder %v12207_v1, 1  ;;  %v3282_v53 = vrot.slane %v7906_v54, 7  ;;  %vm1354_vm6 = vcmp.eq.s32.totalorder %v1318_v40, 1  ;;  %vm1164_vm14 = vcmp.eq.s32.totalorder %v12215_v27, 1  ;;  %v12243_v38 = vld [vmem:[#allocation26_spill] sm:$0xff] }
 0x27c   : > { %12189 = vst [vmem:[#allocation213_spill] sm:$0xff] %v7877_v10  ;;  %5111 = vmatmul.msk.bf16.gmra.mxu3 %vm12205_vm3, %v12204_v0  ;;  %2313 = vmatpush.bf16.msrb.mxu0 %v12208_v23  ;;  %v7947_v0 = vsel %vm11557_vm2, %v12211_v25, %v6961_v55  ;;  %vm1157_vm3 = vcmp.eq.s32.totalorder %v12214_v46, 1  ;;  %v7959_v40 = vsel %vm1353_vm11, %v7649_v19, %v12148_v5  ;;  %v12217_v23 = vld [vmem:[#allocation175_spill] sm:$0xff]  ;;  %v12219_v25 = vld [vmem:[#allocation134_spill] sm:$0xff]  ;;  %v12223_v49 = vrot.slane %v7383_v34, 1  ;;  %v12234_v55 = vld [vmem:[#allocation124_spill] sm:$0xff] }
 0x27d   : > { %12194 = vst [vmem:[#allocation132_spill] sm:$0xff] %v7886_v56  ;;  %v7963_v37 = vsel %vm1354_vm6, %v12217_v23, %v12155_v32  ;;  %v7973_v8 = vsel %vm1488_vm8, %v3340_v14, %v12221_v7  ;;  %v12227_v15 = vrot.slane %v7688_v18, 7  ;;  %v12228_v7 = vrot.slane %v7622_v44, 7  ;;  %v12239_v56 = vld [vmem:[#allocation168_spill] sm:$0xff]  ;;  %v12307_v47 = vld [vmem:[#allocation46_spill] sm:$0xff]  ;;  %v12311_v1 = vld [vmem:[#allocation143_spill] sm:$0xff] }
 0x27e   : > { %12198 = vst [vmem:[#allocation119_spill] sm:$0xff] %v7906_v54  ;;  %v7979_v43 = vsel %vm1488_vm8, %v12223_v49, %v3340_v14  ;;  %vm12229_vm10 = vcmp.lt.s32.totalorder %v6659_v45, 1  ;;  %v12231_v49 = vrot.slane %v7688_v18, 1  ;;  %v12232_v14 = vrot.slane %v7622_v44, 1  ;;  %v12277_v4 = vld [vmem:[#allocation156_spill] sm:$0xff]  ;;  %v12324_v46 = vld [vmem:[#allocation182_spill] sm:$0xff] }
 0x27f   : > { %12200 = vst [vmem:[#allocation174_spill] sm:$0xff] %v7911_v59  ;;  %v7992_v34 = vsel %vm12229_vm10, %v12228_v7, %v12227_v15  ;;  %vm12236_vm2 = vmmov %vm12229_vm10  ;;  %v12241_v7 = vld [vmem:[#allocation186_spill] sm:$0xff]  ;;  %vm11627_vm4 = vcmp.eq.s32.totalorder %v12243_v38, 1  ;;  %v12248_v29 = vrot.slane %v12234_v55, 1  ;;  %v12299_v26 = vpack.c.bf16 %v7898_v33, %v7892_v58  ;;  %v12303_v58 = vld [vmem:[#allocation151_spill] sm:$0xff] }
 0x280   : > { %12201 = vst [vmem:[#allocation214_spill] sm:$0xff] %v7917_v61  ;;  %v8000_v17 = vsel %vm1488_vm8, %v12232_v14, %v12231_v49  ;;  %2314 = vmatpush.bf16.msrb.mxu0 %v12241_v7  ;;  %v12244_v49 = vld [vmem:[#allocation71_spill] sm:$0xff]  ;;  %vm12270_vm11 = vmmov %vm12236_vm2  ;;  %v12304_v33 = vld [vmem:[#allocation161_spill] sm:$0xff] }
 0x281   : > { %12216 = vst [vmem:[#allocation178_spill] sm:$0xff] %v7959_v40  ;;  %v12245_v14 = vld [vmem:[#allocation75_spill] sm:$0xff]  ;;  %v12253_v40 = vrot.slane %v7592_v36, 7  ;;  %v12308_v50 = vld [vmem:[#allocation76_spill] sm:$0xff] }
 0x282   : > { %12218 = vst [vmem:[#allocation117_spill] sm:$0xff] %v7963_v37  ;;  %v12238_v37 = vld [vmem:[#allocation158_spill] sm:$0xff]  ;;  %v12348_v38 = vld [vmem:[#allocation39_spill] sm:$0xff] }
 0x283   : > { %12222 = vst [vmem:[#allocation133_spill] sm:$0xff] %v7973_v8  ;;  %v12235_v8 = vrot.slane %v12234_v55, 7  ;;  %v8012_v15 = vsel %vm11572_vm7, %v12239_v56, %v12238_v37  ;;  %v8029_v56 = vsel %vm1488_vm8, %v3343_v30, %v12248_v29  ;;  %v12250_v37 = vrot.slane %v12122_v21, 1  ;;  %vm12254_vm7 = vmmov %vm12236_vm2 }
 0x284   : > { %12224 = vst [vmem:[#allocation171_spill] sm:$0xff] %v7979_v43  ;;  %v12257_v55 = vrot.slane %v7592_v36, 1 }
 0x285   : > { %12230 = vst [vmem:[#allocation159_spill] sm:$0xff] %v7992_v34  ;;  %v8006_v43 = vsel %vm12236_vm2, %v3279_v41, %v12235_v8  ;;  %v12242_v34 = vld [vmem:[#allocation22_spill] sm:$0xff]  ;;  %v8035_v7 = vsel %vm1488_vm8, %v12250_v37, %v3343_v30  ;;  %v12261_v37 = vld [vmem:[#allocation157_spill] sm:$0xff] }
 0x286   : > { %12233 = vst [vmem:[#allocation169_spill] sm:$0xff] %v8000_v17  ;;  %vm11612_vm10 = vcmp.eq.s32.totalorder %v12242_v34, 1  ;;  %v12246_v17 = vrot.slane %v12122_v21, 7  ;;  %v12259_v21 = vrot.slane %v12119_v57, 7 }
 0x287   : > { %12237 = vst [vmem:[#allocation40_spill] sm:$0xff] %v8006_v43  ;;  %v12252_v43 = vrot.slane %v7586_v62, 7 }
 0x288   : > { %12240 = vst [vmem:[#allocation52_spill] sm:$0xff] %v8012_v15  ;;  %v8023_v8 = vsel %vm12236_vm2, %v12246_v17, %v3279_v41  ;;  %v12256_v41 = vrot.slane %v7586_v62, 1  ;;  %v8057_v30 = vsel %vm12236_vm2, %v3282_v53, %v12259_v21  ;;  %v12267_v62 = vld [vmem:[#allocation73_spill] sm:$0xff]  ;;  %v12272_v21 = vrot.slane %v12119_v57, 1 }
 0x289   : > { %12247 = vst [vmem:[#allocation134_spill] sm:$0xff] %v8023_v8  ;;  %v8043_v17 = vsel %vm12254_vm7, %v12253_v40, %v12252_v43  ;;  %v12262_v8 = vld [vmem:[#allocation167_spill] sm:$0xff]  ;;  %vm11629_vm6 = vcmp.eq.s32.totalorder %v12267_v62, 1  ;;  %vm12276_vm2 = vcmask 523264   ;;  %v12278_v40 = vld [vmem:[#allocation166_spill] sm:$0xff] }
 0x28a   : > { %12249 = vst [vmem:[#allocation135_spill] sm:$0xff] %v8029_v56  ;;  %v8051_v29 = vsel %vm1488_vm8, %v12257_v55, %v12256_v41  ;;  %v8063_v43 = vsel %vm11585_vm15, %v12262_v8, %v12261_v37  ;;  %v12268_v55 = vld [vmem:[#allocation120_spill] sm:$0xff]  ;;  %v12275_v37 = vpack.c.bf16 %v7369_v48, %v7601_v16  ;;  %v12281_v48 = vpack.c.bf16 %v12192_v24, %v12191_v63  ;;  %vm12282_vm15 = vmmov %vm12276_vm2  ;;  %v12298_v24 = vld [vmem:[#allocation207_spill] sm:$0xff] }
 0x28b   : > { %12251 = vst [vmem:[#allocation43_spill] sm:$0xff] %v8035_v7  ;;  %v12266_v7 = vld [vmem:[#allocation27_spill] sm:$0xff]  ;;  %v12269_v41 = vrot.slane %v12268_v55, 7  ;;  %5078 = vmatmul.msk.bf16.gmra.mxu2 %vm12282_vm15, %v12299_v26  ;;  %v8155_v26 = vsel %vm11604_vm5, %v12304_v33, %v12303_v58  ;;  %v12312_v58 = vld [vmem:[#allocation33_spill] sm:$0xff]  ;;  %v12315_v63 = vld [vmem:[#allocation144_spill] sm:$0xff] }
 0x28c   : > { %12255 = vst [vmem:[#allocation158_spill] sm:$0xff] %v8043_v17  ;;  %vm11622_vm7 = vcmp.eq.s32.totalorder %v12266_v7, 1  ;;  %5043 = vmatmul.msk.bf16.gmra.mxu0 %vm12276_vm2, %v12275_v37  ;;  %5046 = vmatmul.msk.bf16.gmra.mxu1 %vm12282_vm15, %v12281_v48  ;;  %v12284_v37 = vld [vmem:[#allocation165_spill] sm:$0xff]  ;;  %v12290_v48 = vld [vmem:[#allocation154_spill] sm:$0xff]  ;;  %v12323_v17 = vld [vmem:[#allocation183_spill] sm:$0xff]  ;;  %v12327_v15 = vrot.slane %v12315_v63, 1 }
 0x28d   : > { %12258 = vst [vmem:[#allocation168_spill] sm:$0xff] %v8051_v29  ;;  %v8073_v29 = vsel %vm12270_vm11, %v12269_v41, %v3282_v53  ;;  %v8093_v53 = vsel %vm11606_vm9, %v12278_v40, %v12277_v4  ;;  %v12280_v41 = vld [vmem:[#allocation31_spill] sm:$0xff]  ;;  %v12293_v40 = vld [vmem:[#allocation153_spill] sm:$0xff] }
 0x28e   : > { %12260 = vst [vmem:[#allocation186_spill] sm:$0xff] %v8057_v30  ;;  %v12273_v30 = vrot.slane %v7906_v54, 1  ;;  %vm1159_vm11 = vcmp.eq.s32.totalorder %v12280_v41, 1  ;;  %v8128_v57 = vsel %vm11593_vm0, %v12294_v51, %v12293_v40  ;;  %v12297_v4 = vld [vmem:[#allocation141_spill] sm:$0xff]  ;;  %v12300_v40 = vld [vmem:[#allocation152_spill] sm:$0xff]  ;;  %vm11637_vm0 = vcmp.eq.s32.totalorder %v12307_v47, 1 }
 0x28f   : > { %12263 = vst [vmem:[#allocation157_spill] sm:$0xff] %v8063_v43  ;;  %v12313_v33 = vld [vmem:[#allocation105_spill] sm:$0xff]  ;;  %v1477_v51 = vrot.slane %v12311_v1, 1  ;;  %v8271_v7 = vsel %vm1159_vm11, %v7652_v52, %v12188_v2  ;;  %v1457_v41 = vrot.slane %v12298_v24, 1  ;;  %vm12364_vm11 = vcmask 523264  }
 0x290   : > { %12271 = vst [vmem:[#allocation167_spill] sm:$0xff] %v8073_v29  ;;  %v8081_v8 = vsel %vm1488_vm8, %v12273_v30, %v12272_v21  ;;  %v12283_v21 = vld [vmem:[#allocation155_spill] sm:$0xff]  ;;  %v12288_v29 = vld [vmem:[#allocation34_spill] sm:$0xff]  ;;  %v12309_v30 = vld [vmem:[#allocation77_spill] sm:$0xff]  ;;  %v12384_v47 = vrot.slane %v7773_v3, 1 }
 0x291   : > { %12274 = vst [vmem:[#allocation215_spill] sm:$0xff] %v8081_v8  ;;  %v8106_v56 = vsel %vm11596_vm12, %v12284_v37, %v12283_v21  ;;  %vm1160_vm2 = vcmp.eq.s32.totalorder %v12288_v29, 1  ;;  %v12291_v8 = vld [vmem:[#allocation164_spill] sm:$0xff]  ;;  %v12306_v37 = vld [vmem:[#allocation30_spill] sm:$0xff]  ;;  %vm11643_vm12 = vcmp.eq.s32.totalorder %v12309_v30, 1  ;;  %v12359_v29 = vld [vmem:[#allocation83_spill] sm:$0xff] }
 0x292   : > { %12279 = vst [vmem:[#allocation156_spill] sm:$0xff] %v8093_v53  ;;  %v8120_v9 = vsel %vm11595_vm1, %v12291_v8, %v12290_v48  ;;  %v5378_v8 = vld [vmem:[%s11202_s5 + $0x90] sm:$0xff]  ;;  %v12301_v53 = vld [vmem:[#allocation162_spill] sm:$0xff]  ;;  %vm11636_vm15 = vcmp.eq.s32.totalorder %v12306_v37, 1  ;;  %vm11642_vm1 = vcmp.eq.s32.totalorder %v12308_v50, 1 }
 0x293   : > { %12285 = vst [vmem:[#allocation166_spill] sm:$0xff] %v8106_v56  ;;  %v5374_v48 = vld [vmem:[%s11202_s5 + $0x70] sm:$0xff]  ;;  %v8149_v21 = vsel %vm11600_vm13, %v12301_v53, %v12300_v40  ;;  %v12310_v40 = vld [vmem:[#allocation142_spill] sm:$0xff]  ;;  %2938 = vmatpush.bf16.msrb.mxu2 %v5378_v8  ;;  %v12316_v56 = vld [vmem:[#allocation145_spill] sm:$0xff]  ;;  %v12321_v8 = vrot.slane %v12297_v4, 7 }
 0x294   : > { %12292 = vst [vmem:[#allocation31_spill] sm:$0xff] %v8120_v9  ;;  %v1409_v31 = vrot.slane %v12310_v40, 7  ;;  %2721 = vmatpush.bf16.msrb.mxu1 %v5374_v48  ;;  %v8181_v9 = vsel %vm1157_vm3, %v7649_v19, %v12120_v12  ;;  %v1412_v53 = vrot.slane %v12316_v56, 7  ;;  %v12325_v12 = vpack.c.bf16 %v12323_v17, %v12324_v46 }
 0x295   : > { %12295 = vst [vmem:[#allocation155_spill] sm:$0xff] %v8128_v57  ;;  %v8172_v57 = vsel %vm1164_vm14, %v12313_v33, %v12199_v39  ;;  %vm12320_vm14 = vcmp.lt.s32.totalorder %v6659_v45, 1  ;;  %v1480_v33 = vrot.slane %v8181_v9, 1  ;;  %vm12326_vm3 = vcmask 523264  }
 0x296   : > { %12302 = vst [vmem:[#allocation165_spill] sm:$0xff] %v8149_v21  ;;  %v12318_v21 = vld [vmem:[#allocation49_spill] sm:$0xff]  ;;  %vm12322_vm9 = vmmov %vm12320_vm14  ;;  %5112 = vmatmul.msk.bf16.gmra.mxu3 %vm12326_vm3, %v12325_v12  ;;  %vm12337_vm3 = vcmp.eq.s32.totalorder %v12244_v49, 1 }
 0x297   : > { %12305 = vst [vmem:[#allocation34_spill] sm:$0xff] %v8155_v26  ;;  %v12319_v26 = vrot.slane %v12311_v1, 7  ;;  %v1435_v48 = vsel %vm12322_vm9, %v12321_v8, %v1409_v31  ;;  %v1498_v1 = vsel %vm1488_vm8, %v1477_v51, %v12327_v15  ;;  %v12330_v8 = vld [vmem:[#allocation160_spill] sm:$0xff]  ;;  %vm12331_vm9 = vcmp.eq.s32.totalorder %v12225_v22, 1  ;;  %v12481_v49 = vld [vmem:[#allocation193_spill] sm:$0xff] }
 0x298   : > { %12314 = vst [vmem:[#allocation154_spill] sm:$0xff] %v8172_v57 }
 0x299   : > { %12317 = vst [vmem:[#allocation164_spill] sm:$0xff] %v8181_v9  ;;  %v1434_v27 = vsel %vm12320_vm14, %v1409_v31, %v12319_v26  ;;  %v12328_v26 = vrot.slane %v12310_v40, 1  ;;  %v12329_v31 = vld [vmem:[#allocation150_spill] sm:$0xff]  ;;  %vm12333_vm14 = vcmp.eq.s32.totalorder %v12226_v6, 1  ;;  %v12342_v6 = vld [vmem:[#allocation37_spill] sm:$0xff] }
 0x29a   : > { %v8210_v43 = vsel %vm12331_vm9, %v12330_v8, %v12329_v31  ;;  %v8216_v12 = vsel %vm12333_vm14, %v12217_v23, %v12109_v20  ;;  %v8224_v17 = vsel %vm11627_vm4, %v1498_v1, %v1434_v27  ;;  %vm12339_vm9 = vcmp.eq.s32.totalorder %v12245_v14, 1  ;;  %v12343_v31 = vld [vmem:[#allocation78_spill] sm:$0xff]  ;;  %v12344_v8 = vld [vmem:[#allocation80_spill] sm:$0xff]  ;;  %12352 = vst [vmem:[#allocation49_spill] sm:$0xff] %v8271_v7 }
 0x29b   : > { %v1499_v4 = vsel %vm1488_vm8, %v12328_v26, %v1477_v51  ;;  %12332 = vst [vmem:[#allocation153_spill] sm:$0xff] %v8210_v43  ;;  %v8232_v46 = vsel %vm12339_vm9, %v1434_v27, %v1498_v1  ;;  %v12341_v26 = vld [vmem:[#allocation36_spill] sm:$0xff]  ;;  %vm1643_vm14 = vcmp.eq.s32.totalorder %v12342_v6, 1  ;;  %vm1803_vm13 = vcmp.eq.s32.totalorder %v12343_v31, 1  ;;  %v12356_v43 = vld [vmem:[#allocation38_spill] sm:$0xff] }
 0x29c   : > { %12334 = vst [vmem:[#allocation163_spill] sm:$0xff] %v8216_v12  ;;  %v8220_v15 = vsel %vm11612_vm10, %v1499_v4, %v1435_v48  ;;  %v8228_v51 = vsel %vm12337_vm3, %v1435_v48, %v1499_v4  ;;  %vm1644_vm5 = vcmp.eq.s32.totalorder %v12341_v26, 1  ;;  %vm11652_vm10 = vcmp.eq.s32.totalorder %v12344_v8, 1 }
 0x29d   : > { %12335 = vst [vmem:[#allocation207_spill] sm:$0xff] %v8220_v15  ;;  %v12345_v4 = vrot.slane %v12315_v63, 7  ;;  %vm12346_vm3 = vcmp.lt.s32.totalorder %v6659_v45, 1  ;;  %v12347_v27 = vrot.slane %v12316_v56, 1  ;;  %vm1163_vm9 = vcmp.eq.s32.totalorder %v12348_v38, 1  ;;  %v12402_v38 = vld [vmem:[#allocation185_spill] sm:$0xff] }
 0x29e   : > { %12336 = vst [vmem:[#allocation152_spill] sm:$0xff] %v8224_v17  ;;  %v1414_v22 = vrot.slane %v8216_v12, 7  ;;  %v1481_v63 = vrot.slane %v8216_v12, 1  ;;  %v1482_v17 = vrot.slane %v8271_v7, 1  ;;  %v8282_v15 = vsel %vm1160_vm2, %v12199_v39, %v12112_v35 }
 0x29f   : > { %12338 = vst [vmem:[#allocation162_spill] sm:$0xff] %v8228_v51  ;;  %v1432_v1 = vsel %vm12346_vm3, %v12345_v4, %v1412_v53  ;;  %v1496_v48 = vsel %vm1488_vm8, %v12347_v27, %v1480_v33  ;;  %v12355_v27 = vld [vmem:[#allocation55_spill] sm:$0xff]  ;;  %v1483_v12 = vrot.slane %v8282_v15, 1  ;;  %vm1805_vm2 = vcmp.eq.s32.totalorder %v12359_v29, 1  ;;  %v12362_v51 = vld [vmem:[#allocation173_spill] sm:$0xff] }
 0x2a0   : > { %12340 = vst [vmem:[#allocation151_spill] sm:$0xff] %v8232_v46  ;;  %v8253_v34 = vsel %vm11622_vm7, %v1496_v48, %v1432_v1  ;;  %v8257_v20 = vsel %vm11629_vm6, %v1432_v1, %v1496_v48  ;;  %v12353_v1 = vld [vmem:[#allocation48_spill] sm:$0xff]  ;;  %v1413_v48 = vrot.slane %v8181_v9, 7  ;;  %v1495_v4 = vsel %vm1488_vm8, %v1480_v33, %v1481_v63  ;;  %v12357_v33 = vld [vmem:[#allocation42_spill] sm:$0xff]  ;;  %vm12360_vm7 = vmmov %vm12346_vm3 }
 0x2a1   : > { %12349 = vst [vmem:[#allocation161_spill] sm:$0xff] %v8253_v34  ;;  %vm1646_vm4 = vcmp.eq.s32.totalorder %v12357_v33, 1  ;;  %v12358_v34 = vld [vmem:[#allocation82_spill] sm:$0xff]  ;;  %v1494_v2 = vsel %vm1488_vm8, %v1481_v63, %v1482_v17  ;;  %v2457_v6 = vrot.slane %v12199_v39, 7 }
 0x2a2   : > { %12350 = vst [vmem:[#allocation33_spill] sm:$0xff] %v8257_v20  ;;  %vm1806_vm6 = vcmp.eq.s32.totalorder %v12358_v34, 1  ;;  %v1430_v40 = vsel %vm12346_vm3, %v1413_v48, %v1414_v22  ;;  %v1431_v56 = vsel %vm12360_vm7, %v1412_v53, %v1413_v48  ;;  %v1416_v20 = vrot.slane %v8282_v15, 7  ;;  %v12361_v9 = vld [vmem:[#allocation118_spill] sm:$0xff]  ;;  %vm12370_vm7 = vmmov %vm12364_vm11 }
 0x2a3   : > { %12354 = vst [vmem:[#allocation183_spill] sm:$0xff] %v8282_v15  ;;  %v12363_v46 = vpack.c.bf16 %v12361_v9, %v12362_v51  ;;  %v8307_v62 = vsel %vm11636_vm15, %v1495_v4, %v1431_v56  ;;  %v8311_v14 = vsel %vm11637_vm0, %v1494_v2, %v1430_v40  ;;  %v8315_v53 = vsel %vm11643_vm12, %v1431_v56, %v1495_v4  ;;  %v12378_v4 = vld [vmem:[#allocation85_spill] sm:$0xff] }
 0x2a4   : > { %12365 = vst [vmem:[#allocation182_spill] sm:$0xff] %v8307_v62  ;;  %v8319_v63 = vsel %vm11642_vm1, %v1430_v40, %v1494_v2  ;;  %v12369_v9 = vpack.c.bf16 %v12210_v42, %v12209_v13  ;;  %v12371_v51 = vrot.slane %v12298_v24, 7  ;;  %v12376_v13 = vld [vmem:[#allocation44_spill] sm:$0xff]  ;;  %v12377_v40 = vld [vmem:[#allocation45_spill] sm:$0xff]  ;;  %vm1807_vm0 = vcmp.eq.s32.totalorder %v12378_v4, 1 }
 0x2a5   : > { %5044 = vmatmul.msk.bf16.gmra.mxu0 %vm12364_vm11, %v12363_v46  ;;  %12366 = vst [vmem:[#allocation150_spill] sm:$0xff] %v8311_v14  ;;  %v12372_v46 = vrot.slane %v7773_v3, 7  ;;  %vm12374_vm11 = vcmp.eq.s32.totalorder %v12312_v58, 1  ;;  %vm1647_vm15 = vcmp.eq.s32.totalorder %v12377_v40, 1  ;;  %v1493_v56 = vsel %vm1488_vm8, %v1482_v17, %v1483_v12  ;;  %v12400_v15 = vld [vmem:[#allocation41_spill] sm:$0xff] }
 0x2a6   : > { %12367 = vst [vmem:[#allocation160_spill] sm:$0xff] %v8315_v53  ;;  %5047 = vmatmul.msk.bf16.gmra.mxu1 %vm12370_vm7, %v12369_v9  ;;  %v8341_v42 = vsel %vm12374_vm11, %v12148_v5, %v7649_v19  ;;  %vm1648_vm7 = vcmp.eq.s32.totalorder %v12376_v13, 1  ;;  %v12379_v9 = vld [vmem:[#allocation87_spill] sm:$0xff]  ;;  %vm12380_vm11 = vcmp.eq.s32.totalorder %v12318_v21, 1  ;;  %v12382_v2 = vrot.slane %v7601_v16, 1 }
 0x2a7   : > { %12368 = vst [vmem:[#allocation36_spill] sm:$0xff] %v8319_v63  ;;  %v8331_v48 = vsel %vm12346_vm3, %v12372_v46, %v12371_v51  ;;  %vm11705_vm3 = vcmp.eq.s32.totalorder %v12379_v9, 1  ;;  %v1415_v51 = vrot.slane %v8271_v7, 7  ;;  %v1484_v46 = vrot.slane %v8341_v42, 1  ;;  %v12674_v4 = vld [vmem:[#allocation151_spill] sm:$0xff] }
 0x2a8   : > { %12373 = vst [vmem:[#allocation37_spill] sm:$0xff] %v8331_v48  ;;  %v8355_v58 = vsel %vm12380_vm11, %v12155_v32, %v12217_v23  ;;  %v8361_v37 = vsel %vm1488_vm8, %v1457_v41, %v12382_v2  ;;  %v8367_v7 = vsel %vm1488_vm8, %v12384_v47, %v1457_v41  ;;  %v12386_v21 = vpack.c.bf16 %v7953_v60, %v7947_v0 }
 0x2a9   : > { %12375 = vst [vmem:[#allocation78_spill] sm:$0xff] %v8341_v42  ;;  %v1485_v17 = vrot.slane %v8355_v58, 1  ;;  %vm12387_vm11 = vcmask 523264   ;;  %vm12388_vm1 = vcmp.lt.s32.totalorder %v6659_v45, 1  ;;  %v1492_v47 = vsel %vm1488_vm8, %v1483_v12, %v1484_v46 }
 0x2aa   : > { %12381 = vst [vmem:[#allocation80_spill] sm:$0xff] %v8355_v58  ;;  %5079 = vmatmul.msk.bf16.gmra.mxu2 %vm12387_vm11, %v12386_v21  ;;  %v1428_v2 = vsel %vm12388_vm1, %v1415_v51, %v1416_v20  ;;  %vm12389_vm12 = vmmov %vm12388_vm1  ;;  %v1418_v41 = vrot.slane %v8355_v58, 7  ;;  %v12394_v12 = vrot.slane %v7773_v3, 7 }
 0x2ab   : > { %12383 = vst [vmem:[#allocation39_spill] sm:$0xff] %v8361_v37  ;;  %v1429_v62 = vsel %vm12389_vm12, %v1414_v22, %v1415_v51  ;;  %v8389_v60 = vsel %vm1644_vm5, %v1492_v47, %v1428_v2  ;;  %v8397_v22 = vsel %vm11652_vm10, %v1428_v2, %v1492_v47  ;;  %v12395_v51 = vrot.slane %v8172_v57, 7  ;;  %vm12396_vm12 = vmmov %vm12388_vm1 }
 0x2ac   : > { %12385 = vst [vmem:[#allocation38_spill] sm:$0xff] %v8367_v7  ;;  %v8385_v14 = vsel %vm1643_vm14, %v1493_v56, %v1429_v62  ;;  %v8393_v0 = vsel %vm1803_vm13, %v1429_v62, %v1493_v56  ;;  %v12398_v62 = vld [vmem:[#allocation91_spill] sm:$0xff]  ;;  %v1417_v2 = vrot.slane %v8341_v42, 7  ;;  %vm12401_vm1 = vcmp.eq.s32.totalorder %v12353_v1, 1  ;;  %vm12407_vm10 = vmmov %vm12396_vm12 }
 0x2ad   : > { %12390 = vst [vmem:[#allocation42_spill] sm:$0xff] %v8385_v14  ;;  %v8405_v21 = vsel %vm12396_vm12, %v12395_v51, %v12394_v12  ;;  %v8415_v56 = vsel %vm1163_vm9, %v12398_v62, %v7652_v52  ;;  %v1491_v12 = vsel %vm1488_vm8, %v1484_v46, %v1485_v17  ;;  %v3285_v14 = vrot.slane %v12400_v15, 7  ;;  %vm12405_vm9 = vmmov %vm12387_vm11 }
 0x2ae   : > { %12391 = vst [vmem:[#allocation82_spill] sm:$0xff] %v8389_v60  ;;  %v1486_v47 = vrot.slane %v8415_v56, 1  ;;  %v1650_v58 = vsel %vm12401_vm1, %v8361_v37, %v8331_v48  ;;  %v12403_v60 = vld [vmem:[#allocation184_spill] sm:$0xff]  ;;  %v1419_v42 = vrot.slane %v8415_v56, 7  ;;  %vm12406_vm11 = vcmp.eq.s32.totalorder %v12355_v27, 1  ;;  %v12456_v37 = vld [vmem:[#allocation157_spill] sm:$0xff] }
 0x2af   : > { %12392 = vst [vmem:[#allocation83_spill] sm:$0xff] %v8393_v0  ;;  %v12404_v0 = vpack.c.bf16 %v12402_v38, %v12403_v60  ;;  %v1649_v46 = vsel %vm12406_vm11, %v8367_v7, %v8405_v21  ;;  %v1426_v51 = vsel %vm12396_vm12, %v1417_v2, %v1418_v41  ;;  %v1427_v1 = vsel %vm12407_vm10, %v1416_v20, %v1417_v2 }
 0x2b0   : > { %12393 = vst [vmem:[#allocation118_spill] sm:$0xff] %v8397_v22  ;;  %v1487_v22 = vrot.slane %v8172_v57, 1  ;;  %v1490_v60 = vsel %vm1488_vm8, %v1485_v17, %v1486_v47  ;;  %vm12408_vm1 = vcmp.eq.s32.totalorder %v12356_v43, 1  ;;  %v12413_v2 = vrot.slane %v8172_v57, 7 }
 0x2b1   : > { %12397 = vst [vmem:[#allocation173_spill] sm:$0xff] %v8405_v21  ;;  %5113 = vmatmul.msk.bf16.gmra.mxu3 %vm12405_vm9, %v12404_v0  ;;  %v8446_v0 = vsel %vm12408_vm1, %v1491_v12, %v1427_v1  ;;  %v8450_v38 = vsel %vm1646_vm4, %v1490_v60, %v1426_v51  ;;  %v8458_v27 = vsel %vm1806_vm6, %v1426_v51, %v1490_v60  ;;  %vm12414_vm9 = vmmov %vm12407_vm10  ;;  %v1321_v51 = vpop.permute.xlu2 %1320  ;;  %v12416_v20 = vrot.slane %v7773_v3, 1  ;;  %v12421_v3 = vld [vmem:[#allocation197_spill] sm:$0xff]  ;;  %v12457_v21 = vld [vmem:[#allocation52_spill] sm:$0xff] }
 0x2b2   : > { %12399 = vst [vmem:[#allocation44_spill] sm:$0xff] %v8415_v56  ;;  %v8454_v56 = vsel %vm1805_vm2, %v1427_v1, %v1491_v12  ;;  %v1424_v53 = vsel %vm12407_vm10, %v1419_v42, %v12413_v2  ;;  %v1425_v63 = vsel %vm12414_vm9, %v1418_v41, %v1419_v42  ;;  %v3349_v1 = vrot.slane %v12400_v15, 1  ;;  %v12415_v12 = vld [vmem:[#allocation195_spill] sm:$0xff]  ;;  %vm12428_vm1 = vmmov %vm12414_vm9 }
 0x2b3   : > { %12409 = vst [vmem:[#allocation45_spill] sm:$0xff] %v8446_v0  ;;  %v3296_v48 = vrot.slane %v12415_v12, 7  ;;  %v1489_v60 = vsel %vm1488_vm8, %v1486_v47, %v1487_v22  ;;  %v1520_v17 = vsel %vm1488_vm8, %v1487_v22, %v12416_v20  ;;  %v3295_v2 = vrot.slane %v12421_v3, 7  ;;  %vm12434_vm10 = vmmov %vm12428_vm1 }
 0x2b4   : > { %12410 = vst [vmem:[#allocation85_spill] sm:$0xff] %v8450_v38  ;;  %v8480_v57 = vsel %vm1647_vm15, %v1489_v60, %v1425_v63  ;;  %v8484_v42 = vsel %vm1648_vm7, %v1520_v17, %v1424_v53  ;;  %v8488_v41 = vsel %vm1807_vm0, %v1425_v63, %v1489_v60  ;;  %v8492_v47 = vsel %vm11705_vm3, %v1424_v53, %v1520_v17  ;;  %v12423_v60 = vld [vmem:[#allocation47_spill] sm:$0xff] }
 0x2b5   : > { %12411 = vst [vmem:[#allocation87_spill] sm:$0xff] %v8454_v56  ;;  %v1841_v15 = vpack.c.bf16 %v1650_v58, %v1649_v46  ;;  %v3359_v38 = vrot.slane %v12421_v3, 1  ;;  %v12422_v56 = vld [vmem:[#allocation198_spill] sm:$0xff]  ;;  %vm1355_vm11 = vcmp.eq.s32.totalorder %v1321_v51, 1  ;;  %vm11704_vm12 = vcmp.eq.s32.totalorder %v12423_v60, 1 }
 0x2b6   : > { %12412 = vst [vmem:[#allocation91_spill] sm:$0xff] %v8458_v27  ;;  %v3288_v63 = vrot.slane %v12422_v56, 7  ;;  %v12424_v53 = vrot.slane %v7906_v54, 1  ;;  %v12425_v17 = vrot.slane %v12268_v55, 1  ;;  %v12426_v46 = vrot.slane %v7877_v10, 7 }
 0x2b7   : > { %12417 = vst [vmem:[#allocation185_spill] sm:$0xff] %v8480_v57  ;;  %v12427_v22 = vrot.slane %v7828_v28, 7  ;;  %v12430_v51 = vrot.slane %v7877_v10, 1  ;;  %v12431_v0 = vrot.slane %v7828_v28, 1  ;;  %v12433_v54 = vrot.slane %v7622_v44, 7 }
 0x2b8   : > { %12418 = vst [vmem:[#allocation184_spill] sm:$0xff] %v8484_v42  ;;  %v8509_v58 = vsel %vm1488_vm8, %v12425_v17, %v12424_v53  ;;  %vm12435_vm9 = vcmask 523264   ;;  %v12436_v17 = vld [vmem:[#allocation147_spill] sm:$0xff]  ;;  %v12442_v57 = vpack.c.bf16 %v12220_v11, %v12219_v25  ;;  %v3297_v25 = vrot.slane %v7917_v61, 7  ;;  %v12454_v42 = vld [vmem:[#allocation178_spill] sm:$0xff] }
 0x2b9   : > { %12419 = vst [vmem:[#allocation216_spill] sm:$0xff] %v8488_v41  ;;  %v8517_v20 = vsel %vm12428_vm1, %v12427_v22, %v12426_v46  ;;  %v8525_v3 = vsel %vm1488_vm8, %v12431_v0, %v12430_v51  ;;  %v8531_v53 = vsel %vm12434_vm10, %v3285_v14, %v12433_v54  ;;  %5074 = vmatmul.msk.bf16.vlgmr.msra.gmra.mxu0 %vm12435_vm9, %v1841_v15  ;;  %v12437_v55 = vrot.slane %v12436_v17, 7  ;;  %vm12443_vm10 = vmmov %vm12435_vm9 }
 0x2ba   : > { %12420 = vst [vmem:[#allocation217_spill] sm:$0xff] %v8492_v47  ;;  %v12438_v46 = vrot.slane %v7622_v44, 1  ;;  %v12440_v51 = vrot.slane %v12436_v17, 1  ;;  %v3352_v15 = vrot.slane %v12422_v56, 1  ;;  %5048 = vmatmul.msk.bf16.gmra.mxu1 %vm12443_vm10, %v12442_v57  ;;  %vm12444_vm9 = vmmov %vm12428_vm1  ;;  %v8565_v44 = vsel %vm1355_vm11, %v7652_v52, %v12398_v62  ;;  %v12455_v47 = vld [vmem:[#allocation131_spill] sm:$0xff] }
 0x2bb   : > { %12429 = vst [vmem:[#allocation218_spill] sm:$0xff] %v8517_v20  ;;  %v8538_v22 = vsel %vm12428_vm1, %v12437_v55, %v3285_v14  ;;  %v8559_v14 = vsel %vm12444_vm9, %v3295_v2, %v3296_v48  ;;  %v3298_v55 = vrot.slane %v7911_v59, 7  ;;  %v12449_v57 = vrot.slane %v7592_v36, 7  ;;  %vm12452_vm11 = vmmov %vm12428_vm1 }
 0x2bc   : > { %12432 = vst [vmem:[#allocation219_spill] sm:$0xff] %v8525_v3  ;;  %v8544_v0 = vsel %vm1488_vm8, %v3349_v1, %v12438_v46  ;;  %v8550_v54 = vsel %vm1488_vm8, %v12440_v51, %v3349_v1  ;;  %v3362_v46 = vrot.slane %v7911_v59, 1  ;;  %v12447_v1 = vrot.slane %v12415_v12, 1  ;;  %vm12463_vm9 = vmmov %vm12428_vm1 }
 0x2bd   : > { %12439 = vst [vmem:[#allocation220_spill] sm:$0xff] %v8544_v0  ;;  %v8577_v11 = vsel %vm12428_vm1, %v3288_v63, %v12449_v57  ;;  %v12451_v56 = vrot.slane %v7688_v18, 7  ;;  %v3299_v41 = vrot.slane %v12454_v42, 7  ;;  %v3291_v27 = vrot.slane %v12455_v47, 7 }
 0x2be   : > { %12441 = vst [vmem:[#allocation221_spill] sm:$0xff] %v8550_v54  ;;  %v8571_v51 = vsel %vm1488_vm8, %v3359_v38, %v12447_v1  ;;  %v3363_v1 = vrot.slane %v12454_v42, 1  ;;  %v12458_v57 = vpack.c.bf16 %v12456_v37, %v12457_v21  ;;  %v12459_v7 = vrot.slane %v7592_v36, 1 }
 0x2bf   : > { %12445 = vst [vmem:[#allocation222_spill] sm:$0xff] %v8559_v14  ;;  %v8585_v17 = vsel %vm12452_vm11, %v12451_v56, %v3288_v63  ;;  %v12461_v56 = vrot.slane %v7688_v18, 1  ;;  %v3355_v42 = vrot.slane %v12455_v47, 1  ;;  %v3301_v50 = vrot.slane %v8565_v44, 7  ;;  %vm12466_vm11 = vmmov %vm12428_vm1 }
 0x2c0   : > { %12446 = vst [vmem:[#allocation223_spill] sm:$0xff] %v8565_v44  ;;  %5080 = vmatmul.msk.bf16.gmra.mxu2 %vm12443_vm10, %v12458_v57  ;;  %v8598_v59 = vsel %vm1488_vm8, %v3352_v15, %v12459_v7  ;;  %v8610_v37 = vsel %vm12463_vm9, %v3298_v55, %v3299_v41  ;;  %v8614_v21 = vsel %vm1488_vm8, %v3362_v46, %v3363_v1  ;;  %v3365_v7 = vrot.slane %v8565_v44, 1  ;;  %v12464_v57 = vld [vmem:[#allocation132_spill] sm:$0xff]  ;;  %vm12470_vm10 = vmmov %vm12428_vm1 }
 0x2c1   : > { %12448 = vst [vmem:[#allocation224_spill] sm:$0xff] %v8571_v51  ;;  %v8604_v63 = vsel %vm1488_vm8, %v12461_v56, %v3352_v15  ;;  %v3294_v36 = vrot.slane %v12464_v57, 7  ;;  %v3358_v18 = vrot.slane %v12464_v57, 1  ;;  %v8621_v15 = vsel %vm12428_vm1, %v3297_v25, %v3298_v55  ;;  %v12472_v57 = vld [vmem:[#allocation117_spill] sm:$0xff]  ;;  %vm12475_vm9 = vmmov %vm12428_vm1 }
 0x2c2   : > { %12450 = vst [vmem:[#allocation225_spill] sm:$0xff] %v8577_v11  ;;  %v8625_v56 = vsel %vm12466_vm11, %v3296_v48, %v3297_v25  ;;  %v12468_v47 = vrot.slane %v7917_v61, 1  ;;  %v12469_v44 = vrot.slane %v7828_v28, 7  ;;  %v3300_v51 = vrot.slane %v12472_v57, 7  ;;  %vm12483_vm11 = vmmov %vm12475_vm9 }
 0x2c3   : > { %12453 = vst [vmem:[#allocation226_spill] sm:$0xff] %v8585_v17  ;;  %v3364_v55 = vrot.slane %v12472_v57, 1  ;;  %v12473_v20 = vrot.slane %v7601_v16, 7  ;;  %v12474_v48 = vrot.slane %v12298_v24, 7  ;;  %vm12480_vm1 = vcmask 523264  }
 0x2c4   : > { %12460 = vst [vmem:[#allocation157_spill] sm:$0xff] %v8598_v59  ;;  %v8631_v14 = vsel %vm1488_vm8, %v12468_v47, %v3362_v46  ;;  %v8637_v30 = vsel %vm12470_vm10, %v3291_v27, %v12469_v44  ;;  %v12477_v47 = vld [vmem:[#allocation188_spill] sm:$0xff]  ;;  %v12478_v46 = vld [vmem:[#allocation187_spill] sm:$0xff]  ;;  %v12482_v44 = vrot.slane %v12481_v49, 7  ;;  %v12485_v57 = vrot.slane %v7828_v28, 1  ;;  %vm12490_vm10 = vmmov %vm12475_vm9 }
 0x2c5   : > { %12462 = vst [vmem:[#allocation52_spill] sm:$0xff] %v8604_v63  ;;  %v8647_v25 = vsel %vm12475_vm9, %v12474_v48, %v12473_v20  ;;  %v12479_v3 = vpack.c.bf16 %v12477_v47, %v12478_v46  ;;  %v12487_v24 = vrot.slane %v12481_v49, 1  ;;  %v12488_v48 = vld [vmem:[#allocation107_spill] sm:$0xff]  ;;  %v12493_v46 = vld [vmem:[#allocation86_spill] sm:$0xff]  ;;  %vm12514_vm3 = vcmask 523264  }
 0x2c6   : > { %12465 = vst [vmem:[#allocation227_spill] sm:$0xff] %v8621_v15  ;;  %v8663_v16 = vsel %vm1488_vm8, %v3355_v42, %v12485_v57  ;;  %v12502_v28 = vld [vmem:[#allocation203_spill] sm:$0xff] }
 0x2c7   : > { %12467 = vst [vmem:[#allocation228_spill] sm:$0xff] %v8625_v56  ;;  %5114 = vmatmul.msk.bf16.gmra.mxu3 %vm12480_vm1, %v12479_v3  ;;  %v8669_v20 = vsel %vm1488_vm8, %v12487_v24, %v3355_v42  ;;  %v12489_v3 = vrot.slane %v12488_v48, 7  ;;  %vm1780_vm1 = vcmp.eq.s32.totalorder %v12493_v46, 1  ;;  %v8693_v24 = vsel %vm1643_vm14, %v8631_v14, %v8625_v56 }
 0x2c8   : > { %12471 = vst [vmem:[#allocation229_spill] sm:$0xff] %v8637_v30  ;;  %v8657_v30 = vsel %vm12483_vm11, %v12482_v44, %v3291_v27  ;;  %v12492_v27 = vld [vmem:[#allocation84_spill] sm:$0xff]  ;;  %v12494_v44 = vrot.slane %v12488_v48, 1  ;;  %vm12495_vm11 = vmmov %vm12490_vm10  ;;  %v12499_v48 = vrot.slane %v7877_v10, 7  ;;  %v1651_v49 = vsel %vm11704_vm12, %v12502_v28, %v8647_v25 }
 0x2c9   : > { %12476 = vst [vmem:[#allocation230_spill] sm:$0xff] %v8647_v25  ;;  %v8675_v47 = vsel %vm12490_vm10, %v3301_v50, %v12489_v3  ;;  %vm1779_vm9 = vcmp.eq.s32.totalorder %v12492_v27, 1  ;;  %v8687_v42 = vsel %vm12495_vm11, %v3294_v36, %v3295_v2  ;;  %v8699_v3 = vsel %vm1644_vm5, %v8614_v21, %v8621_v15  ;;  %vm12503_vm11 = vmmov %vm12490_vm10 }
 0x2ca   : > { %12484 = vst [vmem:[#allocation188_spill] sm:$0xff] %v8657_v30  ;;  %v8683_v57 = vsel %vm1488_vm8, %v3365_v7, %v12494_v44  ;;  %v8705_v44 = vsel %vm12490_vm10, %v12499_v48, %v3294_v36  ;;  %v8709_v2 = vsel %vm1488_vm8, %v3358_v18, %v3359_v38  ;;  %v8719_v15 = vsel %vm12503_vm11, %v3299_v41, %v3300_v51  ;;  %v12504_v48 = vld [vmem:[#allocation72_spill] sm:$0xff]  ;;  %vm12513_vm12 = vmmov %vm12490_vm10 }
 0x2cb   : > { %12486 = vst [vmem:[#allocation187_spill] sm:$0xff] %v8663_v16  ;;  %v8723_v36 = vsel %vm1488_vm8, %v3364_v55, %v3365_v7  ;;  %v8727_v38 = vsel %vm1488_vm8, %v3363_v1, %v3364_v55  ;;  %v8733_v60 = vsel %vm1648_vm7, %v12504_v48, %v8675_v47  ;;  %v12506_v56 = vrot.slane %v7877_v10, 1  ;;  %v12508_v55 = vld [vmem:[#allocation211_spill] sm:$0xff] }
 0x2cc   : > { %12491 = vst [vmem:[#allocation231_spill] sm:$0xff] %v8675_v47  ;;  %v8743_v7 = vsel %vm12490_vm10, %v3300_v51, %v3301_v50  ;;  %v2455_v1 = vrot.slane %v12217_v23, 7  ;;  %v2519_v25 = vrot.slane %v12217_v23, 1  ;;  %v2520_v28 = vrot.slane %v7652_v52, 1 }
 0x2cd   : > { %12496 = vst [vmem:[#allocation84_spill] sm:$0xff] %v8687_v42  ;;  %v8739_v41 = vsel %vm1488_vm8, %v12506_v56, %v3358_v18  ;;  %v2456_v10 = vrot.slane %v7652_v52, 7  ;;  %vm12509_vm11 = vcmp.eq.s32.totalorder %v12356_v43, 1  ;;  %v8761_v50 = vsel %vm1646_vm4, %v8723_v36, %v8719_v15 }
 0x2ce   : > { %12497 = vst [vmem:[#allocation86_spill] sm:$0xff] %v8693_v24  ;;  %v2454_v24 = vrot.slane %v7649_v19, 7  ;;  %v8755_v18 = vsel %vm12509_vm11, %v8727_v38, %v8610_v37  ;;  %v12512_v51 = vrot.slane %v12112_v35, 7  ;;  %v8776_v52 = vsel %vm1647_vm15, %v8683_v57, %v8743_v7 }
 0x2cf   : > { %12498 = vst [vmem:[#allocation232_spill] sm:$0xff] %v8699_v3  ;;  %v1842_v3 = vpack.c.bf16 %v12508_v55, %v1651_v49  ;;  %v2527_v23 = vsel %vm1488_vm8, %v2519_v25, %v2520_v28  ;;  %v12516_v47 = vrot.slane %v7649_v19, 1  ;;  %v12530_v55 = vld [vmem:[#allocation156_spill] sm:$0xff]  ;;  %v9098_v31 = vsel %vm1806_vm6, %v8719_v15, %v8723_v36 }
 0x2d0   : > { %12500 = vst [vmem:[#allocation233_spill] sm:$0xff] %v8705_v44  ;;  %v2464_v49 = vsel %vm12490_vm10, %v2454_v24, %v2455_v1  ;;  %v2465_v56 = vsel %vm12513_vm12, %v12512_v51, %v2454_v24  ;;  %v12517_v24 = vld [vmem:[#allocation137_spill] sm:$0xff]  ;;  %v12518_v51 = vld [vmem:[#allocation136_spill] sm:$0xff]  ;;  %vm12523_vm12 = vcmp.eq.s32.totalorder %v12344_v8, 1 }
 0x2d1   : > { %12501 = vst [vmem:[#allocation234_spill] sm:$0xff] %v8709_v2  ;;  %5075 = vmatmul.msk.bf16.gmra.mxu0 %vm12514_vm3, %v1842_v3  ;;  %v2528_v35 = vsel %vm1488_vm8, %v12516_v47, %v2519_v25  ;;  %v12519_v3 = vpack.c.bf16 %v12517_v24, %v12518_v51  ;;  %v8807_v24 = vsel %vm12523_vm12, %v2464_v49, %v2527_v23  ;;  %v12527_v47 = vrot.slane %v12415_v12, 1  ;;  %v12688_v15 = vld [vmem:[#allocation140_spill] sm:$0xff] }
 0x2d2   : > { %12505 = vst [vmem:[#allocation72_spill] sm:$0xff] %v8733_v60  ;;  %v8800_v19 = vsel %vm1803_vm13, %v2465_v56, %v2528_v35  ;;  %v2523_v12 = vrot.slane %v12155_v32, 1  ;;  %v12584_v60 = vld [vmem:[#allocation40_spill] sm:$0xff] }
 0x2d3   : > { %12507 = vst [vmem:[#allocation235_spill] sm:$0xff] %v8739_v41  ;;  %5049 = vmatmul.msk.bf16.gmra.mxu1 %vm12514_vm3, %v12519_v3  ;;  %v12526_v3 = vrot.slane %v7917_v61, 1  ;;  %v2458_v61 = vrot.slane %v12148_v5, 7 }
 0x2d4   : > { %12510 = vst [vmem:[#allocation211_spill] sm:$0xff] %v8755_v18  ;;  %v8792_v18 = vsel %vm1643_vm14, %v2528_v35, %v2465_v56  ;;  %v2521_v35 = vrot.slane %v12199_v39, 1  ;;  %v2522_v56 = vrot.slane %v12148_v5, 1  ;;  %vm12532_vm14 = vmmov %vm12514_vm3  ;;  %v12537_v39 = vld [vmem:[#allocation209_spill] sm:$0xff] }
 0x2d5   : > { %12511 = vst [vmem:[#allocation236_spill] sm:$0xff] %v8761_v50  ;;  %v8796_v50 = vsel %vm1644_vm5, %v2527_v23, %v2464_v49  ;;  %vm12525_vm5 = vmmov %vm12490_vm10  ;;  %v8822_v23 = vsel %vm1488_vm8, %v12527_v47, %v12526_v3  ;;  %v12529_v49 = vld [vmem:[#allocation166_spill] sm:$0xff]  ;;  %vm12540_vm10 = vcmp.eq.s32.totalorder %v12356_v43, 1  ;;  %v12565_v43 = vld [vmem:[#allocation88_spill] sm:$0xff] }
 0x2d6   : > { %12515 = vst [vmem:[#allocation237_spill] sm:$0xff] %v8776_v52  ;;  %v2463_v51 = vsel %vm12525_vm5, %v2455_v1, %v2456_v10  ;;  %v12531_v25 = vpack.c.bf16 %v12529_v49, %v12530_v55  ;;  %v5377_v1 = vld [vmem:[%s11202_s5 + $0x88] sm:$0xff]  ;;  %vm12533_vm11 = vmmov %vm12525_vm5  ;;  %v2525_v47 = vsel %vm1488_vm8, %v2521_v35, %v2522_v56  ;;  %v2526_v3 = vsel %vm1488_vm8, %v2520_v28, %v2521_v35  ;;  %v12535_v49 = vld [vmem:[#allocation176_spill] sm:$0xff] }
 0x2d7   : > { %12520 = vst [vmem:[#allocation137_spill] sm:$0xff] %v8792_v18  ;;  %v2462_v26 = vsel %vm12533_vm11, %v2456_v10, %v2457_v6  ;;  %v12534_v55 = vld [vmem:[#allocation210_spill] sm:$0xff]  ;;  %2939 = vmatpush.bf16.msrb.mxu2 %v5377_v1  ;;  %v8853_v5 = vsel %vm12540_vm10, %v2526_v3, %v2463_v51  ;;  %v8861_v35 = vsel %vm1805_vm2, %v2463_v51, %v2526_v3  ;;  %v12545_v1 = vrot.slane %v12155_v32, 7  ;;  %vm12546_vm3 = vmmov %vm12525_vm5  ;;  %v12549_v3 = vld [vmem:[#allocation189_spill] sm:$0xff] }
 0x2d8   : > { %12521 = vst [vmem:[#allocation136_spill] sm:$0xff] %v8796_v50  ;;  %5081 = vmatmul.msk.bf16.gmra.mxu2 %vm12532_vm14, %v12531_v25  ;;  %v8843_v25 = vsel %vm1779_vm9, %v12535_v49, %v12534_v55  ;;  %v12538_v18 = vld [vmem:[#allocation206_spill] sm:$0xff]  ;;  %v8857_v28 = vsel %vm1646_vm4, %v2525_v47, %v2462_v26  ;;  %v8865_v50 = vsel %vm1806_vm6, %v2462_v26, %v2525_v47  ;;  %vm12547_vm4 = vmmov %vm12546_vm3  ;;  %v12552_v47 = vrot.slane %v12398_v62, 1 }
 0x2d9   : > { %12522 = vst [vmem:[#allocation238_spill] sm:$0xff] %v8800_v19  ;;  %v8849_v10 = vsel %vm1780_vm1, %v12538_v18, %v12537_v39  ;;  %v2460_v33 = vsel %vm12546_vm3, %v2458_v61, %v12545_v1  ;;  %v12548_v51 = vld [vmem:[#allocation190_spill] sm:$0xff]  ;;  %vm12551_vm12 = vmmov %vm12532_vm14  ;;  %v2524_v26 = vsel %vm1488_vm8, %v2522_v56, %v2523_v12  ;;  %v12553_v1 = vld [vmem:[#allocation171_spill] sm:$0xff]  ;;  %vm12561_vm14 = vcmp.eq.s32.totalorder %v12379_v9, 1 }
 0x2da   : > { %12524 = vst [vmem:[#allocation239_spill] sm:$0xff] %v8807_v24  ;;  %v2461_v24 = vsel %vm12547_vm4, %v2457_v6, %v2458_v61  ;;  %v12550_v52 = vpack.c.bf16 %v12548_v51, %v12549_v3  ;;  %v2555_v19 = vsel %vm1488_vm8, %v2523_v12, %v12552_v47  ;;  %v12563_v3 = vld [vmem:[#allocation133_spill] sm:$0xff]  ;;  %v12564_v47 = vld [vmem:[#allocation172_spill] sm:$0xff] }
 0x2db   : > { %12528 = vst [vmem:[#allocation240_spill] sm:$0xff] %v8822_v23  ;;  %v8901_v6 = vsel %vm1648_vm7, %v2555_v19, %v2460_v33  ;;  %v8905_v12 = vsel %vm1807_vm0, %v2461_v24, %v2524_v26  ;;  %v8909_v56 = vsel %vm12561_vm14, %v2460_v33, %v2555_v19  ;;  %v12573_v33 = vld [vmem:[#allocation43_spill] sm:$0xff]  ;;  %v12574_v51 = vld [vmem:[#allocation204_spill] sm:$0xff]  ;;  %v12598_v19 = vld [vmem:[#allocation186_spill] sm:$0xff] }
 0x2dc   : > { %12536 = vst [vmem:[#allocation166_spill] sm:$0xff] %v8843_v25  ;;  %5115 = vmatmul.msk.bf16.gmra.mxu3 %vm12551_vm12, %v12550_v52  ;;  %v8897_v52 = vsel %vm1647_vm15, %v2524_v26, %v2461_v24  ;;  %vm12566_vm15 = vcmp.eq.s32.totalorder %v12565_v43, 1  ;;  %v12568_v25 = vld [vmem:[#allocation208_spill] sm:$0xff]  ;;  %v12570_v24 = vld [vmem:[#allocation54_spill] sm:$0xff] }
 0x2dd   : > { %12539 = vst [vmem:[#allocation156_spill] sm:$0xff] %v8849_v10  ;;  %v8919_v13 = vsel %vm12566_vm15, %v12564_v47, %v12563_v3  ;;  %v12569_v10 = vld [vmem:[#allocation148_spill] sm:$0xff]  ;;  %vm12571_vm7 = vcmp.eq.s32.totalorder %v12570_v24, 1  ;;  %v12585_v24 = vld [vmem:[#allocation57_spill] sm:$0xff] }
 0x2de   : > { %12541 = vst [vmem:[#allocation210_spill] sm:$0xff] %v8853_v5  ;;  %v12554_v5 = vld [vmem:[#allocation205_spill] sm:$0xff]  ;;  %v8925_v26 = vsel %vm12571_vm7, %v12569_v10, %v12568_v25  ;;  %vm12586_vm3 = vcmp.eq.s32.totalorder %v12585_v24, 1  ;;  %v12632_v24 = vld [vmem:[#allocation71_spill] sm:$0xff] }
 0x2df   : > { %12542 = vst [vmem:[#allocation176_spill] sm:$0xff] %v8857_v28  ;;  %v12555_v28 = vld [vmem:[#allocation89_spill] sm:$0xff] }
 0x2e0   : > { %12543 = vst [vmem:[#allocation209_spill] sm:$0xff] %v8861_v35  ;;  %vm12556_vm5 = vcmp.eq.s32.totalorder %v12555_v28, 1 }
 0x2e1   : > { %12544 = vst [vmem:[#allocation206_spill] sm:$0xff] %v8865_v50  ;;  %v8893_v61 = vsel %vm12556_vm5, %v12554_v5, %v12553_v1  ;;  %v12583_v50 = vld [vmem:[#allocation62_spill] sm:$0xff] }
 0x2e2   : > { %12557 = vst [vmem:[#allocation190_spill] sm:$0xff] %v8893_v61  ;;  %v8945_v43 = vsel %vm12586_vm3, %v12584_v60, %v12583_v50  ;;  %v12597_v50 = vld [vmem:[#allocation200_spill] sm:$0xff] }
 0x2e3   : > { %12558 = vst [vmem:[#allocation189_spill] sm:$0xff] %v8897_v52  ;;  %v12575_v52 = vld [vmem:[#allocation53_spill] sm:$0xff] }
 0x2e4   : > { %12559 = vst [vmem:[#allocation171_spill] sm:$0xff] %v8901_v6  ;;  %vm12576_vm11 = vcmp.eq.s32.totalorder %v12575_v52, 1  ;;  %v12578_v6 = vld [vmem:[#allocation135_spill] sm:$0xff]  ;;  %v12589_v52 = vld [vmem:[#allocation56_spill] sm:$0xff] }
 0x2e5   : > { %12560 = vst [vmem:[#allocation205_spill] sm:$0xff] %v8905_v12  ;;  %v8933_v40 = vsel %vm12576_vm11, %v12574_v51, %v12573_v33  ;;  %v12579_v12 = vld [vmem:[#allocation134_spill] sm:$0xff]  ;;  %vm12590_vm4 = vcmp.eq.s32.totalorder %v12589_v52, 1 }
 0x2e6   : > { %12562 = vst [vmem:[#allocation241_spill] sm:$0xff] %v8909_v56  ;;  %v12580_v56 = vld [vmem:[#allocation61_spill] sm:$0xff] }
 0x2e7   : > { %12567 = vst [vmem:[#allocation133_spill] sm:$0xff] %v8919_v13  ;;  %vm12581_vm10 = vcmp.eq.s32.totalorder %v12580_v56, 1  ;;  %v12588_v13 = vld [vmem:[#allocation103_spill] sm:$0xff] }
 0x2e8   : > { %12572 = vst [vmem:[#allocation172_spill] sm:$0xff] %v8925_v26  ;;  %v8939_v35 = vsel %vm12581_vm10, %v12579_v12, %v12578_v6  ;;  %v8955_v28 = vsel %vm12590_vm4, %v12588_v13, %v8509_v58  ;;  %v12592_v56 = vld [vmem:[#allocation215_spill] sm:$0xff]  ;;  %v12594_v12 = vld [vmem:[#allocation64_spill] sm:$0xff] }
 0x2e9   : > { %12577 = vst [vmem:[#allocation208_spill] sm:$0xff] %v8933_v40  ;;  %v12593_v6 = vld [vmem:[#allocation167_spill] sm:$0xff]  ;;  %vm12595_vm12 = vcmp.eq.s32.totalorder %v12594_v12, 1  ;;  %v12599_v26 = vld [vmem:[#allocation60_spill] sm:$0xff] }
 0x2ea   : > { %12582 = vst [vmem:[#allocation148_spill] sm:$0xff] %v8939_v35  ;;  %v8961_v33 = vsel %vm12595_vm12, %v12593_v6, %v12592_v56  ;;  %vm12600_vm5 = vcmp.eq.s32.totalorder %v12599_v26, 1  ;;  %v12602_v35 = vld [vmem:[#allocation199_spill] sm:$0xff]  ;;  %vm12631_vm12 = vcmask 523264  }
 0x2eb   : > { %12587 = vst [vmem:[#allocation204_spill] sm:$0xff] %v8945_v43  ;;  %v8969_v61 = vsel %vm12600_vm5, %v12598_v19, %v12597_v50  ;;  %v12603_v43 = vld [vmem:[#allocation59_spill] sm:$0xff]  ;;  %vm12633_vm5 = vcmp.eq.s32.totalorder %v12632_v24, 1  ;;  %v12648_v24 = vld [vmem:[#allocation73_spill] sm:$0xff] }
 0x2ec   : > { %12591 = vst [vmem:[#allocation40_spill] sm:$0xff] %v8955_v28  ;;  %vm12604_vm14 = vcmp.eq.s32.totalorder %v12603_v43, 1  ;;  %v12606_v12 = vld [vmem:[#allocation67_spill] sm:$0xff]  ;;  %v12609_v28 = vld [vmem:[#allocation169_spill] sm:$0xff]  ;;  %v12614_v43 = vld [vmem:[#allocation70_spill] sm:$0xff] }
 0x2ed   : > { %12596 = vst [vmem:[#allocation103_spill] sm:$0xff] %v8961_v33  ;;  %v8975_v40 = vsel %vm12604_vm14, %v12602_v35, %v8550_v54  ;;  %vm12607_vm15 = vcmp.eq.s32.totalorder %v12606_v12, 1  ;;  %v12610_v33 = vld [vmem:[#allocation63_spill] sm:$0xff]  ;;  %vm12615_vm11 = vcmp.eq.s32.totalorder %v12614_v43, 1  ;;  %v12617_v12 = vld [vmem:[#allocation66_spill] sm:$0xff] }
 0x2ee   : > { %12601 = vst [vmem:[#allocation215_spill] sm:$0xff] %v8969_v61  ;;  %v8981_v52 = vsel %vm12607_vm15, %v8538_v22, %v8544_v0  ;;  %vm12611_vm7 = vcmp.eq.s32.totalorder %v12610_v33, 1  ;;  %v12613_v50 = vld [vmem:[#allocation159_spill] sm:$0xff]  ;;  %vm12618_vm10 = vcmp.eq.s32.totalorder %v12617_v12, 1  ;;  %v12621_v33 = vld [vmem:[#allocation69_spill] sm:$0xff]  ;;  %v12624_v43 = vld [vmem:[#allocation158_spill] sm:$0xff] }
 0x2ef   : > { %12605 = vst [vmem:[#allocation167_spill] sm:$0xff] %v8975_v40  ;;  %v8989_v26 = vsel %vm12611_vm7, %v8531_v53, %v12609_v28  ;;  %v8995_v54 = vsel %vm12615_vm11, %v12613_v50, %v8604_v63  ;;  %v9001_v0 = vsel %vm12618_vm10, %v8585_v17, %v8598_v59  ;;  %v12620_v40 = vld [vmem:[#allocation168_spill] sm:$0xff]  ;;  %vm12622_vm3 = vcmp.eq.s32.totalorder %v12621_v33, 1  ;;  %v12640_v33 = vld [vmem:[#allocation218_spill] sm:$0xff]  ;;  %vm12647_vm7 = vmmov %vm12631_vm12 }
 0x2f0   : > { %12608 = vst [vmem:[#allocation186_spill] sm:$0xff] %v8981_v52  ;;  %v9011_v28 = vsel %vm12622_vm3, %v8577_v11, %v12620_v40  ;;  %v12625_v63 = vld [vmem:[#allocation68_spill] sm:$0xff]  ;;  %v12636_v52 = vld [vmem:[#allocation229_spill] sm:$0xff]  ;;  %v12645_v61 = vld [vmem:[#allocation138_spill] sm:$0xff]  ;;  %vm12649_vm11 = vcmp.eq.s32.totalorder %v12648_v24, 1 }
 0x2f1   : > { %12612 = vst [vmem:[#allocation199_spill] sm:$0xff] %v8989_v26  ;;  %vm12626_vm4 = vcmp.eq.s32.totalorder %v12625_v63, 1  ;;  %v12628_v12 = vld [vmem:[#allocation180_spill] sm:$0xff]  ;;  %v12637_v26 = vld [vmem:[#allocation75_spill] sm:$0xff] }
 0x2f2   : > { %12616 = vst [vmem:[#allocation242_spill] sm:$0xff] %v8995_v54  ;;  %v9017_v50 = vsel %vm12626_vm4, %v12624_v43, %v8669_v20  ;;  %v12629_v59 = vld [vmem:[#allocation212_spill] sm:$0xff]  ;;  %v9029_v54 = vsel %vm12633_vm5, %v8657_v30, %v8663_v16  ;;  %vm12638_vm14 = vcmp.eq.s32.totalorder %v12637_v26, 1  ;;  %vm12662_vm4 = vcmp.eq.s32.totalorder %v12344_v8, 1 }
 0x2f3   : > { %12619 = vst [vmem:[#allocation243_spill] sm:$0xff] %v9001_v0  ;;  %v12630_v17 = vpack.c.bf16 %v12628_v12, %v12629_v59  ;;  %v12635_v0 = vld [vmem:[#allocation219_spill] sm:$0xff]  ;;  %v12641_v59 = vld [vmem:[#allocation74_spill] sm:$0xff]  ;;  %v9104_v8 = vsel %vm1807_vm0, %v8743_v7, %v8683_v57  ;;  %vm12677_vm0 = vmmov %vm12647_vm7 }
 0x2f4   : > { %12623 = vst [vmem:[#allocation244_spill] sm:$0xff] %v9011_v28  ;;  %v9035_v63 = vsel %vm12638_vm14, %v12636_v52, %v12635_v0  ;;  %vm12642_vm15 = vcmp.eq.s32.totalorder %v12641_v59, 1  ;;  %v12644_v12 = vld [vmem:[#allocation139_spill] sm:$0xff]  ;;  %v9056_v0 = vsel %vm12649_vm11, %v8705_v44, %v8709_v2  ;;  %v12651_v59 = vld [vmem:[#allocation224_spill] sm:$0xff]  ;;  %v12675_v57 = vld [vmem:[#allocation162_spill] sm:$0xff] }
 0x2f5   : > { %12627 = vst [vmem:[#allocation158_spill] sm:$0xff] %v9017_v50  ;;  %5076 = vmatmul.msk.bf16.gmra.mxu0 %vm12631_vm12, %v12630_v17  ;;  %v9041_v17 = vsel %vm12642_vm15, %v12640_v33, %v8739_v41  ;;  %v12646_v28 = vpack.c.bf16 %v12644_v12, %v12645_v61  ;;  %v5373_v50 = vld [vmem:[%s11202_s5 + $0x68] sm:$0xff]  ;;  %v12652_v41 = vld [vmem:[#allocation77_spill] sm:$0xff]  ;;  %v12656_v12 = vld [vmem:[#allocation76_spill] sm:$0xff]  ;;  %v12676_v36 = vpack.c.bf16 %v12674_v4, %v12675_v57 }
 0x2f6   : > { %12634 = vst [vmem:[#allocation180_spill] sm:$0xff] %v9029_v54  ;;  %vm12653_vm10 = vcmp.eq.s32.totalorder %v12652_v41, 1  ;;  %vm12657_vm3 = vcmp.eq.s32.totalorder %v12656_v12, 1  ;;  %v12661_v41 = vld [vmem:[#allocation227_spill] sm:$0xff]  ;;  %2722 = vmatpush.bf16.msrb.mxu1 %v5373_v50  ;;  %v9092_v54 = vsel %vm1805_vm2, %v8610_v37, %v8727_v38  ;;  %vm12672_vm2 = vcmp.eq.s32.totalorder %v12379_v9, 1  ;;  %v12678_v38 = vld [vmem:[#allocation38_spill] sm:$0xff]  ;;  %vm12686_vm5 = vmmov %vm12677_vm0 }
 0x2f7   : > { %12639 = vst [vmem:[#allocation212_spill] sm:$0xff] %v9035_v63  ;;  %5050 = vmatmul.msk.bf16.gmra.mxu1 %vm12647_vm7, %v12646_v28  ;;  %v9062_v61 = vsel %vm12653_vm10, %v8687_v42, %v12651_v59  ;;  %v12655_v28 = vld [vmem:[#allocation222_spill] sm:$0xff]  ;;  %v12659_v63 = vld [vmem:[#allocation228_spill] sm:$0xff]  ;;  %v9084_v59 = vsel %vm12662_vm4, %v12661_v41, %v8614_v21  ;;  %v12671_v37 = vld [vmem:[#allocation231_spill] sm:$0xff]  ;;  %5116 = vmatmul.msk.bf16.gmra.mxu3 %vm12677_vm0, %v12676_v36 }
 0x2f8   : > { %12643 = vst [vmem:[#allocation245_spill] sm:$0xff] %v9041_v17  ;;  %v9068_v33 = vsel %vm12657_vm3, %v12655_v28, %v8822_v23  ;;  %v9078_v24 = vsel %vm1803_vm13, %v12659_v63, %v8631_v14  ;;  %v12667_v14 = vld [vmem:[#allocation155_spill] sm:$0xff]  ;;  %vm12670_vm13 = vmmov %vm12647_vm7  ;;  %v9116_v34 = vsel %vm12672_vm2, %v12671_v37, %v12504_v48  ;;  %v12679_v41 = vld [vmem:[#allocation173_spill] sm:$0xff] }
 0x2f9   : > { %12650 = vst [vmem:[#allocation139_spill] sm:$0xff] %v9056_v0  ;;  %v12668_v63 = vld [vmem:[#allocation31_spill] sm:$0xff]  ;;  %v12687_v37 = vld [vmem:[#allocation141_spill] sm:$0xff]  ;;  %vm12690_vm14 = vmmov %vm12677_vm0 }
 0x2fa   : > { %12654 = vst [vmem:[#allocation138_spill] sm:$0xff] %v9062_v61  ;;  %v12669_v21 = vpack.c.bf16 %v12667_v14, %v12668_v63  ;;  %v12680_v7 = vld [vmem:[#allocation79_spill] sm:$0xff]  ;;  %v12683_v63 = vld [vmem:[#allocation37_spill] sm:$0xff]  ;;  %v12689_v29 = vpack.c.bf16 %v12687_v37, %v12688_v15  ;;  %v5387_v4 = vld [vmem:[%s11202_s5 + $0xd8] sm:$0xff] }
 0x2fb   : > { %12658 = vst [vmem:[#allocation246_spill] sm:$0xff] %v9068_v33  ;;  %vm12681_vm6 = vcmp.eq.s32.totalorder %v12680_v7, 1  ;;  %v12682_v14 = vld [vmem:[#allocation39_spill] sm:$0xff]  ;;  %3563 = vmatpush.bf16.msra.mxu0 %v5387_v4  ;;  %v12691_v57 = vld [vmem:[#allocation34_spill] sm:$0xff]  ;;  %v12692_v36 = vld [vmem:[#allocation165_spill] sm:$0xff] }
 0x2fc   : > { %12660 = vst [vmem:[#allocation228_spill] sm:$0xff] %v9078_v24  ;;  %5082 = vmatmul.msk.bf16.gmra.mxu2 %vm12670_vm13, %v12669_v21  ;;  %v1809_v50 = vsel %vm12681_vm6, %v12679_v41, %v12678_v38  ;;  %v12684_v21 = vld [vmem:[#allocation81_spill] sm:$0xff]  ;;  %v12693_v38 = vpack.c.bf16 %v12691_v57, %v12692_v36  ;;  %vm12694_vm15 = vmmov %vm12677_vm0  ;;  %v5386_v41 = vld [vmem:[%s11202_s5 + $0xd0] sm:$0xff]  ;;  %v2331_v36 = vpop.f32.mrf.mxu3 }
 0x2fd   : > { %12663 = vst [vmem:[#allocation227_spill] sm:$0xff] %v9084_v59  ;;  %vm12685_vm12 = vcmp.eq.s32.totalorder %v12684_v21, 1  ;;  %vm12698_vm7 = vmmov %vm12677_vm0  ;;  %v12699_v15 = vld [vmem:[#allocation202_spill] sm:$0xff]  ;;  %v12701_v37 = vld [vmem:[#allocation203_spill] sm:$0xff] }
 0x2fe   : > { %12664 = vst [vmem:[#allocation247_spill] sm:$0xff] %v9092_v54  ;;  %v1810_v9 = vsel %vm12685_vm12, %v12683_v63, %v12682_v14  ;;  %v12696_v14 = vld [vmem:[#allocation191_spill] sm:$0xff]  ;;  %v12702_v4 = vld [vmem:[#allocation230_spill] sm:$0xff]  ;;  %vm12703_vm11 = vmmov %vm12677_vm0 }
 0x2ff   : > { %12665 = vst [vmem:[#allocation248_spill] sm:$0xff] %v9098_v31  ;;  %v2211_v48 = vpack.c.bf16 %v1810_v9, %v1809_v50  ;;  %v12695_v50 = vld [vmem:[#allocation33_spill] sm:$0xff]  ;;  %3564 = vmatpush.bf16.msra.mxu0 %v5386_v41  ;;  %v1811_v57 = vsel %vm1779_vm9, %v12702_v4, %v12701_v37  ;;  %vm12707_vm10 = vmmov %vm12677_vm0  ;;  %v12709_v12 = vld [vmem:[#allocation207_spill] sm:$0xff] }
 0x300   : > { %12666 = vst [vmem:[#allocation249_spill] sm:$0xff] %v9104_v8  ;;  %v12697_v63 = vpack.c.bf16 %v12695_v50, %v12696_v14  ;;  %v12700_v9 = vld [vmem:[#allocation201_spill] sm:$0xff]  ;;  %v12704_v50 = vld [vmem:[#allocation143_spill] sm:$0xff]  ;;  %v12705_v14 = vld [vmem:[#allocation142_spill] sm:$0xff] }
 0x301   : > { %12673 = vst [vmem:[#allocation155_spill] sm:$0xff] %v9116_v34  ;;  %v5384_v41 = vld [vmem:[%s11202_s5 + $0xc0] sm:$0xff]  ;;  %vm12711_vm3 = vmmov %vm12677_vm0  ;;  %v12737_v61 = vld [vmem:[#allocation108_spill] sm:$0xff] }
 0x302   : > { %vm12715_vm4 = vmmov %vm12677_vm0  ;;  %v12716_v8 = vld [vmem:[#allocation181_spill] sm:$0xff]  ;;  %v12738_v33 = vld [vmem:[#allocation55_spill] sm:$0xff] }
 0x303   : > { %vm12719_vm13 = vmmov %vm12677_vm0  ;;  %v12736_v59 = vld [vmem:[#allocation109_spill] sm:$0xff]  ;;  %v12746_v0 = vld [vmem:[#allocation150_spill] sm:$0xff] }
 0x304   : > { %vm12723_vm2 = vmmov %vm12677_vm0  ;;  %v12784_v23 = vld [vmem:[#allocation80_spill] sm:$0xff]  ;;  %v12785_v28 = vld [vmem:[#allocation78_spill] sm:$0xff] }
 0x305   : > { %5106 = vmatmul.msk.bf16.vlgmr.msrb.gmra.mxu0 %vm12686_vm5, %v2211_v48  ;;  %v1812_v48 = vsel %vm1780_vm1, %v12700_v9, %v12699_v15  ;;  %v2333_v15 = vpop.f32.mrf.mxu3  ;;  %v12708_v9 = vld [vmem:[#allocation152_spill] sm:$0xff]  ;;  %vm12730_vm6 = vmmov %vm12677_vm0  ;;  %vm12739_vm5 = vcmp.eq.s32.totalorder %v12738_v33, 1  ;;  %v12786_v2 = vpack.c.bf16 %v12784_v23, %v12785_v28  ;;  %v12792_v28 = vld [vmem:[#allocation45_spill] sm:$0xff] }
 0x306   : > { %v12710_v26 = vpack.c.bf16 %v12708_v9, %v12709_v12  ;;  %v12724_v9 = vld [vmem:[#allocation161_spill] sm:$0xff] }
 0x307   : > { %5051 = vmatmul.msk.bf16.gmra.mxu1 %vm12690_vm14, %v12689_v29  ;;  %5117 = vmatmul.msk.bf16.gmra.mxu3 %vm12698_vm7, %v12697_v63  ;;  %v5385_v29 = vld [vmem:[%s11202_s5 + $0xc8] sm:$0xff]  ;;  %v12706_v63 = vpack.c.bf16 %v12704_v50, %v12705_v14  ;;  %v12717_v50 = vld [vmem:[#allocation192_spill] sm:$0xff]  ;;  %vm12740_vm14 = vmmov %vm12677_vm0 }
 0x308   : > { %3565 = vmatpush.bf16.msra.mxu0 %v5385_v29  ;;  %v12712_v29 = vld [vmem:[#allocation36_spill] sm:$0xff]  ;;  %v12718_v14 = vpack.c.bf16 %v12716_v8, %v12717_v50  ;;  %v5372_v8 = vld [vmem:[%s11202_s5 + $0x60] sm:$0xff]  ;;  %vm12749_vm7 = vmmov %vm12677_vm0 }
 0x309   : > { %2723 = vmatpush.bf16.msrb.mxu1 %v5372_v8 }
 0x30c   : > { %5083 = vmatmul.msk.bf16.gmra.mxu2 %vm12694_vm15, %v12693_v38  ;;  %v2212_v38 = vpack.c.bf16 %v1812_v48, %v1811_v57  ;;  %3566 = vmatpush.bf16.msra.mxu0 %v5384_v41  ;;  %v12713_v48 = vld [vmem:[#allocation160_spill] sm:$0xff]  ;;  %v9178_v57 = vpop.f32.mrf.mxu0  ;;  %v12720_v41 = vld [vmem:[#allocation145_spill] sm:$0xff]  ;;  %vm12744_vm15 = vmmov %vm12677_vm0 }
 0x30d   : > { %v12714_v37 = vpack.c.bf16 %v12712_v29, %v12713_v48  ;;  %v2336_v4 = vpop.f32.mrf.mxu3  ;;  %v12725_v29 = vld [vmem:[#allocation153_spill] sm:$0xff] }
 0x30e   : > { %v12726_v48 = vpack.c.bf16 %v12724_v9, %v12725_v29  ;;  %v12732_v9 = vld [vmem:[#allocation99_spill] sm:$0xff]  ;;  %v12733_v29 = vld [vmem:[#allocation100_spill] sm:$0xff] }
 0x315   : > { %5107 = vmatmul.msk.bf16.gmra.mxu0 %vm12703_vm11, %v2212_v38  ;;  %v1985_v38 = vpop.f32.mrf.mxu1  ;;  %v2338_v12 = vpop.f32.mrf.mxu3  ;;  %vm12753_vm11 = vmmov %vm12677_vm0 }
 0x317   : > { %5052 = vmatmul.msk.bf16.gmra.mxu1 %vm12707_vm10, %v12706_v63  ;;  %5118 = vmatmul.msk.bf16.gmra.mxu3 %vm12715_vm4, %v12714_v37  ;;  %v12721_v63 = vld [vmem:[#allocation144_spill] sm:$0xff]  ;;  %v9198_v37 = vpop.f32.mrf.mxu0  ;;  %vm12759_vm4 = vmmov %vm12677_vm0 }
 0x318   : > { %v12722_v34 = vpack.c.bf16 %v12720_v41, %v12721_v63  ;;  %v12727_v41 = vld [vmem:[#allocation118_spill] sm:$0xff]  ;;  %v12728_v63 = vld [vmem:[#allocation83_spill] sm:$0xff] }
 0x319   : > { %v12729_v54 = vpack.c.bf16 %v12727_v41, %v12728_v63 }
 0x31c   : > { %5084 = vmatmul.msk.bf16.gmra.mxu2 %vm12711_vm3, %v12710_v26  ;;  %v5376_v26 = vld [vmem:[%s11202_s5 + $0x80] sm:$0xff] }
 0x31d   : > { %2940 = vmatpush.bf16.msrb.mxu2 %v5376_v26  ;;  %v1987_v50 = vpop.f32.mrf.mxu1  ;;  %v3399_v26 = vsel %vm12739_vm5, %v12737_v61, %v12736_v59  ;;  %v2341_v8 = vpop.f32.mrf.mxu3  ;;  %vm12779_vm5 = vcmp.lt.s32.totalorder %v6659_v45, 1 }
 0x31f   : > { %v9214_v17 = vpop.f32.mrf.mxu0 }
 0x325   : > { %5108 = vmatmul.msk.bf16.gmra.mxu0 %vm12719_vm13, %v12718_v14  ;;  %vm12763_vm13 = vmmov %vm12677_vm0 }
 0x327   : > { %5053 = vmatmul.msk.bf16.gmra.mxu1 %vm12723_vm2, %v12722_v34  ;;  %v2146_v34 = vpop.f32.mrf.mxu2  ;;  %5119 = vmatmul.msk.bf16.gmra.mxu3 %vm12730_vm6, %v12729_v54  ;;  %v12741_v54 = vld [vmem:[#allocation163_spill] sm:$0xff]  ;;  %v9227_v61 = vpop.f32.mrf.mxu0  ;;  %vm12768_vm2 = vmmov %vm12677_vm0 }
 0x328   : > { %v2147_v14 = vadd.f32 %v2146_v34, %v1985_v38  ;;  %v1990_v34 = vpop.f32.mrf.mxu1 }
 0x32a   : > { %v9204_v31 = vadd.f32 %v2331_v36, %v2147_v14  ;;  %v12742_v36 = vld [vmem:[#allocation164_spill] sm:$0xff] }
 0x32b   : > { %v12743_v14 = vpack.c.bf16 %v12741_v54, %v12742_v36 }
 0x32c   : > { %5085 = vmatmul.msk.bf16.gmra.mxu2 %vm12677_vm0, %v12726_v48  ;;  %12731 = vst [vmem:[#allocation31_spill] sm:$0xff] %v9204_v31  ;;  %v12734_v48 = vld [vmem:[#allocation48_spill] sm:$0xff]  ;;  %v12747_v31 = vld [vmem:[#allocation182_spill] sm:$0xff] }
 0x32d   : > { %vm12735_vm12 = vcmp.eq.s32.totalorder %v12734_v48, 1  ;;  %v12748_v59 = vpack.c.bf16 %v12746_v0, %v12747_v31  ;;  %v12757_v0 = vld [vmem:[#allocation51_spill] sm:$0xff] }
 0x32e   : > { %v3400_v24 = vsel %vm12735_vm12, %v12733_v29, %v12732_v9  ;;  %v2343_v29 = vpop.f32.mrf.mxu3  ;;  %vm12758_vm3 = vcmp.eq.s32.totalorder %v12757_v0, 1 }
 0x32f   : > { %v3463_v38 = vpack.c.bf16 %v3400_v24, %v3399_v26  ;;  %v2148_v41 = vpop.f32.mrf.mxu2  ;;  %v3402_v31 = vsel %vm12758_vm3, %v12537_v39, %v12538_v18  ;;  %v12766_v39 = vld [vmem:[#allocation42_spill] sm:$0xff]  ;;  %vm12794_vm3 = vmmov %vm12677_vm0 }
 0x330   : > { %v2149_v63 = vadd.f32 %v2148_v41, %v1987_v50  ;;  %v1992_v24 = vpop.f32.mrf.mxu1  ;;  %v12750_v41 = vld [vmem:[#allocation91_spill] sm:$0xff] }
 0x332   : > { %v9221_v9 = vadd.f32 %v2333_v15, %v2149_v63  ;;  %v12755_v15 = vld [vmem:[#allocation47_spill] sm:$0xff] }
 0x333   : > { %vm12756_vm10 = vcmp.eq.s32.totalorder %v12755_v15, 1 }
 0x334   : > { %12745 = vst [vmem:[#allocation231_spill] sm:$0xff] %v9221_v9  ;;  %v3401_v63 = vsel %vm12756_vm10, %v12534_v55, %v12535_v49  ;;  %vm12790_vm10 = vcmp.eq.s32.totalorder %v12680_v7, 1 }
 0x335   : > { %5234 = vmatmul.msk.bf16.vlgmr.msra.gmra.mxu0 %vm12740_vm14, %v3463_v38  ;;  %v12751_v38 = vld [vmem:[#allocation87_spill] sm:$0xff]  ;;  %vm12781_vm14 = vmmov %vm12677_vm0 }
 0x336   : > { %v12752_v42 = vpack.c.bf16 %v12750_v41, %v12751_v38  ;;  %v2346_v36 = vpop.f32.mrf.mxu3  ;;  %v12765_v38 = vld [vmem:[#allocation82_spill] sm:$0xff] }
 0x337   : > { %5054 = vmatmul.msk.bf16.gmra.mxu1 %vm12744_vm15, %v12743_v14  ;;  %v2151_v26 = vpop.f32.mrf.mxu2  ;;  %v9243_v14 = vpop.f32.mrf.mxu0  ;;  %v12767_v18 = vpack.c.bf16 %v12765_v38, %v12766_v39  ;;  %v12773_v38 = vld [vmem:[#allocation105_spill] sm:$0xff]  ;;  %vm12783_vm15 = vmmov %vm12779_vm5 }
 0x338   : > { %v2152_v50 = vadd.f32 %v2151_v26, %v1990_v34  ;;  %5120 = vmatmul.msk.bf16.gmra.mxu3 %vm12753_vm11, %v12752_v42  ;;  %v1995_v34 = vpop.f32.mrf.mxu1  ;;  %v12760_v42 = vld [vmem:[#allocation183_spill] sm:$0xff]  ;;  %v2429_v39 = vrot.slane %v12773_v38, 7  ;;  %vm12789_vm11 = vcmp.eq.s32.totalorder %v12684_v21, 1 }
 0x33a   : > { %v9233_v54 = vadd.f32 %v2336_v4, %v2152_v50  ;;  %v12761_v4 = vld [vmem:[#allocation49_spill] sm:$0xff] }
 0x33b   : > { %v12762_v50 = vpack.c.bf16 %v12760_v42, %v12761_v4  ;;  %v12770_v42 = vld [vmem:[#allocation216_spill] sm:$0xff]  ;;  %v5382_v4 = vld [vmem:[%s11202_s5 + $0xb0] sm:$0xff] }
 0x33c   : > { %5086 = vmatmul.msk.bf16.gmra.mxu2 %vm12749_vm7, %v12748_v59  ;;  %12754 = vst [vmem:[#allocation151_spill] sm:$0xff] %v9233_v54  ;;  %v3464_v59 = vpack.c.bf16 %v3402_v31, %v3401_v63  ;;  %vm12787_vm7 = vmmov %vm12677_vm0 }
 0x33e   : > { %v9252_v49 = vpop.f32.mrf.mxu3 }
 0x33f   : > { %v2153_v26 = vpop.f32.mrf.mxu2  ;;  %v9258_v54 = vpop.f32.mrf.mxu0 }
 0x340   : > { %v2154_v41 = vadd.f32 %v2153_v26, %v1992_v24  ;;  %v1997_v63 = vpop.f32.mrf.mxu1  ;;  %v5383_v24 = vld [vmem:[%s11202_s5 + $0xb8] sm:$0xff]  ;;  %v12769_v26 = vld [vmem:[#allocation217_spill] sm:$0xff] }
 0x341   : > { %3154 = vmatpush.bf16.msrb.mxu3 %v5383_v24 }
 0x342   : > { %v9250_v55 = vadd.f32 %v2338_v12, %v2154_v41  ;;  %v12771_v12 = vpack.c.bf16 %v12769_v26, %v12770_v42  ;;  %v2493_v42 = vrot.slane %v12773_v38, 1 }
 0x344   : > { %12764 = vst [vmem:[#allocation162_spill] sm:$0xff] %v9250_v55 }
 0x345   : > { %5235 = vmatmul.msk.bf16.gmra.mxu0 %vm12759_vm4, %v3464_v59  ;;  %3155 = vmatpush.bf16.msrb.mxu3 %v5382_v4  ;;  %v12780_v4 = vrot.slane %v12398_v62, 1  ;;  %vm12795_vm4 = vmmov %vm12677_vm0 }
 0x347   : > { %5055 = vmatmul.msk.bf16.gmra.mxu1 %vm12763_vm13, %v12762_v50  ;;  %v2156_v31 = vpop.f32.mrf.mxu2  ;;  %v2428_v50 = vrot.slane %v12398_v62, 7 }
 0x348   : > { %v2157_v59 = vadd.f32 %v2156_v31, %v1995_v34  ;;  %5121 = vmatmul.msk.bf16.gmra.mxu3 %vm12677_vm0, %v12771_v12  ;;  %v12776_v31 = vld [vmem:[#allocation58_spill] sm:$0xff]  ;;  %v2131_v12 = vpop.f32.mrf.mxu0  ;;  %vm12804_vm0 = vmmov %vm12779_vm5 }
 0x349   : > { %vm12777_vm12 = vcmp.eq.s32.totalorder %v12776_v31, 1  ;;  %v9287_v55 = vadd.f32 %v2131_v12, %v9178_v57  ;;  %v9304_v57 = vsel %vm1488_vm8, %v12780_v4, %v2493_v42 }
 0x34a   : > { %v9267_v41 = vadd.f32 %v2341_v8, %v2157_v59  ;;  %v3404_v24 = vsel %vm12777_vm12, %v12563_v3, %v12564_v47  ;;  %v9282_v8 = vpop.f32.mrf.mxu3  ;;  %v12778_v59 = vld [vmem:[#allocation92_spill] sm:$0xff]  ;;  %vm12806_vm12 = vmmov %vm12794_vm3 }
 0x34b   : > { %v2494_v26 = vrot.slane %v12778_v59, 1 }
 0x34c   : > { %5087 = vmatmul.msk.bf16.gmra.mxu2 %vm12768_vm2, %v12767_v18  ;;  %12772 = vst [vmem:[#allocation38_spill] sm:$0xff] %v9267_v41  ;;  %v12774_v18 = vld [vmem:[#allocation50_spill] sm:$0xff]  ;;  %v2000_v41 = vpop.f32.mrf.mxu1 }
 0x34d   : > { %vm12775_vm6 = vcmp.eq.s32.totalorder %v12774_v18, 1  ;;  %v9298_v47 = vsel %vm1488_vm8, %v2493_v42, %v2494_v26 }
 0x34e   : > { %v3403_v34 = vsel %vm12775_vm6, %v12553_v1, %v12554_v5  ;;  %v5381_v5 = vld [vmem:[%s11202_s5 + $0xa8] sm:$0xff]  ;;  %v9294_v1 = vsel %vm12779_vm5, %v2428_v50, %v2429_v39  ;;  %vm12805_vm6 = vmmov %vm12804_vm0 }
 0x34f   : > { %v3465_v9 = vpack.c.bf16 %v3404_v24, %v3403_v34  ;;  %v2158_v3 = vpop.f32.mrf.mxu2  ;;  %v12782_v24 = vrot.slane %v12155_v32, 7  ;;  %3156 = vmatpush.bf16.msrb.mxu3 %v5381_v5  ;;  %vm12810_vm5 = vmmov %vm12794_vm3 }
 0x350   : > { %v2159_v34 = vadd.f32 %v2158_v3, %v1997_v63  ;;  %v5380_v63 = vld [vmem:[%s11202_s5 + $0xa0] sm:$0xff]  ;;  %v2133_v5 = vpop.f32.mrf.mxu0 }
 0x351   : > { %v9311_v12 = vsel %vm12783_vm15, %v12782_v24, %v2428_v50  ;;  %v5395_v50 = vld [vmem:[%s11202_s5 + $0x118] sm:$0xff]  ;;  %v9340_v3 = vadd.f32 %v2133_v5, %v9198_v37  ;;  %v12798_v37 = vld [vmem:[#allocation5_spill] sm:$0xff] }
 0x352   : > { %v9317_v44 = vadd.f32 %v2343_v29, %v2159_v34  ;;  %v9326_v42 = vpop.f32.mrf.mxu3  ;;  %v2588_v23 = vsel %vm12790_vm10, %v9311_v12, %v9304_v57  ;;  %3997 = vmatpush.bf16.msra.mxu2 %v5395_v50  ;;  %vm12799_vm13 = vcmp.eq.s32.totalorder %v12798_v37, 1  ;;  %vm12829_vm10 = vmmov %vm12804_vm0 }
 0x353   : > { %3157 = vmatpush.bf16.msrb.mxu3 %v5380_v63 }
 0x354   : > { %12788 = vst [vmem:[#allocation173_spill] sm:$0xff] %v9317_v44  ;;  %v2002_v21 = vpop.f32.mrf.mxu1 }
 0x355   : > { %5236 = vmatmul.msk.bf16.gmra.mxu0 %vm12781_vm14, %v3465_v9  ;;  %v2589_v9 = vsel %vm12789_vm11, %v9294_v1, %v9298_v47  ;;  %vm12815_vm14 = vmmov %vm12794_vm3  ;;  %vm12828_vm11 = vcmp.eq.s32.totalorder %v12738_v33, 1 }
 0x356   : > { %v3054_v4 = vpack.c.bf16 %v2589_v9, %v2588_v23  ;;  %v3405_v9 = vsel %vm12799_vm13, %v12568_v25, %v12569_v10  ;;  %v12800_v23 = vld [vmem:[#allocation43_spill] sm:$0xff] }
 0x357   : > { %5056 = vmatmul.msk.bf16.gmra.mxu1 %vm12787_vm7, %v12786_v2  ;;  %v12791_v2 = vld [vmem:[#allocation85_spill] sm:$0xff]  ;;  %v2161_v34 = vpop.f32.mrf.mxu2  ;;  %vm12827_vm7 = vcmp.eq.s32.totalorder %v12734_v48, 1 }
 0x358   : > { %v12793_v29 = vpack.c.bf16 %v12791_v2, %v12792_v28  ;;  %v2162_v7 = vadd.f32 %v2161_v34, %v2000_v41  ;;  %5202 = vmatmul.msk.bf16.vlgmr.msrb.gmra.mxu3 %vm12795_vm4, %v3054_v4  ;;  %v5391_v2 = vld [vmem:[%s11202_s5 + $0xf8] sm:$0xff]  ;;  %v2430_v28 = vrot.slane %v12778_v59, 7  ;;  %v12801_v41 = vld [vmem:[#allocation6_spill] sm:$0xff] }
 0x359   : > { %vm12802_vm2 = vcmp.eq.s32.totalorder %v12801_v41, 1  ;;  %v12803_v4 = vld [vmem:[#allocation94_spill] sm:$0xff]  ;;  %3780 = vmatpush.bf16.msra.mxu1 %v5391_v2 }
 0x35a   : > { %v9343_v24 = vadd.f32 %v2346_v36, %v2162_v7  ;;  %v3406_v50 = vsel %vm12802_vm2, %v12800_v23, %v12574_v51  ;;  %v9358_v36 = vpop.f32.mrf.mxu3  ;;  %v2496_v34 = vrot.slane %v12803_v4, 1  ;;  %v2136_v7 = vpop.f32.mrf.mxu0  ;;  %v2489_v2 = vsel %vm12805_vm6, %v2429_v39, %v2430_v28 }
 0x35b   : > { %v3466_v44 = vpack.c.bf16 %v3406_v50, %v3405_v9  ;;  %v12808_v9 = vld [vmem:[#allocation44_spill] sm:$0xff] }
 0x35c   : > { %5088 = vmatmul.msk.bf16.gmra.mxu2 %vm12794_vm3, %v12793_v29  ;;  %12796 = vst [vmem:[#allocation79_spill] sm:$0xff] %v9343_v24  ;;  %v12797_v29 = vld [vmem:[#allocation93_spill] sm:$0xff]  ;;  %v2005_v32 = vpop.f32.mrf.mxu1  ;;  %v9363_v24 = vadd.f32 %v2136_v7, %v9214_v17  ;;  %v12807_v17 = vld [vmem:[#allocation154_spill] sm:$0xff] }
 0x35d   : > { %v2431_v63 = vrot.slane %v12797_v29, 7  ;;  %v2495_v5 = vrot.slane %v12797_v29, 1  ;;  %v12809_v50 = vpack.c.bf16 %v12807_v17, %v12808_v9  ;;  %v2432_v9 = vrot.slane %v12803_v4, 7 }
 0x35f   : > { %v9367_v25 = vsel %vm12804_vm0, %v2430_v28, %v2431_v63  ;;  %v2163_v10 = vpop.f32.mrf.mxu2  ;;  %v2551_v51 = vsel %vm1488_vm8, %v2495_v5, %v2496_v34  ;;  %v9373_v23 = vsel %vm1488_vm8, %v2494_v26, %v2495_v5  ;;  %v9431_v30 = vsel %vm12829_vm10, %v2431_v63, %v2432_v9 }
 0x360   : > { %v2164_v52 = vadd.f32 %v2163_v10, %v2002_v21  ;;  %v2591_v16 = vsel %vm1780_vm1, %v9367_v25, %v2551_v51  ;;  %v2590_v26 = vsel %vm1779_vm9, %v2489_v2, %v9373_v23  ;;  %v12812_v21 = vld [vmem:[#allocation184_spill] sm:$0xff]  ;;  %vm12816_vm1 = vmmov %vm12794_vm3 }
 0x361   : > { %v3055_v10 = vpack.c.bf16 %v2591_v16, %v2590_v26  ;;  %v12823_v26 = vld [vmem:[#allocation62_spill] sm:$0xff]  ;;  %vm12830_vm3 = vmmov %vm12804_vm0 }
 0x362   : > { %v9383_v7 = vadd.f32 %v9252_v49, %v2164_v52  ;;  %v9391_v39 = vpop.f32.mrf.mxu3  ;;  %v2138_v5 = vpop.f32.mrf.mxu0  ;;  %vm12831_vm4 = vmmov %vm12816_vm1 }
 0x363   : > { %v9398_v52 = vadd.f32 %v2138_v5, %v9227_v61  ;;  %v12824_v61 = vld [vmem:[#allocation24_spill] sm:$0xff]  ;;  %vm12832_vm13 = vmmov %vm12816_vm1 }
 0x364   : > { %12811 = vst [vmem:[#allocation39_spill] sm:$0xff] %v9383_v7  ;;  %v2007_v17 = vpop.f32.mrf.mxu1  ;;  %vm12825_vm15 = vcmp.eq.s32.totalorder %v12824_v61, 1  ;;  %vm12837_vm6 = vmmov %vm12816_vm1 }
 0x365   : > { %5237 = vmatmul.msk.bf16.gmra.mxu0 %vm12806_vm12, %v3466_v44  ;;  %v12813_v44 = vld [vmem:[#allocation185_spill] sm:$0xff]  ;;  %v3408_v5 = vsel %vm12825_vm15, %v12823_v26, %v12584_v60  ;;  %vm12838_vm12 = vmmov %vm12816_vm1 }
 0x366   : > { %v12814_v28 = vpack.c.bf16 %v12812_v21, %v12813_v44  ;;  %v12819_v21 = vld [vmem:[#allocation134_spill] sm:$0xff]  ;;  %v12820_v44 = vld [vmem:[#allocation135_spill] sm:$0xff]  ;;  %vm12847_vm15 = vmmov %vm12830_vm3 }
 0x367   : > { %5057 = vmatmul.msk.bf16.gmra.mxu1 %vm12810_vm5, %v12809_v50  ;;  %v2166_v49 = vpop.f32.mrf.mxu2  ;;  %v12818_v50 = vld [vmem:[#allocation29_spill] sm:$0xff]  ;;  %vm12850_vm10 = vmmov %vm12831_vm4 }
 0x368   : > { %v2167_v46 = vadd.f32 %v2166_v49, %v2005_v32  ;;  %5203 = vmatmul.msk.bf16.gmra.mxu3 %vm12816_vm1, %v3055_v10  ;;  %v2433_v7 = vrot.slane %v12818_v50, 7  ;;  %v2497_v10 = vrot.slane %v12818_v50, 1  ;;  %vm12845_vm1 = vcmp.eq.s32.totalorder %v12757_v0, 1 }
 0x36a   : > { %v9402_v27 = vadd.f32 %v9282_v8, %v2167_v46  ;;  %v9414_v32 = vpop.f32.mrf.mxu3  ;;  %v12826_v8 = vld [vmem:[#allocation8_spill] sm:$0xff]  ;;  %v2557_v46 = vsel %vm12827_vm7, %v9298_v47, %v9294_v1  ;;  %v9435_v48 = vsel %vm12830_vm3, %v2432_v9, %v2433_v7  ;;  %v2550_v1 = vsel %vm1488_vm8, %v2496_v34, %v2497_v10  ;;  %vm12848_vm7 = vmmov %vm12830_vm3 }
 0x36b   : > { %v2498_v49 = vrot.slane %v12826_v8, 1  ;;  %v12835_v9 = vld [vmem:[#allocation88_spill] sm:$0xff] }
 0x36c   : > { %5089 = vmatmul.msk.bf16.gmra.mxu2 %vm12815_vm14, %v12814_v28  ;;  %12817 = vst [vmem:[#allocation37_spill] sm:$0xff] %v9402_v27  ;;  %v12821_v28 = vld [vmem:[#allocation7_spill] sm:$0xff]  ;;  %vm12836_vm0 = vcmp.eq.s32.totalorder %v12835_v9, 1 }
 0x36d   : > { %vm12822_vm9 = vcmp.eq.s32.totalorder %v12821_v28, 1  ;;  %v9439_v33 = vsel %vm1488_vm8, %v2497_v10, %v2498_v49  ;;  %v12839_v10 = vld [vmem:[#allocation112_spill] sm:$0xff] }
 0x36e   : > { %v3407_v16 = vsel %vm12822_vm9, %v12820_v44, %v12819_v21  ;;  %v2556_v21 = vsel %vm12828_vm11, %v9304_v57, %v9311_v12  ;;  %v2837_v57 = vpack.c.bf16 %v12773_v38, %v12398_v62  ;;  %v12833_v12 = vld [vmem:[#allocation89_spill] sm:$0xff]  ;;  %v2593_v34 = vsel %vm12836_vm0, %v9435_v48, %v9439_v33  ;;  %vm12849_vm11 = vmmov %vm12831_vm4 }
 0x36f   : > { %v3467_v26 = vpack.c.bf16 %v3408_v5, %v3407_v16  ;;  %v2168_v40 = vpop.f32.mrf.mxu2  ;;  %v2620_v11 = vpack.c.bf16 %v2557_v46, %v2556_v21  ;;  %vm12834_vm2 = vcmp.eq.s32.totalorder %v12833_v12, 1  ;;  %v2500_v46 = vrot.slane %v12839_v10, 1  ;;  %v12840_v21 = vld [vmem:[#allocation114_spill] sm:$0xff] }
 0x370   : > { %v2592_v63 = vsel %vm12834_vm2, %v9431_v30, %v2550_v1  ;;  %v2435_v12 = vrot.slane %v12840_v21, 7  ;;  %vm12846_vm9 = vcmp.eq.s32.totalorder %v12755_v15, 1  ;;  %vm12856_vm2 = vmmov %vm12837_vm6 }
 0x371   : > { %v2558_v9 = vsel %vm12846_vm9, %v9373_v23, %v2489_v2  ;;  %v2838_v23 = vpack.c.bf16 %v12797_v29, %v12778_v59  ;;  %v12851_v2 = vld [vmem:[#allocation54_spill] sm:$0xff]  ;;  %vm12869_vm9 = vmmov %vm12856_vm2 }
 0x372   : > { %v2141_v44 = vpop.f32.mrf.mxu0  ;;  %vm12852_vm3 = vcmp.eq.s32.totalorder %v12851_v2, 1 }
 0x373   : > { %v9427_v60 = vadd.f32 %v2141_v44, %v9243_v14  ;;  %v2169_v14 = vadd.f32 %v2168_v40, %v2007_v17  ;;  %v9457_v40 = vpop.f32.mrf.mxu3  ;;  %v3056_v17 = vpack.c.bf16 %v2593_v34, %v2592_v63  ;;  %v2499_v44 = vrot.slane %v12840_v21, 1 }
 0x374   : > { %v2010_v27 = vpop.f32.mrf.mxu1  ;;  %v2434_v63 = vrot.slane %v12826_v8, 7 }
 0x375   : > { %5238 = vmatmul.msk.bf16.gmra.mxu0 %vm12831_vm4, %v3467_v26  ;;  %v9446_v47 = vadd.f32 %v9326_v42, %v2169_v14  ;;  %v12841_v26 = vld [vmem:[#allocation10_spill] sm:$0xff] }
 0x376   : > { %vm12842_vm5 = vcmp.eq.s32.totalorder %v12841_v26, 1  ;;  %v9496_v0 = vsel %vm12847_vm15, %v2434_v63, %v2435_v12  ;;  %v9500_v15 = vsel %vm12848_vm7, %v2433_v7, %v2434_v63  ;;  %v12857_v63 = vld [vmem:[#allocation18_spill] sm:$0xff]  ;;  %vm12870_vm15 = vmmov %vm12856_vm2 }
 0x377   : > { %5138 = vmatmul.msk.bf16.vlgmr.msrb.gmra.mxu1 %vm12832_vm13, %v2620_v11  ;;  %v3409_v14 = vsel %vm12842_vm5, %v8509_v58, %v12588_v13  ;;  %vm12855_vm13 = vmmov %vm12837_vm6  ;;  %vm12866_vm5 = vcmp.eq.s32.totalorder %v12776_v31, 1 }
 0x378   : > { %5204 = vmatmul.msk.bf16.gmra.mxu3 %vm12838_vm12, %v3056_v17  ;;  %vm12865_vm12 = vcmp.eq.s32.totalorder %v12774_v18, 1 }
 0x37a   : > { %v2143_v11 = vpop.f32.mrf.mxu0 }
 0x37b   : > { %v9461_v16 = vadd.f32 %v2143_v11, %v9258_v54  ;;  %v12843_v54 = vld [vmem:[#allocation9_spill] sm:$0xff] }
 0x37c   : > { %5170 = vmatmul.msk.bf16.vlgmr.msrb.gmra.mxu2 %vm12837_vm6, %v2837_v57  ;;  %v2012_v42 = vpop.f32.mrf.mxu1  ;;  %vm12844_vm14 = vcmp.eq.s32.totalorder %v12843_v54, 1 }
 0x37d   : > { %v3410_v57 = vsel %vm12844_vm14, %v12592_v56, %v12593_v6  ;;  %v9492_v56 = vsel %vm1488_vm8, %v2499_v44, %v2500_v46  ;;  %vm12867_vm14 = vmmov %vm12848_vm7 }
 0x37e   : > { %v3468_v6 = vpack.c.bf16 %v3410_v57, %v3409_v14 }
 0x37f   : > { %v2171_v62 = vpop.f32.mrf.mxu2 }
 0x380   : > { %v2172_v38 = vadd.f32 %v2171_v62, %v2010_v27  ;;  %v9477_v27 = vpop.f32.mrf.mxu3 }
 0x382   : > { %v9465_v5 = vadd.f32 %v9358_v36, %v2172_v38  ;;  %v2559_v36 = vsel %vm12845_vm1, %v2551_v51, %v9367_v25  ;;  %v2316_v58 = vpop.f32.mrf.mxu0  ;;  %v9504_v25 = vsel %vm1488_vm8, %v2498_v49, %v2499_v44  ;;  %v12853_v49 = vld [vmem:[#allocation53_spill] sm:$0xff]  ;;  %vm12868_vm1 = vmmov %vm12848_vm7 }
 0x383   : > { %v9488_v34 = vadd.f32 %v2316_v58, %v9287_v55  ;;  %v2621_v11 = vpack.c.bf16 %v2559_v36, %v2558_v9  ;;  %v2594_v7 = vsel %vm12852_vm3, %v9500_v15, %v9504_v25  ;;  %vm12854_vm4 = vcmp.eq.s32.totalorder %v12853_v49, 1  ;;  %v12858_v58 = vld [vmem:[#allocation200_spill] sm:$0xff]  ;;  %vm12876_vm3 = vmmov %vm12856_vm2 }
 0x384   : > { %v2015_v13 = vpop.f32.mrf.mxu1  ;;  %v2436_v36 = vrot.slane %v12839_v10, 7  ;;  %v2437_v9 = vrot.slane %v12857_v63, 7 }
 0x385   : > { %5239 = vmatmul.msk.bf16.gmra.mxu0 %vm12849_vm11, %v3468_v6  ;;  %v12859_v6 = vld [vmem:[#allocation11_spill] sm:$0xff] }
 0x386   : > { %vm12860_vm0 = vcmp.eq.s32.totalorder %v12859_v6, 1 }
 0x387   : > { %v2173_v17 = vpop.f32.mrf.mxu2  ;;  %5139 = vmatmul.msk.bf16.gmra.mxu1 %vm12850_vm10, %v2621_v11  ;;  %v3411_v11 = vsel %vm12860_vm0, %v12858_v58, %v12598_v19  ;;  %v2561_v19 = vsel %vm12866_vm5, %v9439_v33, %v9435_v48  ;;  %v2839_v33 = vpack.c.bf16 %v12818_v50, %v12803_v4  ;;  %vm12875_vm10 = vmmov %vm12856_vm2  ;;  %vm12886_vm0 = vcmp.eq.s32.totalorder %v12801_v41, 1 }
 0x388   : > { %v2174_v55 = vadd.f32 %v2173_v17, %v2012_v42  ;;  %v2595_v42 = vsel %vm12854_vm4, %v9496_v0, %v9492_v56  ;;  %v9521_v62 = vpop.f32.mrf.mxu3  ;;  %v12861_v17 = vld [vmem:[#allocation221_spill] sm:$0xff]  ;;  %vm12889_vm5 = vmmov %vm12876_vm3 }
 0x38a   : > { %v9509_v51 = vadd.f32 %v9391_v39, %v2174_v55  ;;  %v2318_v38 = vpop.f32.mrf.mxu0  ;;  %v3057_v39 = vpack.c.bf16 %v2595_v42, %v2594_v7  ;;  %v2560_v7 = vsel %vm12865_vm12, %v2550_v1, %v9431_v30  ;;  %v9561_v30 = vsel %vm12868_vm1, %v2436_v36, %v2437_v9  ;;  %v12871_v1 = vld [vmem:[#allocation61_spill] sm:$0xff]  ;;  %vm12888_vm12 = vmmov %vm12868_vm1 }
 0x38b   : > { %v9525_v14 = vadd.f32 %v2318_v38, %v9340_v3  ;;  %v12862_v3 = vld [vmem:[#allocation13_spill] sm:$0xff]  ;;  %vm12872_vm7 = vcmp.eq.s32.totalorder %v12871_v1, 1 }
 0x38c   : > { %5171 = vmatmul.msk.bf16.gmra.mxu2 %vm12855_vm13, %v2838_v23  ;;  %v2017_v44 = vpop.f32.mrf.mxu1  ;;  %5205 = vmatmul.msk.bf16.gmra.mxu3 %vm12856_vm2, %v3057_v39  ;;  %vm12863_vm6 = vcmp.eq.s32.totalorder %v12862_v3, 1  ;;  %v2501_v23 = vrot.slane %v12857_v63, 1  ;;  %v9557_v39 = vsel %vm12867_vm14, %v2435_v12, %v2436_v36  ;;  %vm12885_vm2 = vcmp.eq.s32.totalorder %v12798_v37, 1  ;;  %vm12890_vm14 = vmmov %vm12876_vm3 }
 0x38d   : > { %v3412_v55 = vsel %vm12863_vm6, %v12861_v17, %v12602_v35  ;;  %vm12887_vm6 = vmmov %vm12868_vm1 }
 0x38e   : > { %v3469_v35 = vpack.c.bf16 %v3412_v55, %v3411_v11  ;;  %v9569_v31 = vsel %vm1488_vm8, %v2500_v46, %v2501_v23  ;;  %v12873_v46 = vld [vmem:[#allocation57_spill] sm:$0xff] }
 0x38f   : > { %v2176_v59 = vpop.f32.mrf.mxu2  ;;  %v2596_v12 = vsel %vm12872_vm7, %v9557_v39, %v9569_v31  ;;  %vm12874_vm11 = vcmp.eq.s32.totalorder %v12873_v46, 1  ;;  %vm12896_vm7 = vmmov %vm12876_vm3 }
 0x390   : > { %v2177_v29 = vadd.f32 %v2176_v59, %v2015_v13  ;;  %v9541_v13 = vpop.f32.mrf.mxu3  ;;  %v2622_v59 = vpack.c.bf16 %v2561_v19, %v2560_v7  ;;  %v5390_v7 = vld [vmem:[%s11202_s5 + $0xf0] sm:$0xff]  ;;  %v12877_v19 = vld [vmem:[#allocation113_spill] sm:$0xff] }
 0x391   : > { %3781 = vmatpush.bf16.msra.mxu1 %v5390_v7 }
 0x392   : > { %v9529_v57 = vadd.f32 %v9414_v32, %v2177_v29  ;;  %v12864_v32 = vld [vmem:[#allocation17_spill] sm:$0xff]  ;;  %v2321_v49 = vpop.f32.mrf.mxu0 }
 0x393   : > { %v2502_v2 = vrot.slane %v12864_v32, 1  ;;  %v9553_v38 = vadd.f32 %v2321_v49, %v9363_v24  ;;  %v2504_v49 = vrot.slane %v12877_v19, 1  ;;  %v2438_v46 = vrot.slane %v12864_v32, 7 }
 0x394   : > { %v2020_v42 = vpop.f32.mrf.mxu1 }
 0x395   : > { %v9565_v18 = vsel %vm1488_vm8, %v2501_v23, %v2502_v2  ;;  %5240 = vmatmul.msk.bf16.gmra.mxu0 %vm12869_vm9, %v3469_v35  ;;  %v12878_v35 = vld [vmem:[#allocation115_spill] sm:$0xff]  ;;  %v2481_v41 = vsel %vm12888_vm12, %v2437_v9, %v2438_v46 }
 0x397   : > { %v2178_v29 = vpop.f32.mrf.mxu2  ;;  %5140 = vmatmul.msk.bf16.gmra.mxu1 %vm12870_vm15, %v2622_v59  ;;  %v2503_v59 = vrot.slane %v12878_v35, 1  ;;  %vm12895_vm15 = vmmov %vm12876_vm3 }
 0x398   : > { %v2179_v24 = vadd.f32 %v2178_v29, %v2017_v44  ;;  %v2597_v44 = vsel %vm12874_vm11, %v9561_v30, %v9565_v18  ;;  %v9586_v36 = vpop.f32.mrf.mxu3  ;;  %v12879_v29 = vld [vmem:[#allocation220_spill] sm:$0xff] }
 0x399   : > { %v3058_v4 = vpack.c.bf16 %v2597_v44, %v2596_v12  ;;  %v2439_v12 = vrot.slane %v12878_v35, 7  ;;  %v2562_v44 = vsel %vm12885_vm2, %v9504_v25, %v9500_v15  ;;  %v2840_v15 = vpack.c.bf16 %v12840_v21, %v12826_v8  ;;  %v12891_v25 = vld [vmem:[#allocation56_spill] sm:$0xff]  ;;  %vm12910_vm2 = vmmov %vm12887_vm6 }
 0x39a   : > { %v9574_v48 = vadd.f32 %v9457_v40, %v2179_v24  ;;  %v5394_v40 = vld [vmem:[%s11202_s5 + $0x110] sm:$0xff]  ;;  %v2323_v58 = vpop.f32.mrf.mxu0  ;;  %vm12892_vm1 = vcmp.eq.s32.totalorder %v12891_v25, 1  ;;  %v2440_v21 = vrot.slane %v12877_v19, 7 }
 0x39b   : > { %v9593_v11 = vadd.f32 %v2323_v58, %v9398_v52  ;;  %3998 = vmatpush.bf16.msra.mxu2 %v5394_v40  ;;  %v12880_v52 = vld [vmem:[#allocation15_spill] sm:$0xff]  ;;  %v2480_v37 = vsel %vm12887_vm6, %v2438_v46, %v2439_v12 }
 0x39c   : > { %5172 = vmatmul.msk.bf16.gmra.mxu2 %vm12875_vm10, %v2839_v33  ;;  %v2022_v50 = vpop.f32.mrf.mxu1  ;;  %5206 = vmatmul.msk.bf16.gmra.mxu3 %vm12876_vm3, %v3058_v4  ;;  %vm12881_vm4 = vcmp.eq.s32.totalorder %v12880_v52, 1  ;;  %v12883_v33 = vld [vmem:[#allocation14_spill] sm:$0xff]  ;;  %vm12907_vm3 = vcmp.eq.s32.totalorder %v12821_v28, 1 }
 0x39d   : > { %v3413_v24 = vsel %vm12881_vm4, %v12879_v29, %v8538_v22  ;;  %vm12884_vm13 = vcmp.eq.s32.totalorder %v12883_v33, 1  ;;  %v2563_v22 = vsel %vm12886_vm0, %v9492_v56, %v9496_v0  ;;  %v2544_v56 = vsel %vm1488_vm8, %v2502_v2, %v2503_v59  ;;  %vm12911_vm0 = vmmov %vm12889_vm5 }
 0x39e   : > { %v2623_v29 = vpack.c.bf16 %v2563_v22, %v2562_v44  ;;  %v2598_v7 = vsel %vm12892_vm1, %v2481_v41, %v2544_v56  ;;  %v12897_v44 = vld [vmem:[#allocation19_spill] sm:$0xff]  ;;  %vm12908_vm4 = vcmp.eq.s32.totalorder %v12824_v61, 1  ;;  %vm12918_vm1 = vmmov %vm12911_vm0 }
 0x39f   : > { %v2181_v17 = vpop.f32.mrf.mxu2  ;;  %v2441_v22 = vrot.slane %v12897_v44, 7 }
 0x3a0   : > { %v2182_v55 = vadd.f32 %v2181_v17, %v2020_v42  ;;  %v12882_v42 = vld [vmem:[#allocation169_spill] sm:$0xff]  ;;  %v9629_v17 = vsel %vm1488_vm8, %v2503_v59, %v2504_v49 }
 0x3a1   : > { %v3414_v1 = vsel %vm12884_vm13, %v12882_v42, %v8531_v53  ;;  %vm12909_vm13 = vmmov %vm12887_vm6 }
 0x3a2   : > { %v9597_v23 = vadd.f32 %v9477_v27, %v2182_v55  ;;  %v9612_v27 = vpop.f32.mrf.mxu3  ;;  %v2326_v40 = vpop.f32.mrf.mxu0  ;;  %v3470_v4 = vpack.c.bf16 %v3414_v1, %v3413_v24  ;;  %v12893_v24 = vld [vmem:[#allocation64_spill] sm:$0xff]  ;;  %vm12912_vm6 = vmmov %vm12911_vm0 }
 0x3a3   : > { %v9625_v53 = vadd.f32 %v2326_v40, %v9427_v60  ;;  %vm12894_vm9 = vcmp.eq.s32.totalorder %v12893_v24, 1  ;;  %v12898_v40 = vld [vmem:[#allocation159_spill] sm:$0xff]  ;;  %v12906_v24 = vld [vmem:[#allocation25_spill] sm:$0xff] }
 0x3a4   : > { %v2025_v58 = vpop.f32.mrf.mxu1  ;;  %v2599_v9 = vsel %vm12894_vm9, %v2480_v37, %v9629_v17 }
 0x3a5   : > { %5241 = vmatmul.msk.bf16.gmra.mxu0 %vm12889_vm5, %v3470_v4  ;;  %v12899_v4 = vld [vmem:[#allocation52_spill] sm:$0xff] }
 0x3a7   : > { %v2183_v55 = vpop.f32.mrf.mxu2  ;;  %5141 = vmatmul.msk.bf16.gmra.mxu1 %vm12890_vm14, %v2623_v29  ;;  %vm12917_vm14 = vmmov %vm12911_vm0 }
 0x3a8   : > { %v2184_v0 = vadd.f32 %v2183_v55, %v2022_v50  ;;  %v3059_v50 = vpack.c.bf16 %v2599_v9, %v2598_v7  ;;  %v12900_v55 = vld [vmem:[#allocation16_spill] sm:$0xff]  ;;  %v2505_v7 = vrot.slane %v12897_v44, 1  ;;  %v2564_v9 = vsel %vm12907_vm3, %v9569_v31, %v9557_v39  ;;  %vm12930_vm3 = vmmov %vm12910_vm2 }
 0x3a9   : > { %vm12901_vm11 = vcmp.eq.s32.totalorder %v12900_v55, 1 }
 0x3aa   : > { %v9640_v60 = vadd.f32 %v9521_v62, %v2184_v0  ;;  %v2378_v42 = vpop.f32.mrf.mxu3  ;;  %v2328_v2 = vpop.f32.mrf.mxu0  ;;  %v3415_v29 = vsel %vm12901_vm11, %v12899_v4, %v12898_v40  ;;  %v12902_v0 = vld [vmem:[#allocation226_spill] sm:$0xff]  ;;  %v2542_v28 = vsel %vm1488_vm8, %v2504_v49, %v2505_v7 }
 0x3ab   : > { %v9651_v1 = vadd.f32 %v2328_v2, %v9461_v16  ;;  %v12904_v16 = vld [vmem:[#allocation35_spill] sm:$0xff]  ;;  %v2565_v2 = vsel %vm12908_vm4, %v9565_v18, %v9561_v30  ;;  %v2841_v30 = vpack.c.bf16 %v12857_v63, %v12839_v10  ;;  %v12913_v18 = vld [vmem:[#allocation60_spill] sm:$0xff]  ;;  %v2442_v10 = vrot.slane %v12906_v24, 7  ;;  %vm12931_vm4 = vmmov %vm12911_vm0 }
 0x3ac   : > { %5173 = vmatmul.msk.bf16.gmra.mxu2 %vm12895_vm15, %v2840_v15  ;;  %v2027_v59 = vpop.f32.mrf.mxu1  ;;  %5207 = vmatmul.msk.bf16.gmra.mxu3 %vm12896_vm7, %v3059_v50  ;;  %v12903_v15 = vld [vmem:[#allocation157_spill] sm:$0xff]  ;;  %vm12905_vm10 = vcmp.eq.s32.totalorder %v12904_v16, 1  ;;  %v2624_v4 = vpack.c.bf16 %v2565_v2, %v2564_v9  ;;  %vm12914_vm12 = vcmp.eq.s32.totalorder %v12913_v18, 1  ;;  %v12919_v63 = vld [vmem:[#allocation23_spill] sm:$0xff]  ;;  %v12920_v2 = vld [vmem:[#allocation20_spill] sm:$0xff]  ;;  %vm12923_vm15 = vcmp.eq.s32.totalorder %v12841_v26, 1 }
 0x3ad   : > { %v3416_v25 = vsel %vm12905_vm10, %v12903_v15, %v12902_v0  ;;  %v2478_v0 = vsel %vm12910_vm2, %v2440_v21, %v2441_v22  ;;  %v2443_v9 = vrot.slane %v12919_v63, 7  ;;  %vm12921_vm9 = vcmp.eq.s32.totalorder %v12920_v2, 1  ;;  %v12925_v18 = vld [vmem:[#allocation225_spill] sm:$0xff]  ;;  %vm12929_vm10 = vmmov %vm12910_vm2 }
 0x3ae   : > { %vm12924_vm7 = vcmp.eq.s32.totalorder %v12843_v54, 1  ;;  %v2477_v26 = vsel %vm12930_vm3, %v2441_v22, %v2442_v10  ;;  %v12936_v22 = vld [vmem:[#allocation63_spill] sm:$0xff] }
 0x3af   : > { %v2186_v62 = vpop.f32.mrf.mxu2 }
 0x3b0   : > { %v2187_v46 = vadd.f32 %v2186_v62, %v2025_v58  ;;  %v3471_v62 = vpack.c.bf16 %v3416_v25, %v3415_v29 }
 0x3b2   : > { %v9655_v8 = vadd.f32 %v9541_v13, %v2187_v46  ;;  %v2381_v58 = vpop.f32.mrf.mxu3  ;;  %v2506_v13 = vrot.slane %v12906_v24, 1  ;;  %v2479_v46 = vsel %vm12909_vm13, %v2439_v12, %v2440_v21  ;;  %v12915_v12 = vld [vmem:[#allocation59_spill] sm:$0xff]  ;;  %vm12932_vm13 = vmmov %vm12911_vm0 }
 0x3b3   : > { %v2600_v31 = vsel %vm12914_vm12, %v2479_v46, %v2542_v28  ;;  %vm12916_vm5 = vcmp.eq.s32.totalorder %v12915_v12, 1  ;;  %v12927_v12 = vld [vmem:[#allocation21_spill] sm:$0xff]  ;;  %vm12939_vm12 = vmmov %vm12918_vm1 }
 0x3b4   : > { %v2030_v50 = vpop.f32.mrf.mxu1  ;;  %v2541_v15 = vsel %vm1488_vm8, %v2505_v7, %v2506_v13  ;;  %vm12928_vm11 = vcmp.eq.s32.totalorder %v12927_v12, 1 }
 0x3b5   : > { %5242 = vmatmul.msk.bf16.gmra.mxu0 %vm12911_vm0, %v3471_v62  ;;  %v2601_v21 = vsel %vm12916_vm5, %v2478_v0, %v2541_v15  ;;  %v3418_v62 = vsel %vm12921_vm9, %v8669_v20, %v12624_v43  ;;  %v9722_v43 = vsel %vm12929_vm10, %v2442_v10, %v2443_v9  ;;  %vm12937_vm0 = vcmp.eq.s32.totalorder %v12936_v22, 1  ;;  %vm12956_vm10 = vmmov %vm12931_vm4 }
 0x3b6   : > { %v3060_v49 = vpack.c.bf16 %v2601_v21, %v2600_v31  ;;  %v12926_v31 = vld [vmem:[#allocation168_spill] sm:$0xff]  ;;  %vm12952_vm9 = vcmp.eq.s32.totalorder %v12862_v3, 1 }
 0x3b7   : > { %v2188_v40 = vpop.f32.mrf.mxu2  ;;  %5142 = vmatmul.msk.bf16.gmra.mxu1 %vm12912_vm6, %v2624_v4  ;;  %v2507_v4 = vrot.slane %v12919_v63, 1  ;;  %v3417_v21 = vsel %vm12928_vm11, %v12926_v31, %v12925_v18  ;;  %vm12938_vm6 = vmmov %vm12918_vm1 }
 0x3b8   : > { %v2189_v39 = vadd.f32 %v2188_v40, %v2027_v59  ;;  %v3472_v20 = vpack.c.bf16 %v3418_v62, %v3417_v21  ;;  %v12934_v62 = vld [vmem:[#allocation67_spill] sm:$0xff]  ;;  %v12942_v21 = vld [vmem:[#allocation188_spill] sm:$0xff]  ;;  %vm12955_vm11 = vmmov %vm12931_vm4 }
 0x3b9   : > { %vm12935_vm2 = vcmp.eq.s32.totalorder %v12934_v62, 1  ;;  %v12947_v62 = vld [vmem:[#allocation219_spill] sm:$0xff] }
 0x3ba   : > { %v9688_v61 = vadd.f32 %v9586_v36, %v2189_v39  ;;  %v2383_v29 = vpop.f32.mrf.mxu3  ;;  %v12922_v39 = vld [vmem:[#allocation32_spill] sm:$0xff] }
 0x3bc   : > { %5174 = vmatmul.msk.bf16.gmra.mxu2 %vm12917_vm14, %v2841_v30  ;;  %v2032_v59 = vpop.f32.mrf.mxu1  ;;  %5208 = vmatmul.msk.bf16.gmra.mxu3 %vm12918_vm1, %v3060_v49  ;;  %v2566_v30 = vsel %vm12923_vm15, %v2544_v56, %v2481_v41  ;;  %v2842_v56 = vpack.c.bf16 %v12878_v35, %v12864_v32  ;;  %v2444_v32 = vrot.slane %v12922_v39, 7  ;;  %v12941_v35 = vld [vmem:[#allocation121_spill] sm:$0xff]  ;;  %vm12951_vm1 = vcmp.eq.s32.totalorder %v12859_v6, 1  ;;  %vm12953_vm15 = vmmov %vm12930_vm3 }
 0x3bd   : > { %v2445_v31 = vrot.slane %v12941_v35, 7 }
 0x3bf   : > { %v2191_v25 = vpop.f32.mrf.mxu2 }
 0x3c0   : > { %v2192_v7 = vadd.f32 %v2191_v25, %v2030_v50  ;;  %v2508_v50 = vrot.slane %v12922_v39, 1 }
 0x3c2   : > { %v9699_v36 = vadd.f32 %v9612_v27, %v2192_v7  ;;  %v9707_v40 = vpop.f32.mrf.mxu3  ;;  %v2567_v27 = vsel %vm12924_vm7, %v9629_v17, %v2480_v37  ;;  %v2539_v54 = vsel %vm1488_vm8, %v2507_v4, %v2508_v50  ;;  %v2540_v17 = vsel %vm1488_vm8, %v2506_v13, %v2507_v4  ;;  %vm12954_vm7 = vmmov %vm12930_vm3 }
 0x3c3   : > { %v2625_v7 = vpack.c.bf16 %v2567_v27, %v2566_v30  ;;  %v2602_v30 = vsel %vm12935_vm2, %v2477_v26, %v2540_v17  ;;  %v2603_v10 = vsel %vm12937_vm0, %v9722_v43, %v2539_v54  ;;  %vm12963_vm2 = vmmov %vm12938_vm6 }
 0x3c4   : > { %v2035_v49 = vpop.f32.mrf.mxu1  ;;  %v3061_v13 = vpack.c.bf16 %v2603_v10, %v2602_v30 }
 0x3c5   : > { %5243 = vmatmul.msk.bf16.gmra.mxu0 %vm12931_vm4, %v3472_v20  ;;  %v12943_v20 = vld [vmem:[#allocation187_spill] sm:$0xff] }
 0x3c7   : > { %v2193_v25 = vpop.f32.mrf.mxu2  ;;  %5143 = vmatmul.msk.bf16.gmra.mxu1 %vm12932_vm13, %v2625_v7  ;;  %vm12962_vm13 = vmmov %vm12938_vm6 }
 0x3c8   : > { %v2194_v37 = vadd.f32 %v2193_v25, %v2032_v59  ;;  %v12944_v25 = vld [vmem:[#allocation22_spill] sm:$0xff] }
 0x3c9   : > { %vm12945_vm5 = vcmp.eq.s32.totalorder %v12944_v25, 1 }
 0x3ca   : > { %v9732_v41 = vadd.f32 %v2378_v42, %v2194_v37  ;;  %v9741_v27 = vpop.f32.mrf.mxu3  ;;  %v3419_v7 = vsel %vm12945_vm5, %v12943_v20, %v12942_v21  ;;  %v12946_v37 = vld [vmem:[#allocation229_spill] sm:$0xff]  ;;  %v9767_v21 = vsel %vm12953_vm15, %v2444_v32, %v2445_v31  ;;  %vm12977_vm5 = vcmp.eq.s32.totalorder %v12883_v33, 1  ;;  %vm12981_vm15 = vmmov %vm12963_vm2 }
 0x3cc   : > { %12933 = vst [vmem:[#allocation81_spill] sm:$0xff] %v9732_v41  ;;  %5175 = vmatmul.msk.bf16.gmra.mxu2 %vm12938_vm6, %v2842_v56  ;;  %v2037_v59 = vpop.f32.mrf.mxu1  ;;  %5209 = vmatmul.msk.bf16.gmra.mxu3 %vm12939_vm12, %v3061_v13  ;;  %v12948_v56 = vld [vmem:[#allocation26_spill] sm:$0xff]  ;;  %v2568_v13 = vsel %vm12951_vm1, %v2542_v28, %v2479_v46  ;;  %vm12976_vm12 = vcmp.eq.s32.totalorder %v12880_v52, 1  ;;  %vm12979_vm1 = vmmov %vm12954_vm7 }
 0x3cd   : > { %vm12949_vm14 = vcmp.eq.s32.totalorder %v12948_v56, 1 }
 0x3ce   : > { %v3420_v30 = vsel %vm12949_vm14, %v12947_v62, %v12946_v37  ;;  %v9771_v62 = vsel %vm12954_vm7, %v2443_v9, %v2444_v32  ;;  %v12960_v9 = vld [vmem:[#allocation66_spill] sm:$0xff]  ;;  %vm12978_vm14 = vmmov %vm12954_vm7 }
 0x3cf   : > { %v2196_v4 = vpop.f32.mrf.mxu2  ;;  %vm12961_vm4 = vcmp.eq.s32.totalorder %v12960_v9, 1  ;;  %v12973_v9 = vld [vmem:[#allocation27_spill] sm:$0xff] }
 0x3d0   : > { %v2197_v18 = vadd.f32 %v2196_v4, %v2035_v49  ;;  %v2509_v49 = vrot.slane %v12941_v35, 1  ;;  %v2569_v4 = vsel %vm12952_vm9, %v2541_v15, %v2478_v0  ;;  %v2843_v0 = vpack.c.bf16 %v12897_v44, %v12877_v19  ;;  %v12958_v15 = vld [vmem:[#allocation70_spill] sm:$0xff]  ;;  %vm12980_vm9 = vmmov %vm12963_vm2 }
 0x3d1   : > { %v2626_v37 = vpack.c.bf16 %v2569_v4, %v2568_v13  ;;  %vm12959_vm3 = vcmp.eq.s32.totalorder %v12958_v15, 1  ;;  %v12966_v4 = vld [vmem:[#allocation123_spill] sm:$0xff]  ;;  %v12971_v15 = vld [vmem:[#allocation233_spill] sm:$0xff]  ;;  %vm12974_vm6 = vcmp.eq.s32.totalorder %v12973_v9, 1 }
 0x3d2   : > { %v9745_v42 = vadd.f32 %v2381_v58, %v2197_v18  ;;  %v9757_v22 = vpop.f32.mrf.mxu3  ;;  %v12950_v58 = vld [vmem:[#allocation122_spill] sm:$0xff]  ;;  %v2538_v6 = vsel %vm1488_vm8, %v2508_v50, %v2509_v49 }
 0x3d3   : > { %v2510_v10 = vrot.slane %v12950_v58, 1  ;;  %v2604_v28 = vsel %vm12959_vm3, %v9771_v62, %v2538_v6  ;;  %v2446_v13 = vrot.slane %v12950_v58, 7  ;;  %vm12988_vm3 = vmmov %vm12963_vm2 }
 0x3d4   : > { %12940 = vst [vmem:[#allocation141_spill] sm:$0xff] %v9745_v42  ;;  %v2040_v18 = vpop.f32.mrf.mxu1  ;;  %v3473_v42 = vpack.c.bf16 %v3420_v30, %v3419_v7  ;;  %v9799_v7 = vpop.f32.mrf.mxu0 }
 0x3d5   : > { %v9775_v41 = vsel %vm1488_vm8, %v2509_v49, %v2510_v10  ;;  %12964 = vst [vmem:[#allocation34_spill] sm:$0xff] %v9799_v7  ;;  %v5389_v49 = vld [vmem:[%s11202_s5 + $0xe8] sm:$0xff]  ;;  %v2571_v7 = vsel %vm12977_vm5, %v2539_v54, %v9722_v43  ;;  %v2844_v54 = vpack.c.bf16 %v12919_v63, %v12906_v24  ;;  %vm13004_vm5 = vmmov %vm12988_vm3 }
 0x3d6   : > { %5244 = vmatmul.msk.bf16.gmra.mxu0 %vm12955_vm11, %v3473_v42  ;;  %v2605_v32 = vsel %vm12961_vm4, %v9767_v21, %v9775_v41  ;;  %3782 = vmatpush.bf16.msra.mxu1 %v5389_v49 }
 0x3d7   : > { %v2198_v20 = vpop.f32.mrf.mxu2  ;;  %5144 = vmatmul.msk.bf16.gmra.mxu1 %vm12956_vm10, %v2626_v37  ;;  %v12967_v37 = vld [vmem:[#allocation218_spill] sm:$0xff]  ;;  %vm12987_vm10 = vmmov %vm12963_vm2 }
 0x3d8   : > { %v2199_v3 = vadd.f32 %v2198_v20, %v2037_v59  ;;  %v3062_v59 = vpack.c.bf16 %v2605_v32, %v2604_v28  ;;  %v2447_v20 = vrot.slane %v12966_v4, 7  ;;  %v12972_v28 = vld [vmem:[#allocation234_spill] sm:$0xff] }
 0x3d9   : > { %v3422_v32 = vsel %vm12974_vm6, %v12972_v28, %v12971_v15  ;;  %vm13002_vm6 = vmmov %vm12979_vm1 }
 0x3da   : > { %v9781_v46 = vadd.f32 %v2383_v29, %v2199_v3  ;;  %v9792_v50 = vpop.f32.mrf.mxu3  ;;  %v5393_v29 = vld [vmem:[%s11202_s5 + $0x108] sm:$0xff]  ;;  %v12968_v3 = vld [vmem:[#allocation235_spill] sm:$0xff] }
 0x3db   : > { %3999 = vmatpush.bf16.msra.mxu2 %v5393_v29  ;;  %v2511_v29 = vrot.slane %v12966_v4, 1 }
 0x3dc   : > { %12957 = vst [vmem:[#allocation140_spill] sm:$0xff] %v9781_v46  ;;  %5176 = vmatmul.msk.bf16.gmra.mxu2 %vm12962_vm13, %v2843_v0  ;;  %v2042_v42 = vpop.f32.mrf.mxu1  ;;  %5210 = vmatmul.msk.bf16.gmra.mxu3 %vm12963_vm2, %v3062_v59  ;;  %v12969_v0 = vld [vmem:[#allocation28_spill] sm:$0xff]  ;;  %v12975_v59 = vld [vmem:[#allocation125_spill] sm:$0xff]  ;;  %v2473_v46 = vsel %vm12979_vm1, %v2445_v31, %v2446_v13  ;;  %vm12996_vm13 = vcmp.eq.s32.totalorder %v12900_v55, 1  ;;  %vm12997_vm2 = vcmp.eq.s32.totalorder %v12904_v16, 1 }
 0x3dd   : > { %vm12970_vm0 = vcmp.eq.s32.totalorder %v12969_v0, 1  ;;  %v2448_v63 = vrot.slane %v12975_v59, 7 }
 0x3df   : > { %v2201_v19 = vpop.f32.mrf.mxu2 }
 0x3e0   : > { %v2202_v44 = vadd.f32 %v2201_v19, %v2040_v18  ;;  %v3421_v18 = vsel %vm12970_vm0, %v12968_v3, %v12967_v37  ;;  %v2512_v19 = vrot.slane %v12975_v59, 1 }
 0x3e1   : > { %v3474_v3 = vpack.c.bf16 %v3422_v32, %v3421_v18 }
 0x3e2   : > { %v9802_v30 = vadd.f32 %v9707_v40, %v2202_v44  ;;  %v9817_v40 = vpop.f32.mrf.mxu3  ;;  %v2570_v44 = vsel %vm12976_vm12, %v2540_v17, %v2477_v26  ;;  %v2535_v52 = vsel %vm1488_vm8, %v2511_v29, %v2512_v19  ;;  %v2536_v26 = vsel %vm1488_vm8, %v2510_v10, %v2511_v29  ;;  %v12982_v17 = vld [vmem:[#allocation69_spill] sm:$0xff]  ;;  %v9850_v10 = vpop.f32.mrf.mxu0  ;;  %v12990_v29 = vld [vmem:[#allocation126_spill] sm:$0xff]  ;;  %vm13003_vm12 = vmmov %vm12979_vm1 }
 0x3e3   : > { %v2627_v28 = vpack.c.bf16 %v2571_v7, %v2570_v44  ;;  %vm12983_vm7 = vcmp.eq.s32.totalorder %v12982_v17, 1  ;;  %v12984_v7 = vld [vmem:[#allocation68_spill] sm:$0xff]  ;;  %12986 = vst [vmem:[#allocation33_spill] sm:$0xff] %v9850_v10  ;;  %v2449_v44 = vrot.slane %v12990_v29, 7  ;;  %v2471_v16 = vsel %vm13003_vm12, %v2447_v20, %v2448_v63 }
 0x3e4   : > { %12965 = vst [vmem:[#allocation165_spill] sm:$0xff] %v9802_v30  ;;  %v2045_v37 = vpop.f32.mrf.mxu1  ;;  %v9828_v30 = vsel %vm12978_vm14, %v2446_v13, %v2447_v20  ;;  %v2606_v31 = vsel %vm12983_vm7, %v2473_v46, %v2536_v26  ;;  %vm12985_vm11 = vcmp.eq.s32.totalorder %v12984_v7, 1  ;;  %v2573_v7 = vsel %vm12997_vm2, %v9775_v41, %v9767_v21  ;;  %vm13005_vm14 = vmmov %vm12988_vm3 }
 0x3e5   : > { %v2607_v49 = vsel %vm12985_vm11, %v9828_v30, %v2535_v52  ;;  %vm13011_vm7 = vmmov %vm12988_vm3  ;;  %vm13014_vm11 = vcmp.eq.s32.totalorder %v12927_v12, 1 }
 0x3e6   : > { %5245 = vmatmul.msk.bf16.gmra.mxu0 %vm12980_vm9, %v3474_v3  ;;  %v12991_v3 = vld [vmem:[#allocation222_spill] sm:$0xff]  ;;  %vm13022_vm2 = vmmov %vm13004_vm5 }
 0x3e7   : > { %v2203_v15 = vpop.f32.mrf.mxu2  ;;  %5145 = vmatmul.msk.bf16.gmra.mxu1 %vm12981_vm15, %v2627_v28  ;;  %v12993_v28 = vld [vmem:[#allocation46_spill] sm:$0xff]  ;;  %vm13010_vm15 = vmmov %vm12988_vm3 }
 0x3e8   : > { %v2204_v33 = vadd.f32 %v2203_v15, %v2042_v42  ;;  %v3063_v42 = vpack.c.bf16 %v2607_v49, %v2606_v31  ;;  %v12992_v15 = vld [vmem:[#allocation240_spill] sm:$0xff]  ;;  %vm12994_vm4 = vcmp.eq.s32.totalorder %v12993_v28, 1  ;;  %v12995_v31 = vld [vmem:[#allocation127_spill] sm:$0xff]  ;;  %vm13027_vm12 = vmmov %vm13022_vm2 }
 0x3e9   : > { %v12998_v49 = vld [vmem:[#allocation84_spill] sm:$0xff] }
 0x3ea   : > { %v9839_v43 = vadd.f32 %v9741_v27, %v2204_v33  ;;  %v9848_v13 = vpop.f32.mrf.mxu3  ;;  %v3424_v33 = vsel %vm12994_vm4, %v12992_v15, %v12991_v3  ;;  %v9878_v3 = vpop.f32.mrf.mxu0 }
 0x3ec   : > { %5177 = vmatmul.msk.bf16.gmra.mxu2 %vm12987_vm10, %v2844_v54  ;;  %v2047_v18 = vpop.f32.mrf.mxu1  ;;  %5211 = vmatmul.msk.bf16.gmra.mxu3 %vm12988_vm3, %v3063_v42  ;;  %v2513_v54 = vrot.slane %v12990_v29, 1  ;;  %v12999_v42 = vld [vmem:[#allocation224_spill] sm:$0xff]  ;;  %vm13015_vm10 = vcmp.eq.s32.totalorder %v12920_v2, 1  ;;  %vm13016_vm3 = vmmov %vm13002_vm6 }
 0x3ed   : > { %vm13017_vm4 = vmmov %vm13016_vm3  ;;  %v13018_v2 = vld [vmem:[#allocation232_spill] sm:$0xff] }
 0x3ee   : > { %v2534_v21 = vsel %vm1488_vm8, %v2512_v19, %v2513_v54 }
 0x3ef   : > { %v2206_v27 = vpop.f32.mrf.mxu2 }
 0x3f0   : > { %v2207_v32 = vadd.f32 %v2206_v27, %v2045_v37  ;;  %v2514_v37 = vrot.slane %v12995_v31, 1  ;;  %v13000_v27 = vld [vmem:[#allocation30_spill] sm:$0xff] }
 0x3f1   : > { %vm13001_vm0 = vcmp.eq.s32.totalorder %v13000_v27, 1 }
 0x3f2   : > { %v9855_v24 = vadd.f32 %v9757_v22, %v2207_v32  ;;  %v9863_v17 = vpop.f32.mrf.mxu3  ;;  %v2572_v22 = vsel %vm12996_vm13, %v2538_v6, %v9771_v62  ;;  %v3423_v32 = vsel %vm13001_vm0, %v12999_v42, %v12998_v49  ;;  %v2533_v41 = vsel %vm1488_vm8, %v2513_v54, %v2514_v37  ;;  %vm13021_vm13 = vmmov %vm13004_vm5 }
 0x3f3   : > { %v3475_v10 = vpack.c.bf16 %v3424_v33, %v3423_v32  ;;  %v2628_v6 = vpack.c.bf16 %v2573_v7, %v2572_v22  ;;  %v13006_v22 = vld [vmem:[#allocation71_spill] sm:$0xff]  ;;  %v9902_v32 = vpop.f32.mrf.mxu0 }
 0x3f4   : > { %12989 = vst [vmem:[#allocation191_spill] sm:$0xff] %v9855_v24  ;;  %v2725_v15 = vpop.f32.mrf.mxu1  ;;  %v2470_v24 = vsel %vm13002_vm6, %v2448_v63, %v2449_v44  ;;  %vm13007_vm1 = vcmp.eq.s32.totalorder %v13006_v22, 1  ;;  %v13008_v63 = vld [vmem:[#allocation75_spill] sm:$0xff] }
 0x3f5   : > { %v2805_v55 = vadd.f32 %v2725_v15, %v9488_v34  ;;  %v2845_v34 = vpack.c.bf16 %v12941_v35, %v12922_v39  ;;  %v2608_v20 = vsel %vm13007_vm1, %v2471_v16, %v2534_v21  ;;  %vm13009_vm9 = vcmp.eq.s32.totalorder %v13008_v63, 1  ;;  %v13012_v15 = vld [vmem:[#allocation128_spill] sm:$0xff] }
 0x3f6   : > { %5246 = vmatmul.msk.bf16.gmra.mxu0 %vm13004_vm5, %v3475_v10  ;;  %v2609_v7 = vsel %vm13009_vm9, %v2470_v24, %v2533_v41  ;;  %v2450_v35 = vrot.slane %v12995_v31, 7  ;;  %vm13028_vm5 = vmmov %vm13022_vm2  ;;  %vm13031_vm1 = vcmp.eq.s32.totalorder %v12948_v56, 1 }
 0x3f7   : > { %v2208_v62 = vpop.f32.mrf.mxu2  ;;  %5146 = vmatmul.msk.bf16.gmra.mxu1 %vm13005_vm14, %v2628_v6  ;;  %v3064_v19 = vpack.c.bf16 %v2609_v7, %v2608_v20  ;;  %vm13030_vm14 = vcmp.eq.s32.totalorder %v12944_v25, 1  ;;  %vm13033_vm9 = vmmov %vm13016_vm3 }
 0x3f8   : > { %v2209_v49 = vadd.f32 %v2208_v62, %v2047_v18  ;;  %v2451_v62 = vrot.slane %v13012_v15, 7 }
 0x3fa   : > { %v9892_v33 = vadd.f32 %v9792_v50, %v2209_v49  ;;  %v3166_v42 = vpop.f32.mrf.mxu3  ;;  %v2515_v49 = vrot.slane %v13012_v15, 1 }
 0x3fc   : > { %5178 = vmatmul.msk.bf16.gmra.mxu2 %vm13010_vm15, %v2845_v34  ;;  %v2727_v18 = vpop.f32.mrf.mxu1  ;;  %5212 = vmatmul.msk.bf16.gmra.mxu3 %vm13011_vm7, %v3064_v19  ;;  %v13013_v34 = vld [vmem:[#allocation129_spill] sm:$0xff]  ;;  %v2532_v12 = vsel %vm1488_vm8, %v2514_v37, %v2515_v49  ;;  %vm13034_vm15 = vmmov %vm13016_vm3 }
 0x3fd   : > { %v2806_v10 = vadd.f32 %v2727_v18, %v9525_v14  ;;  %v2516_v22 = vrot.slane %v13013_v34, 1  ;;  %v2574_v14 = vsel %vm13014_vm11, %v2536_v26, %v2473_v46  ;;  %v2469_v18 = vsel %vm13017_vm4, %v2449_v44, %v2450_v35  ;;  %v13025_v37 = vld [vmem:[#allocation73_spill] sm:$0xff]  ;;  %vm13040_vm7 = vmmov %vm13022_vm2 }
 0x3fe   : > { %v2846_v44 = vpack.c.bf16 %v12966_v4, %v12950_v58  ;;  %vm13026_vm6 = vcmp.eq.s32.totalorder %v13025_v37, 1  ;;  %v2452_v58 = vrot.slane %v13013_v34, 7  ;;  %v13029_v4 = vld [vmem:[#allocation130_spill] sm:$0xff]  ;;  %vm13041_vm11 = vmmov %vm13022_vm2 }
 0x3ff   : > { %v2942_v54 = vpop.f32.mrf.mxu2  ;;  %vm13047_vm4 = vmmov %vm13022_vm2 }
 0x400   : > { %v3022_v50 = vadd.f32 %v2942_v54, %v2805_v55  ;;  %v2575_v55 = vsel %vm13015_vm10, %v2535_v52, %v9828_v30  ;;  %v2531_v54 = vsel %vm1488_vm8, %v2515_v49, %v2516_v22  ;;  %v13019_v30 = vld [vmem:[#allocation86_spill] sm:$0xff]  ;;  %v2467_v25 = vsel %vm13034_vm15, %v2451_v62, %v2452_v58 }
 0x401   : > { %v2629_v19 = vpack.c.bf16 %v2575_v55, %v2574_v14  ;;  %v13020_v52 = vpack.c.bf16 %v13018_v2, %v13019_v30  ;;  %v2576_v2 = vsel %vm13030_vm14, %v2534_v21, %v2471_v16  ;;  %v2577_v30 = vsel %vm13031_vm1, %v2533_v41, %v2470_v24  ;;  %v13035_v16 = vld [vmem:[#allocation102_spill] sm:$0xff] }
 0x402   : > { %v9906_v39 = vadd.f32 %v9817_v40, %v3022_v50  ;;  %v3169_v6 = vpop.f32.mrf.mxu3  ;;  %v2468_v40 = vsel %vm13016_vm3, %v2450_v35, %v2451_v62  ;;  %v13023_v50 = vld [vmem:[#allocation74_spill] sm:$0xff]  ;;  %v2630_v37 = vpack.c.bf16 %v2577_v30, %v2576_v2  ;;  %v13036_v21 = vrot.slane %v13035_v16, 1 }
 0x403   : > { %vm13024_vm0 = vcmp.eq.s32.totalorder %v13023_v50, 1  ;;  %v2847_v62 = vpack.c.bf16 %v12990_v29, %v12975_v59  ;;  %vm13062_vm14 = vcmp.eq.s32.totalorder %v13000_v27, 1  ;;  %vm13063_vm1 = vcmp.eq.s32.totalorder %v12993_v28, 1 }
 0x404   : > { %v2730_v20 = vpop.f32.mrf.mxu1  ;;  %v2610_v35 = vsel %vm13024_vm0, %v2469_v18, %v2532_v12  ;;  %vm13054_vm0 = vmmov %vm13047_vm4 }
 0x405   : > { %v2807_v63 = vadd.f32 %v2730_v20, %v9553_v38  ;;  %v9931_v38 = vpop.f32.mrf.mxu0  ;;  %vm13066_vm15 = vmmov %vm13054_vm0 }
 0x406   : > { %5247 = vmatmul.msk.bf16.gmra.mxu0 %vm13021_vm13, %v13020_v52  ;;  %vm13048_vm13 = vcmp.eq.s32.totalorder %v12969_v0, 1 }
 0x407   : > { %v2944_v7 = vpop.f32.mrf.mxu2  ;;  %5147 = vmatmul.msk.bf16.gmra.mxu1 %vm13022_vm2, %v2629_v19 }
 0x408   : > { %v3023_v46 = vadd.f32 %v2944_v7, %v2806_v10  ;;  %v2611_v10 = vsel %vm13026_vm6, %v2468_v40, %v2531_v54  ;;  %vm13055_vm6 = vmmov %vm13054_vm0 }
 0x409   : > { %v3065_v14 = vpack.c.bf16 %v2611_v10, %v2610_v35  ;;  %v13037_v10 = vld [vmem:[#allocation236_spill] sm:$0xff] }
 0x40a   : > { %v9934_v26 = vadd.f32 %v9848_v13, %v3023_v46  ;;  %v3171_v49 = vpop.f32.mrf.mxu3  ;;  %v2517_v46 = vrot.slane %v13029_v4, 1 }
 0x40c   : > { %5179 = vmatmul.msk.bf16.gmra.mxu2 %vm13027_vm12, %v2846_v44  ;;  %v2732_v55 = vpop.f32.mrf.mxu1  ;;  %5213 = vmatmul.msk.bf16.gmra.mxu3 %vm13028_vm5, %v3065_v14  ;;  %v2529_v56 = vsel %vm1488_vm8, %v2517_v46, %v13036_v21  ;;  %v2530_v24 = vsel %vm1488_vm8, %v2516_v22, %v2517_v46  ;;  %v13038_v14 = vld [vmem:[#allocation211_spill] sm:$0xff]  ;;  %vm13046_vm8 = vmmov %vm13022_vm2  ;;  %v5392_v22 = vld [vmem:[%s11202_s5 + $0x100] sm:$0xff]  ;;  %vm13049_vm2 = vcmp.eq.s32.totalorder %v12973_v9, 1  ;;  %v2848_v9 = vpack.c.bf16 %v13012_v15, %v12995_v31 }
 0x40d   : > { %v2808_v20 = vadd.f32 %v2732_v55, %v9593_v11  ;;  %v9954_v52 = vpop.f32.mrf.mxu0  ;;  %v13039_v55 = vpack.c.bf16 %v13037_v10, %v13038_v14  ;;  %4000 = vmatpush.bf16.msra.mxu2 %v5392_v22  ;;  %vm13056_vm12 = vmmov %vm13054_vm0  ;;  %v13059_v22 = vld [vmem:[#allocation238_spill] sm:$0xff] }
 0x40e   : > { %vm13061_vm5 = vmmov %vm13054_vm0 }
 0x40f   : > { %v2947_v7 = vpop.f32.mrf.mxu2 }
 0x410   : > { %v3024_v19 = vadd.f32 %v2947_v7, %v2807_v63  ;;  %v13032_v63 = vrot.slane %v13029_v4, 7  ;;  %v13042_v7 = vld [vmem:[#allocation77_spill] sm:$0xff] }
 0x411   : > { %vm13043_vm10 = vcmp.eq.s32.totalorder %v13042_v7, 1 }
 0x412   : > { %v9946_v13 = vadd.f32 %v9863_v17, %v3024_v19  ;;  %v3174_v11 = vpop.f32.mrf.mxu3  ;;  %v2466_v17 = vsel %vm13033_vm9, %v2452_v58, %v13032_v63  ;;  %v2612_v19 = vsel %vm13043_vm10, %v2467_v25, %v2530_v24  ;;  %v13044_v58 = vld [vmem:[#allocation76_spill] sm:$0xff]  ;;  %v5388_v63 = vld [vmem:[%s11202_s5 + $0xe0] sm:$0xff]  ;;  %vm13065_vm9 = vmmov %vm13054_vm0 }
 0x413   : > { %vm13045_vm3 = vcmp.eq.s32.totalorder %v13044_v58, 1  ;;  %3783 = vmatpush.bf16.msra.mxu1 %v5388_v63  ;;  %v2581_v31 = vsel %vm13063_vm1, %v2529_v56, %v2466_v17  ;;  %vm13078_vm10 = vmmov %vm13054_vm0 }
 0x414   : > { %v2735_v44 = vpop.f32.mrf.mxu1  ;;  %v2613_v45 = vsel %vm13045_vm3, %v2466_v17, %v2529_v56  ;;  %vm13083_vm3 = vmmov %vm13054_vm0 }
 0x415   : > { %v2809_v50 = vadd.f32 %v2735_v44, %v9625_v53  ;;  %v9986_v46 = vpop.f32.mrf.mxu0  ;;  %vm13122_vm1 = vmmov %vm13054_vm0 }
 0x416   : > { %5248 = vmatmul.msk.bf16.gmra.mxu0 %vm13040_vm7, %v13039_v55  ;;  %v13051_v55 = vld [vmem:[#allocation72_spill] sm:$0xff]  ;;  %vm13071_vm7 = vmmov %vm13054_vm0 }
 0x417   : > { %v2949_v35 = vpop.f32.mrf.mxu2  ;;  %5148 = vmatmul.msk.bf16.gmra.mxu1 %vm13041_vm11, %v2630_v37  ;;  %v2579_v37 = vsel %vm13049_vm2, %v2531_v54, %v2468_v40  ;;  %v13057_v54 = vld [vmem:[#allocation231_spill] sm:$0xff]  ;;  %vm13076_vm11 = vmmov %vm13054_vm0 }
 0x418   : > { %v3025_v41 = vadd.f32 %v2949_v35, %v2808_v20  ;;  %v3066_v20 = vpack.c.bf16 %v2613_v45, %v2612_v19  ;;  %v2578_v35 = vsel %vm13048_vm13, %v2532_v12, %v2469_v18  ;;  %v13058_v45 = vld [vmem:[#allocation239_spill] sm:$0xff]  ;;  %vm13097_vm13 = vmmov %vm13054_vm0 }
 0x419   : > { %vm13100_vm2 = vmmov %vm13054_vm0 }
 0x41a   : > { %v9974_v53 = vadd.f32 %v3166_v42, %v3025_v41  ;;  %v3176_v29 = vpop.f32.mrf.mxu3 }
 0x41c   : > { %5180 = vmatmul.msk.bf16.gmra.mxu2 %vm13046_vm8, %v2847_v62  ;;  %v2737_v42 = vpop.f32.mrf.mxu1  ;;  %5214 = vmatmul.msk.bf16.gmra.mxu3 %vm13047_vm4, %v3066_v20  ;;  %v13052_v62 = vld [vmem:[#allocation237_spill] sm:$0xff]  ;;  %v13060_v20 = vpack.c.bf16 %v13058_v45, %v13059_v22  ;;  %vm13088_vm8 = vmmov %vm13054_vm0 }
 0x41d   : > { %v2810_v2 = vadd.f32 %v2737_v42, %v9651_v1  ;;  %v13050_v1 = vld [vmem:[#allocation31_spill] sm:$0xff]  ;;  %v10000_v14 = vpop.f32.mrf.mxu0  ;;  %v13053_v7 = vpack.c.bf16 %v13051_v55, %v13052_v62  ;;  %vm13091_vm4 = vmmov %vm13054_vm0 }
 0x41f   : > { %v2952_v59 = vpop.f32.mrf.mxu2 }
 0x420   : > { %v3026_v30 = vadd.f32 %v2952_v59, %v2809_v50  ;;  %v2631_v50 = vpack.c.bf16 %v2579_v37, %v2578_v35  ;;  %v13064_v59 = vld [vmem:[#allocation151_spill] sm:$0xff] }
 0x422   : > { %v9990_v44 = vadd.f32 %v3169_v6, %v3026_v30  ;;  %v3179_v0 = vpop.f32.mrf.mxu3 }
 0x424   : > { %v2740_v21 = vpop.f32.mrf.mxu1 }
 0x425   : > { %v2811_v41 = vadd.f32 %v2740_v21, %v13050_v1  ;;  %v13068_v1 = vld [vmem:[#allocation206_spill] sm:$0xff] }
 0x426   : > { %5249 = vmatmul.msk.bf16.gmra.mxu0 %vm13054_vm0, %v13053_v7  ;;  %v13073_v7 = vld [vmem:[#allocation136_spill] sm:$0xff] }
 0x427   : > { %v2954_v10 = vpop.f32.mrf.mxu2  ;;  %5149 = vmatmul.msk.bf16.gmra.mxu1 %vm13055_vm6, %v2631_v50  ;;  %vm13107_vm6 = vmmov %vm13054_vm0 }
 0x428   : > { %v3027_v6 = vadd.f32 %v2954_v10, %v2810_v2 }
 0x42a   : > { %v10007_v18 = vadd.f32 %v3171_v49, %v3027_v6  ;;  %v10019_v2 = vpop.f32.mrf.mxu3  ;;  %v2580_v49 = vsel %vm13062_vm14, %v2530_v24, %v2467_v25  ;;  %v13067_v24 = vld [vmem:[#allocation162_spill] sm:$0xff]  ;;  %vm13118_vm14 = vmmov %vm13054_vm0 }
 0x42b   : > { %v2632_v35 = vpack.c.bf16 %v2581_v31, %v2580_v49  ;;  %v13072_v6 = vld [vmem:[#allocation38_spill] sm:$0xff]  ;;  %v13081_v49 = vld [vmem:[#allocation205_spill] sm:$0xff] }
 0x42c   : > { %5181 = vmatmul.msk.bf16.gmra.mxu2 %vm13056_vm12, %v2848_v9  ;;  %v2742_v40 = vpop.f32.mrf.mxu1  ;;  %5215 = vmatmul.msk.bf16.gmra.mxu3 %vm13061_vm5, %v13060_v20  ;;  %v13074_v9 = vld [vmem:[#allocation137_spill] sm:$0xff]  ;;  %vm13110_vm12 = vmmov %vm13054_vm0 }
 0x42d   : > { %v2812_v12 = vadd.f32 %v2742_v40, %v13057_v54  ;;  %v13075_v40 = vpack.c.bf16 %v13073_v7, %v13074_v9  ;;  %v13077_v54 = vld [vmem:[#allocation175_spill] sm:$0xff]  ;;  %v13080_v20 = vld [vmem:[#allocation241_spill] sm:$0xff]  ;;  %vm13114_vm5 = vmmov %vm13054_vm0 }
 0x42e   : > { %v13082_v31 = vpack.c.bf16 %v13080_v20, %v13081_v49  ;;  %v13098_v20 = vld [vmem:[#allocation95_spill] sm:$0xff]  ;;  %v13099_v49 = vld [vmem:[#allocation90_spill] sm:$0xff] }
 0x42f   : > { %v2957_v19 = vpop.f32.mrf.mxu2 }
 0x430   : > { %v3028_v58 = vadd.f32 %v2957_v19, %v2811_v41  ;;  %v13069_v41 = vld [vmem:[#allocation209_spill] sm:$0xff] }
 0x431   : > { %v13070_v10 = vpack.c.bf16 %v13068_v1, %v13069_v41  ;;  %v13079_v19 = vld [vmem:[#allocation173_spill] sm:$0xff] }
 0x432   : > { %v10017_v42 = vadd.f32 %v3174_v11, %v3028_v58  ;;  %v2849_v11 = vpack.c.bf16 %v13029_v4, %v13013_v34  ;;  %v3184_v27 = vpop.f32.mrf.mxu3 }
 0x434   : > { %v2745_v15 = vpop.f32.mrf.mxu1 }
 0x435   : > { %v2813_v30 = vadd.f32 %v2745_v15, %v13064_v59 }
 0x437   : > { %v2959_v63 = vpop.f32.mrf.mxu2  ;;  %5150 = vmatmul.msk.bf16.gmra.mxu1 %vm13065_vm9, %v2632_v35  ;;  %vm13127_vm9 = vmmov %vm13054_vm0 }
 0x438   : > { %v3029_v37 = vadd.f32 %v2959_v63, %v2812_v12  ;;  %v2850_v12 = vpack.c.bf16 %v13077_v54, %v13035_v16  ;;  %v13084_v63 = vld [vmem:[#allocation79_spill] sm:$0xff]  ;;  %v10059_v16 = vpop.f32.mrf.mxu0  ;;  %v13093_v54 = vld [vmem:[#allocation37_spill] sm:$0xff] }
 0x43a   : > { %v10027_v21 = vadd.f32 %v3176_v29, %v3029_v37  ;;  %v10040_v34 = vpop.f32.mrf.mxu3 }
 0x43c   : > { %5182 = vmatmul.msk.bf16.gmra.mxu2 %vm13066_vm15, %v2849_v11  ;;  %v2747_v25 = vpop.f32.mrf.mxu1  ;;  %5216 = vmatmul.msk.bf16.gmra.mxu3 %vm13071_vm7, %v13070_v10  ;;  %v13092_v10 = vld [vmem:[#allocation39_spill] sm:$0xff]  ;;  %vm13131_vm15 = vmmov %vm13054_vm0 }
 0x43d   : > { %v2814_v28 = vadd.f32 %v2747_v25, %v13067_v24  ;;  %v13085_v25 = vld [vmem:[#allocation176_spill] sm:$0xff]  ;;  %v13086_v24 = vld [vmem:[#allocation210_spill] sm:$0xff]  ;;  %vm13136_vm7 = vmmov %vm13054_vm0 }
 0x43f   : > { %v2962_v17 = vpop.f32.mrf.mxu2 }
 0x440   : > { %v3030_v56 = vadd.f32 %v2962_v17, %v2813_v30  ;;  %v13089_v17 = vld [vmem:[#allocation104_spill] sm:$0xff] }
 0x442   : > { %v10037_v50 = vadd.f32 %v3179_v0, %v3030_v56  ;;  %v3189_v15 = vpop.f32.mrf.mxu3  ;;  %v13090_v56 = vld [vmem:[#allocation106_spill] sm:$0xff] }
 0x443   : > { %v2851_v1 = vpack.c.bf16 %v13090_v56, %v13089_v17 }
 0x444   : > { %v2750_v29 = vpop.f32.mrf.mxu1 }
 0x445   : > { %v2815_v55 = vadd.f32 %v2750_v29, %v13072_v6 }
 0x447   : > { %v2964_v62 = vpop.f32.mrf.mxu2  ;;  %5151 = vmatmul.msk.bf16.gmra.mxu1 %vm13076_vm11, %v13075_v40  ;;  %vm13140_vm11 = vmmov %vm13054_vm0 }
 0x448   : > { %v10042_v4 = vadd.f32 %v2964_v62, %v2814_v28  ;;  %v13087_v28 = vpack.c.bf16 %v13085_v25, %v13086_v24  ;;  %v10073_v62 = vpop.f32.mrf.mxu0 }
 0x44a   : > { %v10069_v41 = vpop.f32.mrf.mxu3 }
 0x44c   : > { %5183 = vmatmul.msk.bf16.gmra.mxu2 %vm13078_vm10, %v2850_v12  ;;  %v2752_v0 = vpop.f32.mrf.mxu1  ;;  %5217 = vmatmul.msk.bf16.gmra.mxu3 %vm13083_vm3, %v13082_v31  ;;  %v2852_v31 = vpack.c.bf16 %v13099_v49, %v13098_v20  ;;  %v13108_v49 = vld [vmem:[#allocation98_spill] sm:$0xff]  ;;  %vm13148_vm10 = vmmov %vm13054_vm0 }
 0x44d   : > { %v2816_v58 = vadd.f32 %v2752_v0, %v13079_v19  ;;  %vm13152_vm3 = vmmov %vm13054_vm0 }
 0x44f   : > { %v2967_v45 = vpop.f32.mrf.mxu2 }
 0x450   : > { %v3032_v22 = vadd.f32 %v2967_v45, %v2815_v55  ;;  %v13095_v45 = vld [vmem:[#allocation189_spill] sm:$0xff] }
 0x452   : > { %v10056_v59 = vadd.f32 %v3184_v27, %v3032_v22  ;;  %v3194_v9 = vpop.f32.mrf.mxu3 }
 0x454   : > { %v2755_v30 = vpop.f32.mrf.mxu1 }
 0x455   : > { %v2817_v35 = vadd.f32 %v2755_v30, %v13084_v63  ;;  %v10086_v30 = vpop.f32.mrf.mxu0 }
 0x457   : > { %v2969_v37 = vpop.f32.mrf.mxu2  ;;  %5152 = vmatmul.msk.bf16.gmra.mxu1 %vm13088_vm8, %v13087_v28  ;;  %vm13158_vm8 = vmmov %vm13054_vm0 }
 0x458   : > { %v10061_v11 = vadd.f32 %v2969_v37, %v2816_v58  ;;  %v13094_v58 = vld [vmem:[#allocation171_spill] sm:$0xff] }
 0x459   : > { %v13096_v22 = vpack.c.bf16 %v13094_v58, %v13095_v45 }
 0x45a   : > { %v10090_v37 = vpop.f32.mrf.mxu3 }
 0x45c   : > { %5184 = vmatmul.msk.bf16.gmra.mxu2 %vm13091_vm4, %v2851_v1  ;;  %v2757_v27 = vpop.f32.mrf.mxu1  ;;  %vm13162_vm4 = vmmov %vm13054_vm0 }
 0x45d   : > { %v2818_v29 = vadd.f32 %v2757_v27, %v13092_v10  ;;  %v10094_v28 = vpop.f32.mrf.mxu0  ;;  %v13101_v10 = vld [vmem:[#allocation96_spill] sm:$0xff] }
 0x45f   : > { %v2972_v6 = vpop.f32.mrf.mxu2 }
 0x460   : > { %v3034_v55 = vadd.f32 %v2972_v6, %v2817_v35 }
 0x462   : > { %v10075_v7 = vadd.f32 %v3189_v15, %v3034_v55  ;;  %v13104_v55 = vld [vmem:[#allocation101_spill] sm:$0xff] }
 0x464   : > { %v2760_v40 = vpop.f32.mrf.mxu1 }
 0x465   : > { %v2819_v12 = vadd.f32 %v2760_v40, %v13093_v54  ;;  %v13105_v40 = vld [vmem:[#allocation110_spill] sm:$0xff]  ;;  %v10108_v58 = vpop.f32.mrf.mxu0 }
 0x466   : > { %v13106_v54 = vpack.c.bf16 %v13104_v55, %v13105_v40 }
 0x467   : > { %v2974_v0 = vpop.f32.mrf.mxu2  ;;  %5153 = vmatmul.msk.bf16.gmra.mxu1 %vm13097_vm13, %v13096_v22  ;;  %vm13169_vm13 = vmmov %vm13054_vm0 }
 0x468   : > { %v10078_v19 = vadd.f32 %v2974_v0, %v2818_v29  ;;  %v13102_v29 = vld [vmem:[#allocation97_spill] sm:$0xff] }
 0x469   : > { %v13103_v6 = vpack.c.bf16 %v13101_v10, %v13102_v29 }
 0x46c   : > { %5185 = vmatmul.msk.bf16.gmra.mxu2 %vm13100_vm2, %v2852_v31  ;;  %v2762_v15 = vpop.f32.mrf.mxu1  ;;  %v13109_v31 = vld [vmem:[#allocation194_spill] sm:$0xff]  ;;  %vm13173_vm2 = vmmov %vm13054_vm0 }
 0x46d   : > { %v2820_v63 = vadd.f32 %v2762_v15, %v9446_v47  ;;  %v3199_v47 = vpop.f32.mrf.mxu3  ;;  %v3681_v15 = vpack.c.bf16 %v13109_v31, %v13108_v49  ;;  %v13116_v49 = vld [vmem:[#allocation177_spill] sm:$0xff] }
 0x46f   : > { %v2977_v35 = vpop.f32.mrf.mxu2 }
 0x470   : > { %v3036_v25 = vadd.f32 %v2977_v35, %v2819_v12 }
 0x472   : > { %v10092_v24 = vadd.f32 %v3194_v9, %v3036_v25 }
 0x474   : > { %v2765_v17 = vpop.f32.mrf.mxu1 }
 0x475   : > { %v2821_v56 = vadd.f32 %v2765_v17, %v9465_v5  ;;  %v10112_v22 = vpop.f32.mrf.mxu3  ;;  %v13111_v17 = vld [vmem:[#allocation156_spill] sm:$0xff] }
 0x477   : > { %v2979_v1 = vpop.f32.mrf.mxu2  ;;  %5266 = vmatmul.msk.bf16.vlgmr.msra.gmra.mxu1 %vm13054_vm0, %v13103_v6 }
 0x478   : > { %v10097_v27 = vadd.f32 %v2979_v1, %v2820_v63  ;;  %v13112_v1 = vld [vmem:[#allocation166_spill] sm:$0xff] }
 0x47c   : > { %5298 = vmatmul.msk.bf16.vlgmr.msra.gmra.mxu2 %vm13107_vm6, %v13106_v54  ;;  %v2767_v9 = vpop.f32.mrf.mxu1  ;;  %vm13181_vm6 = vmmov %vm13054_vm0 }
 0x47d   : > { %v2822_v12 = vadd.f32 %v2767_v9, %v9509_v51  ;;  %v10120_v51 = vpop.f32.mrf.mxu0  ;;  %v3204_v10 = vpop.f32.mrf.mxu3 }
 0x47f   : > { %v2982_v0 = vpop.f32.mrf.mxu2 }
 0x480   : > { %v3038_v5 = vadd.f32 %v2982_v0, %v2821_v56  ;;  %v13113_v56 = vpack.c.bf16 %v13111_v17, %v13112_v1 }
 0x482   : > { %v10110_v45 = vadd.f32 %v3199_v47, %v3038_v5 }
 0x484   : > { %v2770_v20 = vpop.f32.mrf.mxu1 }
 0x485   : > { %v2823_v63 = vadd.f32 %v2770_v20, %v9529_v57  ;;  %v10129_v57 = vpop.f32.mrf.mxu0  ;;  %v10132_v0 = vpop.f32.mrf.mxu3  ;;  %v13115_v20 = vld [vmem:[#allocation179_spill] sm:$0xff] }
 0x486   : > { %v13117_v31 = vpack.c.bf16 %v13115_v20, %v13116_v49  ;;  %v13124_v20 = vld [vmem:[#allocation146_spill] sm:$0xff]  ;;  %v13125_v49 = vld [vmem:[#allocation12_spill] sm:$0xff] }
 0x487   : > { %v2984_v35 = vpop.f32.mrf.mxu2  ;;  %5267 = vmatmul.msk.bf16.gmra.mxu1 %vm13110_vm12, %v3681_v15  ;;  %v13120_v15 = vld [vmem:[#allocation190_spill] sm:$0xff]  ;;  %vm13186_vm12 = vmmov %vm13054_vm0 }
 0x488   : > { %v10117_v25 = vadd.f32 %v2984_v35, %v2822_v12 }
 0x48c   : > { %5299 = vmatmul.msk.bf16.gmra.mxu2 %vm13114_vm5, %v13113_v56  ;;  %v2772_v29 = vpop.f32.mrf.mxu1  ;;  %vm13190_vm5 = vmmov %vm13054_vm0 }
 0x48d   : > { %v2824_v6 = vadd.f32 %v2772_v29, %v9574_v48  ;;  %v13119_v48 = vld [vmem:[#allocation133_spill] sm:$0xff]  ;;  %v10144_v35 = vpop.f32.mrf.mxu0 }
 0x48f   : > { %v2987_v47 = vpop.f32.mrf.mxu2 }
 0x490   : > { %v3040_v55 = vadd.f32 %v2987_v47, %v2823_v63  ;;  %v13121_v63 = vpack.c.bf16 %v13119_v48, %v13120_v15  ;;  %v13128_v48 = vld [vmem:[#allocation208_spill] sm:$0xff] }
 0x491   : > { %v13129_v15 = vld [vmem:[#allocation172_spill] sm:$0xff] }
 0x492   : > { %v10127_v40 = vadd.f32 %v3204_v10, %v3040_v55  ;;  %v3209_v10 = vpop.f32.mrf.mxu3 }
 0x494   : > { %v2775_v54 = vpop.f32.mrf.mxu1 }
 0x495   : > { %v2825_v9 = vadd.f32 %v2775_v54, %v9597_v23  ;;  %v10148_v54 = vpop.f32.mrf.mxu0 }
 0x497   : > { %v2989_v12 = vpop.f32.mrf.mxu2  ;;  %5268 = vmatmul.msk.bf16.gmra.mxu1 %vm13118_vm14, %v13117_v31  ;;  %v13126_v31 = vpack.c.bf16 %v13124_v20, %v13125_v49  ;;  %vm13194_vm14 = vmmov %vm13054_vm0 }
 0x498   : > { %v10134_v5 = vadd.f32 %v2989_v12, %v2824_v6 }
 0x49c   : > { %5300 = vmatmul.msk.bf16.gmra.mxu2 %vm13122_vm1, %v13121_v63  ;;  %v2777_v17 = vpop.f32.mrf.mxu1  ;;  %vm13198_vm1 = vmmov %vm13054_vm0 }
 0x49d   : > { %v2826_v23 = vadd.f32 %v2777_v17, %v9640_v60  ;;  %v13130_v60 = vpack.c.bf16 %v13128_v48, %v13129_v15  ;;  %v13137_v48 = vld [vmem:[#allocation204_spill] sm:$0xff] }
 0x49f   : > { %v2992_v1 = vpop.f32.mrf.mxu2 }
 0x4a0   : > { %v3042_v56 = vadd.f32 %v2992_v1, %v2825_v9  ;;  %v10163_v1 = vpop.f32.mrf.mxu0 }
 0x4a2   : > { %v3259_v29 = vadd.f32 %v3209_v10, %v3042_v56  ;;  %v13133_v56 = vld [vmem:[#allocation170_spill] sm:$0xff]  ;;  %v13134_v10 = vld [vmem:[#allocation124_spill] sm:$0xff] }
 0x4a4   : > { %v2780_v6 = vpop.f32.mrf.mxu1 }
 0x4a5   : > { %v2827_v47 = vadd.f32 %v2780_v6, %v9655_v8  ;;  %v3684_v6 = vpack.c.bf16 %v13134_v10, %v13133_v56 }
 0x4a7   : > { %v2994_v55 = vpop.f32.mrf.mxu2  ;;  %5269 = vmatmul.msk.bf16.gmra.mxu1 %vm13127_vm9, %v13126_v31  ;;  %vm13202_vm9 = vmmov %vm13054_vm0 }
 0x4a8   : > { %v10150_v12 = vadd.f32 %v2994_v55, %v2826_v23  ;;  %v10171_v31 = vpop.f32.mrf.mxu0 }
 0x4aa   : > { %13123 = vst [vmem:[#allocation202_spill] sm:$0xff] %v10150_v12 }
 0x4ac   : > { %5301 = vmatmul.msk.bf16.gmra.mxu2 %vm13131_vm15, %v13130_v60  ;;  %v2782_v9 = vpop.f32.mrf.mxu1  ;;  %v13141_v60 = vld [vmem:[#allocation81_spill] sm:$0xff]  ;;  %vm13206_vm15 = vmmov %vm13054_vm0 }
 0x4ad   : > { %v2828_v63 = vadd.f32 %v2782_v9, %v9688_v61  ;;  %v13138_v61 = vld [vmem:[#allocation148_spill] sm:$0xff] }
 0x4ae   : > { %v13139_v15 = vpack.c.bf16 %v13137_v48, %v13138_v61  ;;  %v13149_v48 = vld [vmem:[#allocation103_spill] sm:$0xff]  ;;  %v13150_v61 = vld [vmem:[#allocation40_spill] sm:$0xff] }
 0x4af   : > { %v2997_v17 = vpop.f32.mrf.mxu2 }
 0x4b0   : > { %v10161_v8 = vadd.f32 %v2997_v17, %v2827_v47  ;;  %v10180_v56 = vpop.f32.mrf.mxu0 }
 0x4b1   : > { %13143 = vst [vmem:[#allocation143_spill] sm:$0xff] %v10180_v56 }
 0x4b2   : > { %13132 = vst [vmem:[#allocation201_spill] sm:$0xff] %v10161_v8 }
 0x4b4   : > { %v2785_v23 = vpop.f32.mrf.mxu1 }
 0x4b5   : > { %v2829_v55 = vadd.f32 %v2785_v23, %v9699_v36  ;;  %v13145_v23 = vld [vmem:[#allocation119_spill] sm:$0xff] }
 0x4b7   : > { %v2999_v20 = vpop.f32.mrf.mxu2  ;;  %5270 = vmatmul.msk.bf16.gmra.mxu1 %vm13136_vm7, %v3684_v6  ;;  %v13146_v6 = vld [vmem:[#allocation141_spill] sm:$0xff]  ;;  %vm13210_vm7 = vmmov %vm13054_vm0 }
 0x4b8   : > { %v10168_v49 = vadd.f32 %v2999_v20, %v2828_v63  ;;  %v13144_v63 = vld [vmem:[#allocation120_spill] sm:$0xff] }
 0x4b9   : > { %v3685_v10 = vpack.c.bf16 %v13145_v23, %v13144_v63  ;;  %v13154_v23 = vld [vmem:[#allocation165_spill] sm:$0xff] }
 0x4ba   : > { %13135 = vst [vmem:[#allocation203_spill] sm:$0xff] %v10168_v49 }
 0x4bc   : > { %5302 = vmatmul.msk.bf16.gmra.mxu2 %vm13140_vm11, %v13139_v15  ;;  %v2787_v47 = vpop.f32.mrf.mxu1  ;;  %v13151_v15 = vpack.c.bf16 %v13149_v48, %v13150_v61  ;;  %v13159_v61 = vld [vmem:[#allocation167_spill] sm:$0xff]  ;;  %vm13214_vm11 = vmmov %vm13054_vm0 }
 0x4bd   : > { %v2830_v9 = vadd.f32 %v2787_v47, %v13141_v60  ;;  %v13153_v47 = vld [vmem:[#allocation140_spill] sm:$0xff] }
 0x4bf   : > { %v3002_v17 = vpop.f32.mrf.mxu2 }
 0x4c0   : > { %v10178_v8 = vadd.f32 %v3002_v17, %v2829_v55 }
 0x4c2   : > { %13142 = vst [vmem:[#allocation230_spill] sm:$0xff] %v10178_v8  ;;  %v3618_v8 = vpop.f32.mrf.mxu0 }
 0x4c3   : > { %v10195_v63 = vadd.f32 %v3618_v8, %v3259_v29 }
 0x4c4   : > { %v2790_v36 = vpop.f32.mrf.mxu1 }
 0x4c5   : > { %v2831_v20 = vadd.f32 %v2790_v36, %v13146_v6 }
 0x4c7   : > { %v3004_v49 = vpop.f32.mrf.mxu2  ;;  %5271 = vmatmul.msk.bf16.gmra.mxu1 %vm13148_vm10, %v3685_v10  ;;  %v13155_v10 = vld [vmem:[#allocation147_spill] sm:$0xff]  ;;  %vm13218_vm10 = vmmov %vm13054_vm0 }
 0x4c8   : > { %v10185_v12 = vadd.f32 %v3004_v49, %v2830_v9 }
 0x4ca   : > { %13147 = vst [vmem:[#allocation142_spill] sm:$0xff] %v10185_v12  ;;  %v13156_v12 = vld [vmem:[#allocation149_spill] sm:$0xff] }
 0x4cb   : > { %v13157_v48 = vpack.c.bf16 %v13155_v10, %v13156_v12  ;;  %v13166_v12 = vld [vmem:[#allocation111_spill] sm:$0xff]  ;;  %v13167_v10 = vld [vmem:[#allocation41_spill] sm:$0xff] }
 0x4cc   : > { %5303 = vmatmul.msk.bf16.gmra.mxu2 %vm13152_vm3, %v13151_v15  ;;  %v2792_v55 = vpop.f32.mrf.mxu1  ;;  %v13160_v15 = vld [vmem:[#allocation215_spill] sm:$0xff]  ;;  %vm13222_vm3 = vmmov %vm13054_vm0 }
 0x4cd   : > { %v2832_v60 = vadd.f32 %v2792_v55, %v13153_v47  ;;  %v13161_v55 = vpack.c.bf16 %v13159_v61, %v13160_v15  ;;  %v13170_v61 = vld [vmem:[#allocation199_spill] sm:$0xff]  ;;  %v13171_v15 = vld [vmem:[#allocation186_spill] sm:$0xff] }
 0x4cf   : > { %v3007_v17 = vpop.f32.mrf.mxu2 }
 0x4d0   : > { %v10193_v56 = vadd.f32 %v3007_v17, %v2831_v20 }
 0x4d4   : > { %v2795_v36 = vpop.f32.mrf.mxu1 }
 0x4d5   : > { %v2833_v49 = vadd.f32 %v2795_v36, %v13154_v23  ;;  %v13164_v36 = vld [vmem:[#allocation191_spill] sm:$0xff] }
 0x4d7   : > { %v3009_v9 = vpop.f32.mrf.mxu2  ;;  %5272 = vmatmul.msk.bf16.gmra.mxu1 %vm13158_vm8, %v13157_v48  ;;  %v13168_v48 = vpack.c.bf16 %v13166_v12, %v13167_v10  ;;  %v13175_v10 = vld [vmem:[#allocation198_spill] sm:$0xff]  ;;  %vm13228_vm8 = vmmov %vm13054_vm0 }
 0x4d8   : > { %v10198_v6 = vadd.f32 %v3009_v9, %v2832_v60 }
 0x4dc   : > { %5304 = vmatmul.msk.bf16.gmra.mxu2 %vm13162_vm4, %v13161_v55  ;;  %v2797_v20 = vpop.f32.mrf.mxu1  ;;  %v13172_v55 = vpack.c.bf16 %v13170_v61, %v13171_v15  ;;  %v13178_v61 = vld [vmem:[#allocation243_spill] sm:$0xff]  ;;  %v13179_v15 = vld [vmem:[#allocation242_spill] sm:$0xff]  ;;  %vm13232_vm4 = vmmov %vm13054_vm0 }
 0x4dd   : > { %v2834_v29 = vadd.f32 %v2797_v20, %v9839_v43 }
 0x4df   : > { %v3012_v8 = vpop.f32.mrf.mxu2 }
 0x4e0   : > { %v10209_v47 = vadd.f32 %v3012_v8, %v2833_v49 }
 0x4e2   : > { %13163 = vst [vmem:[#allocation152_spill] sm:$0xff] %v10209_v47 }
 0x4e4   : > { %v2800_v17 = vpop.f32.mrf.mxu1 }
 0x4e5   : > { %v2835_v60 = vadd.f32 %v2800_v17, %v13164_v36  ;;  %v13174_v17 = vld [vmem:[#allocation34_spill] sm:$0xff] }
 0x4e7   : > { %v3014_v23 = vpop.f32.mrf.mxu2  ;;  %5273 = vmatmul.msk.bf16.gmra.mxu1 %vm13169_vm13, %v13168_v48  ;;  %v13176_v48 = vld [vmem:[#allocation196_spill] sm:$0xff]  ;;  %vm13237_vm13 = vmmov %vm13054_vm0 }
 0x4e8   : > { %v10212_v9 = vadd.f32 %v3014_v23, %v2834_v29  ;;  %v3648_v29 = vadd.f32 %v13174_v17, %v9906_v39  ;;  %v13177_v47 = vpack.c.bf16 %v13175_v10, %v13176_v48  ;;  %v13183_v10 = vld [vmem:[#allocation193_spill] sm:$0xff] }
 0x4e9   : > { %v13184_v48 = vld [vmem:[#allocation65_spill] sm:$0xff] }
 0x4ea   : > { %13165 = vst [vmem:[#allocation207_spill] sm:$0xff] %v10212_v9 }
 0x4ec   : > { %5305 = vmatmul.msk.bf16.gmra.mxu2 %vm13173_vm2, %v13172_v55  ;;  %v2802_v43 = vpop.f32.mrf.mxu1  ;;  %v13180_v55 = vpack.c.bf16 %v13178_v61, %v13179_v15  ;;  %v13185_v61 = vpack.c.bf16 %v13183_v10, %v13184_v48  ;;  %v13187_v15 = vld [vmem:[#allocation158_spill] sm:$0xff]  ;;  %v13191_v10 = vld [vmem:[#allocation116_spill] sm:$0xff]  ;;  %vm13241_vm2 = vmmov %vm13054_vm0 }
 0x4ed   : > { %v2836_v49 = vadd.f32 %v2802_v43, %v9892_v33  ;;  %v13182_v33 = vld [vmem:[#allocation33_spill] sm:$0xff]  ;;  %v13196_v48 = vld [vmem:[#allocation180_spill] sm:$0xff] }
 0x4ef   : > { %v3017_v20 = vpop.f32.mrf.mxu2 }
 0x4f0   : > { %v10223_v8 = vadd.f32 %v3017_v20, %v2835_v60  ;;  %v3649_v60 = vadd.f32 %v13182_v33, %v9934_v26  ;;  %v13188_v26 = vld [vmem:[#allocation244_spill] sm:$0xff] }
 0x4f4   : > { %v3785_v36 = vpop.f32.mrf.mxu1 }
 0x4f5   : > { %v3865_v23 = vadd.f32 %v3785_v36, %v3648_v29 }
 0x4f7   : > { %v3019_v9 = vpop.f32.mrf.mxu2  ;;  %5274 = vmatmul.msk.bf16.gmra.mxu1 %vm13054_vm0, %v13177_v47 }
 0x4f8   : > { %v10227_v12 = vadd.f32 %v3019_v9, %v2836_v49  ;;  %v3650_v9 = vadd.f32 %v9878_v3, %v9946_v13 }
 0x4fc   : > { %5306 = vmatmul.msk.bf16.gmra.mxu2 %vm13181_vm6, %v13180_v55  ;;  %v3787_v43 = vpop.f32.mrf.mxu1  ;;  %v13189_v55 = vpack.c.bf16 %v13187_v15, %v13188_v26  ;;  %vm13243_vm6 = vmmov %vm13054_vm0 }
 0x4fd   : > { %v3866_v39 = vadd.f32 %v3787_v43, %v3649_v60  ;;  %v3652_v43 = vadd.f32 %v9931_v38, %v9990_v44  ;;  %v3653_v38 = vadd.f32 %v9954_v52, %v10007_v18  ;;  %v13204_v52 = vld [vmem:[#allocation245_spill] sm:$0xff] }
 0x4ff   : > { %v4002_v20 = vpop.f32.mrf.mxu2 }
 0x500   : > { %v10239_v17 = vadd.f32 %v4002_v20, %v3865_v23  ;;  %v3651_v23 = vadd.f32 %v9902_v32, %v9974_v53  ;;  %v13192_v32 = vld [vmem:[#allocation131_spill] sm:$0xff] }
 0x501   : > { %v13193_v53 = vpack.c.bf16 %v13191_v10, %v13192_v32  ;;  %v13203_v10 = vld [vmem:[#allocation139_spill] sm:$0xff] }
 0x502   : > { %v13205_v18 = vpack.c.bf16 %v13203_v10, %v13204_v52 }
 0x504   : > { %v3790_v49 = vpop.f32.mrf.mxu1 }
 0x505   : > { %v3867_v29 = vadd.f32 %v3790_v49, %v3650_v9 }
 0x507   : > { %v4004_v36 = vpop.f32.mrf.mxu2  ;;  %5275 = vmatmul.msk.bf16.gmra.mxu1 %vm13186_vm12, %v13185_v61  ;;  %vm13244_vm12 = vmmov %vm13054_vm0 }
 0x508   : > { %v10243_v47 = vadd.f32 %v4004_v36, %v3866_v39  ;;  %v5399_v39 = vld [vmem:[%s11205_s8 + $0x18] sm:$0xff] }
 0x509   : > { %4535 = vmatpush.bf16.msra.mxu3 %v5399_v39  ;;  %v13199_v39 = vld [vmem:[#allocation132_spill] sm:$0xff] }
 0x50c   : > { %5307 = vmatmul.msk.bf16.gmra.mxu2 %vm13190_vm5, %v13189_v55  ;;  %v3792_v33 = vpop.f32.mrf.mxu1  ;;  %vm13245_vm5 = vmmov %vm13054_vm0 }
 0x50d   : > { %v3868_v3 = vadd.f32 %v3792_v33, %v3651_v23  ;;  %v3654_v23 = vadd.f32 %v9986_v46, %v10017_v42 }
 0x50f   : > { %v4007_v13 = vpop.f32.mrf.mxu2 }
 0x510   : > { %v10255_v60 = vadd.f32 %v4007_v13, %v3867_v29  ;;  %v13195_v29 = vld [vmem:[#allocation212_spill] sm:$0xff] }
 0x511   : > { %v13197_v61 = vpack.c.bf16 %v13195_v29, %v13196_v48  ;;  %v3656_v29 = vadd.f32 %v10059_v16, %v10037_v50 }
 0x514   : > { %v3795_v20 = vpop.f32.mrf.mxu1 }
 0x515   : > { %v3869_v9 = vadd.f32 %v3795_v20, %v3652_v43  ;;  %v13200_v20 = vld [vmem:[#allocation213_spill] sm:$0xff] }
 0x517   : > { %v4009_v49 = vpop.f32.mrf.mxu2  ;;  %5276 = vmatmul.msk.bf16.gmra.mxu1 %vm13194_vm14, %v13193_v53  ;;  %vm13246_vm14 = vmmov %vm13054_vm0 }
 0x518   : > { %v10262_v36 = vadd.f32 %v4009_v49, %v3868_v3  ;;  %v13201_v49 = vpack.c.bf16 %v13199_v39, %v13200_v20 }
 0x51c   : > { %5308 = vmatmul.msk.bf16.gmra.mxu2 %vm13198_vm1, %v13197_v61  ;;  %v3797_v44 = vpop.f32.mrf.mxu1  ;;  %vm13247_vm1 = vmmov %vm13054_vm0 }
 0x51d   : > { %v3870_v15 = vadd.f32 %v3797_v44, %v3653_v38 }
 0x51f   : > { %v4012_v26 = vpop.f32.mrf.mxu2 }
 0x520   : > { %v10274_v55 = vadd.f32 %v4012_v26, %v3869_v9  ;;  %v3655_v9 = vadd.f32 %v10000_v14, %v10027_v21  ;;  %v13207_v26 = vld [vmem:[#allocation195_spill] sm:$0xff]  ;;  %v13211_v14 = vld [vmem:[#allocation246_spill] sm:$0xff] }
 0x521   : > { %v13212_v21 = vld [vmem:[#allocation138_spill] sm:$0xff] }
 0x524   : > { %v3800_v33 = vpop.f32.mrf.mxu1 }
 0x525   : > { %v3871_v3 = vadd.f32 %v3800_v33, %v3654_v23  ;;  %v13208_v23 = vld [vmem:[#allocation197_spill] sm:$0xff] }
 0x526   : > { %v13209_v33 = vpack.c.bf16 %v13207_v26, %v13208_v23 }
 0x527   : > { %v4014_v13 = vpop.f32.mrf.mxu2  ;;  %5277 = vmatmul.msk.bf16.gmra.mxu1 %vm13202_vm9, %v13201_v49  ;;  %vm13248_vm9 = vmmov %vm13054_vm0 }
 0x528   : > { %v10278_v43 = vadd.f32 %v4014_v13, %v3870_v15  ;;  %v3248_v15 = vadd.f32 %v10019_v2, %v10042_v4  ;;  %v3658_v2 = vadd.f32 %v10086_v30, %v10056_v59 }
 0x52a   : > { %v3657_v50 = vadd.f32 %v10073_v62, %v3248_v15  ;;  %v13219_v62 = vld [vmem:[#allocation227_spill] sm:$0xff] }
 0x52c   : > { %5309 = vmatmul.msk.bf16.gmra.mxu2 %vm13206_vm15, %v13205_v18  ;;  %v3802_v32 = vpop.f32.mrf.mxu1  ;;  %v3250_v18 = vadd.f32 %v10040_v34, %v10061_v11  ;;  %v3660_v34 = vadd.f32 %v10108_v58, %v10075_v7  ;;  %v5398_v11 = vld [vmem:[%s11205_s8 + $0x10] sm:$0xff]  ;;  %vm13249_vm15 = vmmov %vm13054_vm0 }
 0x52d   : > { %v3872_v46 = vadd.f32 %v3802_v32, %v3655_v9  ;;  %v13215_v9 = vld [vmem:[#allocation174_spill] sm:$0xff]  ;;  %4536 = vmatpush.bf16.msra.mxu3 %v5398_v11  ;;  %v13230_v7 = vld [vmem:[#allocation247_spill] sm:$0xff] }
 0x52e   : > { %v13216_v32 = vld [vmem:[#allocation214_spill] sm:$0xff]  ;;  %v3659_v59 = vadd.f32 %v10094_v28, %v3250_v18  ;;  %v3252_v28 = vadd.f32 %v10069_v41, %v10078_v19  ;;  %v3662_v41 = vadd.f32 %v10129_v57, %v10092_v24 }
 0x52f   : > { %v4017_v42 = vpop.f32.mrf.mxu2 }
 0x530   : > { %v10290_v53 = vadd.f32 %v4017_v42, %v3871_v3  ;;  %v13213_v3 = vpack.c.bf16 %v13211_v14, %v13212_v21  ;;  %v13220_v42 = vld [vmem:[#allocation228_spill] sm:$0xff]  ;;  %v13225_v14 = vld [vmem:[#allocation117_spill] sm:$0xff]  ;;  %v13226_v21 = vld [vmem:[#allocation178_spill] sm:$0xff] }
 0x534   : > { %v3805_v48 = vpop.f32.mrf.mxu1 }
 0x535   : > { %v3873_v61 = vadd.f32 %v3805_v48, %v3656_v29  ;;  %v13221_v29 = vpack.c.bf16 %v13219_v62, %v13220_v42  ;;  %v3254_v62 = vadd.f32 %v10090_v37, %v10097_v27  ;;  %v13239_v42 = vld [vmem:[#allocation249_spill] sm:$0xff] }
 0x537   : > { %v4019_v38 = vpop.f32.mrf.mxu2  ;;  %5278 = vmatmul.msk.bf16.gmra.mxu1 %vm13210_vm7, %v13209_v33  ;;  %v3663_v24 = vadd.f32 %v10144_v35, %v3254_v62  ;;  %vm13250_vm7 = vmmov %vm13054_vm0 }
 0x538   : > { %v10294_v44 = vadd.f32 %v4019_v38, %v3872_v46  ;;  %v13217_v46 = vpack.c.bf16 %v13215_v9, %v13216_v32 }
 0x53c   : > { %5310 = vmatmul.msk.bf16.gmra.mxu2 %vm13214_vm11, %v13213_v3  ;;  %v3807_v16 = vpop.f32.mrf.mxu1  ;;  %v13227_v3 = vpack.c.bf16 %v13225_v14, %v13226_v21  ;;  %v3666_v21 = vadd.f32 %v10171_v31, %v10127_v40  ;;  %v5397_v31 = vld [vmem:[%s11205_s8 + $0x8] sm:$0xff]  ;;  %vm13251_vm11 = vmmov %vm13054_vm0 }
 0x53d   : > { %v3874_v13 = vadd.f32 %v3807_v16, %v3657_v50  ;;  %v13229_v50 = vld [vmem:[#allocation248_spill] sm:$0xff]  ;;  %v3661_v16 = vadd.f32 %v10120_v51, %v3252_v28  ;;  %v13238_v51 = vld [vmem:[#allocation155_spill] sm:$0xff]  ;;  %4537 = vmatpush.bf16.msra.mxu3 %v5397_v31 }
 0x53e   : > { %v13231_v58 = vpack.c.bf16 %v13229_v50, %v13230_v7  ;;  %v3258_v7 = vadd.f32 %v10132_v0, %v10134_v5 }
 0x53f   : > { %v4022_v39 = vpop.f32.mrf.mxu2 }
 0x540   : > { %v10307_v20 = vadd.f32 %v4022_v39, %v3873_v61 }
 0x544   : > { %v3810_v4 = vpop.f32.mrf.mxu1 }
 0x545   : > { %v3875_v49 = vadd.f32 %v3810_v4, %v3658_v2 }
 0x547   : > { %v4024_v10 = vpop.f32.mrf.mxu2  ;;  %5279 = vmatmul.msk.bf16.gmra.mxu1 %vm13218_vm10, %v13217_v46  ;;  %vm13252_vm10 = vmmov %vm13054_vm0 }
 0x548   : > { %v10311_v52 = vadd.f32 %v4024_v10, %v3874_v13  ;;  %v13235_v10 = vld [vmem:[#allocation107_spill] sm:$0xff]  ;;  %v4125_v31 = vsel %vm13252_vm10, %v10278_v43, 0.0  ;;  %vm13267_vm10 = vmmov %vm13054_vm0 }
 0x54c   : > { %5311 = vmatmul.msk.bf16.gmra.mxu2 %vm13222_vm3, %v13221_v29  ;;  %v3812_v30 = vpop.f32.mrf.mxu1  ;;  %v13240_v29 = vpack.c.bf16 %v13238_v51, %v13239_v42  ;;  %vm13253_vm3 = vmmov %vm13054_vm0 }
 0x54d   : > { %v3876_v48 = vadd.f32 %v3812_v30, %v3659_v59 }
 0x54f   : > { %v4027_v61 = vpop.f32.mrf.mxu2 }
 0x550   : > { %v10324_v38 = vadd.f32 %v4027_v61, %v3875_v49  ;;  %v13234_v49 = vld [vmem:[#allocation223_spill] sm:$0xff]  ;;  %v3664_v61 = vadd.f32 %v10148_v54, %v10110_v45 }
 0x551   : > { %v3695_v18 = vpack.c.bf16 %v13235_v10, %v13234_v49 }
 0x552   : > { %13223 = vst [vmem:[#allocation36_spill] sm:$0xff] %v10324_v38 }
 0x554   : > { %v3815_v15 = vpop.f32.mrf.mxu1 }
 0x555   : > { %v3877_v26 = vadd.f32 %v3815_v15, %v3660_v34  ;;  %v3256_v15 = vadd.f32 %v10112_v22, %v10117_v25  ;;  %v13242_v22 = vld [vmem:[#allocation143_spill] sm:$0xff] }
 0x556   : > { %v3667_v25 = vadd.f32 %v13242_v22, %v3258_v7  ;;  %v4123_v22 = vsel %vm13250_vm7, %v10274_v55, 0.0  ;;  %vm13265_vm7 = vmmov %vm13054_vm0 }
 0x557   : > { %v4029_v23 = vpop.f32.mrf.mxu2  ;;  %5280 = vmatmul.msk.bf16.gmra.mxu1 %vm13228_vm8, %v13227_v3  ;;  %vm13254_vm8 = vmmov %vm13054_vm0 }
 0x558   : > { %v10331_v33 = vadd.f32 %v4029_v23, %v3876_v48 }
 0x55a   : > { %13224 = vst [vmem:[#allocation160_spill] sm:$0xff] %v10331_v33 }
 0x55c   : > { %5312 = vmatmul.msk.bf16.gmra.mxu2 %vm13232_vm4, %v13231_v58  ;;  %v3817_v13 = vpop.f32.mrf.mxu1  ;;  %v10377_v58 = vpop.f32.mrf.mxu3  ;;  %vm13255_vm4 = vmmov %vm13054_vm0 }
 0x55d   : > { %v3878_v39 = vadd.f32 %v3817_v13, %v3661_v16 }
 0x55f   : > { %v4032_v2 = vpop.f32.mrf.mxu2 }
 0x560   : > { %v10344_v4 = vadd.f32 %v4032_v2, %v3877_v26  ;;  %v3665_v26 = vadd.f32 %v10163_v1, %v3256_v15  ;;  %v10380_v1 = vpop.f32.mrf.mxu0 }
 0x562   : > { %13233 = vst [vmem:[#allocation181_spill] sm:$0xff] %v10344_v4 }
 0x564   : > { %v3820_v19 = vpop.f32.mrf.mxu1  ;;  %v10384_v40 = vpop.f32.mrf.mxu3 }
 0x565   : > { %v3879_v9 = vadd.f32 %v3820_v19, %v3662_v41 }
 0x567   : > { %v4034_v32 = vpop.f32.mrf.mxu2  ;;  %5281 = vmatmul.msk.bf16.gmra.mxu1 %vm13237_vm13, %v3695_v18  ;;  %vm13256_vm13 = vmmov %vm13054_vm0 }
 0x568   : > { %v10350_v46 = vadd.f32 %v4034_v32, %v3878_v39  ;;  %v10390_v19 = vpop.f32.mrf.mxu0 }
 0x56a   : > { %13236 = vst [vmem:[#allocation192_spill] sm:$0xff] %v10350_v46 }
 0x56c   : > { %5313 = vmatmul.msk.bf16.gmra.mxu2 %vm13241_vm2, %v13240_v29  ;;  %v3822_v57 = vpop.f32.mrf.mxu1  ;;  %v10396_v18 = vpop.f32.mrf.mxu3  ;;  %vm13257_vm2 = vmmov %vm13054_vm0 }
 0x56d   : > { %v3880_v59 = vadd.f32 %v3822_v57, %v3663_v24  ;;  %v4186_v24 = vmul.f32 %v10239_v17, %v10239_v17  ;;  %v4117_v57 = vsel %vm13054_vm0, %v10243_v47, 0.0 }
 0x56f   : > { %v4037_v30 = vpop.f32.mrf.mxu2 }
 0x570   : > { %v10360_v48 = vadd.f32 %v4037_v30, %v3879_v9  ;;  %v10400_v62 = vpop.f32.mrf.mxu0 }
 0x574   : > { %v3825_v34 = vpop.f32.mrf.mxu1  ;;  %v10408_v29 = vpop.f32.mrf.mxu3 }
 0x575   : > { %v3881_v11 = vadd.f32 %v3825_v34, %v3664_v61  ;;  %v4116_v61 = vsel %vm13243_vm6, %v10239_v17, 0.0  ;;  %vm13258_vm6 = vmmov %vm13054_vm0 }
 0x576   : > { %v4118_v15 = vadd.f32 %v4117_v57, %v4116_v61  ;;  %v4193_v57 = vmul.f32 %v10294_v44, %v10294_v44 }
 0x577   : > { %v4039_v37 = vpop.f32.mrf.mxu2 }
 0x578   : > { %v10364_v27 = vadd.f32 %v4039_v37, %v3880_v59  ;;  %v4188_v59 = vmul.f32 %v10255_v60, %v10255_v60  ;;  %v10416_v30 = vpop.f32.mrf.mxu0  ;;  %v4189_v37 = vmul.f32 %v10262_v36, %v10262_v36 }
 0x57a   : > { %v4223_v7 = vsel %vm13249_vm15, %v4189_v37, 0.0  ;;  %v4129_v37 = vsel %vm13256_vm13, %v10294_v44, 0.0  ;;  %vm13264_vm15 = vmmov %vm13054_vm0 }
 0x57b   : > { %vm13275_vm13 = vmmov %vm13054_vm0 }
 0x57c   : > { %v3827_v23 = vpop.f32.mrf.mxu1 }
 0x57d   : > { %v3882_v35 = vadd.f32 %v3827_v23, %v3665_v26  ;;  %v4218_v26 = vsel %vm13246_vm14, %v4186_v24, 0.0  ;;  %v4221_v23 = vsel %vm13247_vm1, %v4188_v59, 0.0  ;;  %v4127_v24 = vsel %vm13254_vm8, %v10290_v53, 0.0  ;;  %vm13261_vm14 = vmmov %vm13054_vm0 }
 0x57e   : > { %vm13262_vm1 = vmmov %vm13054_vm0 }
 0x57f   : > { %v4042_v28 = vpop.f32.mrf.mxu2  ;;  %vm13270_vm8 = vmmov %vm13054_vm0 }
 0x580   : > { %v10369_v14 = vadd.f32 %v4042_v28, %v3881_v11  ;;  %v4119_v11 = vsel %vm13245_vm5, %v10255_v60, 0.0  ;;  %v4190_v28 = vmul.f32 %v10274_v55, %v10274_v55  ;;  %vm13260_vm5 = vmmov %vm13054_vm0 }
 0x584   : > { %v3830_v3 = vpop.f32.mrf.mxu1 }
 0x585   : > { %v3883_v45 = vadd.f32 %v3830_v3, %v3666_v21 }
 0x587   : > { %v4044_v54 = vpop.f32.mrf.mxu2 }
 0x588   : > { %v10373_v50 = vadd.f32 %v4044_v54, %v3882_v35  ;;  %v4121_v35 = vsel %vm13248_vm9, %v10262_v36, 0.0  ;;  %vm13263_vm9 = vmmov %vm13054_vm0 }
 0x58c   : > { %v3832_v16 = vpop.f32.mrf.mxu1 }
 0x58d   : > { %v3884_v13 = vadd.f32 %v3832_v16, %v3667_v25  ;;  %v4191_v25 = vmul.f32 %v10278_v43, %v10278_v43 }
 0x58f   : > { %v4047_v39 = vpop.f32.mrf.mxu2 }
 0x590   : > { %v10382_v2 = vadd.f32 %v4047_v39, %v3883_v45  ;;  %v4120_v45 = vadd.f32 %v4119_v11, %v4118_v15  ;;  %v4225_v39 = vsel %vm13251_vm11, %v4190_v28, 0.0  ;;  %v4194_v15 = vmul.f32 %v10307_v20, %v10307_v20  ;;  %vm13266_vm11 = vmmov %vm13054_vm0 }
 0x594   : > { %v3835_v41 = vpop.f32.mrf.mxu1 }
 0x595   : > { %v3885_v0 = vadd.f32 %v3835_v41, %v10195_v63  ;;  %v4187_v63 = vmul.f32 %v10243_v47, %v10243_v47  ;;  %v4192_v41 = vmul.f32 %v10290_v53, %v10290_v53 }
 0x597   : > { %v4049_v5 = vpop.f32.mrf.mxu2  ;;  %v4219_v34 = vsel %vm13244_vm12, %v4187_v63, 0.0  ;;  %v4227_v63 = vsel %vm13253_vm3, %v4191_v25, 0.0  ;;  %v4229_v11 = vsel %vm13255_vm4, %v4192_v41, 0.0  ;;  %vm13259_vm12 = vmmov %vm13054_vm0 }
 0x598   : > { %v10392_v49 = vadd.f32 %v4049_v5, %v3884_v13  ;;  %v4220_v3 = vadd.f32 %v4219_v34, %v4218_v26  ;;  %v4122_v13 = vadd.f32 %v4121_v35, %v4120_v45  ;;  %v10452_v34 = vpop.f32.mrf.mxu0  ;;  %v4131_v45 = vsel %vm13054_vm0, %v10307_v20, 0.0  ;;  %vm13269_vm3 = vmmov %vm13054_vm0 }
 0x599   : > { %vm13274_vm4 = vmmov %vm13054_vm0 }
 0x59a   : > { %v4222_v16 = vadd.f32 %v4221_v23, %v4220_v3  ;;  %v4231_v3 = vsel %vm13257_vm2, %v4193_v57, 0.0  ;;  %vm13277_vm2 = vmmov %vm13054_vm0 }
 0x59c   : > { %v10394_v10 = vpop.f32.mrf.mxu1  ;;  %v4224_v5 = vadd.f32 %v4223_v7, %v4222_v16  ;;  %v4195_v7 = vmul.f32 %v10311_v52, %v10311_v52  ;;  %v4233_v16 = vsel %vm13258_vm6, %v4194_v15, 0.0  ;;  %vm13278_vm6 = vmmov %vm13054_vm0 }
 0x59e   : > { %v4226_v59 = vadd.f32 %v4225_v39, %v4224_v5  ;;  %v4196_v39 = vmul.f32 %v10324_v38, %v10324_v38  ;;  %v4235_v5 = vsel %vm13260_vm5, %v4195_v7, 0.0  ;;  %vm13280_vm5 = vmmov %vm13054_vm0 }
 0x59f   : > { %v4052_v9 = vpop.f32.mrf.mxu2 }
 0x5a0   : > { %v10398_v32 = vadd.f32 %v4052_v9, %v3885_v0  ;;  %v10445_v0 = vpop.f32.mrf.mxu3  ;;  %v4124_v9 = vadd.f32 %v4123_v22, %v4122_v13  ;;  %v4228_v23 = vadd.f32 %v4227_v63, %v4226_v59  ;;  %v4133_v13 = vsel %vm13259_vm12, %v10311_v52, 0.0  ;;  %vm13279_vm12 = vmmov %vm13054_vm0 }
 0x5a1   : > { %v4197_v63 = vmul.f32 %v10331_v33, %v10331_v33 }
 0x5a2   : > { %v4126_v61 = vadd.f32 %v4125_v31, %v4124_v9  ;;  %v4230_v22 = vadd.f32 %v4229_v11, %v4228_v23  ;;  %v4135_v9 = vsel %vm13261_vm14, %v10324_v38, 0.0  ;;  %v4137_v11 = vsel %vm13263_vm9, %v10331_v33, 0.0  ;;  %v13273_v38 = vld [vmem:[#allocation230_spill] sm:$0xff]  ;;  %vm13281_vm14 = vmmov %vm13054_vm0 }
 0x5a3   : > { %v4239_v7 = vsel %vm13264_vm15, %v4197_v63, 0.0  ;;  %vm13283_vm9 = vmmov %vm13054_vm0 }
 0x5a4   : > { %v10402_v51 = vpop.f32.mrf.mxu1  ;;  %v4128_v35 = vadd.f32 %v4127_v24, %v4126_v61  ;;  %v4232_v31 = vadd.f32 %v4231_v3, %v4230_v22  ;;  %v4237_v61 = vsel %vm13262_vm1, %v4196_v39, 0.0  ;;  %v4139_v22 = vsel %vm13265_vm7, %v10344_v4, 0.0  ;;  %vm13282_vm1 = vmmov %vm13054_vm0 }
 0x5a5   : > { %vm13284_vm15 = vmmov %vm13054_vm0 }
 0x5a6   : > { %v4130_v25 = vadd.f32 %v4129_v37, %v4128_v35  ;;  %v4234_v57 = vadd.f32 %v4233_v16, %v4232_v31  ;;  %v4198_v37 = vmul.f32 %v10344_v4, %v10344_v4  ;;  %v4141_v31 = vsel %vm13267_vm10, %v10350_v46, 0.0  ;;  %vm13285_vm7 = vmmov %vm13054_vm0 }
 0x5a7   : > { %v10404_v42 = vpop.f32.mrf.mxu2  ;;  %v4143_v4 = vsel %vm13270_vm8, %v10360_v48, 0.0  ;;  %vm13287_vm10 = vmmov %vm13054_vm0 }
 0x5a8   : > { %v4132_v41 = vadd.f32 %v4131_v45, %v4130_v25  ;;  %v3224_v24 = vpop.f32.mrf.mxu3  ;;  %v4236_v23 = vadd.f32 %v4235_v5, %v4234_v57  ;;  %v10487_v45 = vpop.f32.mrf.mxu0  ;;  %v4199_v25 = vmul.f32 %v10350_v46, %v10350_v46  ;;  %v4241_v39 = vsel %vm13266_vm11, %v4198_v37, 0.0  ;;  %v13268_v5 = vld [vmem:[#allocation202_spill] sm:$0xff]  ;;  %vm13286_vm11 = vmmov %vm13054_vm0 }
 0x5a9   : > { %vm13289_vm8 = vmmov %vm13054_vm0 }
 0x5aa   : > { %v4134_v59 = vadd.f32 %v4133_v13, %v4132_v41  ;;  %v4238_v16 = vadd.f32 %v4237_v61, %v4236_v23  ;;  %v4200_v41 = vmul.f32 %v10360_v48, %v10360_v48  ;;  %v4201_v61 = vmul.f32 %v10364_v27, %v10364_v27  ;;  %v13272_v23 = vld [vmem:[#allocation203_spill] sm:$0xff] }
 0x5ac   : > { %v10431_v21 = vpop.f32.mrf.mxu1  ;;  %v4136_v35 = vadd.f32 %v4135_v9, %v4134_v59  ;;  %v3260_v9 = vadd.f32 %v10377_v58, %v13268_v5  ;;  %v4240_v63 = vadd.f32 %v4239_v7, %v4238_v16  ;;  %v4243_v59 = vsel %vm13269_vm3, %v4199_v25, 0.0  ;;  %vm13288_vm3 = vmmov %vm13054_vm0 }
 0x5ad   : > { %v3263_v58 = vadd.f32 %v10408_v29, %v13273_v38  ;;  %v4245_v7 = vsel %vm13274_vm4, %v4200_v41, 0.0  ;;  %v4202_v25 = vmul.f32 %v10369_v14, %v10369_v14  ;;  %v3265_v38 = vadd.f32 %v3224_v24, %v10193_v56  ;;  %vm13290_vm4 = vmmov %vm13054_vm0 }
 0x5ae   : > { %v4138_v13 = vadd.f32 %v4137_v11, %v4136_v35  ;;  %v13271_v11 = vld [vmem:[#allocation201_spill] sm:$0xff]  ;;  %v3262_v35 = vadd.f32 %v10396_v18, %v13272_v23  ;;  %v4242_v46 = vadd.f32 %v4241_v39, %v4240_v63  ;;  %v3669_v39 = vadd.f32 %v10380_v1, %v3260_v9 }
 0x5af   : > { %v10433_v54 = vpop.f32.mrf.mxu2  ;;  %v3261_v37 = vadd.f32 %v10384_v40, %v13271_v11  ;;  %v4247_v29 = vsel %vm13277_vm2, %v4201_v61, 0.0  ;;  %v4147_v41 = vsel %vm13054_vm0, %v10369_v14, 0.0  ;;  %v4203_v63 = vmul.f32 %v10373_v50, %v10373_v50  ;;  %vm13293_vm2 = vmmov %vm13054_vm0 }
 0x5b0   : > { %v4140_v57 = vadd.f32 %v4139_v22, %v4138_v13  ;;  %v4145_v22 = vsel %vm13275_vm13, %v10364_v27, 0.0  ;;  %v13276_v13 = vld [vmem:[#allocation142_spill] sm:$0xff]  ;;  %v3226_v5 = vpop.f32.mrf.mxu3  ;;  %v4244_v11 = vadd.f32 %v4243_v59, %v4242_v46  ;;  %v4249_v1 = vsel %vm13278_vm6, %v4202_v25, 0.0  ;;  %vm13291_vm13 = vmmov %vm13054_vm0 }
 0x5b1   : > { %v3264_v40 = vadd.f32 %v10445_v0, %v13276_v13  ;;  %v3886_v0 = vadd.f32 %v10394_v10, %v3669_v39  ;;  %v3670_v46 = vadd.f32 %v10390_v19, %v3261_v37  ;;  %v4149_v56 = vsel %vm13279_vm12, %v10373_v50, 0.0  ;;  %vm13294_vm6 = vmmov %vm13054_vm0 }
 0x5b2   : > { %v4142_v33 = vadd.f32 %v4141_v31, %v4140_v57  ;;  %v4246_v57 = vadd.f32 %v4245_v7, %v4244_v11  ;;  %v4204_v24 = vmul.f32 %v10382_v2, %v10382_v2  ;;  %v4251_v19 = vsel %vm13280_vm5, %v4203_v63, 0.0  ;;  %vm13295_vm12 = vmmov %vm13054_vm0 }
 0x5b3   : > { %v3887_v61 = vadd.f32 %v10402_v51, %v3670_v46  ;;  %v10536_v7 = vadd.f32 %v10404_v42, %v3886_v0  ;;  %v4205_v10 = vmul.f32 %v10392_v49, %v10392_v49  ;;  %v3671_v37 = vadd.f32 %v10400_v62, %v3262_v35  ;;  %vm13296_vm5 = vmmov %vm13054_vm0 }
 0x5b4   : > { %v10459_v26 = vpop.f32.mrf.mxu1  ;;  %v4144_v18 = vadd.f32 %v4143_v4, %v4142_v33  ;;  %v3635_v33 = vpop.f32.mrf.mxu0  ;;  %v3266_v4 = vadd.f32 %v3226_v5, %v10198_v6  ;;  %v4248_v9 = vadd.f32 %v4247_v29, %v4246_v57  ;;  %v4151_v6 = vsel %vm13281_vm14, %v10382_v2, 0.0  ;;  %vm13297_vm14 = vmmov %vm13054_vm0 }
 0x5b5   : > { %v10545_v13 = vadd.f32 %v10433_v54, %v3887_v61  ;;  %v3672_v51 = vadd.f32 %v10416_v30, %v3263_v58  ;;  %v4253_v42 = vsel %vm13282_vm1, %v4204_v24, 0.0  ;;  %v4153_v5 = vsel %vm13283_vm9, %v10392_v49, 0.0  ;;  %vm13298_vm1 = vmmov %vm13054_vm0 }
 0x5b6   : > { %v4146_v23 = vadd.f32 %v4145_v22, %v4144_v18  ;;  %v4250_v22 = vadd.f32 %v4249_v1, %v4248_v9  ;;  %v4206_v11 = vmul.f32 %v10398_v32, %v10398_v32  ;;  %v3888_v18 = vadd.f32 %v10431_v21, %v3671_v37  ;;  %v5396_v37 = vld [vmem:[%s11205_s8] sm:$0xff]  ;;  %vm13299_vm9 = vmmov %vm13054_vm0 }
 0x5b7   : > { %v10461_v28 = vpop.f32.mrf.mxu2  ;;  %v4207_v35 = vmul.f32 %v10536_v7, %v10536_v7  ;;  %v3673_v54 = vadd.f32 %v10452_v34, %v3264_v40  ;;  %v4255_v30 = vsel %vm13284_vm15, %v4205_v10, 0.0  ;;  %v4155_v58 = vsel %vm13285_vm7, %v10398_v32, 0.0  ;;  %4538 = vmatpush.bf16.msra.mxu3 %v5396_v37  ;;  %vm13301_vm15 = vmmov %vm13054_vm0 }
 0x5b8   : > { %v4148_v59 = vadd.f32 %v4147_v41, %v4146_v23  ;;  %v4252_v29 = vadd.f32 %v4251_v19, %v4250_v22  ;;  %v3889_v63 = vadd.f32 %v10459_v26, %v3672_v51  ;;  %v10562_v57 = vadd.f32 %v10461_v28, %v3888_v18  ;;  %v3229_v21 = vpop.f32.mrf.mxu3  ;;  %vm13302_vm7 = vmmov %vm13054_vm0 }
 0x5b9   : > { %v4208_v46 = vmul.f32 %v10545_v13, %v10545_v13  ;;  %v3674_v1 = vadd.f32 %v10487_v45, %v3265_v38  ;;  %v4257_v34 = vsel %vm13286_vm11, %v4206_v11, 0.0  ;;  %v4157_v40 = vsel %vm13287_vm10, %v10536_v7, 0.0  ;;  %vm13303_vm11 = vmmov %vm13054_vm0 }
 0x5ba   : > { %v4150_v25 = vadd.f32 %v4149_v56, %v4148_v59  ;;  %v4254_v23 = vadd.f32 %v4253_v42, %v4252_v29  ;;  %v4259_v9 = vsel %vm13288_vm3, %v4207_v35, 0.0  ;;  %v3675_v59 = vadd.f32 %v3635_v33, %v3266_v4  ;;  %vm13304_vm10 = vmmov %vm13054_vm0 }
 0x5bb   : > { %v4159_v19 = vsel %vm13289_vm8, %v10545_v13, 0.0  ;;  %v4209_v45 = vmul.f32 %v10562_v57, %v10562_v57  ;;  %v4161_v33 = vsel %vm13291_vm13, %v10562_v57, 0.0  ;;  %vm13305_vm3 = vmmov %vm13054_vm0 }
 0x5bc   : > { %v10483_v15 = vpop.f32.mrf.mxu1  ;;  %v4152_v62 = vadd.f32 %v4151_v6, %v4150_v25  ;;  %v4256_v28 = vadd.f32 %v4255_v30, %v4254_v23  ;;  %v3638_v61 = vpop.f32.mrf.mxu0  ;;  %vm13306_vm8 = vmmov %vm13054_vm0 }
 0x5bd   : > { %v3890_v56 = vadd.f32 %v10483_v15, %v3673_v54  ;;  %v4263_v18 = vsel %vm13293_vm2, %v4209_v45, 0.0  ;;  %vm13308_vm13 = vmmov %vm13054_vm0 }
 0x5be   : > { %v4154_v0 = vadd.f32 %v4153_v5, %v4152_v62  ;;  %v4258_v10 = vadd.f32 %v4257_v34, %v4256_v28  ;;  %vm13309_vm2 = vmmov %vm13054_vm0 }
 0x5bf   : > { %v10485_v3 = vpop.f32.mrf.mxu2 }
 0x5c0   : > { %v10572_v26 = vadd.f32 %v10485_v3, %v3889_v63  ;;  %v4156_v24 = vadd.f32 %v4155_v58, %v4154_v0  ;;  %v4261_v3 = vsel %vm13290_vm4, %v4208_v46, 0.0  ;;  %v4260_v42 = vadd.f32 %v4259_v9, %v4258_v10  ;;  %v3231_v63 = vpop.f32.mrf.mxu3  ;;  %vm13307_vm4 = vmmov %vm13054_vm0 }
 0x5c2   : > { %v4158_v15 = vadd.f32 %v4157_v40, %v4156_v24  ;;  %v4210_v4 = vmul.f32 %v10572_v26, %v10572_v26  ;;  %v4163_v29 = vsel %vm13054_vm0, %v10572_v26, 0.0 }
 0x5c4   : > { %v3850_v16 = vpop.f32.mrf.mxu1  ;;  %v4160_v5 = vadd.f32 %v4159_v19, %v4158_v15  ;;  %v3640_v28 = vpop.f32.mrf.mxu0  ;;  %v13300_v15 = vld [vmem:[#allocation207_spill] sm:$0xff] }
 0x5c5   : > { %v3891_v38 = vadd.f32 %v3850_v16, %v3674_v1 }
 0x5c6   : > { %v4162_v54 = vadd.f32 %v4161_v33, %v4160_v5 }
 0x5c7   : > { %v4064_v31 = vpop.f32.mrf.mxu2 }
 0x5c8   : > { %v10579_v6 = vadd.f32 %v4064_v31, %v3890_v56  ;;  %v13292_v31 = vld [vmem:[#allocation152_spill] sm:$0xff]  ;;  %v4164_v23 = vadd.f32 %v4163_v29, %v4162_v54 }
 0x5c9   : > { %v3267_v51 = vadd.f32 %v3229_v21, %v13292_v31 }
 0x5ca   : > { %v4211_v62 = vmul.f32 %v10579_v6, %v10579_v6  ;;  %v4165_v30 = vsel %vm13295_vm12, %v10579_v6, 0.0 }
 0x5cb   : > { %v3676_v1 = vadd.f32 %v3638_v61, %v3267_v51  ;;  %v4166_v56 = vadd.f32 %v4165_v30, %v4164_v23 }
 0x5cc   : > { %v3852_v39 = vpop.f32.mrf.mxu1  ;;  %v4267_v0 = vsel %vm13296_vm5, %v4211_v62, 0.0  ;;  %vm13314_vm5 = vmmov %vm13298_vm1 }
 0x5cd   : > { %v3892_v22 = vadd.f32 %v3852_v39, %v3675_v59  ;;  %v4262_v39 = vadd.f32 %v4261_v3, %v4260_v42  ;;  %v3268_v3 = vadd.f32 %v3231_v63, %v13300_v15 }
 0x5cf   : > { %v4067_v41 = vpop.f32.mrf.mxu2  ;;  %v4264_v21 = vadd.f32 %v4263_v18, %v4262_v39  ;;  %v3677_v42 = vadd.f32 %v3640_v28, %v3268_v3 }
 0x5d0   : > { %v10589_v25 = vadd.f32 %v4067_v41, %v3891_v38  ;;  %v4265_v41 = vsel %vm13294_vm6, %v4210_v4, 0.0 }
 0x5d1   : > { %v4266_v40 = vadd.f32 %v4265_v41, %v4264_v21  ;;  %v3643_v41 = vpop.f32.mrf.mxu0 }
 0x5d2   : > { %v4212_v58 = vmul.f32 %v10589_v25, %v10589_v25  ;;  %v4167_v46 = vsel %vm13297_vm14, %v10589_v25, 0.0  ;;  %vm13315_vm14 = vmmov %vm13298_vm1 }
 0x5d3   : > { %v4268_v19 = vadd.f32 %v4267_v0, %v4266_v40  ;;  %v4168_v45 = vadd.f32 %v4167_v46, %v4166_v56 }
 0x5d4   : > { %v3855_v16 = vpop.f32.mrf.mxu1  ;;  %v4269_v24 = vsel %vm13298_vm1, %v4212_v58, 0.0 }
 0x5d5   : > { %v3893_v9 = vadd.f32 %v3855_v16, %v3676_v1  ;;  %v4270_v33 = vadd.f32 %v4269_v24, %v4268_v19 }
 0x5d7   : > { %v4069_v11 = vpop.f32.mrf.mxu2 }
 0x5d8   : > { %v10597_v35 = vadd.f32 %v4069_v11, %v3892_v22  ;;  %v3234_v11 = vpop.f32.mrf.mxu3 }
 0x5d9   : > { %v3269_v39 = vadd.f32 %v3234_v11, %v10223_v8 }
 0x5da   : > { %v4213_v34 = vmul.f32 %v10597_v35, %v10597_v35  ;;  %v4169_v59 = vsel %vm13299_vm9, %v10597_v35, 0.0  ;;  %vm13316_vm9 = vmmov %vm13298_vm1 }
 0x5db   : > { %v4170_v4 = vadd.f32 %v4169_v59, %v4168_v45  ;;  %v3678_v23 = vadd.f32 %v3643_v41, %v3269_v39 }
 0x5dc   : > { %v3857_v38 = vpop.f32.mrf.mxu1  ;;  %v4271_v61 = vsel %vm13301_vm15, %v4213_v34, 0.0  ;;  %vm13317_vm15 = vmmov %vm13298_vm1 }
 0x5dd   : > { %v4272_v31 = vadd.f32 %v4271_v61, %v4270_v33  ;;  %v3894_v29 = vadd.f32 %v3857_v38, %v3677_v42 }
 0x5df   : > { %v4072_v10 = vpop.f32.mrf.mxu2 }
 0x5e0   : > { %v10614_v37 = vadd.f32 %v4072_v10, %v3893_v9  ;;  %v3236_v34 = vpop.f32.mrf.mxu3  ;;  %v3645_v9 = vpop.f32.mrf.mxu0 }
 0x5e1   : > { %v3270_v8 = vadd.f32 %v3236_v34, %v10227_v12 }
 0x5e2   : > { %v4171_v22 = vsel %vm13302_vm7, %v10614_v37, 0.0  ;;  %v4214_v16 = vmul.f32 %v10614_v37, %v10614_v37  ;;  %vm13318_vm7 = vmmov %vm13298_vm1 }
 0x5e3   : > { %v4172_v51 = vadd.f32 %v4171_v22, %v4170_v4  ;;  %v3679_v45 = vadd.f32 %v3645_v9, %v3270_v8 }
 0x5e4   : > { %v4273_v5 = vsel %vm13303_vm11, %v4214_v16, 0.0  ;;  %v3860_v30 = vpop.f32.mrf.mxu1  ;;  %vm13319_vm11 = vmmov %vm13298_vm1 }
 0x5e5   : > { %v4274_v18 = vadd.f32 %v4273_v5, %v4272_v31  ;;  %v3895_v1 = vadd.f32 %v3860_v30, %v3678_v23 }
 0x5e7   : > { %v4074_v62 = vpop.f32.mrf.mxu2 }
 0x5e8   : > { %v10622_v54 = vadd.f32 %v4074_v62, %v3894_v29 }
 0x5ea   : > { %v4173_v58 = vsel %vm13304_vm10, %v10622_v54, 0.0  ;;  %v4215_v63 = vmul.f32 %v10622_v54, %v10622_v54  ;;  %vm13320_vm10 = vmmov %vm13298_vm1 }
 0x5eb   : > { %v4174_v21 = vadd.f32 %v4173_v58, %v4172_v51 }
 0x5ec   : > { %v4275_v0 = vsel %vm13305_vm3, %v4215_v63, 0.0  ;;  %v3862_v59 = vpop.f32.mrf.mxu1  ;;  %vm13321_vm3 = vmmov %vm13298_vm1 }
 0x5ed   : > { %v4276_v46 = vadd.f32 %v4275_v0, %v4274_v18  ;;  %v3896_v15 = vadd.f32 %v3862_v59, %v3679_v45 }
 0x5ef   : > { %v4077_v40 = vpop.f32.mrf.mxu2 }
 0x5f0   : > { %v10630_v56 = vadd.f32 %v4077_v40, %v3895_v1 }
 0x5f2   : > { %v4175_v28 = vsel %vm13306_vm8, %v10630_v56, 0.0  ;;  %v4216_v24 = vmul.f32 %v10630_v56, %v10630_v56  ;;  %vm13322_vm8 = vmmov %vm13298_vm1 }
 0x5f3   : > { %v4176_v19 = vadd.f32 %v4175_v28, %v4174_v21 }
 0x5f4   : > { %v4277_v38 = vsel %vm13307_vm4, %v4216_v24, 0.0  ;;  %vm13323_vm4 = vmmov %vm13298_vm1 }
 0x5f5   : > { %v4278_v10 = vadd.f32 %v4277_v38, %v4276_v46 }
 0x5f7   : > { %v4079_v3 = vpop.f32.mrf.mxu2 }
 0x5f8   : > { %v10637_v61 = vadd.f32 %v4079_v3, %v3896_v15 }
 0x5fa   : > { %v4177_v12 = vsel %vm13308_vm13, %v10637_v61, 0.0  ;;  %v4217_v33 = vmul.f32 %v10637_v61, %v10637_v61  ;;  %vm13324_vm13 = vmmov %vm13298_vm1 }
 0x5fb   : > { %v4178_v4 = vadd.f32 %v4177_v12, %v4176_v19  ;;  %v4114_v12 = vld [vmem:[%s11203_s6] sm:$0x1] }
 0x5fc   : > { %v4279_v22 = vsel %vm13309_vm2, %v4217_v33, 0.0  ;;  %vm13325_vm2 = vmmov %vm13298_vm1 }
 0x5fd   : > { %v4179_v16 = vrot.slane %v4178_v4, 4  ;;  %v4280_v31 = vadd.f32 %v4279_v22, %v4278_v10 }
 0x5ff   : > { %v4180_v51 = vadd.f32 %v4179_v16, %v4178_v4  ;;  %v4281_v42 = vrot.slane %v4280_v31, 4 }
 0x601   : > { %v4181_v5 = vrot.slane %v4180_v51, 2  ;;  %v4282_v11 = vadd.f32 %v4281_v42, %v4280_v31  ;;  %v13310_v31 = vld [vmem:[#allocation36_spill] sm:$0xff]  ;;  %v13312_v42 = vld [vmem:[#allocation181_spill] sm:$0xff] }
 0x603   : > { %v4182_v18 = vadd.f32 %v4181_v5, %v4180_v51  ;;  %v4283_v29 = vrot.slane %v4282_v11, 2  ;;  %v13311_v51 = vld [vmem:[#allocation160_spill] sm:$0xff] }
 0x605   : > { %v4183_v62 = vrot.slane %v4182_v18, 1  ;;  %v4284_v39 = vadd.f32 %v4283_v29, %v4282_v11  ;;  %v13313_v11 = vld [vmem:[#allocation192_spill] sm:$0xff] }
 0x607   : > { %v4184_v41 = vadd.f32 %v4183_v62, %v4182_v18  ;;  %v4285_v30 = vrot.slane %v4284_v39, 1 }
 0x609   : > { %v10644_v58 = vmul.f32 0.00390625, %v4184_v41  ;;  %v4286_v63 = vadd.f32 %v4285_v30, %v4284_v39  ;;  %v10704_v41 = vld [vmem:[%s11204_s7] ss:$0 sm:$0xff] }
 0x60b   : > { %v4287_v21 = vmul.f32 0.00390625, %v4286_v63  ;;  %v4288_v23 = vmul.f32 %v10644_v58, %v10644_v58  ;;  %v4334_v0 = vsub.f32 %v10637_v61, %v10644_v58  ;;  %v4330_v40 = vsub.f32 %v10597_v35, %v10644_v58 }
 0x60c   : > { %v4331_v8 = vsub.f32 %v10614_v37, %v10644_v58  ;;  %v4332_v28 = vsub.f32 %v10622_v54, %v10644_v58  ;;  %v4333_v24 = vsub.f32 %v10630_v56, %v10644_v58  ;;  %v4303_v10 = vsub.f32 %v10239_v17, %v10644_v58 }
 0x60d   : > { %v4289_v46 = vsub.f32 %v4287_v21, %v4288_v23  ;;  %v4304_v15 = vsub.f32 %v10243_v47, %v10644_v58  ;;  %v4305_v3 = vsub.f32 %v10255_v60, %v10644_v58  ;;  %v4306_v61 = vsub.f32 %v10262_v36, %v10644_v58 }
 0x60e   : > { %v4307_v4 = vsub.f32 %v10274_v55, %v10644_v58  ;;  %v4308_v17 = vsub.f32 %v10278_v43, %v10644_v58  ;;  %v4309_v47 = vsub.f32 %v10290_v53, %v10644_v58  ;;  %v4310_v60 = vsub.f32 %v10294_v44, %v10644_v58 }
 0x60f   : > { %v4290_v1 = vmax.f32 %v4289_v46, 0.0  ;;  %v4311_v36 = vsub.f32 %v10307_v20, %v10644_v58  ;;  %v4312_v22 = vsub.f32 %v10311_v52, %v10644_v58  ;;  %v4313_v55 = vsub.f32 %v13310_v31, %v10644_v58 }
 0x610   : > { %v4314_v43 = vsub.f32 %v13311_v51, %v10644_v58  ;;  %v4315_v5 = vsub.f32 %v13312_v42, %v10644_v58  ;;  %v4316_v44 = vsub.f32 %v13313_v11, %v10644_v58  ;;  %v4317_v20 = vsub.f32 %v10360_v48, %v10644_v58 }
 0x611   : > { %v4291_v34 = vadd.f32 1e-05, %v4290_v1  ;;  %v4318_v52 = vsub.f32 %v10364_v27, %v10644_v58  ;;  %v4319_v18 = vsub.f32 %v10369_v14, %v10644_v58  ;;  %v4320_v29 = vsub.f32 %v10373_v50, %v10644_v58 }
 0x612   : > { %v4321_v62 = vsub.f32 %v10382_v2, %v10644_v58  ;;  %v4322_v39 = vsub.f32 %v10392_v49, %v10644_v58  ;;  %v4323_v27 = vsub.f32 %v10398_v32, %v10644_v58  ;;  %v4324_v14 = vsub.f32 %v10536_v7, %v10644_v58 }
 0x613   : > { %5504 = vrsqrt.f32 %v4291_v34  ;;  %vm4298_vm6 = vweird.f32 %v4291_v34  ;;  %v4325_v50 = vsub.f32 %v10545_v13, %v10644_v58  ;;  %v4326_v2 = vsub.f32 %v10562_v57, %v10644_v58 }
 0x614   : > { %v4327_v49 = vsub.f32 %v10572_v26, %v10644_v58  ;;  %v4328_v30 = vsub.f32 %v10579_v6, %v10644_v58  ;;  %v4329_v63 = vsub.f32 %v10589_v25, %v10644_v58 }
 0x619   : > { %v5505_v9 = vpop.eup %5504 }
 0x61a   : > { %v4293_v59 = vmul.f32 %v5505_v9, %v4291_v34  ;;  %vm4299_vm0 = vweird.f32 %v5505_v9 }
 0x61b   : > { %vm4300_vm12 = vmor %vm4298_vm6, %vm4299_vm0 }
 0x61c   : > { %v4294_v19 = vmul.f32 %v5505_v9, %v4293_v59  ;;  %vm13326_vm0 = vmmov %vm13298_vm1 }
 0x61d   : > { %vm13327_vm6 = vmmov %vm13326_vm0 }
 0x61e   : > { %v4295_v45 = vmul.f32 0.5, %v4294_v19 }
 0x620   : > { %v4296_v38 = vsub.f32 1.5, %v4295_v45 }
 0x622   : > { %v4297_v33 = vmul.f32 %v5505_v9, %v4296_v38 }
 0x624   : > { %v4301_v16 = vsel %vm4300_vm12, %v5505_v9, %v4297_v33  ;;  %vm13328_vm12 = vmmov %vm13326_vm0 }
 0x625   : > { %v4302_v53 = vmul.f32 %v4301_v16, %v4114_v12 }
 0x627   : > { %v4335_v48 = vperm.slane %v4302_v53, 0 }
 0x629   : > { %v4367_v21 = vmul.f32 %v4335_v48, %v4334_v0  ;;  %v4336_v32 = vmul.f32 %v4335_v48, %v4303_v10  ;;  %v4337_v23 = vmul.f32 %v4335_v48, %v4304_v15  ;;  %v4338_v46 = vmul.f32 %v4335_v48, %v4305_v3 }
 0x62a   : > { %v4339_v7 = vmul.f32 %v4335_v48, %v4306_v61  ;;  %v4340_v1 = vmul.f32 %v4335_v48, %v4307_v4  ;;  %v4341_v34 = vmul.f32 %v4335_v48, %v4308_v17  ;;  %v4342_v13 = vmul.f32 %v4335_v48, %v4309_v47 }
 0x62b   : > { %v10721_v9 = vadd.f32 %v10704_v41, %v4367_v21  ;;  %v10723_v57 = vmul.f32 %v4335_v48, %v4310_v60  ;;  %v4344_v26 = vmul.f32 %v4335_v48, %v4311_v36  ;;  %v4345_v59 = vmul.f32 %v4335_v48, %v4312_v22 }
 0x62c   : > { %v4346_v19 = vmul.f32 %v4335_v48, %v4313_v55  ;;  %v4347_v6 = vmul.f32 %v4335_v48, %v4314_v43  ;;  %v4348_v45 = vmul.f32 %v4335_v48, %v4315_v5  ;;  %v4349_v38 = vmul.f32 %v4335_v48, %v4316_v44 }
 0x62d   : > { %v4350_v25 = vmul.f32 %v4335_v48, %v4317_v20  ;;  %v4351_v0 = vmul.f32 %v4335_v48, %v4318_v52  ;;  %v4352_v10 = vmul.f32 %v4335_v48, %v4319_v18  ;;  %v4353_v15 = vmul.f32 %v4335_v48, %v4320_v29 }
 0x62e   : > { %v4354_v3 = vmul.f32 %v4335_v48, %v4321_v62  ;;  %v4355_v61 = vmul.f32 %v4335_v48, %v4322_v39  ;;  %v4356_v12 = vmul.f32 %v4335_v48, %v4323_v27  ;;  %v4357_v33 = vmul.f32 %v4335_v48, %v4324_v14 }
 0x62f   : > { %v4358_v4 = vmul.f32 %v4335_v48, %v4325_v50  ;;  %v4359_v17 = vmul.f32 %v4335_v48, %v4326_v2  ;;  %v4360_v47 = vmul.f32 %v4335_v48, %v4327_v49  ;;  %v4361_v16 = vmul.f32 %v4335_v48, %v4328_v30 }
 0x630   : > { %v4362_v60 = vmul.f32 %v4335_v48, %v4329_v63  ;;  %v4363_v36 = vmul.f32 %v4335_v48, %v4330_v40  ;;  %v4364_v22 = vmul.f32 %v4335_v48, %v4331_v8  ;;  %v4365_v31 = vmul.f32 %v4335_v48, %v4332_v28 }
 0x631   : > { %v4366_v55 = vmul.f32 %v4335_v48, %v4333_v24  ;;  %v4371_v51 = vadd.f32 %v10704_v41, %v4336_v32  ;;  %v4372_v43 = vadd.f32 %v10704_v41, %v4337_v23  ;;  %v4373_v42 = vadd.f32 %v10704_v41, %v4338_v46 }
 0x632   : > { %v4375_v35 = vadd.f32 %v10704_v41, %v4340_v1  ;;  %v4377_v40 = vadd.f32 %v10704_v41, %v4342_v13  ;;  %v4379_v37 = vadd.f32 %v10704_v41, %v4344_v26  ;;  %v4380_v8 = vadd.f32 %v10704_v41, %v4345_v59 }
 0x633   : > { %v4381_v54 = vadd.f32 %v10704_v41, %v4346_v19  ;;  %v4382_v28 = vadd.f32 %v10704_v41, %v4347_v6  ;;  %v4383_v56 = vadd.f32 %v10704_v41, %v4348_v45  ;;  %v4384_v58 = vadd.f32 %v10704_v41, %v4349_v38 }
 0x634   : > { %v4385_v24 = vadd.f32 %v10704_v41, %v4350_v25  ;;  %v4386_v5 = vadd.f32 %v10704_v41, %v4351_v0  ;;  %v4387_v53 = vadd.f32 %v10704_v41, %v4352_v10  ;;  %v4388_v11 = vadd.f32 %v10704_v41, %v4353_v15 }
 0x635   : > { %v4389_v44 = vadd.f32 %v10704_v41, %v4354_v3  ;;  %v4390_v20 = vadd.f32 %v10704_v41, %v4355_v61  ;;  %v4391_v52 = vadd.f32 %v10704_v41, %v4356_v12  ;;  %v4392_v18 = vadd.f32 %v10704_v41, %v4357_v33 }
 0x636   : > { %v4393_v29 = vadd.f32 %v10704_v41, %v4358_v4  ;;  %v4394_v62 = vadd.f32 %v10704_v41, %v4359_v17  ;;  %v4395_v39 = vadd.f32 %v10704_v41, %v4360_v47  ;;  %v4396_v48 = vadd.f32 %v10704_v41, %v4361_v16 }
 0x637   : > { %v4397_v27 = vadd.f32 %v10704_v41, %v4362_v60  ;;  %v4398_v14 = vadd.f32 %v10704_v41, %v4363_v36  ;;  %v4399_v50 = vadd.f32 %v10704_v41, %v4364_v22  ;;  %v4400_v2 = vadd.f32 %v10704_v41, %v4365_v31 }
 0x638   : > { %v4401_v49 = vadd.f32 %v10704_v41, %v4366_v55  ;;  %v4403_v30 = vmax.f32 %v4371_v51, 0.0  ;;  %v4404_v63 = vmax.f32 %v4372_v43, 0.0  ;;  %v4374_v21 = vadd.f32 %v10704_v41, %v4339_v7 }
 0x639   : > { %v4405_v32 = vmax.f32 %v4373_v42, 0.0  ;;  %v4376_v23 = vadd.f32 %v10704_v41, %v4341_v34  ;;  %v4407_v46 = vmax.f32 %v4375_v35, 0.0  ;;  %v4378_v19 = vadd.f32 %v10704_v41, %v10723_v57 }
 0x63a   : > { %v4435_v1 = vpack.c.bf16 %v4404_v63, %v4403_v30  ;;  %v4406_v13 = vmax.f32 %v4374_v21, 0.0  ;;  %v4409_v6 = vmax.f32 %v4377_v40, 0.0  ;;  %v4411_v7 = vmax.f32 %v4379_v37, 0.0 }
 0x63b   : > { %v4408_v26 = vmax.f32 %v4376_v23, 0.0  ;;  %v4410_v38 = vmax.f32 %v4378_v19, 0.0  ;;  %v4412_v0 = vmax.f32 %v4380_v8, 0.0  ;;  %v4413_v34 = vmax.f32 %v4381_v54, 0.0 }
 0x63c   : > { %5330 = vmatmul.msk.bf16.vlgmr.msra.gmra.mxu3 %vm13314_vm5, %v4435_v1  ;;  %v4436_v59 = vpack.c.bf16 %v4406_v13, %v4405_v32  ;;  %v4414_v15 = vmax.f32 %v4382_v28, 0.0  ;;  %v4415_v3 = vmax.f32 %v4383_v56, 0.0  ;;  %v4416_v61 = vmax.f32 %v4384_v58, 0.0 }
 0x63d   : > { %v4437_v45 = vpack.c.bf16 %v4408_v26, %v4407_v46  ;;  %v4438_v25 = vpack.c.bf16 %v4410_v38, %v4409_v6  ;;  %v4439_v10 = vpack.c.bf16 %v4412_v0, %v4411_v7  ;;  %v4417_v12 = vmax.f32 %v4385_v24, 0.0 }
 0x63e   : > { %v4418_v33 = vmax.f32 %v4386_v5, 0.0  ;;  %v4419_v4 = vmax.f32 %v4387_v53, 0.0  ;;  %v4420_v17 = vmax.f32 %v4388_v11, 0.0  ;;  %v4440_v41 = vpack.c.bf16 %v4414_v15, %v4413_v34 }
 0x63f   : > { %v4441_v57 = vpack.c.bf16 %v4416_v61, %v4415_v3  ;;  %v4421_v47 = vmax.f32 %v4389_v44, 0.0  ;;  %v4422_v16 = vmax.f32 %v4390_v20, 0.0  ;;  %v4423_v22 = vmax.f32 %v4391_v52, 0.0 }
 0x640   : > { %v4442_v60 = vpack.c.bf16 %v4418_v33, %v4417_v12  ;;  %v4443_v36 = vpack.c.bf16 %v4420_v17, %v4419_v4  ;;  %v4424_v31 = vmax.f32 %v4392_v18, 0.0  ;;  %v4425_v51 = vmax.f32 %v4393_v29, 0.0 }
 0x641   : > { %v4444_v55 = vpack.c.bf16 %v4422_v16, %v4421_v47  ;;  %v4426_v43 = vmax.f32 %v4394_v62, 0.0  ;;  %v4427_v42 = vmax.f32 %v4395_v39, 0.0  ;;  %v4428_v40 = vmax.f32 %v4396_v48, 0.0 }
 0x642   : > { %v4445_v35 = vpack.c.bf16 %v4424_v31, %v4423_v22  ;;  %v4429_v37 = vmax.f32 %v4397_v27, 0.0  ;;  %v4430_v8 = vmax.f32 %v4398_v14, 0.0  ;;  %v4431_v28 = vmax.f32 %v4399_v50, 0.0 }
 0x643   : > { %v4446_v54 = vpack.c.bf16 %v4426_v43, %v4425_v51  ;;  %v4432_v56 = vmax.f32 %v4400_v2, 0.0  ;;  %v4433_v58 = vmax.f32 %v4401_v49, 0.0  ;;  %v4447_v24 = vpack.c.bf16 %v4428_v40, %v4427_v42 }
 0x644   : > { %v4448_v5 = vpack.c.bf16 %v4430_v8, %v4429_v37  ;;  %v4434_v53 = vmax.f32 %v10721_v9, 0.0 }
 0x645   : > { %v4449_v11 = vpack.c.bf16 %v4432_v56, %v4431_v28 }
 0x646   : > { %v4450_v44 = vpack.c.bf16 %v4434_v53, %v4433_v58 }
 0x64c   : > { %5331 = vmatmul.msk.bf16.gmra.mxu3 %vm13315_vm14, %v4436_v59 }
 0x65c   : > { %5332 = vmatmul.msk.bf16.gmra.mxu3 %vm13298_vm1, %v4437_v45 }
 0x66c   : > { %5333 = vmatmul.msk.bf16.gmra.mxu3 %vm13316_vm9, %v4438_v25 }
 0x67c   : > { %5334 = vmatmul.msk.bf16.gmra.mxu3 %vm13317_vm15, %v4439_v10 }
 0x68c   : > { %5335 = vmatmul.msk.bf16.gmra.mxu3 %vm13318_vm7, %v4440_v41 }
 0x69c   : > { %5336 = vmatmul.msk.bf16.gmra.mxu3 %vm13319_vm11, %v4441_v57 }
 0x6ac   : > { %5337 = vmatmul.msk.bf16.gmra.mxu3 %vm13320_vm10, %v4442_v60 }
 0x6bc   : > { %5338 = vmatmul.msk.bf16.gmra.mxu3 %vm13321_vm3, %v4443_v36 }
 0x6bf   : > { %v10779_v20 = vpop.f32.mrf.mxu3 }
 0x6c0   : > { %v4660_v45 = vmul.f32 %v10779_v20, %v10779_v20 }
 0x6c7   : > { %v10781_v52 = vpop.f32.mrf.mxu3 }
 0x6c8   : > { %v4661_v6 = vmul.f32 %v10781_v52, %v10781_v52  ;;  %v4622_v38 = vadd.f32 %v10781_v52, %v10779_v20 }
 0x6ca   : > { %v4692_v0 = vadd.f32 %v4661_v6, %v4660_v45 }
 0x6cc   : > { %5339 = vmatmul.msk.bf16.gmra.mxu3 %vm13322_vm8, %v4444_v55 }
 0x6cf   : > { %v10784_v9 = vpop.f32.mrf.mxu3 }
 0x6d0   : > { %v4662_v25 = vmul.f32 %v10784_v9, %v10784_v9  ;;  %v4623_v7 = vadd.f32 %v4622_v38, %v10784_v9 }
 0x6d2   : > { %v4693_v15 = vadd.f32 %v4692_v0, %v4662_v25 }
 0x6d7   : > { %v10786_v18 = vpop.f32.mrf.mxu3 }
 0x6d8   : > { %v4663_v10 = vmul.f32 %v10786_v18, %v10786_v18  ;;  %v4624_v3 = vadd.f32 %v4623_v7, %v10786_v18 }
 0x6da   : > { %v4694_v33 = vadd.f32 %v4693_v15, %v4663_v10 }
 0x6dc   : > { %5340 = vmatmul.msk.bf16.gmra.mxu3 %vm13323_vm4, %v4445_v35 }
 0x6df   : > { %v10789_v29 = vpop.f32.mrf.mxu3 }
 0x6e0   : > { %v4664_v61 = vmul.f32 %v10789_v29, %v10789_v29  ;;  %v4625_v12 = vadd.f32 %v4624_v3, %v10789_v29 }
 0x6e2   : > { %v4695_v17 = vadd.f32 %v4694_v33, %v4664_v61 }
 0x6e7   : > { %v10791_v62 = vpop.f32.mrf.mxu3 }
 0x6e8   : > { %v4665_v4 = vmul.f32 %v10791_v62, %v10791_v62  ;;  %v4626_v41 = vadd.f32 %v4625_v12, %v10791_v62 }
 0x6ea   : > { %v4696_v16 = vadd.f32 %v4695_v17, %v4665_v4 }
 0x6ec   : > { %5341 = vmatmul.msk.bf16.gmra.mxu3 %vm13324_vm13, %v4446_v54 }
 0x6ef   : > { %v10794_v39 = vpop.f32.mrf.mxu3 }
 0x6f0   : > { %v4666_v57 = vmul.f32 %v10794_v39, %v10794_v39  ;;  %v4627_v47 = vadd.f32 %v4626_v41, %v10794_v39 }
 0x6f2   : > { %v4697_v22 = vadd.f32 %v4696_v16, %v4666_v57 }
 0x6f7   : > { %v10796_v48 = vpop.f32.mrf.mxu3 }
 0x6f8   : > { %v4667_v60 = vmul.f32 %v10796_v48, %v10796_v48  ;;  %v4628_v31 = vadd.f32 %v4627_v47, %v10796_v48 }
 0x6fa   : > { %v4698_v43 = vadd.f32 %v4697_v22, %v4667_v60 }
 0x6fc   : > { %5342 = vmatmul.msk.bf16.gmra.mxu3 %vm13325_vm2, %v4447_v24 }
 0x6ff   : > { %v10799_v27 = vpop.f32.mrf.mxu3 }
 0x700   : > { %v4668_v55 = vmul.f32 %v10799_v27, %v10799_v27  ;;  %v4629_v51 = vadd.f32 %v4628_v31, %v10799_v27 }
 0x702   : > { %v4699_v35 = vadd.f32 %v4698_v43, %v4668_v55 }
 0x707   : > { %v10801_v14 = vpop.f32.mrf.mxu3 }
 0x708   : > { %v4669_v42 = vmul.f32 %v10801_v14, %v10801_v14  ;;  %v4630_v40 = vadd.f32 %v4629_v51, %v10801_v14 }
 0x70a   : > { %v4700_v8 = vadd.f32 %v4699_v35, %v4669_v42 }
 0x70c   : > { %5343 = vmatmul.msk.bf16.gmra.mxu3 %vm13326_vm0, %v4448_v5 }
 0x70f   : > { %v10804_v50 = vpop.f32.mrf.mxu3 }
 0x710   : > { %v4670_v37 = vmul.f32 %v10804_v50, %v10804_v50  ;;  %v4631_v54 = vadd.f32 %v4630_v40, %v10804_v50 }
 0x712   : > { %v4701_v58 = vadd.f32 %v4700_v8, %v4670_v37 }
 0x717   : > { %v10806_v2 = vpop.f32.mrf.mxu3 }
 0x718   : > { %v4671_v28 = vmul.f32 %v10806_v2, %v10806_v2  ;;  %v4632_v24 = vadd.f32 %v4631_v54, %v10806_v2 }
 0x71a   : > { %v4702_v53 = vadd.f32 %v4701_v58, %v4671_v28 }
 0x71c   : > { %5344 = vmatmul.msk.bf16.gmra.mxu3 %vm13327_vm6, %v4449_v11 }
 0x71f   : > { %v10809_v49 = vpop.f32.mrf.mxu3 }
 0x720   : > { %v4672_v5 = vmul.f32 %v10809_v49, %v10809_v49  ;;  %v4633_v11 = vadd.f32 %v4632_v24, %v10809_v49 }
 0x722   : > { %v4703_v6 = vadd.f32 %v4702_v53, %v4672_v5 }
 0x727   : > { %v10811_v30 = vpop.f32.mrf.mxu3 }
 0x728   : > { %v4634_v45 = vadd.f32 %v4633_v11, %v10811_v30 }
 0x72c   : > { %5345 = vmatmul.msk.bf16.gmra.mxu3 %vm13328_vm12, %v4450_v44  ;;  %v4673_v44 = vmul.f32 %v10811_v30, %v10811_v30 }
 0x72e   : > { %v4704_v25 = vadd.f32 %v4703_v6, %v4673_v44 }
 0x72f   : > { %v10814_v63 = vpop.f32.mrf.mxu3 }
 0x730   : > { %v4674_v38 = vmul.f32 %v10814_v63, %v10814_v63  ;;  %v4635_v7 = vadd.f32 %v4634_v45, %v10814_v63 }
 0x732   : > { %v4705_v15 = vadd.f32 %v4704_v25, %v4674_v38 }
 0x737   : > { %v10816_v21 = vpop.f32.mrf.mxu3 }
 0x738   : > { %v4675_v0 = vmul.f32 %v10816_v21, %v10816_v21  ;;  %v4636_v3 = vadd.f32 %v4635_v7, %v10816_v21 }
 0x73a   : > { %v4706_v12 = vadd.f32 %v4705_v15, %v4675_v0 }
 0x73f   : > { %v10818_v32 = vpop.f32.mrf.mxu3 }
 0x740   : > { %v4676_v61 = vmul.f32 %v10818_v32, %v10818_v32  ;;  %v4637_v33 = vadd.f32 %v4636_v3, %v10818_v32 }
 0x742   : > { %v4707_v17 = vadd.f32 %v4706_v12, %v4676_v61 }
 0x747   : > { %v10820_v23 = vpop.f32.mrf.mxu3 }
 0x748   : > { %v4677_v4 = vmul.f32 %v10820_v23, %v10820_v23  ;;  %v4638_v41 = vadd.f32 %v4637_v33, %v10820_v23 }
 0x74a   : > { %v4708_v47 = vadd.f32 %v4707_v17, %v4677_v4 }
 0x74f   : > { %v10822_v46 = vpop.f32.mrf.mxu3 }
 0x750   : > { %v4678_v57 = vmul.f32 %v10822_v46, %v10822_v46  ;;  %v4639_v16 = vadd.f32 %v4638_v41, %v10822_v46 }
 0x752   : > { %v4709_v31 = vadd.f32 %v4708_v47, %v4678_v57 }
 0x757   : > { %v10824_v1 = vpop.f32.mrf.mxu3 }
 0x758   : > { %v4679_v60 = vmul.f32 %v10824_v1, %v10824_v1  ;;  %v4640_v55 = vadd.f32 %v4639_v16, %v10824_v1 }
 0x75a   : > { %v4710_v43 = vadd.f32 %v4709_v31, %v4679_v60 }
 0x75f   : > { %v10826_v13 = vpop.f32.mrf.mxu3 }
 0x760   : > { %v4680_v51 = vmul.f32 %v10826_v13, %v10826_v13  ;;  %v4641_v42 = vadd.f32 %v4640_v55, %v10826_v13 }
 0x762   : > { %v4711_v40 = vadd.f32 %v4710_v43, %v4680_v51 }
 0x767   : > { %v10828_v26 = vpop.f32.mrf.mxu3 }
 0x768   : > { %v4681_v35 = vmul.f32 %v10828_v26, %v10828_v26  ;;  %v4642_v37 = vadd.f32 %v4641_v42, %v10828_v26 }
 0x76a   : > { %v4712_v54 = vadd.f32 %v4711_v40, %v4681_v35 }
 0x76f   : > { %v10830_v59 = vpop.f32.mrf.mxu3 }
 0x770   : > { %v4682_v8 = vmul.f32 %v10830_v59, %v10830_v59  ;;  %v4643_v28 = vadd.f32 %v4642_v37, %v10830_v59 }
 0x772   : > { %v4713_v5 = vadd.f32 %v4712_v54, %v4682_v8 }
 0x777   : > { %v10832_v19 = vpop.f32.mrf.mxu3 }
 0x778   : > { %v4683_v58 = vmul.f32 %v10832_v19, %v10832_v19  ;;  %v4644_v53 = vadd.f32 %v4643_v28, %v10832_v19 }
 0x77a   : > { %v4714_v44 = vadd.f32 %v4713_v5, %v4683_v58 }
 0x77f   : > { %v10845_v34 = vpop.f32.mrf.mxu3 }
 0x780   : > { %v4684_v11 = vmul.f32 %v10845_v34, %v10845_v34  ;;  %v4645_v6 = vadd.f32 %v4644_v53, %v10845_v34 }
 0x782   : > { %v4715_v38 = vadd.f32 %v4714_v44, %v4684_v11 }
 0x787   : > { %v10859_v36 = vpop.f32.mrf.mxu3 }
 0x788   : > { %v4685_v45 = vmul.f32 %v10859_v36, %v10859_v36  ;;  %v4646_v25 = vadd.f32 %v4645_v6, %v10859_v36 }
 0x78a   : > { %v4716_v0 = vadd.f32 %v4715_v38, %v4685_v45 }
 0x78f   : > { %v10873_v56 = vpop.f32.mrf.mxu3 }
 0x790   : > { %v4686_v7 = vmul.f32 %v10873_v56, %v10873_v56  ;;  %v4647_v15 = vadd.f32 %v4646_v25, %v10873_v56 }
 0x792   : > { %v4717_v12 = vadd.f32 %v4716_v0, %v4686_v7 }
 0x797   : > { %v10887_v10 = vpop.f32.mrf.mxu3 }
 0x798   : > { %v4687_v3 = vmul.f32 %v10887_v10, %v10887_v10  ;;  %v4648_v33 = vadd.f32 %v4647_v15, %v10887_v10 }
 0x79a   : > { %v4718_v17 = vadd.f32 %v4717_v12, %v4687_v3 }
 0x79f   : > { %v10901_v22 = vpop.f32.mrf.mxu3 }
 0x7a0   : > { %v4688_v4 = vmul.f32 %v10901_v22, %v10901_v22  ;;  %v4649_v41 = vadd.f32 %v4648_v33, %v10901_v22 }
 0x7a2   : > { %v4719_v47 = vadd.f32 %v4718_v17, %v4688_v4 }
 0x7a7   : > { %v10915_v24 = vpop.f32.mrf.mxu3 }
 0x7a8   : > { %v4689_v57 = vmul.f32 %v10915_v24, %v10915_v24  ;;  %v4650_v16 = vadd.f32 %v4649_v41, %v10915_v24 }
 0x7aa   : > { %v4720_v31 = vadd.f32 %v4719_v47, %v4689_v57 }
 0x7af   : > { %v10929_v61 = vpop.f32.mrf.mxu3 }
 0x7b0   : > { %v4690_v60 = vmul.f32 %v10929_v61, %v10929_v61  ;;  %v4651_v55 = vadd.f32 %v4650_v16, %v10929_v61 }
 0x7b2   : > { %v4721_v43 = vadd.f32 %v4720_v31, %v4690_v60 }
 0x7b7   : > { %v4617_v51 = vpop.f32.mrf.mxu3 }
 0x7b8   : > { %v4652_v42 = vadd.f32 %v4651_v55, %v4617_v51  ;;  %v4691_v35 = vmul.f32 %v4617_v51, %v4617_v51  ;;  %v4620_v55 = vld [vmem:[%s11206_s9] sm:$0x1] }
 0x7ba   : > { %v4653_v40 = vrot.slane %v4652_v42, 4  ;;  %v4722_v37 = vadd.f32 %v4721_v43, %v4691_v35 }
 0x7bc   : > { %v4654_v8 = vadd.f32 %v4653_v40, %v4652_v42  ;;  %v4723_v54 = vrot.slane %v4722_v37, 4  ;;  %v10960_v40 = vld [vmem:[%s11207_s10] ss:$0 sm:$0xff] }
 0x7be   : > { %v4655_v28 = vrot.slane %v4654_v8, 2  ;;  %v4724_v58 = vadd.f32 %v4723_v54, %v4722_v37 }
 0x7c0   : > { %v4656_v5 = vadd.f32 %v4655_v28, %v4654_v8  ;;  %v4725_v53 = vrot.slane %v4724_v58, 2 }
 0x7c2   : > { %v4657_v11 = vrot.slane %v4656_v5, 1  ;;  %v4726_v44 = vadd.f32 %v4725_v53, %v4724_v58  ;;  %v5508_v58 = vld [vmem:[%s5795_s24 + $0xf8] sm:$0xff] }
 0x7c4   : > { %v4658_v6 = vadd.f32 %v4657_v11, %v4656_v5  ;;  %v4727_v45 = vrot.slane %v4726_v44, 1 }
 0x7c6   : > { %v10941_v38 = vmul.f32 0.00390625, %v4658_v6  ;;  %v4728_v25 = vadd.f32 %v4727_v45, %v4726_v44 }
 0x7c8   : > { %v4729_v7 = vmul.f32 0.00390625, %v4728_v25  ;;  %v4730_v0 = vmul.f32 %v10941_v38, %v10941_v38  ;;  %v4772_v33 = vsub.f32 %v10887_v10, %v10941_v38  ;;  %v4773_v4 = vsub.f32 %v10901_v22, %v10941_v38 }
 0x7c9   : > { %v4774_v17 = vsub.f32 %v10915_v24, %v10941_v38  ;;  %v4775_v41 = vsub.f32 %v10929_v61, %v10941_v38  ;;  %v4776_v37 = vsub.f32 %v4617_v51, %v10941_v38  ;;  %v4745_v53 = vsub.f32 %v10779_v20, %v10941_v38 }
 0x7ca   : > { %v4731_v15 = vsub.f32 %v4729_v7, %v4730_v0  ;;  %v4746_v51 = vsub.f32 %v10781_v52, %v10941_v38  ;;  %v4747_v11 = vsub.f32 %v10784_v9, %v10941_v38  ;;  %v4748_v44 = vsub.f32 %v10786_v18, %v10941_v38 }
 0x7cb   : > { %v4749_v6 = vsub.f32 %v10789_v29, %v10941_v38  ;;  %v4750_v20 = vsub.f32 %v10791_v62, %v10941_v38  ;;  %v4751_v9 = vsub.f32 %v10794_v39, %v10941_v38  ;;  %v4752_v18 = vsub.f32 %v10796_v48, %v10941_v38 }
 0x7cc   : > { %v4732_v3 = vmax.f32 %v4731_v15, 0.0  ;;  %v4753_v29 = vsub.f32 %v10799_v27, %v10941_v38  ;;  %v4755_v48 = vsub.f32 %v10804_v50, %v10941_v38 }
 0x7ce   : > { %v4733_v12 = vadd.f32 1e-05, %v4732_v3 }
 0x7d0   : > { %5506 = vrsqrt.f32 %v4733_v12  ;;  %vm4740_vm14 = vweird.f32 %v4733_v12 }
 0x7d6   : > { %v5507_v57 = vpop.eup %5506 }
 0x7d7   : > { %v4735_v47 = vmul.f32 %v5507_v57, %v4733_v12  ;;  %vm4741_vm5 = vweird.f32 %v5507_v57 }
 0x7d8   : > { %vm4742_vm1 = vmor %vm4740_vm14, %vm4741_vm5 }
 0x7d9   : > { %v4736_v16 = vmul.f32 %v5507_v57, %v4735_v47 }
 0x7db   : > { %v4737_v60 = vmul.f32 0.5, %v4736_v16  ;;  %v4756_v16 = vsub.f32 %v10806_v2, %v10941_v38 }
 0x7dd   : > { %v4738_v31 = vsub.f32 1.5, %v4737_v60 }
 0x7df   : > { %v4739_v43 = vmul.f32 %v5507_v57, %v4738_v31 }
 0x7e1   : > { %v4743_v42 = vsel %vm4742_vm1, %v5507_v57, %v4739_v43  ;;  %v4754_v57 = vsub.f32 %v10801_v14, %v10941_v38 }
 0x7e2   : > { %v4744_v35 = vmul.f32 %v4743_v42, %v4620_v55  ;;  %v4757_v55 = vsub.f32 %v10809_v49, %v10941_v38  ;;  %v4758_v49 = vsub.f32 %v10811_v30, %v10941_v38  ;;  %v4760_v30 = vsub.f32 %v10816_v21, %v10941_v38 }
 0x7e3   : > { %v4762_v21 = vsub.f32 %v10820_v23, %v10941_v38  ;;  %v4764_v23 = vsub.f32 %v10824_v1, %v10941_v38  ;;  %v4766_v1 = vsub.f32 %v10828_v26, %v10941_v38  ;;  %v4768_v26 = vsub.f32 %v10832_v19, %v10941_v38 }
 0x7e4   : > { %v10963_v8 = vperm.slane %v4744_v35, 0  ;;  %v5509_v35 = vld [vmem:[%s5795_s24] sm:$0xff]  ;;  %v4770_v19 = vsub.f32 %v10859_v36, %v10941_v38 }
 0x7e6   : > { %v4809_v54 = vmul.f32 %v10963_v8, %v4776_v37  ;;  %v4778_v45 = vmul.f32 %v10963_v8, %v4745_v53  ;;  %v4779_v25 = vmul.f32 %v10963_v8, %v4746_v51  ;;  %v4780_v7 = vmul.f32 %v10963_v8, %v4747_v11  ;;  %v5510_v37 = vld [vmem:[%s5795_s24 + $0x8] sm:$0xff]  ;;  %v5512_v51 = vld [vmem:[%s5795_s24 + $0x18] sm:$0xff] }
 0x7e7   : > { %v4781_v52 = vmul.f32 %v10963_v8, %v4748_v44  ;;  %v4782_v0 = vmul.f32 %v10963_v8, %v4749_v6  ;;  %v4783_v15 = vmul.f32 %v10963_v8, %v4750_v20  ;;  %v4784_v3 = vmul.f32 %v10963_v8, %v4751_v9  ;;  %v5514_v9 = vld [vmem:[%s5795_s24 + $0x28] sm:$0xff] }
 0x7e8   : > { %v4844_v28 = vadd.f32 %v10960_v40, %v4809_v54  ;;  %v4813_v62 = vadd.f32 %v10960_v40, %v4778_v45  ;;  %v4814_v12 = vadd.f32 %v10960_v40, %v4779_v25  ;;  %v4815_v39 = vadd.f32 %v10960_v40, %v4780_v7  ;;  %v5513_v25 = vld [vmem:[%s5795_s24 + $0x20] sm:$0xff] }
 0x7e9   : > { %v4785_v27 = vmul.f32 %v10963_v8, %v4752_v18  ;;  %v4816_v47 = vadd.f32 %v10960_v40, %v4781_v52  ;;  %v4786_v60 = vmul.f32 %v10963_v8, %v4753_v29  ;;  %v4817_v31 = vadd.f32 %v10960_v40, %v4782_v0 }
 0x7ea   : > { %v4876_v5 = vadd.f32 %v5508_v58, %v4844_v28  ;;  %v4787_v14 = vmul.f32 %v10963_v8, %v4754_v57  ;;  %v4788_v43 = vmul.f32 %v10963_v8, %v4755_v48  ;;  %v4818_v50 = vadd.f32 %v10960_v40, %v4783_v15  ;;  %v5511_v28 = vld [vmem:[%s5795_s24 + $0x10] sm:$0xff] }
 0x7eb   : > { %v4819_v42 = vadd.f32 %v10960_v40, %v4784_v3  ;;  %v4845_v2 = vadd.f32 %v5509_v35, %v4813_v62  ;;  %v4846_v54 = vadd.f32 %v5510_v37, %v4814_v12  ;;  %v4847_v58 = vadd.f32 %v5511_v28, %v4815_v39  ;;  %v5515_v15 = vld [vmem:[%s5795_s24 + $0x30] sm:$0xff]  ;;  %v5516_v39 = vld [vmem:[%s5795_s24 + $0x38] sm:$0xff] }
 0x7ec   : > { %4908 = vst [vmem:[%s10970_s15 + $0xf8] sm:$0xff] %v4876_v5  ;;  %v4789_v5 = vmul.f32 %v10963_v8, %v4756_v16  ;;  %v4820_v53 = vadd.f32 %v10960_v40, %v4785_v27  ;;  %v4848_v11 = vadd.f32 %v5512_v51, %v4816_v47  ;;  %v4759_v44 = vsub.f32 %v10814_v63, %v10941_v38  ;;  %v5517_v47 = vld [vmem:[%s5795_s24 + $0x40] sm:$0xff] }
 0x7ed   : > { %v4790_v6 = vmul.f32 %v10963_v8, %v4757_v55  ;;  %v4821_v45 = vadd.f32 %v10960_v40, %v4786_v60  ;;  %v4849_v7 = vadd.f32 %v5513_v25, %v4817_v31  ;;  %4877 = vst [vmem:[%s10970_s15] sm:$0xff] %v4845_v2  ;;  %v4791_v20 = vmul.f32 %v10963_v8, %v4758_v49  ;;  %v5518_v55 = vld [vmem:[%s5795_s24 + $0x48] sm:$0xff] }
 0x7ee   : > { %v4822_v52 = vadd.f32 %v10960_v40, %v4787_v14  ;;  %v4850_v0 = vadd.f32 %v5514_v9, %v4818_v50  ;;  %4878 = vst [vmem:[%s10970_s15 + $0x8] sm:$0xff] %v4846_v54  ;;  %v4761_v63 = vsub.f32 %v10818_v32, %v10941_v38  ;;  %v4792_v18 = vmul.f32 %v10963_v8, %v4759_v44  ;;  %v5520_v54 = vld [vmem:[%s5795_s24 + $0x58] sm:$0xff]  ;;  %v5522_v44 = vld [vmem:[%s5795_s24 + $0x68] sm:$0xff] }
 0x7ef   : > { %v4823_v29 = vadd.f32 %v10960_v40, %v4788_v43  ;;  %v4851_v3 = vadd.f32 %v5515_v15, %v4819_v42  ;;  %4879 = vst [vmem:[%s10970_s15 + $0x10] sm:$0xff] %v4847_v58  ;;  %v4793_v62 = vmul.f32 %v10963_v8, %v4760_v30  ;;  %v4824_v12 = vadd.f32 %v10960_v40, %v4789_v5  ;;  %v5519_v42 = vld [vmem:[%s5795_s24 + $0x50] sm:$0xff]  ;;  %v5521_v5 = vld [vmem:[%s5795_s24 + $0x60] sm:$0xff]  ;;  %v5524_v9 = vld [vmem:[%s5795_s24 + $0x78] sm:$0xff] }
 0x7f0   : > { %v4852_v57 = vadd.f32 %v5516_v39, %v4820_v53  ;;  %4880 = vst [vmem:[%s10970_s15 + $0x18] sm:$0xff] %v4848_v11  ;;  %v4763_v32 = vsub.f32 %v10822_v46, %v10941_v38  ;;  %v4794_v48 = vmul.f32 %v10963_v8, %v4761_v63  ;;  %v4825_v27 = vadd.f32 %v10960_v40, %v4790_v6  ;;  %v5527_v39 = vld [vmem:[%s5795_s24 + $0x90] sm:$0xff] }
 0x7f1   : > { %v4853_v16 = vadd.f32 %v5517_v47, %v4821_v45  ;;  %4881 = vst [vmem:[%s10970_s15 + $0x20] sm:$0xff] %v4849_v7  ;;  %v4795_v60 = vmul.f32 %v10963_v8, %v4762_v21  ;;  %v4826_v31 = vadd.f32 %v10960_v40, %v4791_v20  ;;  %v4854_v14 = vadd.f32 %v5518_v55, %v4822_v52  ;;  %v5523_v7 = vld [vmem:[%s5795_s24 + $0x70] sm:$0xff]  ;;  %v5526_v21 = vld [vmem:[%s5795_s24 + $0x88] sm:$0xff] }
 0x7f2   : > { %4882 = vst [vmem:[%s10970_s15 + $0x28] sm:$0xff] %v4850_v0  ;;  %v4765_v46 = vsub.f32 %v10826_v13, %v10941_v38  ;;  %v4796_v43 = vmul.f32 %v10963_v8, %v4763_v32  ;;  %v4827_v50 = vadd.f32 %v10960_v40, %v4792_v18  ;;  %v4855_v35 = vadd.f32 %v5519_v42, %v4823_v29  ;;  %v5525_v29 = vld [vmem:[%s5795_s24 + $0x80] sm:$0xff]  ;;  %v5530_v55 = vld [vmem:[%s5795_s24 + $0xa8] sm:$0xff] }
 0x7f3   : > { %4883 = vst [vmem:[%s10970_s15 + $0x30] sm:$0xff] %v4851_v3  ;;  %v4797_v2 = vmul.f32 %v10963_v8, %v4764_v23  ;;  %v4828_v37 = vadd.f32 %v10960_v40, %v4793_v62  ;;  %v4856_v28 = vadd.f32 %v5520_v54, %v4824_v12  ;;  %v4767_v13 = vsub.f32 %v10830_v59, %v10941_v38  ;;  %v5534_v42 = vld [vmem:[%s5795_s24 + $0xc8] sm:$0xff]  ;;  %v5536_v54 = vld [vmem:[%s5795_s24 + $0xd8] sm:$0xff] }
 0x7f4   : > { %4884 = vst [vmem:[%s10970_s15 + $0x38] sm:$0xff] %v4852_v57  ;;  %v4798_v58 = vmul.f32 %v10963_v8, %v4765_v46  ;;  %v4829_v49 = vadd.f32 %v10960_v40, %v4794_v48  ;;  %v4857_v53 = vadd.f32 %v5521_v5, %v4825_v27  ;;  %v4799_v51 = vmul.f32 %v10963_v8, %v4766_v1  ;;  %v5528_v27 = vld [vmem:[%s5795_s24 + $0x98] sm:$0xff]  ;;  %v5531_v46 = vld [vmem:[%s5795_s24 + $0xb0] sm:$0xff] }
 0x7f5   : > { %4885 = vst [vmem:[%s10970_s15 + $0x40] sm:$0xff] %v4853_v16  ;;  %v4830_v11 = vadd.f32 %v10960_v40, %v4795_v60  ;;  %v4858_v6 = vadd.f32 %v5522_v44, %v4826_v31  ;;  %v4769_v59 = vsub.f32 %v10845_v34, %v10941_v38  ;;  %v4800_v45 = vmul.f32 %v10963_v8, %v4767_v13  ;;  %v5529_v60 = vld [vmem:[%s5795_s24 + $0xa0] sm:$0xff] }
 0x7f6   : > { %4886 = vst [vmem:[%s10970_s15 + $0x48] sm:$0xff] %v4854_v14  ;;  %v4831_v25 = vadd.f32 %v10960_v40, %v4796_v43  ;;  %v4859_v30 = vadd.f32 %v5523_v7, %v4827_v50  ;;  %v4801_v20 = vmul.f32 %v10963_v8, %v4768_v26  ;;  %v4832_v52 = vadd.f32 %v10960_v40, %v4797_v2  ;;  %v5532_v43 = vld [vmem:[%s5795_s24 + $0xb8] sm:$0xff]  ;;  %v5535_v2 = vld [vmem:[%s5795_s24 + $0xd0] sm:$0xff]  ;;  %v5537_v13 = vld [vmem:[%s5795_s24 + $0xe0] sm:$0xff] }
 0x7f7   : > { %4887 = vst [vmem:[%s10970_s15 + $0x50] sm:$0xff] %v4855_v35  ;;  %v4860_v34 = vadd.f32 %v5524_v9, %v4828_v37  ;;  %v4771_v0 = vsub.f32 %v10873_v56, %v10941_v38  ;;  %v4802_v63 = vmul.f32 %v10963_v8, %v4769_v59  ;;  %v4833_v18 = vadd.f32 %v10960_v40, %v4798_v58  ;;  %v5533_v38 = vld [vmem:[%s5795_s24 + $0xc0] sm:$0xff] }
 0x7f8   : > { %4888 = vst [vmem:[%s10970_s15 + $0x58] sm:$0xff] %v4856_v28  ;;  %v4861_v36 = vadd.f32 %v5525_v29, %v4829_v49  ;;  %v4803_v15 = vmul.f32 %v10963_v8, %v4770_v19  ;;  %v4834_v3 = vadd.f32 %v10960_v40, %v4799_v51  ;;  %v4862_v62 = vadd.f32 %v5526_v21, %v4830_v11  ;;  %v5538_v49 = vld [vmem:[%s5795_s24 + $0xe8] sm:$0xff] }
 0x7f9   : > { %4889 = vst [vmem:[%s10970_s15 + $0x60] sm:$0xff] %v4857_v53  ;;  %v4804_v56 = vmul.f32 %v10963_v8, %v4771_v0  ;;  %v4835_v12 = vadd.f32 %v10960_v40, %v4800_v45  ;;  %v4863_v57 = vadd.f32 %v5527_v39, %v4831_v25  ;;  %v4805_v32 = vmul.f32 %v10963_v8, %v4772_v33 }
 0x7fa   : > { %4890 = vst [vmem:[%s10970_s15 + $0x68] sm:$0xff] %v4858_v6  ;;  %v4836_v48 = vadd.f32 %v10960_v40, %v4801_v20  ;;  %v4864_v47 = vadd.f32 %v5528_v27, %v4832_v52  ;;  %v4806_v16 = vmul.f32 %v10963_v8, %v4773_v4  ;;  %v4837_v23 = vadd.f32 %v10960_v40, %v4802_v63 }
 0x7fb   : > { %4891 = vst [vmem:[%s10970_s15 + $0x70] sm:$0xff] %v4859_v30  ;;  %v4865_v10 = vadd.f32 %v5529_v60, %v4833_v18  ;;  %v4807_v33 = vmul.f32 %v10963_v8, %v4774_v17  ;;  %v4838_v31 = vadd.f32 %v10960_v40, %v4803_v15  ;;  %v4866_v22 = vadd.f32 %v5530_v55, %v4834_v3 }
 0x7fc   : > { %4892 = vst [vmem:[%s10970_s15 + $0x78] sm:$0xff] %v4860_v34  ;;  %v4808_v4 = vmul.f32 %v10963_v8, %v4775_v41  ;;  %v4839_v14 = vadd.f32 %v10960_v40, %v4804_v56  ;;  %v4867_v24 = vadd.f32 %v5531_v46, %v4835_v12  ;;  %v4840_v17 = vadd.f32 %v10960_v40, %v4805_v32 }
 0x7fd   : > { %4893 = vst [vmem:[%s10970_s15 + $0x80] sm:$0xff] %v4861_v36  ;;  %v4868_v50 = vadd.f32 %v5532_v43, %v4836_v48  ;;  %v4841_v61 = vadd.f32 %v10960_v40, %v4806_v16  ;;  %v4869_v41 = vadd.f32 %v5533_v38, %v4837_v23  ;;  %v4842_v8 = vadd.f32 %v10960_v40, %v4807_v33 }
 0x7fe   : > { %4894 = vst [vmem:[%s10970_s15 + $0x88] sm:$0xff] %v4862_v62  ;;  %v4870_v35 = vadd.f32 %v5534_v42, %v4838_v31  ;;  %v4843_v1 = vadd.f32 %v10960_v40, %v4808_v4  ;;  %v4871_v37 = vadd.f32 %v5535_v2, %v4839_v14  ;;  %v4872_v28 = vadd.f32 %v5536_v54, %v4840_v17  ;;  %v5539_v40 = vld [vmem:[%s5795_s24 + $0xf0] sm:$0xff]  ;;  %s5560_s24 = scalar_lea.hbm %s11208_s11, 512 }
 0x7ff   : > { %4895 = vst [vmem:[%s10970_s15 + $0x90] sm:$0xff] %v4863_v57  ;;  %v4873_v58 = vadd.f32 %v5537_v13, %v4841_v61  ;;  %v4874_v5 = vadd.f32 %v5538_v49, %v4842_v8  ;;  %p5562_p1 = scmp.lt.s32.totalorder %s5560_s24, %s5556_s16 }
 0x800   : > { %4896 = vst [vmem:[%s10970_s15 + $0x98] sm:$0xff] %v4864_v47  ;;  %v4875_v53 = vadd.f32 %v5539_v40, %v4843_v1 }
 0x801   : > { %4897 = vst [vmem:[%s10970_s15 + $0xa0] sm:$0xff] %v4865_v10  ;;  %p5563_p2 = por %p5562_p1, %p5561_p0 }
 0x802   : > { %4898 = vst [vmem:[%s10970_s15 + $0xa8] sm:$0xff] %v4866_v22 }
 0x803   : > { %4899 = vst [vmem:[%s10970_s15 + $0xb0] sm:$0xff] %v4867_v24  ;;  %p5564_p3 = pnand %p5563_p2, %p5559_p13 }
 0x804   : > { %4900 = vst [vmem:[%s10970_s15 + $0xb8] sm:$0xff] %v4868_v50 }
 0x805   : > { %4901 = vst [vmem:[%s10970_s15 + $0xc0] sm:$0xff] %v4869_v41 }
 0x806   : > { %4902 = vst [vmem:[%s10970_s15 + $0xc8] sm:$0xff] %v4870_v35 }
 0x807   : > { %4903 = vst [vmem:[%s10970_s15 + $0xd0] sm:$0xff] %v4871_v37 }
 0x808   : > { %4904 = vst [vmem:[%s10970_s15 + $0xd8] sm:$0xff] %v4872_v28 }
 0x809   : > { %4905 = vst [vmem:[%s10970_s15 + $0xe0] sm:$0xff] %v4873_v58 }
 0x80a   : > { %4906 = vst [vmem:[%s10970_s15 + $0xe8] sm:$0xff] %v4874_v5 }
 0x80b   : > { %4907 = vst [vmem:[%s10970_s15 + $0xf0] sm:$0xff] %v4875_v53 }
 0x80c   : > { %5567 = shalt.err (!%p5564_p3)
}
 0x80d   : > { %s5606_s30 = smov 128   ;;  %s5607_s15 = smov 8  }
 0x80e   : > { %5413 = dma.vmem_to_hbm [thread:$0]  (%p5706_p5), %s4923_s29, 4096, %s4925_s12, %s4910_s13, %s5606_s30, %s5606_s30, %s5607_s15  }
 0x80f PF: > { %p5419_p4 = scmp.ge.s32.totalorder %s5602_s20, 2  ;;  %s4939_s21 = sand.u32 1, %s5590_s17  }
 0x810   : > { %s4940_s0 = scalar_lea.sflag [#allocation3], %s4939_s21 }
 0x811   : > { %p5416_p7 = pnand %p5419_p4, %p5710_p6 }
 0x813   : > { %p5417_p8 = pneg %p5416_p7 }
 0x815   : > { %5585 = dma.done.wait (%p5417_p8), %s4940_s0, 4096  }
 0x816   : > { %5587 = vsyncadd (%p5417_p8), %s4940_s0, 4294963200  ;;  %p21_p9 = scmp.ge.s32.totalorder %s5693_s23, 4   ;;  %s13329_s17 = smov %s5594_s18 }
 0x817   : > { %s13330_s18 = smov %s5598_s19  ;;  %s13331_s19 = smov %s5704_s26 }
 0x818   : > { %s13332_s20 = smov %s5693_s23  ;;  %23 = sbr.rel (!%p21_p9) target bundleno = 5 (0x5), region = 99 }
 0x81d   :  { %4946 = vsyncpa [#allocation3], 1 }
 0x81e   :  { %4948 = vsyncpa [#allocation3 + $0x1], 1 }

</bundles_post_ra>
